<compile_context>
chip_gen: v7x
topology: tpu7x:2x2x1
jax: 0.10.0
libtpu: 0.0.40
codegen_flags: <defaults>
</compile_context>

<pallas_src>
import functools
import math

import numpy as np

import jax
import jax.numpy as jnp
from jax.experimental import pallas as pl
from jax.experimental.pallas import tpu as pltpu


def _num_tensorcores():
    """2 on dual-TensorCore chips (v7x), else 1. Best-effort, safe fallback."""
    try:
        kind = jax.devices()[0].device_kind.lower()
    except Exception:
        return 1
    return 2 if ("v7" in kind or "7x" in kind) else 1


# ----------------------------------------------------------------------------
# Kernel 1: grayscale + determinant-of-Hessian blob response (stencils on MXU)
# ----------------------------------------------------------------------------
def _band(n, taps):
    """Banded row-operator matrix with replicate (clamped) boundary."""
    idx = np.arange(n)
    m = np.zeros((n, n), np.float32)
    for d, w in taps:
        np.add.at(m, (idx, np.clip(idx + d, 0, n - 1)), w)
    return m


_BLUR_TAPS = ((-2, 1.0 / 16.0), (-1, 4.0 / 16.0), (0, 6.0 / 16.0),
              (1, 4.0 / 16.0), (2, 1.0 / 16.0))
_D1_TAPS = ((1, 0.5), (-1, -0.5))
_D2_TAPS = ((1, 1.0), (0, -2.0), (-1, 1.0))


def _hessian_operators(H, W):
    """Left ([H,H]) / right ([W,W]) operators with blur + derivatives folded in.

      blur2 = Bh @ g @ Bw.T
      gxx   = Bh       @ g @ (D2w @ Bw).T
      gyy   = (D2h@Bh) @ g @ Bw.T
      gxy   = (D1h@Bh) @ g @ (D1w @ Bw).T
    """
    bh, bw = _band(H, _BLUR_TAPS), _band(W, _BLUR_TAPS)
    d1h, d2h = _band(H, _D1_TAPS), _band(H, _D2_TAPS)
    d1w, d2w = _band(W, _D1_TAPS), _band(W, _D2_TAPS)
    l0, lyy, lxy = bh, d2h @ bh, d1h @ bh
    r0, rxx, rxy = bw.T, (d2w @ bw).T, (d1w @ bw).T
    to_bf16 = lambda a: jnp.asarray(a, dtype=jnp.bfloat16)   # MXU operands
    return (to_bf16(l0), to_bf16(lyy), to_bf16(lxy),
            to_bf16(r0), to_bf16(rxx), to_bf16(rxy))


def gray_hessian_kernel(x_ref, l0_ref, lyy_ref, lxy_ref, r0_ref, rxx_ref, rxy_ref,
                        gray_ref, resp_ref):
    # x block: [Bblk, 3, H, W] f32
    x = x_ref[...]
    gray = 0.299 * x[:, 0] + 0.587 * x[:, 1] + 0.114 * x[:, 2]   # [Bblk, H, W], VPU
    gray_ref[...] = gray[:, None]

    l0 = l0_ref[...]
    lyy = lyy_ref[...]
    lxy = lxy_ref[...]
    r0 = r0_ref[...]
    rxx = rxx_ref[...]
    rxy = rxy_ref[...]

    # All stencils as small bf16 matmuls on the (otherwise idle) MXU; f32 accumulate.
    for b in range(gray.shape[0]):
        g = gray[b].astype(jnp.bfloat16)                          # [H, W]
        a0 = jnp.dot(l0, g, preferred_element_type=jnp.float32).astype(jnp.bfloat16)
        ayy = jnp.dot(lyy, g, preferred_element_type=jnp.float32).astype(jnp.bfloat16)
        axy = jnp.dot(lxy, g, preferred_element_type=jnp.float32).astype(jnp.bfloat16)
        gxx = jnp.dot(a0, rxx, preferred_element_type=jnp.float32)
        gyy = jnp.dot(ayy, r0, preferred_element_type=jnp.float32)
        gxy = jnp.dot(axy, rxy, preferred_element_type=jnp.float32)
        # response only feeds top-k ranking -> bf16 write halves output traffic
        resp_ref[b, 0, :, :] = (gxx * gyy - gxy * gxy).astype(resp_ref.dtype)


def _pick_batch_block(B, C, H, W):
    """Images per grid step: ~2 MiB of input per step (double-buffered input plus
    two outputs ~= 3.3x the input block), and keep >=2 grid steps when B > 1 so
    the 'parallel' axis can shard across TensorCores."""
    target = max(1, (2 << 20) // max(1, C * H * W * 4))
    if B > 1:
        target = min(target, max(1, B // 2))
    best = 1
    for d in range(1, min(B, target) + 1):
        if B % d == 0:
            best = d
    return best


def rgb_to_gray_and_hessian(x, batch_block=None):
    B, C, H, W = x.shape
    if batch_block is None:
        batch_block = _pick_batch_block(B, C, H, W)
    assert B % batch_block == 0
    l0, lyy, lxy, r0, rxx, rxy = _hessian_operators(H, W)
    # TODO(synk): for ~1 MP images, row-tile (bblk, C, TILE_H, W) with a halo so the
    #             whole-image block fits v7x's 64 MiB VMEM and yields >=2 grid steps.
    return pl.pallas_call(
        gray_hessian_kernel,
        out_shape=(jax.ShapeDtypeStruct((B, 1, H, W), jnp.float32),
                   jax.ShapeDtypeStruct((B, 1, H, W), jnp.bfloat16)),
        grid=(B // batch_block,),
        in_specs=[pl.BlockSpec((batch_block, C, H, W), lambda b: (b, 0, 0, 0)),
                  pl.BlockSpec((H, H), lambda b: (0, 0)),
                  pl.BlockSpec((H, H), lambda b: (0, 0)),
                  pl.BlockSpec((H, H), lambda b: (0, 0)),
                  pl.BlockSpec((W, W), lambda b: (0, 0)),
                  pl.BlockSpec((W, W), lambda b: (0, 0)),
                  pl.BlockSpec((W, W), lambda b: (0, 0))],
        out_specs=(pl.BlockSpec((batch_block, 1, H, W), lambda b: (b, 0, 0, 0)),
                   pl.BlockSpec((batch_block, 1, H, W), lambda b: (b, 0, 0, 0))),
        compiler_params=pltpu.CompilerParams(dimension_semantics=("parallel",)),
    )(x.astype(jnp.float32), l0, lyy, lxy, r0, rxx, rxy)


# ----------------------------------------------------------------------------
# Glue: keypoint selection -> LAFs, and patch extraction (separable bilinear)
# ----------------------------------------------------------------------------
def select_keypoints(resp, num_features, mr_size=6.0, sigma=1.6):
    B, _, H, W = resp.shape
    flat = resp.reshape(B, H * W)
    vals, idx = jax.lax.top_k(flat, num_features)            # [B, N]
    vals = vals.astype(jnp.float32)
    ys = (idx // W).astype(jnp.float32)
    xs = (idx % W).astype(jnp.float32)
    s = mr_size * sigma / 2.0                                 # patch half-extent in pixels
    ss = jnp.full_like(xs, s)
    zz = jnp.zeros_like(xs)
    row0 = jnp.stack([ss, zz, xs], axis=-1)
    row1 = jnp.stack([zz, ss, ys], axis=-1)
    lafs = jnp.stack([row0, row1], axis=-2)                   # [B, N, 2, 3]
    return lafs, vals


def _bilinear_weights(coords, n):
    # coords: [P] sample positions along an axis of length n  ->  [P, n] weights
    c = jnp.clip(coords, 0.0, n - 1.0)
    c0 = jnp.floor(c)
    c1 = jnp.minimum(c0 + 1.0, n - 1.0)
    w = c - c0
    i = jnp.arange(n, dtype=jnp.float32)
    w0 = (i[None, :] == c0[:, None]).astype(jnp.float32) * (1.0 - w)[:, None]
    w1 = (i[None, :] == c1[:, None]).astype(jnp.float32) * w[:, None]
    return w0 + w1


def extract_patches(gray, lafs, P):
    """Upright-LAF bilinear sampling is separable, so each patch is two small
    weight matmuls (Wy @ img @ Wx^T) instead of an XLA fancy-index gather."""
    # TODO(synk): fuse this into the descriptor kernel (scalar-prefetch coords +
    #             DMA'd row bands) so patches never round-trip HBM.
    B, _, H, W = gray.shape
    img = gray[:, 0]                                           # [B, H, W]
    t = (jnp.arange(P, dtype=jnp.float32) - (P - 1) / 2.0) / ((P - 1) / 2.0)

    def sample(img2d, laf):
        xs = laf[0, 0] * t + laf[0, 2]                         # [P] column coords
        ys = laf[1, 1] * t + laf[1, 2]                         # [P] row coords
        wx = _bilinear_weights(xs, W)                          # [P, W]
        wy = _bilinear_weights(ys, H)                          # [P, H]
        return wy @ img2d @ wx.T                               # [P, P]

    sample_n = jax.vmap(sample, in_axes=(None, 0))
    sample_bn = jax.vmap(sample_n, in_axes=(0, 0))
    patches = sample_bn(img, lafs)                             # [B, N, P, P]
    return patches[:, :, None]                                 # [B, N, 1, P, P]


# ----------------------------------------------------------------------------
# Kernel 2: SIFT descriptor (RootSIFT), lane-dense [tile, AB*SB^2] output
# ----------------------------------------------------------------------------
def _atan2_approx(y, x):
    # elementwise atan2 via polynomial; divide replaced by EUP reciprocal
    eps = 1e-12
    ax, ay = jnp.abs(x), jnp.abs(y)
    mn, mx = jnp.minimum(ax, ay), jnp.maximum(ax, ay)
    a = mn * pl.reciprocal(mx + eps, approx=True)
    s = a * a
    r = a * (0.99997726 + s * (-0.33262347 + s * (0.19354346 +
             s * (-0.11643287 + s * (0.05265332 + s * (-0.01172120))))))
    r = jnp.where(ay > ax, 0.5 * math.pi - r, r)
    r = jnp.where(x < 0.0, math.pi - r, r)
    r = jnp.where(y < 0.0, -r, r)
    return r


def sift_desc_kernel(p_ref, g_ref, w_ref, o_ref, *, angle_bins, patch_size):
    P = patch_size
    PP = P * P
    AB = angle_bins
    x = p_ref[...]           # [T, P*P]  (row-major flattened patches), f32
    gauss = g_ref[...]       # [1, P*P]
    pool = w_ref[...]        # [P*P, SB*SB], bf16 (MXU operand)
    T = x.shape[0]

    def shift(a, d):
        return pltpu.roll(a, (-d) % PP, axis=1)

    # TODO(synk): flat-index central differences wrap at patch borders
    # (kornia spatial_gradient uses replicate padding); interior is exact.
    gx = 0.5 * (shift(x, 1) - shift(x, -1))
    gy = 0.5 * (shift(x, P) - shift(x, -P))
    mag = jnp.sqrt(gx * gx + gy * gy + 1e-10) * gauss
    ori = _atan2_approx(gy, gx) + 2.0 * math.pi

    ab = float(AB)
    o_big = ori * (ab / (2.0 * math.pi))
    bo0f = jnp.floor(o_big)
    wo1 = o_big - bo0f
    # range wrap without a divide: o_big is in (AB/2, 3*AB/2], so one subtract suffices
    bo0 = jnp.where(bo0f >= ab, bo0f - ab, bo0f)               # in [0, AB)

    # hoisted out of the angle-bin loop (2 vmuls instead of 16)
    c0 = mag * (1.0 - wo1)
    c1 = mag * wo1

    # per-angle-bin soft histograms; mask reuse: (bo1 == k) <=> (bo0 == (k-1) mod AB)
    # bins built directly in bf16 (halves the concat materialization)
    prev_m = bo0 == float(AB - 1)
    bins = []
    for k in range(AB):
        mk = bo0 == float(k)
        bins.append((jnp.where(mk, c0, 0.0)
                     + jnp.where(prev_m, c1, 0.0)).astype(jnp.bfloat16))
        prev_m = mk

    # one stacked MXU matmul: [AB*T, P*P] x [P*P, SB*SB] (bf16 in, f32 accumulate)
    stacked = jnp.concatenate(bins, axis=0)                    # [AB*T, P*P] bf16
    raw = jnp.dot(stacked, pool, preferred_element_type=jnp.float32)   # [AB*T, SB2]

    # lane-dense reorder inside the kernel: desc[t, k*SB2 + s] = raw[k*T + t, s]
    desc = jnp.concatenate([raw[k * T:(k + 1) * T, :] for k in range(AB)],
                           axis=1)                             # [T, AB*SB2] = [T, 512]

    eps = 1e-8

    def _red(d):  # per-patch sum over the full 512-wide descriptor -> [T, 1]
        return jnp.sum(d, axis=-1, keepdims=True)

    desc = desc * jax.lax.rsqrt(_red(desc * desc) + eps)
    desc = jnp.clip(desc, 0.0, 0.2)
    desc = desc * jax.lax.rsqrt(_red(desc * desc) + eps)
    # RootSIFT: L1-normalize then sqrt (EUP reciprocal keeps the divide off the VALU)
    desc = jnp.sqrt(desc * pl.reciprocal(_red(jnp.abs(desc)) + eps, approx=True) + eps)
    o_ref[...] = desc                                          # lane-dense [T, 512] store


def _pick_desc_tile(BN, num_tc):
    """Big tiles fill the MXU (stacked matmul M = angle_bins*tile). On single-TC
    chips (v5e/v6e) use up to 256; only force >=2 grid steps on dual-TC v7x."""
    tile = min(256, pl.next_power_of_2(max(8, min(BN, 256))))
    if num_tc > 1:
        while tile > 8 and pl.cdiv(BN, tile) < 2:
            tile //= 2
    return max(8, tile)


def sift_descriptor(patches, angle_bins=8, spatial_bins=8, tile=None):
    BN, P, _ = patches.shape
    PP = P * P
    SB2 = spatial_bins * spatial_bins
    D = angle_bins * SB2

    if tile is None:
        tile = _pick_desc_tile(BN, _num_tensorcores())
    BN_pad = pl.cdiv(BN, tile) * tile

    flat = patches.reshape(BN, PP).astype(jnp.float32)
    if BN_pad != BN:
        flat = jnp.pad(flat, ((0, BN_pad - BN), (0, 0)))

    # Gaussian weighting window over the patch (sum-normalized)
    sigma = float(P) / math.sqrt(2.0)
    r = jnp.arange(P, dtype=jnp.float32) - (P - 1) / 2.0
    g1 = jnp.exp(-0.5 * (r / sigma) ** 2)
    g2 = jnp.outer(g1, g1)
    gauss = (g2 / jnp.sum(g2)).reshape(1, PP).astype(jnp.float32)

    # bilinear spatial-pooling weights: pixel (i,j) -> spatial bin (by,bx)
    ksp = P // spatial_bins
    centers = (jnp.arange(spatial_bins, dtype=jnp.float32) + 0.5) * ksp - 0.5
    pix = jnp.arange(P, dtype=jnp.float32)
    w1d = jnp.maximum(0.0, 1.0 - jnp.abs(pix[:, None] - centers[None, :]) / ksp)  # [P, SB]
    pool = (w1d[:, None, :, None] * w1d[None, :, None, :]).reshape(PP, SB2)
    pool = pool.astype(jnp.bfloat16)                           # MXU operand (f32 accumulate)

    kernel = functools.partial(sift_desc_kernel, angle_bins=angle_bins, patch_size=P)
    out = pl.pallas_call(
        kernel,
        out_shape=jax.ShapeDtypeStruct((BN_pad, D), jnp.float32),
        grid=(BN_pad // tile,),
        in_specs=[pl.BlockSpec((tile, PP), lambda i: (i, 0)),
                  pl.BlockSpec((1, PP), lambda i: (0, 0)),
                  pl.BlockSpec((PP, SB2), lambda i: (0, 0))],
        out_specs=pl.BlockSpec((tile, D), lambda i: (i, 0)),   # lane-dense (512-wide)
        compiler_params=pltpu.CompilerParams(
            dimension_semantics=("parallel",),
            vmem_limit_bytes=32 * 1024 * 1024),
    )(flat, gauss, pool)                                       # [BN_pad, D]
    return out[:BN]


# ----------------------------------------------------------------------------
# Full forward: (lafs, resps, descs) like SIFT.forward
# ----------------------------------------------------------------------------
def sift_forward(x, *, num_features=128, patch_size=32, angle_bins=8, spatial_bins=8):
    gray, resp = rgb_to_gray_and_hessian(x)                      # Pallas kernel
    lafs, resps = select_keypoints(resp, num_features)           # glue
    patches = extract_patches(gray, lafs, patch_size)            # glue (matmul sampling)
    B, N = patches.shape[:2]
    descs = sift_descriptor(patches.reshape(B * N, patch_size, patch_size),
                            angle_bins, spatial_bins)            # Pallas kernel
    return lafs, resps, descs.reshape(B, N, -1)


if __name__ == "__main__":
    key = jax.random.PRNGKey(0)
    # small shapes: batch=2, RGB, 128x128 image (lane-dense W), 16 keypoints, 32x32 patches
    x = jax.random.uniform(key, (2, 3, 128, 128), dtype=jnp.float32)

    fwd = jax.jit(functools.partial(sift_forward, num_features=16, patch_size=32,
                                    angle_bins=8, spatial_bins=8))
    lafs, resps, descs = fwd(x)
    jax.block_until_ready((lafs, resps, descs))

    assert lafs.shape == (2, 16, 2, 3)
    assert resps.shape == (2, 16)
    assert descs.shape == (2, 16, 8 * 8 * 8)          # angle_bins * spatial_bins^2 = 512
    assert bool(jnp.all(jnp.isfinite(descs)))
    print("KERNEL_OK")
</pallas_src>

<mosaic_0001>
module attributes {stable_mosaic.version = 11 : i64} {
  func.func @gray_hessian_kernel(%arg0: i32, %arg1: memref<1x3x128x128xf32, #tpu.memory_space<vmem>>, %arg2: memref<128x128xbf16, #tpu.memory_space<vmem>>, %arg3: memref<128x128xbf16, #tpu.memory_space<vmem>>, %arg4: memref<128x128xbf16, #tpu.memory_space<vmem>>, %arg5: memref<128x128xbf16, #tpu.memory_space<vmem>>, %arg6: memref<128x128xbf16, #tpu.memory_space<vmem>>, %arg7: memref<128x128xbf16, #tpu.memory_space<vmem>>, %arg8: memref<1x1x128x128xf32, #tpu.memory_space<vmem>>, %arg9: memref<1x1x128x128xbf16, #tpu.memory_space<vmem>>) attributes {dimension_semantics = [#tpu.dimension_semantics<parallel>], iteration_bounds = array<i64: 2>, scalar_prefetch = 0 : i64, scratch_operands = 0 : i64, tpu.core_type = #tpu.core_type<tc>, window_params = [{transform_indices = @transform_0, window_bounds = array<i64: 1, 3, 128, 128>}, {pipeline_mode = #tpu.pipeline_mode<synchronous>, transform_indices = @transform_1, window_bounds = array<i64: 128, 128>}, {pipeline_mode = #tpu.pipeline_mode<synchronous>, transform_indices = @transform_2, window_bounds = array<i64: 128, 128>}, {pipeline_mode = #tpu.pipeline_mode<synchronous>, transform_indices = @transform_3, window_bounds = array<i64: 128, 128>}, {pipeline_mode = #tpu.pipeline_mode<synchronous>, transform_indices = @transform_4, window_bounds = array<i64: 128, 128>}, {pipeline_mode = #tpu.pipeline_mode<synchronous>, transform_indices = @transform_5, window_bounds = array<i64: 128, 128>}, {pipeline_mode = #tpu.pipeline_mode<synchronous>, transform_indices = @transform_6, window_bounds = array<i64: 128, 128>}, {transform_indices = @transform_7, window_bounds = array<i64: 1, 1, 128, 128>}, {transform_indices = @transform_8, window_bounds = array<i64: 1, 1, 128, 128>}]} {
    %c0 = arith.constant 0 : index
    %c0_0 = arith.constant 0 : index
    %c0_1 = arith.constant 0 : index
    %c0_2 = arith.constant 0 : index
    %0 = vector.load %arg1[%c0, %c0_0, %c0_1, %c0_2] : memref<1x3x128x128xf32, #tpu.memory_space<vmem>>, vector<1x3x128x128xf32>
    %1 = vector.extract_strided_slice %0 {offsets = [0, 0, 0, 0], sizes = [1, 1, 128, 128], strides = [1, 1, 1, 1]} : vector<1x3x128x128xf32> to vector<1x1x128x128xf32>
    %2 = vector.shape_cast %1 : vector<1x1x128x128xf32> to vector<1x128x128xf32>
    %cst = arith.constant 2.990000e-01 : f32
    %3 = vector.broadcast %cst : f32 to vector<1x128x128xf32>
    %4 = arith.mulf %3, %2 : vector<1x128x128xf32>
    %5 = vector.extract_strided_slice %0 {offsets = [0, 1, 0, 0], sizes = [1, 1, 128, 128], strides = [1, 1, 1, 1]} : vector<1x3x128x128xf32> to vector<1x1x128x128xf32>
    %6 = vector.shape_cast %5 : vector<1x1x128x128xf32> to vector<1x128x128xf32>
    %cst_3 = arith.constant 5.870000e-01 : f32
    %7 = vector.broadcast %cst_3 : f32 to vector<1x128x128xf32>
    %8 = arith.mulf %7, %6 : vector<1x128x128xf32>
    %9 = arith.addf %4, %8 : vector<1x128x128xf32>
    %10 = vector.extract_strided_slice %0 {offsets = [0, 2, 0, 0], sizes = [1, 1, 128, 128], strides = [1, 1, 1, 1]} : vector<1x3x128x128xf32> to vector<1x1x128x128xf32>
    %11 = vector.shape_cast %10 : vector<1x1x128x128xf32> to vector<1x128x128xf32>
    %cst_4 = arith.constant 1.140000e-01 : f32
    %12 = vector.broadcast %cst_4 : f32 to vector<1x128x128xf32>
    %13 = arith.mulf %12, %11 : vector<1x128x128xf32>
    %14 = arith.addf %9, %13 : vector<1x128x128xf32>
    %15 = vector.shape_cast %14 : vector<1x128x128xf32> to vector<1x1x128x128xf32>
    %c0_5 = arith.constant 0 : index
    %c0_6 = arith.constant 0 : index
    %c0_7 = arith.constant 0 : index
    %c0_8 = arith.constant 0 : index
    %16 = vector.load %arg8[%c0_5, %c0_6, %c0_7, %c0_8] : memref<1x1x128x128xf32, #tpu.memory_space<vmem>>, vector<1x1x128x128xf32>
    tpu.vector_store %arg8[%c0_5, %c0_6, %c0_7, %c0_8], %15 {strides = array<i32>} : memref<1x1x128x128xf32, #tpu.memory_space<vmem>>, vector<1x1x128x128xf32>,
    %c0_9 = arith.constant 0 : index
    %c0_10 = arith.constant 0 : index
    %17 = vector.load %arg2[%c0_9, %c0_10] : memref<128x128xbf16, #tpu.memory_space<vmem>>, vector<128x128xbf16>
    %c0_11 = arith.constant 0 : index
    %c0_12 = arith.constant 0 : index
    %18 = vector.load %arg3[%c0_11, %c0_12] : memref<128x128xbf16, #tpu.memory_space<vmem>>, vector<128x128xbf16>
    %c0_13 = arith.constant 0 : index
    %c0_14 = arith.constant 0 : index
    %19 = vector.load %arg4[%c0_13, %c0_14] : memref<128x128xbf16, #tpu.memory_space<vmem>>, vector<128x128xbf16>
    %c0_15 = arith.constant 0 : index
    %c0_16 = arith.constant 0 : index
    %20 = vector.load %arg5[%c0_15, %c0_16] : memref<128x128xbf16, #tpu.memory_space<vmem>>, vector<128x128xbf16>
    %c0_17 = arith.constant 0 : index
    %c0_18 = arith.constant 0 : index
    %21 = vector.load %arg6[%c0_17, %c0_18] : memref<128x128xbf16, #tpu.memory_space<vmem>>, vector<128x128xbf16>
    %c0_19 = arith.constant 0 : index
    %c0_20 = arith.constant 0 : index
    %22 = vector.load %arg7[%c0_19, %c0_20] : memref<128x128xbf16, #tpu.memory_space<vmem>>, vector<128x128xbf16>
    %23 = vector.shape_cast %14 : vector<1x128x128xf32> to vector<128x128xf32>
    %24 = arith.truncf %23 : vector<128x128xf32> to vector<128x128xbf16>
    %cst_21 = arith.constant dense<0.000000e+00> : vector<128x128xf32>
    %25 = tpu.matmul %17, %24, %cst_21 {dimension_numbers = #tpu.dot_dimension_numbers<[1], [0], [0], [1], [0, 0, 1, 1], [], []>} : vector<128x128xbf16>, vector<128x128xbf16>, vector<128x128xf32> -> vector<128x128xf32>
    %26 = arith.truncf %25 : vector<128x128xf32> to vector<128x128xbf16>
    %cst_22 = arith.constant dense<0.000000e+00> : vector<128x128xf32>
    %27 = tpu.matmul %18, %24, %cst_22 {dimension_numbers = #tpu.dot_dimension_numbers<[1], [0], [0], [1], [0, 0, 1, 1], [], []>} : vector<128x128xbf16>, vector<128x128xbf16>, vector<128x128xf32> -> vector<128x128xf32>
    %28 = arith.truncf %27 : vector<128x128xf32> to vector<128x128xbf16>
    %cst_23 = arith.constant dense<0.000000e+00> : vector<128x128xf32>
    %29 = tpu.matmul %19, %24, %cst_23 {dimension_numbers = #tpu.dot_dimension_numbers<[1], [0], [0], [1], [0, 0, 1, 1], [], []>} : vector<128x128xbf16>, vector<128x128xbf16>, vector<128x128xf32> -> vector<128x128xf32>
    %30 = arith.truncf %29 : vector<128x128xf32> to vector<128x128xbf16>
    %cst_24 = arith.constant dense<0.000000e+00> : vector<128x128xf32>
    %31 = tpu.matmul %26, %21, %cst_24 {dimension_numbers = #tpu.dot_dimension_numbers<[1], [0], [0], [1], [0, 0, 1, 1], [], []>} : vector<128x128xbf16>, vector<128x128xbf16>, vector<128x128xf32> -> vector<128x128xf32>
    %cst_25 = arith.constant dense<0.000000e+00> : vector<128x128xf32>
    %32 = tpu.matmul %28, %20, %cst_25 {dimension_numbers = #tpu.dot_dimension_numbers<[1], [0], [0], [1], [0, 0, 1, 1], [], []>} : vector<128x128xbf16>, vector<128x128xbf16>, vector<128x128xf32> -> vector<128x128xf32>
    %cst_26 = arith.constant dense<0.000000e+00> : vector<128x128xf32>
    %33 = tpu.matmul %30, %22, %cst_26 {dimension_numbers = #tpu.dot_dimension_numbers<[1], [0], [0], [1], [0, 0, 1, 1], [], []>} : vector<128x128xbf16>, vector<128x128xbf16>, vector<128x128xf32> -> vector<128x128xf32>
    %34 = arith.mulf %31, %32 : vector<128x128xf32>
    %35 = arith.mulf %33, %33 : vector<128x128xf32>
    %36 = arith.subf %34, %35 : vector<128x128xf32>
    %37 = arith.truncf %36 : vector<128x128xf32> to vector<128x128xbf16>
    %c0_27 = arith.constant 0 : index
    %c0_28 = arith.constant 0 : index
    %c0_29 = arith.constant 0 : index
    %c0_30 = arith.constant 0 : index
    %38 = vector.load %arg9[%c0_27, %c0_28, %c0_29, %c0_30] : memref<1x1x128x128xbf16, #tpu.memory_space<vmem>>, vector<1x1x128x128xbf16>
    %39 = vector.shape_cast %38 : vector<1x1x128x128xbf16> to vector<128x128xbf16>
    %40 = vector.shape_cast %37 : vector<128x128xbf16> to vector<1x1x128x128xbf16>
    tpu.vector_store %arg9[%c0_27, %c0_28, %c0_29, %c0_30], %40 {strides = array<i32>} : memref<1x1x128x128xbf16, #tpu.memory_space<vmem>>, vector<1x1x128x128xbf16>,
    return
  }
  func.func @transform_0(%arg0: i32) -> (i32, i32, i32, i32) {
    %c0_i32 = arith.constant 0 : i32
    %c0_i32_0 = arith.constant 0 : i32
    %c0_i32_1 = arith.constant 0 : i32
    %c0_i32_2 = arith.constant 0 : i32
    return %arg0, %c0_i32, %c0_i32_0, %c0_i32_1 : i32, i32, i32, i32
  }
  func.func @transform_1(%arg0: i32) -> (i32, i32) {
    %c0_i32 = arith.constant 0 : i32
    %c0_i32_0 = arith.constant 0 : i32
    %c0_i32_1 = arith.constant 0 : i32
    return %c0_i32, %c0_i32_0 : i32, i32
  }
  func.func @transform_2(%arg0: i32) -> (i32, i32) {
    %c0_i32 = arith.constant 0 : i32
    %c0_i32_0 = arith.constant 0 : i32
    %c0_i32_1 = arith.constant 0 : i32
    return %c0_i32, %c0_i32_0 : i32, i32
  }
  func.func @transform_3(%arg0: i32) -> (i32, i32) {
    %c0_i32 = arith.constant 0 : i32
    %c0_i32_0 = arith.constant 0 : i32
    %c0_i32_1 = arith.constant 0 : i32
    return %c0_i32, %c0_i32_0 : i32, i32
  }
  func.func @transform_4(%arg0: i32) -> (i32, i32) {
    %c0_i32 = arith.constant 0 : i32
    %c0_i32_0 = arith.constant 0 : i32
    %c0_i32_1 = arith.constant 0 : i32
    return %c0_i32, %c0_i32_0 : i32, i32
  }
  func.func @transform_5(%arg0: i32) -> (i32, i32) {
    %c0_i32 = arith.constant 0 : i32
    %c0_i32_0 = arith.constant 0 : i32
    %c0_i32_1 = arith.constant 0 : i32
    return %c0_i32, %c0_i32_0 : i32, i32
  }
  func.func @transform_6(%arg0: i32) -> (i32, i32) {
    %c0_i32 = arith.constant 0 : i32
    %c0_i32_0 = arith.constant 0 : i32
    %c0_i32_1 = arith.constant 0 : i32
    return %c0_i32, %c0_i32_0 : i32, i32
  }
  func.func @transform_7(%arg0: i32) -> (i32, i32, i32, i32) {
    %c0_i32 = arith.constant 0 : i32
    %c0_i32_0 = arith.constant 0 : i32
    %c0_i32_1 = arith.constant 0 : i32
    %c0_i32_2 = arith.constant 0 : i32
    return %arg0, %c0_i32, %c0_i32_0, %c0_i32_1 : i32, i32, i32, i32
  }
  func.func @transform_8(%arg0: i32) -> (i32, i32, i32, i32) {
    %c0_i32 = arith.constant 0 : i32
    %c0_i32_0 = arith.constant 0 : i32
    %c0_i32_1 = arith.constant 0 : i32
    %c0_i32_2 = arith.constant 0 : i32
    return %arg0, %c0_i32, %c0_i32_0, %c0_i32_1 : i32, i32, i32, i32
  }
}

module attributes {stable_mosaic.version = 11 : i64} {
  func.func @sift_desc_kernel(%arg0: i32, %arg1: memref<32x1024xf32, #tpu.memory_space<vmem>>, %arg2: memref<1x1024xf32, #tpu.memory_space<vmem>>, %arg3: memref<1024x64xbf16, #tpu.memory_space<vmem>>, %arg4: memref<32x512xf32, #tpu.memory_space<vmem>>) attributes {dimension_semantics = [#tpu.dimension_semantics<parallel>], iteration_bounds = array<i64: 1>, scalar_prefetch = 0 : i64, scratch_operands = 0 : i64, tpu.core_type = #tpu.core_type<tc>, window_params = [{transform_indices = @transform_0, window_bounds = array<i64: 32, 1024>}, {pipeline_mode = #tpu.pipeline_mode<synchronous>, transform_indices = @transform_1, window_bounds = array<i64: 1, 1024>}, {pipeline_mode = #tpu.pipeline_mode<synchronous>, transform_indices = @transform_2, window_bounds = array<i64: 1024, 64>}, {transform_indices = @transform_3, window_bounds = array<i64: 32, 512>}]} {
    %c0 = arith.constant 0 : index
    %c0_0 = arith.constant 0 : index
    %0 = vector.load %arg1[%c0, %c0_0] : memref<32x1024xf32, #tpu.memory_space<vmem>>, vector<32x1024xf32>
    %c0_1 = arith.constant 0 : index
    %c0_2 = arith.constant 0 : index
    %1 = vector.load %arg2[%c0_1, %c0_2] : memref<1x1024xf32, #tpu.memory_space<vmem>>, vector<1x1024xf32>
    %c0_3 = arith.constant 0 : index
    %c0_4 = arith.constant 0 : index
    %2 = vector.load %arg3[%c0_3, %c0_4] : memref<1024x64xbf16, #tpu.memory_space<vmem>>, vector<1024x64xbf16>
    %c1023_i32 = arith.constant 1023 : i32
    %3 = tpu.dynamic_rotate %0 by %c1023_i32 dim 1 : vector<32x1024xf32>, i32 -> vector<32x1024xf32>
    %c1_i32 = arith.constant 1 : i32
    %4 = tpu.dynamic_rotate %0 by %c1_i32 dim 1 : vector<32x1024xf32>, i32 -> vector<32x1024xf32>
    %5 = arith.subf %3, %4 : vector<32x1024xf32>
    %cst = arith.constant 5.000000e-01 : f32
    %6 = vector.broadcast %cst : f32 to vector<32x1024xf32>
    %7 = arith.mulf %6, %5 : vector<32x1024xf32>
    %c992_i32 = arith.constant 992 : i32
    %8 = tpu.dynamic_rotate %0 by %c992_i32 dim 1 : vector<32x1024xf32>, i32 -> vector<32x1024xf32>
    %c32_i32 = arith.constant 32 : i32
    %9 = tpu.dynamic_rotate %0 by %c32_i32 dim 1 : vector<32x1024xf32>, i32 -> vector<32x1024xf32>
    %10 = arith.subf %8, %9 : vector<32x1024xf32>
    %cst_5 = arith.constant 5.000000e-01 : f32
    %11 = vector.broadcast %cst_5 : f32 to vector<32x1024xf32>
    %12 = arith.mulf %11, %10 : vector<32x1024xf32>
    %13 = arith.mulf %7, %7 : vector<32x1024xf32>
    %14 = arith.mulf %12, %12 : vector<32x1024xf32>
    %15 = arith.addf %13, %14 : vector<32x1024xf32>
    %cst_6 = arith.constant 1.000000e-10 : f32
    %16 = vector.broadcast %cst_6 : f32 to vector<32x1024xf32>
    %17 = arith.addf %15, %16 : vector<32x1024xf32>
    %18 = math.sqrt %17 : vector<32x1024xf32>
    %19 = vector.broadcast %1 : vector<1x1024xf32> to vector<32x1024xf32>
    %20 = arith.mulf %18, %19 : vector<32x1024xf32>
    %21 = math.absf %7 : vector<32x1024xf32>
    %22 = math.absf %12 : vector<32x1024xf32>
    %23 = arith.minimumf %21, %22 : vector<32x1024xf32>
    %24 = arith.maximumf %21, %22 : vector<32x1024xf32>
    %cst_7 = arith.constant 9.99999996E-13 : f32
    %25 = vector.broadcast %cst_7 : f32 to vector<32x1024xf32>
    %26 = arith.addf %24, %25 : vector<32x1024xf32>
    %27 = tpu.reciprocal %26 {approx = true} : vector<32x1024xf32> -> vector<32x1024xf32>
    %28 = arith.mulf %23, %27 : vector<32x1024xf32>
    %29 = arith.mulf %28, %28 : vector<32x1024xf32>
    %cst_8 = arith.constant -1.172120e-02 : f32
    %30 = vector.broadcast %cst_8 : f32 to vector<32x1024xf32>
    %31 = arith.mulf %29, %30 : vector<32x1024xf32>
    %cst_9 = arith.constant 0.0526533201 : f32
    %32 = vector.broadcast %cst_9 : f32 to vector<32x1024xf32>
    %33 = arith.addf %32, %31 : vector<32x1024xf32>
    %34 = arith.mulf %29, %33 : vector<32x1024xf32>
    %cst_10 = arith.constant -0.116432868 : f32
    %35 = vector.broadcast %cst_10 : f32 to vector<32x1024xf32>
    %36 = arith.addf %35, %34 : vector<32x1024xf32>
    %37 = arith.mulf %29, %36 : vector<32x1024xf32>
    %cst_11 = arith.constant 0.193543464 : f32
    %38 = vector.broadcast %cst_11 : f32 to vector<32x1024xf32>
    %39 = arith.addf %38, %37 : vector<32x1024xf32>
    %40 = arith.mulf %29, %39 : vector<32x1024xf32>
    %cst_12 = arith.constant -0.332623482 : f32
    %41 = vector.broadcast %cst_12 : f32 to vector<32x1024xf32>
    %42 = arith.addf %41, %40 : vector<32x1024xf32>
    %43 = arith.mulf %29, %42 : vector<32x1024xf32>
    %cst_13 = arith.constant 0.999977231 : f32
    %44 = vector.broadcast %cst_13 : f32 to vector<32x1024xf32>
    %45 = arith.addf %44, %43 : vector<32x1024xf32>
    %46 = arith.mulf %28, %45 : vector<32x1024xf32>
    %47 = arith.cmpf ogt, %22, %21 : vector<32x1024xf32>
    %cst_14 = arith.constant 1.57079637 : f32
    %48 = vector.broadcast %cst_14 : f32 to vector<32x1024xf32>
    %49 = arith.subf %48, %46 : vector<32x1024xf32>
    %50 = arith.select %47, %49, %46 : vector<32x1024xi1>, vector<32x1024xf32>
    %cst_15 = arith.constant 0.000000e+00 : f32
    %51 = vector.broadcast %cst_15 : f32 to vector<32x1024xf32>
    %52 = arith.cmpf olt, %7, %51 : vector<32x1024xf32>
    %cst_16 = arith.constant 3.14159274 : f32
    %53 = vector.broadcast %cst_16 : f32 to vector<32x1024xf32>
    %54 = arith.subf %53, %50 : vector<32x1024xf32>
    %55 = arith.select %52, %54, %50 : vector<32x1024xi1>, vector<32x1024xf32>
    %cst_17 = arith.constant 0.000000e+00 : f32
    %56 = vector.broadcast %cst_17 : f32 to vector<32x1024xf32>
    %57 = arith.cmpf olt, %12, %56 : vector<32x1024xf32>
    %cst_18 = arith.constant 0.000000e+00 : f32
    %58 = vector.broadcast %cst_18 : f32 to vector<32x1024xf32>
    %59 = arith.subf %58, %55 : vector<32x1024xf32>
    %60 = arith.select %57, %59, %55 : vector<32x1024xi1>, vector<32x1024xf32>
    %cst_19 = arith.constant 6.28318548 : f32
    %61 = vector.broadcast %cst_19 : f32 to vector<32x1024xf32>
    %62 = arith.addf %60, %61 : vector<32x1024xf32>
    %cst_20 = arith.constant 1.27323949 : f32
    %63 = vector.broadcast %cst_20 : f32 to vector<32x1024xf32>
    %64 = arith.mulf %62, %63 : vector<32x1024xf32>
    %65 = math.floor %64 : vector<32x1024xf32>
    %66 = arith.subf %64, %65 : vector<32x1024xf32>
    %cst_21 = arith.constant 8.000000e+00 : f32
    %67 = vector.broadcast %cst_21 : f32 to vector<32x1024xf32>
    %68 = arith.cmpf oge, %65, %67 : vector<32x1024xf32>
    %cst_22 = arith.constant 8.000000e+00 : f32
    %69 = vector.broadcast %cst_22 : f32 to vector<32x1024xf32>
    %70 = arith.subf %65, %69 : vector<32x1024xf32>
    %71 = arith.select %68, %70, %65 : vector<32x1024xi1>, vector<32x1024xf32>
    %cst_23 = arith.constant 1.000000e+00 : f32
    %72 = vector.broadcast %cst_23 : f32 to vector<32x1024xf32>
    %73 = arith.subf %72, %66 : vector<32x1024xf32>
    %74 = arith.mulf %20, %73 : vector<32x1024xf32>
    %75 = arith.mulf %20, %66 : vector<32x1024xf32>
    %cst_24 = arith.constant 7.000000e+00 : f32
    %76 = vector.broadcast %cst_24 : f32 to vector<32x1024xf32>
    %77 = arith.cmpf oeq, %71, %76 : vector<32x1024xf32>
    %cst_25 = arith.constant 0.000000e+00 : f32
    %78 = vector.broadcast %cst_25 : f32 to vector<32x1024xf32>
    %79 = arith.cmpf oeq, %71, %78 : vector<32x1024xf32>
    %cst_26 = arith.constant 0.000000e+00 : f32
    %80 = vector.broadcast %cst_26 : f32 to vector<32x1024xf32>
    %81 = arith.select %79, %74, %80 : vector<32x1024xi1>, vector<32x1024xf32>
    %cst_27 = arith.constant 0.000000e+00 : f32
    %82 = vector.broadcast %cst_27 : f32 to vector<32x1024xf32>
    %83 = arith.select %77, %75, %82 : vector<32x1024xi1>, vector<32x1024xf32>
    %84 = arith.addf %81, %83 : vector<32x1024xf32>
    %85 = arith.truncf %84 : vector<32x1024xf32> to vector<32x1024xbf16>
    %cst_28 = arith.constant 1.000000e+00 : f32
    %86 = vector.broadcast %cst_28 : f32 to vector<32x1024xf32>
    %87 = arith.cmpf oeq, %71, %86 : vector<32x1024xf32>
    %cst_29 = arith.constant 0.000000e+00 : f32
    %88 = vector.broadcast %cst_29 : f32 to vector<32x1024xf32>
    %89 = arith.select %87, %74, %88 : vector<32x1024xi1>, vector<32x1024xf32>
    %cst_30 = arith.constant 0.000000e+00 : f32
    %90 = vector.broadcast %cst_30 : f32 to vector<32x1024xf32>
    %91 = arith.select %79, %75, %90 : vector<32x1024xi1>, vector<32x1024xf32>
    %92 = arith.addf %89, %91 : vector<32x1024xf32>
    %93 = arith.truncf %92 : vector<32x1024xf32> to vector<32x1024xbf16>
    %cst_31 = arith.constant 2.000000e+00 : f32
    %94 = vector.broadcast %cst_31 : f32 to vector<32x1024xf32>
    %95 = arith.cmpf oeq, %71, %94 : vector<32x1024xf32>
    %cst_32 = arith.constant 0.000000e+00 : f32
    %96 = vector.broadcast %cst_32 : f32 to vector<32x1024xf32>
    %97 = arith.select %95, %74, %96 : vector<32x1024xi1>, vector<32x1024xf32>
    %cst_33 = arith.constant 0.000000e+00 : f32
    %98 = vector.broadcast %cst_33 : f32 to vector<32x1024xf32>
    %99 = arith.select %87, %75, %98 : vector<32x1024xi1>, vector<32x1024xf32>
    %100 = arith.addf %97, %99 : vector<32x1024xf32>
    %101 = arith.truncf %100 : vector<32x1024xf32> to vector<32x1024xbf16>
    %cst_34 = arith.constant 3.000000e+00 : f32
    %102 = vector.broadcast %cst_34 : f32 to vector<32x1024xf32>
    %103 = arith.cmpf oeq, %71, %102 : vector<32x1024xf32>
    %cst_35 = arith.constant 0.000000e+00 : f32
    %104 = vector.broadcast %cst_35 : f32 to vector<32x1024xf32>
    %105 = arith.select %103, %74, %104 : vector<32x1024xi1>, vector<32x1024xf32>
    %cst_36 = arith.constant 0.000000e+00 : f32
    %106 = vector.broadcast %cst_36 : f32 to vector<32x1024xf32>
    %107 = arith.select %95, %75, %106 : vector<32x1024xi1>, vector<32x1024xf32>
    %108 = arith.addf %105, %107 : vector<32x1024xf32>
    %109 = arith.truncf %108 : vector<32x1024xf32> to vector<32x1024xbf16>
    %cst_37 = arith.constant 4.000000e+00 : f32
    %110 = vector.broadcast %cst_37 : f32 to vector<32x1024xf32>
    %111 = arith.cmpf oeq, %71, %110 : vector<32x1024xf32>
    %cst_38 = arith.constant 0.000000e+00 : f32
    %112 = vector.broadcast %cst_38 : f32 to vector<32x1024xf32>
    %113 = arith.select %111, %74, %112 : vector<32x1024xi1>, vector<32x1024xf32>
    %cst_39 = arith.constant 0.000000e+00 : f32
    %114 = vector.broadcast %cst_39 : f32 to vector<32x1024xf32>
    %115 = arith.select %103, %75, %114 : vector<32x1024xi1>, vector<32x1024xf32>
    %116 = arith.addf %113, %115 : vector<32x1024xf32>
    %117 = arith.truncf %116 : vector<32x1024xf32> to vector<32x1024xbf16>
    %cst_40 = arith.constant 5.000000e+00 : f32
    %118 = vector.broadcast %cst_40 : f32 to vector<32x1024xf32>
    %119 = arith.cmpf oeq, %71, %118 : vector<32x1024xf32>
    %cst_41 = arith.constant 0.000000e+00 : f32
    %120 = vector.broadcast %cst_41 : f32 to vector<32x1024xf32>
    %121 = arith.select %119, %74, %120 : vector<32x1024xi1>, vector<32x1024xf32>
    %cst_42 = arith.constant 0.000000e+00 : f32
    %122 = vector.broadcast %cst_42 : f32 to vector<32x1024xf32>
    %123 = arith.select %111, %75, %122 : vector<32x1024xi1>, vector<32x1024xf32>
    %124 = arith.addf %121, %123 : vector<32x1024xf32>
    %125 = arith.truncf %124 : vector<32x1024xf32> to vector<32x1024xbf16>
    %cst_43 = arith.constant 6.000000e+00 : f32
    %126 = vector.broadcast %cst_43 : f32 to vector<32x1024xf32>
    %127 = arith.cmpf oeq, %71, %126 : vector<32x1024xf32>
    %cst_44 = arith.constant 0.000000e+00 : f32
    %128 = vector.broadcast %cst_44 : f32 to vector<32x1024xf32>
    %129 = arith.select %127, %74, %128 : vector<32x1024xi1>, vector<32x1024xf32>
    %cst_45 = arith.constant 0.000000e+00 : f32
    %130 = vector.broadcast %cst_45 : f32 to vector<32x1024xf32>
    %131 = arith.select %119, %75, %130 : vector<32x1024xi1>, vector<32x1024xf32>
    %132 = arith.addf %129, %131 : vector<32x1024xf32>
    %133 = arith.truncf %132 : vector<32x1024xf32> to vector<32x1024xbf16>
    %cst_46 = arith.constant 7.000000e+00 : f32
    %134 = vector.broadcast %cst_46 : f32 to vector<32x1024xf32>
    %135 = arith.cmpf oeq, %71, %134 : vector<32x1024xf32>
    %cst_47 = arith.constant 0.000000e+00 : f32
    %136 = vector.broadcast %cst_47 : f32 to vector<32x1024xf32>
    %137 = arith.select %135, %74, %136 : vector<32x1024xi1>, vector<32x1024xf32>
    %cst_48 = arith.constant 0.000000e+00 : f32
    %138 = vector.broadcast %cst_48 : f32 to vector<32x1024xf32>
    %139 = arith.select %127, %75, %138 : vector<32x1024xi1>, vector<32x1024xf32>
    %140 = arith.addf %137, %139 : vector<32x1024xf32>
    %141 = arith.truncf %140 : vector<32x1024xf32> to vector<32x1024xbf16>
    %142 = tpu.concatenate %85, %93, %101, %109, %117, %125, %133, %141 in 0 : vector<32x1024xbf16>, vector<32x1024xbf16>, vector<32x1024xbf16>, vector<32x1024xbf16>, vector<32x1024xbf16>, vector<32x1024xbf16>, vector<32x1024xbf16>, vector<32x1024xbf16> -> vector<256x1024xbf16>
    %cst_49 = arith.constant dense<0.000000e+00> : vector<256x64xf32>
    %143 = tpu.matmul %142, %2, %cst_49 {dimension_numbers = #tpu.dot_dimension_numbers<[1], [0], [0], [1], [0, 0, 1, 1], [], []>} : vector<256x1024xbf16>, vector<1024x64xbf16>, vector<256x64xf32> -> vector<256x64xf32>
    %144 = vector.extract_strided_slice %143 {offsets = [0, 0], sizes = [32, 64], strides = [1, 1]} : vector<256x64xf32> to vector<32x64xf32>
    %145 = vector.extract_strided_slice %143 {offsets = [32, 0], sizes = [32, 64], strides = [1, 1]} : vector<256x64xf32> to vector<32x64xf32>
    %146 = vector.extract_strided_slice %143 {offsets = [64, 0], sizes = [32, 64], strides = [1, 1]} : vector<256x64xf32> to vector<32x64xf32>
    %147 = vector.extract_strided_slice %143 {offsets = [96, 0], sizes = [32, 64], strides = [1, 1]} : vector<256x64xf32> to vector<32x64xf32>
    %148 = vector.extract_strided_slice %143 {offsets = [128, 0], sizes = [32, 64], strides = [1, 1]} : vector<256x64xf32> to vector<32x64xf32>
    %149 = vector.extract_strided_slice %143 {offsets = [160, 0], sizes = [32, 64], strides = [1, 1]} : vector<256x64xf32> to vector<32x64xf32>
    %150 = vector.extract_strided_slice %143 {offsets = [192, 0], sizes = [32, 64], strides = [1, 1]} : vector<256x64xf32> to vector<32x64xf32>
    %151 = vector.extract_strided_slice %143 {offsets = [224, 0], sizes = [32, 64], strides = [1, 1]} : vector<256x64xf32> to vector<32x64xf32>
    %152 = tpu.concatenate %144, %145, %146, %147, %148, %149, %150, %151 in 1 : vector<32x64xf32>, vector<32x64xf32>, vector<32x64xf32>, vector<32x64xf32>, vector<32x64xf32>, vector<32x64xf32>, vector<32x64xf32>, vector<32x64xf32> -> vector<32x512xf32>
    %153 = arith.mulf %152, %152 : vector<32x512xf32>
    %cst_50 = arith.constant dense<0.000000e+00> : vector<32xf32>
    %154 = vector.multi_reduction <add>, %153, %cst_50 [1] : vector<32x512xf32> to vector<32xf32>
    %155 = vector.shape_cast %154 : vector<32xf32> to vector<32x1xf32>
    %cst_51 = arith.constant 9.99999993E-9 : f32
    %156 = vector.broadcast %cst_51 : f32 to vector<32x1xf32>
    %157 = arith.addf %155, %156 : vector<32x1xf32>
    %158 = math.rsqrt %157 : vector<32x1xf32>
    %159 = vector.broadcast %158 : vector<32x1xf32> to vector<32x512xf32>
    %160 = arith.mulf %152, %159 : vector<32x512xf32>
    %cst_52 = arith.constant 0.000000e+00 : f32
    %cst_53 = arith.constant 2.000000e-01 : f32
    %161 = vector.broadcast %cst_52 : f32 to vector<32x512xf32>
    %162 = arith.maximumf %161, %160 : vector<32x512xf32>
    %163 = vector.broadcast %cst_53 : f32 to vector<32x512xf32>
    %164 = arith.minimumf %163, %162 : vector<32x512xf32>
    %165 = arith.mulf %164, %164 : vector<32x512xf32>
    %cst_54 = arith.constant dense<0.000000e+00> : vector<32xf32>
    %166 = vector.multi_reduction <add>, %165, %cst_54 [1] : vector<32x512xf32> to vector<32xf32>
    %167 = vector.shape_cast %166 : vector<32xf32> to vector<32x1xf32>
    %cst_55 = arith.constant 9.99999993E-9 : f32
    %168 = vector.broadcast %cst_55 : f32 to vector<32x1xf32>
    %169 = arith.addf %167, %168 : vector<32x1xf32>
    %170 = math.rsqrt %169 : vector<32x1xf32>
    %171 = vector.broadcast %170 : vector<32x1xf32> to vector<32x512xf32>
    %172 = arith.mulf %164, %171 : vector<32x512xf32>
    %173 = math.absf %172 : vector<32x512xf32>
    %cst_56 = arith.constant dense<0.000000e+00> : vector<32xf32>
    %174 = vector.multi_reduction <add>, %173, %cst_56 [1] : vector<32x512xf32> to vector<32xf32>
    %175 = vector.shape_cast %174 : vector<32xf32> to vector<32x1xf32>
    %cst_57 = arith.constant 9.99999993E-9 : f32
    %176 = vector.broadcast %cst_57 : f32 to vector<32x1xf32>
    %177 = arith.addf %175, %176 : vector<32x1xf32>
    %178 = tpu.reciprocal %177 {approx = true} : vector<32x1xf32> -> vector<32x1xf32>
    %179 = vector.broadcast %178 : vector<32x1xf32> to vector<32x512xf32>
    %180 = arith.mulf %172, %179 : vector<32x512xf32>
    %cst_58 = arith.constant 9.99999993E-9 : f32
    %181 = vector.broadcast %cst_58 : f32 to vector<32x512xf32>
    %182 = arith.addf %180, %181 : vector<32x512xf32>
    %183 = math.sqrt %182 : vector<32x512xf32>
    %c0_59 = arith.constant 0 : index
    %c0_60 = arith.constant 0 : index
    %184 = vector.load %arg4[%c0_59, %c0_60] : memref<32x512xf32, #tpu.memory_space<vmem>>, vector<32x512xf32>
    tpu.vector_store %arg4[%c0_59, %c0_60], %183 {strides = array<i32>} : memref<32x512xf32, #tpu.memory_space<vmem>>, vector<32x512xf32>,
    return
  }
  func.func @transform_0(%arg0: i32) -> (i32, i32) {
    %c0_i32 = arith.constant 0 : i32
    %c0_i32_0 = arith.constant 0 : i32
    return %arg0, %c0_i32 : i32, i32
  }
  func.func @transform_1(%arg0: i32) -> (i32, i32) {
    %c0_i32 = arith.constant 0 : i32
    %c0_i32_0 = arith.constant 0 : i32
    %c0_i32_1 = arith.constant 0 : i32
    return %c0_i32, %c0_i32_0 : i32, i32
  }
  func.func @transform_2(%arg0: i32) -> (i32, i32) {
    %c0_i32 = arith.constant 0 : i32
    %c0_i32_0 = arith.constant 0 : i32
    %c0_i32_1 = arith.constant 0 : i32
    return %c0_i32, %c0_i32_0 : i32, i32
  }
  func.func @transform_3(%arg0: i32) -> (i32, i32) {
    %c0_i32 = arith.constant 0 : i32
    %c0_i32_0 = arith.constant 0 : i32
    return %arg0, %c0_i32 : i32, i32
  }
}

</mosaic_0001>

<bundles_post_ra>
// kernel: sift_forward.2
= control target key start
LH: loop header
LB: loop body
LE: loop exit
PB: predicated region body
PF: predicated region fallthrough
CT: control target
= control target key end

     0   :  { %s3217_s0 = inlined_call_operand.hbm [shape: f32[2,3,128,128], index: 0, kind: input, shape index: {}]   ;;  %s3218_s1 = inlined_call_operand.hbm [shape: bf16[128,128], index: 1, kind: input, shape index: {}]   ;;  %s3219_s2 = inlined_call_operand.hbm [shape: bf16[128,128], index: 2, kind: input, shape index: {}, may-alias: {2,5}]   ;;  %s3220_s3 = inlined_call_operand.hbm [shape: bf16[128,128], index: 3, kind: input, shape index: {}]   ;;  %s3221_s4 = inlined_call_operand.hbm [shape: bf16[128,128], index: 4, kind: input, shape index: {}]   ;;  %s3222_s5 = inlined_call_operand.hbm [shape: bf16[128,128], index: 5, kind: input, shape index: {}, may-alias: {2,5}]   ;;  %s3223_s6 = inlined_call_operand.hbm [shape: bf16[128,128], index: 6, kind: input, shape index: {}]   ;;  %s3224_s7 = inlined_call_operand.vmem [shape: f32[2,1,128,128], index: 7, kind: output, shape index: {0}]   ;;  %s3225_s8 = inlined_call_operand.vmem [shape: bf16[2,1,128,128], index: 8, kind: output, shape index: {1}]  }
   0x1   :  { %3228 = sst [smem:[#allocation17_spill]] %s3218_s1 }
   0x2   :  { %14 = vsyncpa [#allocation3], 0 }
   0x3   :  { %16 = vsyncpa [#allocation3 + $0x1], 0 }
   0x4   :  { %17 = vsyncpa [#allocation5], 0 }
   0x5   :  { %18 = vsyncpa [#allocation8], 0 }
   0x6   :  { %19 = vsyncpa [#allocation11], 0  ;;  %s2751_s27 = smov 0   ;;  %s2753_s28 = smov 0  }
   0x7   :  { %s2755_s29 = smov 0   ;;  %s2757_s30 = smov 0  }
   0x8 LB: > { %s2695_s9 = smov [#allocation4]   ;;  %s2772_s11 = sadd.s32 4294967295, %s2693_s30   ;;  %s2693_s30 = sphi %s2757_s30, %s3246_s30   ;;  %s2689_s29 = sphi %s2755_s29, %s3245_s29   ;;  %s2685_s28 = sphi %s2753_s28, %s3244_s28   ;;  %s2681_s27 = sphi %s2751_s27, %s3243_s27  }
   0x9   : > { %s246_s10 = sshll.u32 %s2695_s9, 4  ;;  %p1855_p0 = scmp.ge.s32.totalorder %s2693_s30, 1  ;;  %s2777_s10 = int_to_ptr.vmem [resolvable:$true] %s246_s10 }
   0xa   : > { %p3226_p1 = scmp.eq.s32.totalorder %s2772_s11, 0  ;;  %p234_p2 = scmp.lt.s32.totalorder %s2693_s30, 3 }
   0xb   : > { %s2696_s13 = smov [#allocation7]   ;;  %s2697_s16 = smov [#allocation10]  }
   0xc   : > { %p2779_p3 = pnand %p1855_p0, %p234_p2  ;;  %s272_s14 = sshll.u32 %s2696_s13, 4  ;;  %s2791_s14 = int_to_ptr.vmem [resolvable:$true] %s272_s14 }
   0xd   : > { %s298_s17 = sshll.u32 %s2697_s16, 4  ;;  %s3231_s1 = sld [smem:[#allocation17_spill]]  ;;  %s2793_s17 = int_to_ptr.vmem [resolvable:$true] %s298_s17 }
   0xe   : > { %s3229_s12 = scalar_select %p2779_p3, 1, 0 }
   0xf   : > { %p2323_p4 = pneg %p2779_p3 }
  0x11   : > { %p2787_p5 = pnand %p2323_p4, %p3226_p1 }
  0x13   : > { %s2449_s20 = scalar_lea.hbm %s3231_s1, 1024  ;;  %p2803_p7 = pneg %p2787_p5 }
  0x14   : > { %p2450_p6 = scmp.ne.s32.totalorder %s3231_s1, %s2449_s20  ;;  %p2456_p10 = scmp.lt.u32.totalorder %s2449_s20, %s3231_s1 }
  0x16   : > { %p2452_p8 = pnand %p2803_p7, %p2450_p6 }
  0x18   : > { %p2453_p9 = pneg %p2452_p8 }
  0x1a   : > { %p2458_p11 = pnand %p2456_p10, %p2453_p9 }
  0x1c   : > { %2461 = shalt.err (!%p2458_p11)
}
  0x1d   : > { %s2462_s26 = scalar_lea.vmem %s2777_s10, 1024  ;;  %p2470_p2 = scmp.lt.s32.totalorder %s2777_s10, %s2777_s10 }
  0x1e   : > { %p2463_p12 = scmp.ne.s32.totalorder %s2777_s10, %s2462_s26  ;;  %p2471_p4 = scmp.lt.s32.totalorder %s2462_s26, %s2462_s26 }
  0x20   : > { %p2465_p13 = pnand %p2463_p12, %p2803_p7  ;;  %p2472_p6 = por %p2471_p4, %p2470_p2 }
  0x22   : > { %p2466_p0 = pneg %p2465_p13 }
  0x24   : > { %p2473_p8 = pnand %p2472_p6, %p2466_p0 }
  0x26   : > { %2476 = shalt.err (!%p2473_p8)
}
  0x27   : > { %s2698_s9 = smov 64   ;;  %s2699_s13 = smov 4  }
  0x28   : > { %2326 = dma.hbm_to_vmem [thread:$0]  (!%p2787_p5), %s3231_s1, 1024, %s2777_s10, [#allocation5], %s2698_s9, %s2698_s9, %s2699_s13  }
  0x29   : > { %s2477_s21 = scalar_lea.hbm %s3220_s3, 1024 }
  0x2a   : > { %p2478_p9 = scmp.ne.s32.totalorder %s3220_s3, %s2477_s21  ;;  %p2484_p12 = scmp.lt.u32.totalorder %s2477_s21, %s3220_s3 }
  0x2c   : > { %p2480_p10 = pnand %p2478_p9, %p2803_p7 }
  0x2e   : > { %p2481_p11 = pneg %p2480_p10 }
  0x30   : > { %p2486_p13 = pnand %p2484_p12, %p2481_p11 }
  0x32   : > { %2489 = shalt.err (!%p2486_p13)
}
  0x33   : > { %s2490_s10 = scalar_lea.vmem %s2791_s14, 1024  ;;  %p2498_p6 = scmp.lt.s32.totalorder %s2791_s14, %s2791_s14 }
  0x34   : > { %p2491_p0 = scmp.ne.s32.totalorder %s2791_s14, %s2490_s10  ;;  %p2499_p8 = scmp.lt.s32.totalorder %s2490_s10, %s2490_s10 }
  0x36   : > { %p2493_p2 = pnand %p2491_p0, %p2803_p7  ;;  %p2500_p9 = por %p2499_p8, %p2498_p6 }
  0x38   : > { %p2494_p4 = pneg %p2493_p2 }
  0x3a   : > { %p2501_p10 = pnand %p2500_p9, %p2494_p4 }
  0x3c   : > { %2504 = shalt.err (!%p2501_p10)
}
  0x3d   : > { %2332 = dma.hbm_to_vmem [thread:$0]  (!%p2787_p5), %s3220_s3, 1024, %s2791_s14, [#allocation8], %s2698_s9, %s2698_s9, %s2699_s13  }
  0x3e   : > { %s2505_s21 = scalar_lea.hbm %s3222_s5, 1024 }
  0x3f   : > { %p2506_p11 = scmp.ne.s32.totalorder %s3222_s5, %s2505_s21  ;;  %p2512_p0 = scmp.lt.u32.totalorder %s2505_s21, %s3222_s5 }
  0x41   : > { %p2508_p12 = pnand %p2506_p11, %p2803_p7 }
  0x43   : > { %p2509_p13 = pneg %p2508_p12 }
  0x45   : > { %p2514_p2 = pnand %p2512_p0, %p2509_p13 }
  0x47   : > { %2517 = shalt.err (!%p2514_p2)
}
  0x48   : > { %s2518_s14 = scalar_lea.vmem %s2793_s17, 1024  ;;  %p2526_p9 = scmp.lt.s32.totalorder %s2793_s17, %s2793_s17 }
  0x49   : > { %p2519_p4 = scmp.ne.s32.totalorder %s2793_s17, %s2518_s14  ;;  %p2527_p10 = scmp.lt.s32.totalorder %s2518_s14, %s2518_s14 }
  0x4b   : > { %p2521_p6 = pnand %p2519_p4, %p2803_p7  ;;  %p2528_p11 = por %p2527_p10, %p2526_p9 }
  0x4d   : > { %p2522_p8 = pneg %p2521_p6 }
  0x4f   : > { %p2529_p12 = pnand %p2528_p11, %p2522_p8 }
  0x51   : > { %2532 = shalt.err (!%p2529_p12)
}
  0x52   : > { %2338 = dma.hbm_to_vmem [thread:$0]  (!%p2787_p5), %s3222_s5, 1024, %s2793_s17, [#allocation11], %s2698_s9, %s2698_s9, %s2699_s13  }
  0x53   : > { %s2700_s18 = smov [#allocation6]   ;;  %s2701_s20 = smov [#allocation9]  }
  0x54   : > { %s259_s19 = sshll.u32 %s2700_s18, 4  ;;  %s285_s21 = sshll.u32 %s2701_s20, 4  ;;  %s260_s19 = int_to_ptr.vmem [resolvable:$true] %s259_s19  ;;  %s286_s21 = int_to_ptr.vmem [resolvable:$true] %s285_s21 }
  0x55   : > { %s2533_s25 = scalar_lea.hbm %s3219_s2, 1024 }
  0x56   : > { %p2534_p13 = scmp.ne.s32.totalorder %s3219_s2, %s2533_s25  ;;  %p2540_p4 = scmp.lt.u32.totalorder %s2533_s25, %s3219_s2 }
  0x58   : > { %p2536_p0 = pnand %p2534_p13, %p2803_p7 }
  0x5a   : > { %p2537_p2 = pneg %p2536_p0 }
  0x5c   : > { %p2542_p6 = pnand %p2540_p4, %p2537_p2 }
  0x5e   : > { %2545 = shalt.err (!%p2542_p6)
}
  0x5f   : > { %s2546_s17 = scalar_lea.vmem %s260_s19, 1024  ;;  %p2554_p11 = scmp.lt.s32.totalorder %s260_s19, %s260_s19 }
  0x60   : > { %p2547_p8 = scmp.ne.s32.totalorder %s260_s19, %s2546_s17  ;;  %p2555_p12 = scmp.lt.s32.totalorder %s2546_s17, %s2546_s17 }
  0x62   : > { %p2549_p9 = pnand %p2547_p8, %p2803_p7  ;;  %p2556_p1 = por %p2555_p12, %p2554_p11 }
  0x64   : > { %p2550_p10 = pneg %p2549_p9 }
  0x66   : > { %p2557_p3 = pnand %p2556_p1, %p2550_p10 }
  0x68   : > { %2560 = shalt.err (!%p2557_p3)
}
  0x69   : > { %2329 = dma.hbm_to_vmem [thread:$0]  (!%p2787_p5), %s3219_s2, 1024, %s260_s19, [#allocation5], %s2698_s9, %s2698_s9, %s2699_s13  }
  0x6a   : > { %s2561_s22 = scalar_lea.hbm %s3221_s4, 1024 }
  0x6b   : > { %p2562_p1 = scmp.ne.s32.totalorder %s3221_s4, %s2561_s22  ;;  %p2568_p0 = scmp.lt.u32.totalorder %s2561_s22, %s3221_s4 }
  0x6d   : > { %p2564_p3 = pnand %p2562_p1, %p2803_p7 }
  0x6f   : > { %p2565_p13 = pneg %p2564_p3 }
  0x71   : > { %p2570_p2 = pnand %p2568_p0, %p2565_p13 }
  0x73   : > { %2573 = shalt.err (!%p2570_p2)
}
  0x74   : > { %s2574_s10 = scalar_lea.vmem %s286_s21, 1024  ;;  %p2582_p9 = scmp.lt.s32.totalorder %s286_s21, %s286_s21 }
  0x75   : > { %p2575_p4 = scmp.ne.s32.totalorder %s286_s21, %s2574_s10  ;;  %p2583_p10 = scmp.lt.s32.totalorder %s2574_s10, %s2574_s10 }
  0x77   : > { %p2577_p6 = pnand %p2575_p4, %p2803_p7  ;;  %p2584_p11 = por %p2583_p10, %p2582_p9 }
  0x79   : > { %p2578_p8 = pneg %p2577_p6 }
  0x7b   : > { %p2585_p12 = pnand %p2584_p11, %p2578_p8 }
  0x7d   : > { %2588 = shalt.err (!%p2585_p12)
}
  0x7e   : > { %2335 = dma.hbm_to_vmem [thread:$0]  (!%p2787_p5), %s3221_s4, 1024, %s286_s21, [#allocation8], %s2698_s9, %s2698_s9, %s2699_s13  }
  0x7f   : > { %s2702_s1 = smov [#allocation12]   ;;  %s2589_s22 = scalar_lea.hbm %s3223_s6, 1024 }
  0x80   : > { %s311_s16 = sshll.u32 %s2702_s1, 4  ;;  %p2590_p1 = scmp.ne.s32.totalorder %s3223_s6, %s2589_s22  ;;  %s312_s16 = int_to_ptr.vmem [resolvable:$true] %s311_s16 }
  0x81   : > { %p2596_p0 = scmp.lt.u32.totalorder %s2589_s22, %s3223_s6 }
  0x82   : > { %p2592_p3 = pnand %p2590_p1, %p2803_p7 }
  0x84   : > { %p2593_p13 = pneg %p2592_p3 }
  0x86   : > { %p2598_p2 = pnand %p2596_p0, %p2593_p13 }
  0x88   : > { %2601 = shalt.err (!%p2598_p2)
}
  0x89   : > { %s2602_s21 = scalar_lea.vmem %s312_s16, 1024  ;;  %p2610_p9 = scmp.lt.s32.totalorder %s312_s16, %s312_s16 }
  0x8a   : > { %p2603_p4 = scmp.ne.s32.totalorder %s312_s16, %s2602_s21  ;;  %p2611_p10 = scmp.lt.s32.totalorder %s2602_s21, %s2602_s21 }
  0x8c   : > { %p2605_p6 = pnand %p2603_p4, %p2803_p7  ;;  %p2612_p11 = por %p2611_p10, %p2610_p9 }
  0x8e   : > { %p2606_p8 = pneg %p2605_p6 }
  0x90   : > { %p2613_p12 = pnand %p2612_p11, %p2606_p8 }
  0x92   : > { %2616 = shalt.err (!%p2613_p12)
}
  0x93   : > { %2341 = dma.hbm_to_vmem [thread:$0]  (!%p2787_p5), %s3223_s6, 1024, %s312_s16, [#allocation11], %s2698_s9, %s2698_s9, %s2699_s13  }
  0x94   : > { %s2943_s15 = sadd.s32 1, %s2693_s30   ;;  %s32_s23 = sadd.s32 1, %s2689_s29 }
  0x95   : > { %s29_s17 = ssub.s32 %s2693_s30, %s2943_s15  ;;  %p39_p7 = scmp.ne.s32.totalorder %s2689_s29, %s2685_s28 }
  0x96   : > { %p30_p1 = scmp.eq.s32.totalorder %s29_s17, 0  ;;  %p40_p3 = scmp.eq.s32.totalorder %s2693_s30, 0 }
  0x97   : > { %p45_p13 = scmp.ne.s32.totalorder %s2685_s28, %s2681_s27  ;;  %p2352_p0 = scmp.lt.s32.totalorder %s2693_s30, 2 }
  0x98   : > { %s2955_s1 = scalar_select %p30_p1, %s2689_s29, %s32_s23  }
  0x99   : > { %p41_p2 = por %p40_p3, %p39_p7  ;;  %p3233_p4 = scmp.eq.s32.totalorder %s2772_s11, 0 }
  0x9a   : > { %s325_s20 = sand.u32 1, %s2689_s29   ;;  %s2295_s9 = smul.u32 6144, %s2693_s30 }
  0x9b   : > { %p2959_p6 = por %p3233_p4, %p45_p13  ;;  %s2294_s13 = smul.u32 384, %s325_s20 }
  0x9c   : > { %s2968_s24 = scalar_lea.hbm %s3217_s0, %s2295_s9  ;;  %p2970_p5 = pnand %p2352_p0, %p41_p2 }
  0x9d   : > { %s329_s25 = scalar_lea.vmem [#allocation2], %s2294_s13  ;;  %s2976_s30 = scalar_lea.sflag [#allocation3], %s325_s20 }
  0x9e   : > { %s336_s26 = sshll.u32 %s329_s25, 4  ;;  %s2617_s14 = scalar_lea.hbm %s2968_s24, 6144  ;;  %s2974_s26 = int_to_ptr.vmem [resolvable:$true] %s336_s26 }
  0x9f   : > { %p2618_p8 = scmp.ne.s32.totalorder %s2968_s24, %s2617_s14  ;;  %p2619_p9 = pneg %p2970_p5 }
  0xa0   : > { %s2622_s19 = scalar_lea.hbm %s3217_s0, 12288  ;;  %p2623_p12 = scmp.lt.u32.totalorder %s2968_s24, %s3217_s0 }
  0xa1   : > { %p2620_p10 = pnand %p2619_p9, %p2618_p8  ;;  %p2624_p7 = scmp.lt.u32.totalorder %s2622_s19, %s2617_s14 }
  0xa2   : > { %p2626_p3 = scmp.lt.u32.totalorder %s2617_s14, %s2968_s24 }
  0xa3   : > { %p2621_p11 = pneg %p2620_p10  ;;  %p2625_p1 = por %p2624_p7, %p2623_p12 }
  0xa5   : > { %p2627_p13 = por %p2626_p3, %p2625_p1 }
  0xa7   : > { %p2628_p0 = pnand %p2627_p13, %p2621_p11 }
  0xa9   : > { %2631 = shalt.err (!%p2628_p0)
}
  0xaa   : > { %s2632_s20 = scalar_lea.vmem %s2974_s26, 6144  ;;  %s2703_s9 = smov [#allocation2]  }
  0xab   : > { %p2633_p2 = scmp.ne.s32.totalorder %s2974_s26, %s2632_s20  ;;  %s2637_s13 = sshll.u32 %s2703_s9, 4  ;;  %s2638_s13 = int_to_ptr.vmem [resolvable:$false] %s2637_s13 }
  0xac   : > { %s2639_s16 = scalar_lea.vmem %s2638_s13, 12288  ;;  %p2640_p10 = scmp.lt.s32.totalorder %s2974_s26, %s2638_s13 }
  0xad   : > { %p2635_p4 = pnand %p2633_p2, %p2619_p9  ;;  %p2641_p12 = scmp.lt.s32.totalorder %s2639_s16, %s2632_s20 }
  0xaf   : > { %p2636_p8 = pneg %p2635_p4  ;;  %p2642_p7 = por %p2641_p12, %p2640_p10 }
  0xb1   : > { %p2643_p1 = pnand %p2642_p7, %p2636_p8 }
  0xb3   : > { %2646 = shalt.err (!%p2643_p1)
}
  0xb4   : > { %s2704_s22 = smov 128   ;;  %s2705_s25 = smov 8  }
  0xb5   : > { %2345 = dma.hbm_to_vmem [thread:$0]  (!%p2970_p5), %s2968_s24, 6144, %s2974_s26, %s2976_s30, %s2704_s22, %s2704_s22, %s2705_s25  }
  0xb6   : > { %p3236_p9 = scmp.ne.s32.totalorder %s3229_s12, 0 }
  0xb7   : > { %s350_s14 = sand.u32 (!%p3236_p9), 1, %s2685_s28  }
  0xb8   : > { %348 = sbr.rel (%p3236_p9) target bundleno = 741 (0x2e5), region = 48  ;;  %s351_s10 = scalar_lea.sflag (!%p3236_p9), [#allocation3], %s350_s14 }
  0xb9   : > { %s2296_s21 = smul.u32 (!%p3236_p9), 384, %s350_s14 }
  0xbb   : > { %s3007_s19 = scalar_lea.vmem (!%p3236_p9), [#allocation2], %s2296_s21 }
  0xbf   : > { %2664 = dma.done.wait (%p2959_p6), %s351_s10, 6144  }
  0xc0   : > { %2666 = vsyncadd (%p2959_p6), %s351_s10, 4294961152  ;;  %p3237_p11 = scmp.eq.s32.totalorder %s2772_s11, 0 }
  0xc2   : > { %2668 = dma.done.wait (%p3237_p11), [#allocation5], 2048   ;;  %p3238_p5 = pmov %p3237_p11 }
  0xc4   : > { %2670 = vsyncadd (%p3238_p5), [#allocation5], 4294965248  ;;  %p3239_p3 = pmov %p3238_p5 }
  0xc6   : > { %2672 = dma.done.wait (%p3239_p3), [#allocation8], 2048   ;;  %p3240_p13 = pmov %p3239_p3 }
  0xc7   : > { %p3241_p0 = pmov %p3239_p3 }
  0xc8   : > { %2674 = vsyncadd (%p3240_p13), [#allocation8], 4294965248 }
  0xc9   : > { %2676 = dma.done.wait (%p3241_p0), [#allocation11], 2048   ;;  %p3242_p2 = pmov %p3241_p0 }
  0xca   : > { %p416_p6 = scmp.lt.s32.totalorder %s2772_s11, 1  ;;  %v427_v0 = vld [vmem:[%s3007_s19] sm:$0xff]  ;;  %v428_v1 = vld [vmem:[%s3007_s19 + $0x8] sm:$0xff]  ;;  %v429_v12 = vld [vmem:[%s3007_s19 + $0x10] sm:$0xff] }
  0xcb   : > { %2678 = vsyncadd (%p3242_p2), [#allocation11], 4294965248  ;;  %v443_v2 = vld [vmem:[%s3007_s19 + $0x80] sm:$0xff]  ;;  %v444_v3 = vld [vmem:[%s3007_s19 + $0x88] sm:$0xff]  ;;  %v475_v6 = vmul.f32 0.299, %v427_v0 }
  0xcc   : > { %s3248_s11 = smov (!%p416_p6, %s2772_s11), 1  ;;  %v459_v4 = vld [vmem:[%s3007_s19 + $0x100] sm:$0xff]  ;;  %v460_v5 = vld [vmem:[%s3007_s19 + $0x108] sm:$0xff]  ;;  %v476_v7 = vmul.f32 0.299, %v428_v1  ;;  %v430_v13 = vld [vmem:[%s3007_s19 + $0x18] sm:$0xff] }
  0xcd   : > { %s1941_s12 = sshll.u32 %s3248_s11, 7  ;;  %v491_v8 = vmul.f32 0.587, %v443_v2  ;;  %v492_v9 = vmul.f32 0.587, %v444_v3  ;;  %v445_v16 = vld [vmem:[%s3007_s19 + $0x90] sm:$0xff] }
  0xce   : > { %v523_v10 = vmul.f32 0.114, %v459_v4  ;;  %v524_v11 = vmul.f32 0.114, %v460_v5  ;;  %v446_v17 = vld [vmem:[%s3007_s19 + $0x98] sm:$0xff]  ;;  %v461_v18 = vld [vmem:[%s3007_s19 + $0x110] sm:$0xff]  ;;  %s3044_s27 = scalar_lea.vmem %s3224_s7, %s1941_s12 }
  0xcf   : > { %v507_v14 = vadd.f32 %v491_v8, %v475_v6  ;;  %v508_v15 = vadd.f32 %v492_v9, %v476_v7  ;;  %v477_v19 = vmul.f32 0.299, %v429_v12  ;;  %v462_v20 = vld [vmem:[%s3007_s19 + $0x118] sm:$0xff]  ;;  %v478_v21 = vmul.f32 0.299, %v430_v13  ;;  %v431_v23 = vld [vmem:[%s3007_s19 + $0x20] sm:$0xff] }
  0xd0   : > { %v493_v22 = vmul.f32 0.587, %v445_v16  ;;  %v494_v26 = vmul.f32 0.587, %v446_v17  ;;  %v525_v27 = vmul.f32 0.114, %v461_v18 }
  0xd1   : > { %v539_v24 = vadd.f32 %v523_v10, %v507_v14  ;;  %v540_v25 = vadd.f32 %v524_v11, %v508_v15  ;;  %v432_v28 = vld [vmem:[%s3007_s19 + $0x28] sm:$0xff]  ;;  %v447_v29 = vld [vmem:[%s3007_s19 + $0xa0] sm:$0xff]  ;;  %v526_v31 = vmul.f32 0.114, %v462_v20  ;;  %v479_v37 = vmul.f32 0.299, %v431_v23 }
  0xd2   : > { %v509_v30 = vadd.f32 %v493_v22, %v477_v19  ;;  %v448_v32 = vld [vmem:[%s3007_s19 + $0xa8] sm:$0xff]  ;;  %v463_v33 = vld [vmem:[%s3007_s19 + $0x120] sm:$0xff]  ;;  %v510_v36 = vadd.f32 %v494_v26, %v478_v21  ;;  %v480_v38 = vmul.f32 0.299, %v432_v28  ;;  %v433_v39 = vld [vmem:[%s3007_s19 + $0x30] sm:$0xff]  ;;  %s1942_s26 = sshll.u32 %s3248_s11, 6 }
  0xd3   : > { %v464_v34 = vld [vmem:[%s3007_s19 + $0x128] sm:$0xff]  ;;  %555 = vst [vmem:[%s3044_s27] sm:$0xff] %v539_v24  ;;  %556 = vst [vmem:[%s3044_s27 + $0x8] sm:$0xff] %v540_v25  ;;  %v3055_v35 = vpack.c.bf16 %v540_v25, %v539_v24  ;;  %v434_v40 = vld [vmem:[%s3007_s19 + $0x38] sm:$0xff]  ;;  %v495_v42 = vmul.f32 0.587, %v447_v29  ;;  %s3185_s17 = scalar_lea.vmem %s3225_s8, %s1942_s26 }
  0xd4   : > { %v541_v41 = vadd.f32 %v525_v27, %v509_v30  ;;  %v496_v43 = vmul.f32 0.587, %v448_v32  ;;  %v527_v44 = vmul.f32 0.114, %v463_v33  ;;  %v542_v45 = vadd.f32 %v526_v31, %v510_v36  ;;  %v449_v47 = vld [vmem:[%s3007_s19 + $0xb0] sm:$0xff]  ;;  %v450_v48 = vld [vmem:[%s3007_s19 + $0xb8] sm:$0xff] }
  0xd5   : > { %2102 = vmatprep.subr.bf16.mxu0 %v3055_v35  ;;  %2134 = vmatprep.subr.bf16.mxu1 %v3055_v35  ;;  %v528_v46 = vmul.f32 0.114, %v464_v34  ;;  %v465_v49 = vld [vmem:[%s3007_s19 + $0x130] sm:$0xff]  ;;  %v511_v50 = vadd.f32 %v495_v42, %v479_v37  ;;  %v466_v52 = vld [vmem:[%s3007_s19 + $0x138] sm:$0xff]  ;;  %v481_v53 = vmul.f32 0.299, %v433_v39 }
  0xd6   : > { %2103 = vmatpush3.bf16.msra.mxu0 %v3055_v35  ;;  %2135 = vmatpush3.bf16.msra.mxu1 %v3055_v35  ;;  %557 = vst [vmem:[%s3044_s27 + $0x10] sm:$0xff] %v541_v41  ;;  %v512_v51 = vadd.f32 %v496_v43, %v480_v38  ;;  %v482_v54 = vmul.f32 0.299, %v434_v40  ;;  %v435_v55 = vld [vmem:[%s3007_s19 + $0x40] sm:$0xff]  ;;  %558 = vst [vmem:[%s3044_s27 + $0x18] sm:$0xff] %v542_v45  ;;  %v3070_v56 = vpack.c.bf16 %v542_v45, %v541_v41  ;;  %v436_v63 = vld [vmem:[%s3007_s19 + $0x48] sm:$0xff] }
  0xd7   : > { %v497_v57 = vmul.f32 0.587, %v449_v47  ;;  %v498_v58 = vmul.f32 0.587, %v450_v48  ;;  %v529_v59 = vmul.f32 0.114, %v465_v49  ;;  %v543_v60 = vadd.f32 %v527_v44, %v511_v50 }
  0xd8   : > { %v544_v61 = vadd.f32 %v528_v46, %v512_v51  ;;  %v530_v62 = vmul.f32 0.114, %v466_v52  ;;  %v451_v0 = vld [vmem:[%s3007_s19 + $0xc0] sm:$0xff]  ;;  %v452_v1 = vld [vmem:[%s3007_s19 + $0xc8] sm:$0xff]  ;;  %2104 = vmatprep.subr.bf16.mxu0 %v3070_v56  ;;  %2136 = vmatprep.subr.bf16.mxu1 %v3070_v56  ;;  %v483_v6 = vmul.f32 0.299, %v435_v55 }
  0xd9   : > { %v513_v2 = vadd.f32 %v497_v57, %v481_v53  ;;  %v514_v3 = vadd.f32 %v498_v58, %v482_v54  ;;  %v467_v4 = vld [vmem:[%s3007_s19 + $0x140] sm:$0xff]  ;;  %v468_v5 = vld [vmem:[%s3007_s19 + $0x148] sm:$0xff]  ;;  %v484_v7 = vmul.f32 0.299, %v436_v63  ;;  %559 = vst [vmem:[%s3044_s27 + $0x20] sm:$0xff] %v543_v60  ;;  %v437_v15 = vld [vmem:[%s3007_s19 + $0x50] sm:$0xff] }
  0xda   : > { %2105 = vmatpush3.bf16.msra.mxu0 %v3070_v56  ;;  %2137 = vmatpush3.bf16.msra.mxu1 %v3070_v56  ;;  %560 = vst [vmem:[%s3044_s27 + $0x28] sm:$0xff] %v544_v61  ;;  %v3083_v8 = vpack.c.bf16 %v544_v61, %v543_v60  ;;  %v499_v9 = vmul.f32 0.587, %v451_v0  ;;  %v500_v10 = vmul.f32 0.587, %v452_v1  ;;  %v438_v16 = vld [vmem:[%s3007_s19 + $0x58] sm:$0xff] }
  0xdb   : > { %v531_v11 = vmul.f32 0.114, %v467_v4  ;;  %v545_v12 = vadd.f32 %v529_v59, %v513_v2  ;;  %v546_v13 = vadd.f32 %v530_v62, %v514_v3  ;;  %v532_v14 = vmul.f32 0.114, %v468_v5  ;;  %v453_v17 = vld [vmem:[%s3007_s19 + $0xd0] sm:$0xff]  ;;  %v454_v20 = vld [vmem:[%s3007_s19 + $0xd8] sm:$0xff] }
  0xdc   : > { %2106 = vmatprep.subr.bf16.mxu0 %v3083_v8  ;;  %2138 = vmatprep.subr.bf16.mxu1 %v3083_v8  ;;  %v515_v18 = vadd.f32 %v499_v9, %v483_v6  ;;  %v516_v19 = vadd.f32 %v500_v10, %v484_v7  ;;  %v469_v21 = vld [vmem:[%s3007_s19 + $0x150] sm:$0xff]  ;;  %v470_v22 = vld [vmem:[%s3007_s19 + $0x158] sm:$0xff]  ;;  %v485_v23 = vmul.f32 0.299, %v437_v15  ;;  %v486_v25 = vmul.f32 0.299, %v438_v16 }
  0xdd   : > { %561 = vst [vmem:[%s3044_s27 + $0x30] sm:$0xff] %v545_v12  ;;  %562 = vst [vmem:[%s3044_s27 + $0x38] sm:$0xff] %v546_v13  ;;  %v3095_v24 = vpack.c.bf16 %v546_v13, %v545_v12  ;;  %v501_v26 = vmul.f32 0.587, %v453_v17  ;;  %v502_v27 = vmul.f32 0.587, %v454_v20 }
  0xde   : > { %2107 = vmatpush3.bf16.msra.mxu0 %v3083_v8  ;;  %2139 = vmatpush3.bf16.msra.mxu1 %v3083_v8  ;;  %v547_v28 = vadd.f32 %v531_v11, %v515_v18  ;;  %v548_v29 = vadd.f32 %v532_v14, %v516_v19  ;;  %v533_v30 = vmul.f32 0.114, %v469_v21  ;;  %v534_v31 = vmul.f32 0.114, %v470_v22  ;;  %v439_v32 = vld [vmem:[%s3007_s19 + $0x60] sm:$0xff]  ;;  %v440_v33 = vld [vmem:[%s3007_s19 + $0x68] sm:$0xff] }
  0xdf   : > { %2108 = vmatprep.subr.bf16.mxu0 %v3095_v24  ;;  %2140 = vmatprep.subr.bf16.mxu1 %v3095_v24  ;;  %v517_v34 = vadd.f32 %v501_v26, %v485_v23  ;;  %v518_v36 = vadd.f32 %v502_v27, %v486_v25  ;;  %v455_v37 = vld [vmem:[%s3007_s19 + $0xe0] sm:$0xff]  ;;  %v456_v38 = vld [vmem:[%s3007_s19 + $0xe8] sm:$0xff]  ;;  %v487_v40 = vmul.f32 0.299, %v439_v32  ;;  %v488_v43 = vmul.f32 0.299, %v440_v33 }
  0xe0   : > { %v471_v39 = vld [vmem:[%s3007_s19 + $0x160] sm:$0xff]  ;;  %563 = vst [vmem:[%s3044_s27 + $0x40] sm:$0xff] %v547_v28  ;;  %564 = vst [vmem:[%s3044_s27 + $0x48] sm:$0xff] %v548_v29  ;;  %v3108_v41 = vpack.c.bf16 %v548_v29, %v547_v28  ;;  %v472_v42 = vld [vmem:[%s3007_s19 + $0x168] sm:$0xff]  ;;  %v503_v44 = vmul.f32 0.587, %v455_v37 }
  0xe1   : > { %v441_v45 = vld [vmem:[%s3007_s19 + $0x70] sm:$0xff]  ;;  %v549_v46 = vadd.f32 %v533_v30, %v517_v34  ;;  %v550_v47 = vadd.f32 %v534_v31, %v518_v36  ;;  %v504_v48 = vmul.f32 0.587, %v456_v38  ;;  %v535_v49 = vmul.f32 0.114, %v471_v39  ;;  %v442_v50 = vld [vmem:[%s3007_s19 + $0x78] sm:$0xff] }
  0xe2   : > { %v457_v51 = vld [vmem:[%s3007_s19 + $0xf0] sm:$0xff]  ;;  %2109 = vmatpush3.bf16.msra.mxu0 %v3095_v24  ;;  %2141 = vmatpush3.bf16.msra.mxu1 %v3095_v24  ;;  %v519_v52 = vadd.f32 %v503_v44, %v487_v40  ;;  %v536_v53 = vmul.f32 0.114, %v472_v42  ;;  %v458_v54 = vld [vmem:[%s3007_s19 + $0xf8] sm:$0xff]  ;;  %v489_v60 = vmul.f32 0.299, %v441_v45 }
  0xe3   : > { %v473_v55 = vld [vmem:[%s3007_s19 + $0x170] sm:$0xff]  ;;  %v474_v57 = vld [vmem:[%s3007_s19 + $0x178] sm:$0xff]  ;;  %2110 = vmatprep.subr.bf16.mxu0 %v3108_v41  ;;  %2142 = vmatprep.subr.bf16.mxu1 %v3108_v41  ;;  %565 = vst [vmem:[%s3044_s27 + $0x50] sm:$0xff] %v549_v46  ;;  %566 = vst [vmem:[%s3044_s27 + $0x58] sm:$0xff] %v550_v47  ;;  %v3123_v58 = vpack.c.bf16 %v550_v47, %v549_v46  ;;  %v520_v59 = vadd.f32 %v504_v48, %v488_v43  ;;  %v490_v61 = vmul.f32 0.299, %v442_v50 }
  0xe4   : > { %v551_v62 = vadd.f32 %v535_v49, %v519_v52  ;;  %v505_v63 = vmul.f32 0.587, %v457_v51  ;;  %v506_v0 = vmul.f32 0.587, %v458_v54  ;;  %v537_v1 = vmul.f32 0.114, %v473_v55 }
  0xe5   : > { %v552_v2 = vadd.f32 %v536_v53, %v520_v59  ;;  %v538_v3 = vmul.f32 0.114, %v474_v57  ;;  %v2401_v4 = vld [vmem:[#allocation4] sm:$0xff]   ;;  %v2403_v13 = vld [vmem:[#allocation4 + $0x8] sm:$0xff]   ;;  %v2405_v15 = vld [vmem:[#allocation4 + $0x10] sm:$0xff]  }
  0xe6   : > { %v2402_v5 = vld [vmem:[#allocation6] sm:$0xff]   ;;  %2111 = vmatpush3.bf16.msra.mxu0 %v3108_v41  ;;  %2143 = vmatpush3.bf16.msra.mxu1 %v3108_v41  ;;  %567 = vst [vmem:[%s3044_s27 + $0x60] sm:$0xff] %v551_v62  ;;  %v521_v6 = vadd.f32 %v505_v63, %v489_v60  ;;  %v522_v7 = vadd.f32 %v506_v0, %v490_v61  ;;  %v2404_v14 = vld [vmem:[#allocation6 + $0x8] sm:$0xff]   ;;  %v2406_v16 = vld [vmem:[#allocation6 + $0x10] sm:$0xff]  }
  0xe7   : > { %2112 = vmatprep.subr.bf16.mxu0 %v3123_v58  ;;  %2144 = vmatprep.subr.bf16.mxu1 %v3123_v58  ;;  %568 = vst [vmem:[%s3044_s27 + $0x68] sm:$0xff] %v552_v2  ;;  %v3131_v9 = vpack.c.bf16 %v552_v2, %v551_v62  ;;  %v2407_v17 = vld [vmem:[#allocation4 + $0x18] sm:$0xff]   ;;  %v2409_v19 = vld [vmem:[#allocation4 + $0x20] sm:$0xff]   ;;  %v2411_v22 = vld [vmem:[#allocation4 + $0x28] sm:$0xff]  }
  0xe8   : > { %v553_v10 = vadd.f32 %v537_v1, %v521_v6  ;;  %v554_v11 = vadd.f32 %v538_v3, %v522_v7  ;;  %2118 = vmatprep.mubr.bf16.mxu0 %v2401_v4  ;;  %2150 = vmatprep.mubr.bf16.mxu1 %v2402_v5  ;;  %v2408_v18 = vld [vmem:[#allocation6 + $0x18] sm:$0xff]   ;;  %v2410_v20 = vld [vmem:[#allocation6 + $0x20] sm:$0xff]   ;;  %v2412_v23 = vld [vmem:[#allocation6 + $0x28] sm:$0xff]  }
  0xe9   : > { %v2425_v21 = vld [vmem:[#allocation10] sm:$0xff]   ;;  %v2414_v25 = vld [vmem:[#allocation6 + $0x30] sm:$0xff]   ;;  %v2416_v27 = vld [vmem:[#allocation6 + $0x38] sm:$0xff]  }
  0xea   : > { %2113 = vmatpush3.bf16.msra.mxu0 %v3123_v58  ;;  %2145 = vmatpush3.bf16.msra.mxu1 %v3123_v58  ;;  %569 = vst [vmem:[%s3044_s27 + $0x70] sm:$0xff] %v553_v10  ;;  %570 = vst [vmem:[%s3044_s27 + $0x78] sm:$0xff] %v554_v11  ;;  %v3139_v12 = vpack.c.bf16 %v554_v11, %v553_v10  ;;  %v2429_v26 = vld [vmem:[#allocation10 + $0x10] sm:$0xff]   ;;  %v2417_v28 = vld [vmem:[#allocation7] sm:$0xff]  }
  0xeb   : > { %2114 = vmatprep.subr.bf16.mxu0 %v3131_v9  ;;  %2146 = vmatprep.subr.bf16.mxu1 %v3131_v9  ;;  %v2433_v29 = vld [vmem:[#allocation10 + $0x20] sm:$0xff]   ;;  %v2418_v31 = vld [vmem:[#allocation7 + $0x8] sm:$0xff]   ;;  %v2419_v33 = vld [vmem:[#allocation7 + $0x10] sm:$0xff]  }
  0xec   : > { %v2426_v30 = vld [vmem:[#allocation9] sm:$0xff]   ;;  %v2435_v32 = vld [vmem:[#allocation10 + $0x28] sm:$0xff]   ;;  %v2437_v36 = vld [vmem:[#allocation10 + $0x30] sm:$0xff]  }
  0xed   : > { %v2428_v34 = vld [vmem:[#allocation9 + $0x8] sm:$0xff]   ;;  %v2430_v37 = vld [vmem:[#allocation9 + $0x10] sm:$0xff]   ;;  %v2420_v38 = vld [vmem:[#allocation7 + $0x18] sm:$0xff]  }
  0xee   : > { %2115 = vmatpush3.bf16.msra.mxu0 %v3131_v9  ;;  %2147 = vmatpush3.bf16.msra.mxu1 %v3131_v9  ;;  %v2421_v39 = vld [vmem:[#allocation7 + $0x20] sm:$0xff]   ;;  %v2432_v40 = vld [vmem:[#allocation9 + $0x18] sm:$0xff]   ;;  %v2422_v42 = vld [vmem:[#allocation7 + $0x28] sm:$0xff]  }
  0xef   : > { %2116 = vmatprep.subr.bf16.mxu0 %v3139_v12  ;;  %2148 = vmatprep.subr.bf16.mxu1 %v3139_v12  ;;  %v2423_v43 = vld [vmem:[#allocation7 + $0x30] sm:$0xff]   ;;  %v2436_v44 = vld [vmem:[#allocation9 + $0x28] sm:$0xff]   ;;  %v2424_v46 = vld [vmem:[#allocation7 + $0x38] sm:$0xff]  }
  0xf0   : > { %v2438_v45 = vld [vmem:[#allocation9 + $0x30] sm:$0xff]   ;;  %v2439_v47 = vld [vmem:[#allocation10 + $0x38] sm:$0xff]   ;;  %v2441_v49 = vld [vmem:[#allocation12] sm:$0xff]  }
  0xf1   : > { %v2440_v48 = vld [vmem:[#allocation9 + $0x38] sm:$0xff]   ;;  %v2442_v63 = vld [vmem:[#allocation12 + $0x8] sm:$0xff]   ;;  %v2443_v4 = vld [vmem:[#allocation12 + $0x10] sm:$0xff]  }
  0xf2   : > { %2117 = vmatpush3.bf16.msra.mxu0 %v3139_v12  ;;  %2149 = vmatpush3.bf16.msra.mxu1 %v3139_v12 }
  0xf3   : > { %2166 = vmatprep.subr.bf16.mxu0 %v3055_v35  ;;  %2198 = vmatprep.subr.bf16.mxu1 %v2425_v21 }
  0xf5   : > { %2119 = vmatmul.mubr.bf16.vlgmr.msra.gmra.mrb[0].mxu0 %v2403_v13  ;;  %2151 = vmatmul.mubr.bf16.vlgmr.msra.gmra.mrb[0].mxu1 %v2404_v14  ;;  %v2444_v14 = vld [vmem:[#allocation12 + $0x18] sm:$0xff]  }
  0xf6   : > { %2167 = vmatpush3.bf16.msra.mxu0 %v3055_v35  ;;  %2122 = vmatprep.mubr.bf16.mxu0 %v2405_v15  ;;  %v2427_v35 = vld [vmem:[#allocation10 + $0x8] sm:$0xff]  }
  0xf7   : > { %2168 = vmatprep.subr.bf16.mxu0 %v3070_v56  ;;  %2154 = vmatprep.mubr.bf16.mxu1 %v2406_v16 }
  0xf8   : > { %2199 = vmatpush3.bf16.msra.mxu1 %v2425_v21 }
  0xf9   : > { %2200 = vmatprep.subr.bf16.mxu1 %v2427_v35 }
  0xfa   : > { %2169 = vmatpush3.bf16.msra.mxu0 %v3070_v56  ;;  %v2413_v56 = vld [vmem:[#allocation4 + $0x30] sm:$0xff]  }
  0xfb   : > { %2170 = vmatprep.subr.bf16.mxu0 %v3083_v8 }
  0xfc   : > { %2201 = vmatpush3.bf16.msra.mxu1 %v2427_v35 }
  0xfd   : > { %2123 = vmatmul.mubr.bf16.gmra.mrb[4].mxu0 %v2407_v17  ;;  %2155 = vmatmul.mubr.bf16.gmra.mrb[4].mxu1 %v2408_v18 }
  0xfe   : > { %2171 = vmatpush3.bf16.msra.mxu0 %v3083_v8  ;;  %2126 = vmatprep.mubr.bf16.mxu0 %v2409_v19  ;;  %v2415_v8 = vld [vmem:[#allocation4 + $0x38] sm:$0xff]   ;;  %v2445_v19 = vld [vmem:[#allocation12 + $0x20] sm:$0xff]  }
  0xff   : > { %2172 = vmatprep.subr.bf16.mxu0 %v3095_v24  ;;  %2158 = vmatprep.mubr.bf16.mxu1 %v2410_v20 }
 0x100   : > { %2202 = vmatprep.subr.bf16.mxu1 %v2429_v26 }
 0x101   : > { %2203 = vmatpush3.bf16.msra.mxu1 %v2429_v26 }
 0x102   : > { %2173 = vmatpush3.bf16.msra.mxu0 %v3095_v24  ;;  %v2431_v24 = vld [vmem:[#allocation10 + $0x18] sm:$0xff]  }
 0x103   : > { %2174 = vmatprep.subr.bf16.mxu0 %v3108_v41  ;;  %2204 = vmatprep.subr.bf16.mxu1 %v2431_v24 }
 0x105   : > { %2127 = vmatmul.mubr.bf16.gmra.mrb[8].mxu0 %v2411_v22  ;;  %2159 = vmatmul.mubr.bf16.gmra.mrb[8].mxu1 %v2412_v23 }
 0x106   : > { %2175 = vmatpush3.bf16.msra.mxu0 %v3108_v41  ;;  %2130 = vmatprep.mubr.bf16.mxu0 %v2413_v56  ;;  %v2434_v41 = vld [vmem:[#allocation9 + $0x20] sm:$0xff]  }
 0x107   : > { %2176 = vmatprep.subr.bf16.mxu0 %v3123_v58  ;;  %2162 = vmatprep.mubr.bf16.mxu1 %v2414_v25 }
 0x108   : > { %2205 = vmatpush3.bf16.msra.mxu1 %v2431_v24 }
 0x109   : > { %2206 = vmatprep.subr.bf16.mxu1 %v2433_v29 }
 0x10a   : > { %2177 = vmatpush3.bf16.msra.mxu0 %v3123_v58 }
 0x10b   : > { %2178 = vmatprep.subr.bf16.mxu0 %v3131_v9 }
 0x10c   : > { %2207 = vmatpush3.bf16.msra.mxu1 %v2433_v29 }
 0x10d   : > { %2131 = vmatmul.mubr.bf16.gmra.mrb[12].mxu0 %v2415_v8  ;;  %2163 = vmatmul.mubr.bf16.gmra.mrb[12].mxu1 %v2416_v27  ;;  %v2446_v8 = vld [vmem:[#allocation12 + $0x28] sm:$0xff]  }
 0x10e   : > { %2179 = vmatpush3.bf16.msra.mxu0 %v3131_v9  ;;  %2182 = vmatprep.mubr.bf16.mxu0 %v2417_v28 }
 0x10f   : > { %2180 = vmatprep.subr.bf16.mxu0 %v3139_v12  ;;  %2208 = vmatprep.subr.bf16.mxu1 %v2435_v32 }
 0x110   : > { %2209 = vmatpush3.bf16.msra.mxu1 %v2435_v32 }
 0x111   : > { %2210 = vmatprep.subr.bf16.mxu1 %v2437_v36 }
 0x112   : > { %2181 = vmatpush3.bf16.msra.mxu0 %v3139_v12 }
 0x113   : > { %2230 = vmatprep.subr.bf16.mxu0 %v2426_v30 }
 0x114   : > { %2211 = vmatpush3.bf16.msra.mxu1 %v2437_v36 }
 0x115   : > { %2183 = vmatmul.mubr.bf16.vlgmr.msra.gmra.mrb[16].mxu0 %v2418_v31  ;;  %2212 = vmatprep.subr.bf16.mxu1 %v2439_v47 }
 0x116   : > { %2186 = vmatprep.mubr.bf16.mxu0 %v2419_v33  ;;  %2231 = vmatpush3.bf16.msra.mxu0 %v2426_v30  ;;  %v2447_v30 = vld [vmem:[#allocation12 + $0x30] sm:$0xff]  }
 0x117   : > { %2232 = vmatprep.subr.bf16.mxu0 %v2428_v34 }
 0x118   : > { %2213 = vmatpush3.bf16.msra.mxu1 %v2439_v47 }
 0x119   : > { %2262 = vmatprep.subr.bf16.mxu1 %v2441_v49 }
 0x11a   : > { %2233 = vmatpush3.bf16.msra.mxu0 %v2428_v34 }
 0x11b   : > { %2234 = vmatprep.subr.bf16.mxu0 %v2430_v37 }
 0x11d   : > { %2187 = vmatmul.mubr.bf16.gmra.mrb[20].mxu0 %v2420_v38 }
 0x11e   : > { %2190 = vmatprep.mubr.bf16.mxu0 %v2421_v39  ;;  %2235 = vmatpush3.bf16.msra.mxu0 %v2430_v37 }
 0x11f   : > { %2236 = vmatprep.subr.bf16.mxu0 %v2432_v40 }
 0x122   : > { %2237 = vmatpush3.bf16.msra.mxu0 %v2432_v40  ;;  %v2448_v40 = vld [vmem:[#allocation12 + $0x38] sm:$0xff]  }
 0x123   : > { %2238 = vmatprep.subr.bf16.mxu0 %v2434_v41 }
 0x125   : > { %2191 = vmatmul.mubr.bf16.gmra.mrb[24].mxu0 %v2422_v42 }
 0x126   : > { %2194 = vmatprep.mubr.bf16.mxu0 %v2423_v43  ;;  %2239 = vmatpush3.bf16.msra.mxu0 %v2434_v41 }
 0x127   : > { %2240 = vmatprep.subr.bf16.mxu0 %v2436_v44 }
 0x12a   : > { %2241 = vmatpush3.bf16.msra.mxu0 %v2436_v44 }
 0x12b   : > { %2242 = vmatprep.subr.bf16.mxu0 %v2438_v45 }
 0x12d   : > { %2195 = vmatmul.mubr.bf16.gmra.mrb[28].mxu0 %v2424_v46 }
 0x12e   : > { %2243 = vmatpush3.bf16.msra.mxu0 %v2438_v45 }
 0x12f   : > { %2244 = vmatprep.subr.bf16.mxu0 %v2440_v48 }
 0x132   : > { %2245 = vmatpush3.bf16.msra.mxu0 %v2440_v48 }
 0x1c8   : > { %v2120_v50 = vpop.f32.mrb[0].mxu0  ;;  %v2152_v51 = vpop.f32.mrb[0].mxu1 }
 0x1c9   : > { %v757_v52 = vpop.f32.mrb[1].mxu0  ;;  %v910_v53 = vpop.f32.mrb[1].mxu1 }
 0x1ca   : > { %v2121_v54 = vpop.f32.mrb[2].mxu0  ;;  %v2153_v55 = vpop.f32.mrb[2].mxu1 }
 0x1cb   : > { %v821_v57 = vpack.c.bf16 %v2121_v54, %v2120_v50  ;;  %v974_v58 = vpack.c.bf16 %v2153_v55, %v2152_v51  ;;  %v760_v59 = vpop.f32.mrb[3].mxu0  ;;  %v913_v60 = vpop.f32.mrb[3].mxu1 }
 0x1cc   : > { %v820_v61 = vpack.c.bf16 %v760_v59, %v757_v52  ;;  %v973_v62 = vpack.c.bf16 %v913_v60, %v910_v53 }
 0x1ce   : > { %2214 = vmatprep.mubr.bf16.mxu1 %v820_v61  ;;  %2246 = vmatprep.mubr.bf16.mxu0 %v973_v62 }
 0x1cf   : > { %2215 = vmatmul.mubr.bf16.vlgmr.msra.gmra.mrb[16].mxu1 %v821_v57  ;;  %2247 = vmatmul.mubr.bf16.vlgmr.msra.gmra.mrb[32].mxu0 %v974_v58 }
 0x1d0   : > { %v2124_v0 = vpop.f32.mrb[4].mxu0  ;;  %v2156_v1 = vpop.f32.mrb[4].mxu1  ;;  %2263 = vmatpush3.bf16.msra.mxu1 %v2441_v49 }
 0x1d1   : > { %v773_v2 = vpop.f32.mrb[5].mxu0  ;;  %v926_v3 = vpop.f32.mrb[5].mxu1  ;;  %2264 = vmatprep.subr.bf16.mxu1 %v2442_v63 }
 0x1d2   : > { %v2125_v5 = vpop.f32.mrb[6].mxu0  ;;  %v2157_v6 = vpop.f32.mrb[6].mxu1 }
 0x1d3   : > { %v823_v7 = vpack.c.bf16 %v2125_v5, %v2124_v0  ;;  %v976_v9 = vpack.c.bf16 %v2157_v6, %v2156_v1  ;;  %v776_v10 = vpop.f32.mrb[7].mxu0  ;;  %v929_v11 = vpop.f32.mrb[7].mxu1 }
 0x1d4   : > { %v822_v12 = vpack.c.bf16 %v776_v10, %v773_v2  ;;  %v975_v13 = vpack.c.bf16 %v929_v11, %v926_v3  ;;  %2265 = vmatpush3.bf16.msra.mxu1 %v2442_v63 }
 0x1d5   : > { %2266 = vmatprep.subr.bf16.mxu1 %v2443_v4 }
 0x1d6   : > { %2218 = vmatprep.mubr.bf16.mxu1 %v822_v12  ;;  %2250 = vmatprep.mubr.bf16.mxu0 %v975_v13 }
 0x1d7   : > { %2219 = vmatmul.mubr.bf16.gmra.mrb[20].mxu1 %v823_v7  ;;  %2251 = vmatmul.mubr.bf16.gmra.mrb[36].mxu0 %v976_v9 }
 0x1d8   : > { %v2128_v15 = vpop.f32.mrb[8].mxu0  ;;  %v2160_v16 = vpop.f32.mrb[8].mxu1  ;;  %2267 = vmatpush3.bf16.msra.mxu1 %v2443_v4 }
 0x1d9   : > { %v789_v17 = vpop.f32.mrb[9].mxu0  ;;  %v942_v18 = vpop.f32.mrb[9].mxu1  ;;  %2268 = vmatprep.subr.bf16.mxu1 %v2444_v14 }
 0x1da   : > { %v2129_v20 = vpop.f32.mrb[10].mxu0  ;;  %v2161_v21 = vpop.f32.mrb[10].mxu1 }
 0x1db   : > { %v825_v35 = vpack.c.bf16 %v2129_v20, %v2128_v15  ;;  %v978_v22 = vpack.c.bf16 %v2161_v21, %v2160_v16  ;;  %v792_v23 = vpop.f32.mrb[11].mxu0  ;;  %v945_v56 = vpop.f32.mrb[11].mxu1 }
 0x1dc   : > { %v824_v25 = vpack.c.bf16 %v792_v23, %v789_v17  ;;  %v977_v26 = vpack.c.bf16 %v945_v56, %v942_v18  ;;  %2269 = vmatpush3.bf16.msra.mxu1 %v2444_v14 }
 0x1dd   : > { %2270 = vmatprep.subr.bf16.mxu1 %v2445_v19 }
 0x1de   : > { %2222 = vmatprep.mubr.bf16.mxu1 %v824_v25  ;;  %2254 = vmatprep.mubr.bf16.mxu0 %v977_v26 }
 0x1df   : > { %2223 = vmatmul.mubr.bf16.gmra.mrb[24].mxu1 %v825_v35  ;;  %2255 = vmatmul.mubr.bf16.gmra.mrb[40].mxu0 %v978_v22 }
 0x1e0   : > { %v2132_v27 = vpop.f32.mrb[12].mxu0  ;;  %v2164_v28 = vpop.f32.mrb[12].mxu1  ;;  %2271 = vmatpush3.bf16.msra.mxu1 %v2445_v19 }
 0x1e1   : > { %v805_v24 = vpop.f32.mrb[13].mxu0  ;;  %v958_v29 = vpop.f32.mrb[13].mxu1  ;;  %2272 = vmatprep.subr.bf16.mxu1 %v2446_v8 }
 0x1e2   : > { %v2133_v31 = vpop.f32.mrb[14].mxu0  ;;  %v2165_v32 = vpop.f32.mrb[14].mxu1 }
 0x1e3   : > { %v827_v33 = vpack.c.bf16 %v2133_v31, %v2132_v27  ;;  %v980_v34 = vpack.c.bf16 %v2165_v32, %v2164_v28  ;;  %v808_v36 = vpop.f32.mrb[15].mxu0  ;;  %v961_v37 = vpop.f32.mrb[15].mxu1 }
 0x1e4   : > { %v826_v38 = vpack.c.bf16 %v808_v36, %v805_v24  ;;  %v979_v39 = vpack.c.bf16 %v961_v37, %v958_v29  ;;  %2273 = vmatpush3.bf16.msra.mxu1 %v2446_v8 }
 0x1e5   : > { %2274 = vmatprep.subr.bf16.mxu1 %v2447_v30 }
 0x1e6   : > { %2226 = vmatprep.mubr.bf16.mxu1 %v826_v38  ;;  %2258 = vmatprep.mubr.bf16.mxu0 %v979_v39 }
 0x1e7   : > { %2227 = vmatmul.mubr.bf16.gmra.mrb[28].mxu1 %v827_v33  ;;  %2259 = vmatmul.mubr.bf16.gmra.mrb[44].mxu0 %v980_v34 }
 0x1e8   : > { %v2184_v41 = vpop.f32.mrb[16].mxu0  ;;  %2275 = vmatpush3.bf16.msra.mxu1 %v2447_v30 }
 0x1e9   : > { %v1063_v42 = vpop.f32.mrb[17].mxu0  ;;  %2276 = vmatprep.subr.bf16.mxu1 %v2448_v40 }
 0x1ea   : > { %v2185_v43 = vpop.f32.mrb[18].mxu0 }
 0x1eb   : > { %v1127_v44 = vpack.c.bf16 %v2185_v43, %v2184_v41  ;;  %v1066_v45 = vpop.f32.mrb[19].mxu0 }
 0x1ec   : > { %v1126_v46 = vpack.c.bf16 %v1066_v45, %v1063_v42  ;;  %2277 = vmatpush3.bf16.msra.mxu1 %v2448_v40 }
 0x1ee   : > { %2278 = vmatprep.mubr.bf16.mxu1 %v1126_v46 }
 0x1ef   : > { %2279 = vmatmul.mubr.bf16.vlgmr.msra.gmra.mrb[32].mxu1 %v1127_v44 }
 0x1f0   : > { %v2188_v47 = vpop.f32.mrb[20].mxu0 }
 0x1f1   : > { %v1079_v48 = vpop.f32.mrb[21].mxu0 }
 0x1f2   : > { %v2189_v49 = vpop.f32.mrb[22].mxu0 }
 0x1f3   : > { %v1129_v50 = vpack.c.bf16 %v2189_v49, %v2188_v47  ;;  %v1082_v51 = vpop.f32.mrb[23].mxu0 }
 0x1f4   : > { %v1128_v52 = vpack.c.bf16 %v1082_v51, %v1079_v48 }
 0x1f6   : > { %2282 = vmatprep.mubr.bf16.mxu1 %v1128_v52 }
 0x1f7   : > { %2283 = vmatmul.mubr.bf16.gmra.mrb[36].mxu1 %v1129_v50 }
 0x1f8   : > { %v2192_v53 = vpop.f32.mrb[24].mxu0 }
 0x1f9   : > { %v1095_v54 = vpop.f32.mrb[25].mxu0 }
 0x1fa   : > { %v2193_v55 = vpop.f32.mrb[26].mxu0 }
 0x1fb   : > { %v1131_v57 = vpack.c.bf16 %v2193_v55, %v2192_v53  ;;  %v1098_v58 = vpop.f32.mrb[27].mxu0 }
 0x1fc   : > { %v1130_v59 = vpack.c.bf16 %v1098_v58, %v1095_v54 }
 0x1fe   : > { %2286 = vmatprep.mubr.bf16.mxu1 %v1130_v59 }
 0x1ff   : > { %2287 = vmatmul.mubr.bf16.gmra.mrb[40].mxu1 %v1131_v57 }
 0x200   : > { %v2196_v60 = vpop.f32.mrb[28].mxu0 }
 0x201   : > { %v1111_v61 = vpop.f32.mrb[29].mxu0 }
 0x202   : > { %v2197_v62 = vpop.f32.mrb[30].mxu0 }
 0x203   : > { %v1133_v63 = vpack.c.bf16 %v2197_v62, %v2196_v60  ;;  %v1114_v0 = vpop.f32.mrb[31].mxu0 }
 0x204   : > { %v1132_v1 = vpack.c.bf16 %v1114_v0, %v1111_v61 }
 0x206   : > { %2290 = vmatprep.mubr.bf16.mxu1 %v1132_v1 }
 0x207   : > { %2291 = vmatmul.mubr.bf16.gmra.mrb[44].mxu1 %v1133_v63 }
 0x2a2   : > { %v2216_v2 = vpop.f32.mrb[16].mxu1  ;;  %v2248_v3 = vpop.f32.mrb[32].mxu0 }
 0x2a3   : > { %v1571_v4 = vmul.f32 %v2248_v3, %v2216_v2  ;;  %v1216_v5 = vpop.f32.mrb[17].mxu1  ;;  %v1361_v6 = vpop.f32.mrb[33].mxu0 }
 0x2a4   : > { %v1569_v7 = vmul.f32 %v1361_v6, %v1216_v5  ;;  %v2217_v9 = vpop.f32.mrb[18].mxu1  ;;  %v2249_v10 = vpop.f32.mrb[34].mxu0 }
 0x2a5   : > { %v1572_v11 = vmul.f32 %v2249_v10, %v2217_v9  ;;  %v1219_v12 = vpop.f32.mrb[19].mxu1  ;;  %v1364_v13 = vpop.f32.mrb[35].mxu0 }
 0x2a6   : > { %v1570_v14 = vmul.f32 %v1364_v13, %v1219_v12 }
 0x2aa   : > { %v2220_v15 = vpop.f32.mrb[20].mxu1  ;;  %v2252_v16 = vpop.f32.mrb[36].mxu0 }
 0x2ab   : > { %v3163_v17 = vmul.f32 %v2252_v16, %v2220_v15  ;;  %v1232_v18 = vpop.f32.mrb[21].mxu1  ;;  %v1377_v19 = vpop.f32.mrb[37].mxu0 }
 0x2ac   : > { %v3165_v20 = vmul.f32 %v1377_v19, %v1232_v18  ;;  %v2221_v21 = vpop.f32.mrb[22].mxu1  ;;  %v2253_v35 = vpop.f32.mrb[38].mxu0 }
 0x2ad   : > { %v1576_v22 = vmul.f32 %v2253_v35, %v2221_v21  ;;  %v1235_v23 = vpop.f32.mrb[23].mxu1  ;;  %v1380_v56 = vpop.f32.mrb[39].mxu0 }
 0x2ae   : > { %v1574_v25 = vmul.f32 %v1380_v56, %v1235_v23 }
 0x2b2   : > { %v2224_v26 = vpop.f32.mrb[24].mxu1  ;;  %v2256_v8 = vpop.f32.mrb[40].mxu0 }
 0x2b3   : > { %v3167_v27 = vmul.f32 %v2256_v8, %v2224_v26  ;;  %v1248_v28 = vpop.f32.mrb[25].mxu1  ;;  %v1393_v24 = vpop.f32.mrb[41].mxu0 }
 0x2b4   : > { %v3169_v29 = vmul.f32 %v1393_v24, %v1248_v28  ;;  %v2225_v30 = vpop.f32.mrb[26].mxu1  ;;  %v2257_v31 = vpop.f32.mrb[42].mxu0 }
 0x2b5   : > { %v3171_v32 = vmul.f32 %v2257_v31, %v2225_v30  ;;  %v1251_v33 = vpop.f32.mrb[27].mxu1  ;;  %v1396_v34 = vpop.f32.mrb[43].mxu0 }
 0x2b6   : > { %v1578_v36 = vmul.f32 %v1396_v34, %v1251_v33 }
 0x2ba   : > { %v2228_v37 = vpop.f32.mrb[28].mxu1  ;;  %v2260_v38 = vpop.f32.mrb[44].mxu0 }
 0x2bb   : > { %v3173_v39 = vmul.f32 %v2260_v38, %v2228_v37  ;;  %v1264_v40 = vpop.f32.mrb[29].mxu1  ;;  %v1409_v41 = vpop.f32.mrb[45].mxu0 }
 0x2bc   : > { %v3175_v42 = vmul.f32 %v1409_v41, %v1264_v40  ;;  %v2229_v43 = vpop.f32.mrb[30].mxu1  ;;  %v2261_v44 = vpop.f32.mrb[46].mxu0 }
 0x2bd   : > { %v3177_v45 = vmul.f32 %v2261_v44, %v2229_v43  ;;  %v1267_v46 = vpop.f32.mrb[31].mxu1  ;;  %v1412_v47 = vpop.f32.mrb[47].mxu0 }
 0x2be   : > { %v3179_v48 = vmul.f32 %v1412_v47, %v1267_v46 }
 0x2c2   : > { %v2280_v49 = vpop.f32.mrb[32].mxu1 }
 0x2c3   : > { %v1587_v50 = vmul.f32 %v2280_v49, %v2280_v49  ;;  %v1506_v51 = vpop.f32.mrb[33].mxu1 }
 0x2c4   : > { %v1585_v52 = vmul.f32 %v1506_v51, %v1506_v51  ;;  %v2281_v53 = vpop.f32.mrb[34].mxu1 }
 0x2c5   : > { %v1603_v54 = vsub.f32 %v1571_v4, %v1587_v50  ;;  %v1588_v55 = vmul.f32 %v2281_v53, %v2281_v53  ;;  %v1509_v57 = vpop.f32.mrb[35].mxu1 }
 0x2c6   : > { %v1601_v58 = vsub.f32 %v1569_v7, %v1585_v52  ;;  %v1586_v59 = vmul.f32 %v1509_v57, %v1509_v57 }
 0x2c7   : > { %v1604_v60 = vsub.f32 %v1572_v11, %v1588_v55 }
 0x2c8   : > { %v1602_v61 = vsub.f32 %v1570_v14, %v1586_v59 }
 0x2c9   : > { %v1967_v62 = vpack.c.bf16 %v1604_v60, %v1603_v54 }
 0x2ca   : > { %v1962_v63 = vpack.c.bf16 %v1602_v61, %v1601_v58  ;;  %v2284_v0 = vpop.f32.mrb[36].mxu1 }
 0x2cb   : > { %1999 = vst [vmem:[%s3185_s17 + $0x8] sm:$0xff] %v1967_v62   ;;  %v1591_v1 = vmul.f32 %v2284_v0, %v2284_v0  ;;  %v1522_v2 = vpop.f32.mrb[37].mxu1 }
 0x2cc   : > { %1963 = vst [vmem:[%s3185_s17] sm:$0xff] %v1962_v63   ;;  %v1589_v3 = vmul.f32 %v1522_v2, %v1522_v2  ;;  %v2285_v4 = vpop.f32.mrb[38].mxu1 }
 0x2cd   : > { %v1607_v5 = vsub.f32 %v3163_v17, %v1591_v1  ;;  %v1592_v6 = vmul.f32 %v2285_v4, %v2285_v4  ;;  %v1525_v7 = vpop.f32.mrb[39].mxu1 }
 0x2ce   : > { %v1605_v9 = vsub.f32 %v3165_v20, %v1589_v3  ;;  %v1590_v10 = vmul.f32 %v1525_v7, %v1525_v7 }
 0x2cf   : > { %v1608_v11 = vsub.f32 %v1576_v22, %v1592_v6 }
 0x2d0   : > { %v1606_v12 = vsub.f32 %v1574_v25, %v1590_v10 }
 0x2d1   : > { %v1977_v13 = vpack.c.bf16 %v1608_v11, %v1607_v5 }
 0x2d2   : > { %v1972_v14 = vpack.c.bf16 %v1606_v12, %v1605_v9  ;;  %v2288_v15 = vpop.f32.mrb[40].mxu1 }
 0x2d3   : > { %2001 = vst [vmem:[%s3185_s17 + $0x18] sm:$0xff] %v1977_v13   ;;  %v1595_v16 = vmul.f32 %v2288_v15, %v2288_v15  ;;  %v1538_v18 = vpop.f32.mrb[41].mxu1 }
 0x2d4   : > { %2000 = vst [vmem:[%s3185_s17 + $0x10] sm:$0xff] %v1972_v14   ;;  %v1593_v19 = vmul.f32 %v1538_v18, %v1538_v18  ;;  %v2289_v21 = vpop.f32.mrb[42].mxu1 }
 0x2d5   : > { %v1611_v17 = vsub.f32 %v3167_v27, %v1595_v16  ;;  %v1596_v35 = vmul.f32 %v2289_v21, %v2289_v21  ;;  %v1541_v23 = vpop.f32.mrb[43].mxu1 }
 0x2d6   : > { %v1609_v20 = vsub.f32 %v3169_v29, %v1593_v19  ;;  %v1594_v56 = vmul.f32 %v1541_v23, %v1541_v23 }
 0x2d7   : > { %v1612_v22 = vsub.f32 %v3171_v32, %v1596_v35 }
 0x2d8   : > { %v1610_v25 = vsub.f32 %v1578_v36, %v1594_v56 }
 0x2d9   : > { %v1987_v26 = vpack.c.bf16 %v1612_v22, %v1611_v17 }
 0x2da   : > { %v1982_v8 = vpack.c.bf16 %v1610_v25, %v1609_v20  ;;  %v2292_v28 = vpop.f32.mrb[44].mxu1 }
 0x2db   : > { %2003 = vst [vmem:[%s3185_s17 + $0x28] sm:$0xff] %v1987_v26   ;;  %v1599_v24 = vmul.f32 %v2292_v28, %v2292_v28  ;;  %v1554_v30 = vpop.f32.mrb[45].mxu1 }
 0x2dc   : > { %2002 = vst [vmem:[%s3185_s17 + $0x20] sm:$0xff] %v1982_v8   ;;  %v1597_v31 = vmul.f32 %v1554_v30, %v1554_v30  ;;  %v2293_v33 = vpop.f32.mrb[46].mxu1 }
 0x2dd   : > { %v1615_v27 = vsub.f32 %v3173_v39, %v1599_v24  ;;  %v1600_v34 = vmul.f32 %v2293_v33, %v2293_v33  ;;  %v1557_v37 = vpop.f32.mrb[47].mxu1 }
 0x2de   : > { %v1613_v29 = vsub.f32 %v3175_v42, %v1597_v31  ;;  %v1598_v38 = vmul.f32 %v1557_v37, %v1557_v37 }
 0x2df   : > { %v1616_v32 = vsub.f32 %v3177_v45, %v1600_v34 }
 0x2e0   : > { %v1614_v36 = vsub.f32 %v3179_v48, %v1598_v38 }
 0x2e1   : > { %v1997_v40 = vpack.c.bf16 %v1616_v32, %v1615_v27 }
 0x2e2   : > { %v1992_v41 = vpack.c.bf16 %v1614_v36, %v1613_v29 }
 0x2e3   : > { %2005 = vst [vmem:[%s3185_s17 + $0x38] sm:$0xff] %v1997_v40  }
 0x2e4   : > { %2004 = vst [vmem:[%s3185_s17 + $0x30] sm:$0xff] %v1992_v41  }
 0x2e5 PF: > { %p22_p4 = scmp.ge.s32.totalorder %s2943_s15, 4   ;;  %s3243_s27 = smov %s2685_s28 }
 0x2e6   : > { %s3244_s28 = smov %s2689_s29  ;;  %s3245_s29 = smov %s2955_s1 }
 0x2e7   : > { %s3246_s30 = smov %s2943_s15  ;;  %24 = sbr.rel (!%p22_p4) target bundleno = 8 (0x8), region = 124 }
 0x2ee   :  { %1734 = vsyncpa [#allocation3], 1 }
 0x2ef   :  { %1736 = vsyncpa [#allocation3 + $0x1], 1 }
 0x2f0   :  { %1737 = vsyncpa [#allocation5], 1 }
 0x2f1   :  { %1738 = vsyncpa [#allocation8], 1 }
 0x2f2   :  { %1739 = vsyncpa [#allocation11], 1 }

// kernel: sift_forward.3
= control target key start
LH: loop header
LB: loop body
LE: loop exit
PB: predicated region body
PF: predicated region fallthrough
CT: control target
= control target key end

     0   :  { %s5795_s16 = smov 127   ;;  %s5796_s25 = smov 1   ;;  %s12020_s0 = inlined_call_operand.vmem [shape: f32[32,1024], index: 0, kind: input, shape index: {}]   ;;  %s12021_s1 = inlined_call_operand.vmem [shape: f32[1,1024], index: 1, kind: input, shape index: {}]   ;;  %s12022_s2 = inlined_call_operand.vmem [shape: bf16[1024,64], index: 2, kind: input, shape index: {}]   ;;  %s12023_s3 = inlined_call_operand.hbm [shape: f32[32,512], index: 3, kind: output, shape index: {}]  }
   0x1   :  { %v18_v0 = vld [vmem:[%s12020_s0 + $0x10] sm:$0xff]  ;;  %v17_v1 = vld [vmem:[%s12020_s0 + $0x8] sm:$0xff]  ;;  %v24_v4 = vld [vmem:[%s12020_s0 + $0x40] sm:$0xff]  ;;  %s5797_s26 = smov 96   ;;  %s5798_s27 = smov 32  }
   0x2   :  { %193 = vrot.lane.b32.xlu1 %v18_v0, %s5795_s16  ;;  %185 = vrot.lane.b32.xlu0 %v17_v1, %s5795_s16  ;;  %v26_v2 = vld [vmem:[%s12020_s0 + $0x50] sm:$0xff]  ;;  %v25_v3 = vld [vmem:[%s12020_s0 + $0x48] sm:$0xff] }
   0x3   :  { %v16_v5 = vld [vmem:[%s12020_s0] sm:$0xff]  ;;  %v5859_v6 = vld [vmem:[%s12020_s0 + $0x78] sm:$0xff] }
   0x4   :  { %v5864_v7 = vld [vmem:[%s12020_s0 + $0x38] sm:$0xff]  ;;  %v5887_v10 = vld [vmem:[%s12020_s0 + $0x60] sm:$0xff] }
   0x5   :  { %v27_v8 = vld [vmem:[%s12020_s0 + $0x58] sm:$0xff]  ;;  %v5892_v11 = vld [vmem:[%s12020_s0 + $0x20] sm:$0xff] }
   0x6   :  { %195 = vrot.lane.b32.xlu1 %v26_v2, %s5795_s16  ;;  %187 = vrot.lane.b32.xlu0 %v25_v3, %s5795_s16  ;;  %v19_v9 = vld [vmem:[%s12020_s0 + $0x18] sm:$0xff] }
   0xa   :  { %278 = vrot.lane.b32.xlu1 %v24_v4, %s5796_s25  ;;  %276 = vrot.lane.b32.xlu0 %v16_v5, %s5796_s25 }
   0xe   :  { %286 = vrot.lane.b32.xlu1 %v25_v3, %s5796_s25  ;;  %284 = vrot.lane.b32.xlu0 %v17_v1, %s5796_s25 }
  0x12   :  { %447 = vrot.lane.b32.xlu1 %v25_v3, %s5797_s26  ;;  %445 = vrot.lane.b32.xlu0 %v17_v1, %s5797_s26 }
  0x16   :  { %455 = vrot.lane.b32.xlu1 %v26_v2, %s5797_s26  ;;  %453 = vrot.lane.b32.xlu0 %v18_v0, %s5797_s26 }
  0x1a   :  { %536 = vrot.lane.b32.xlu1 %v24_v4, %s5798_s27  ;;  %534 = vrot.lane.b32.xlu0 %v16_v5, %s5798_s27 }
  0x1e   :  { %544 = vrot.lane.b32.xlu1 %v25_v3, %s5798_s27  ;;  %542 = vrot.lane.b32.xlu0 %v17_v1, %s5798_s27 }
  0x22   :  { %179 = vrot.lane.b32.xlu1 %v24_v4, %s5795_s16  ;;  %177 = vrot.lane.b32.xlu0 %v16_v5, %s5795_s16 }
  0x26   :  { %334 = vrot.lane.b32.xlu1 %v5859_v6, %s5796_s25  ;;  %332 = vrot.lane.b32.xlu0 %v5864_v7, %s5796_s25 }
  0x2a   :  { %439 = vrot.lane.b32.xlu1 %v24_v4, %s5797_s26  ;;  %437 = vrot.lane.b32.xlu0 %v16_v5, %s5797_s26 }
  0x2e   :  { %592 = vrot.lane.b32.xlu1 %v5859_v6, %s5798_s27  ;;  %590 = vrot.lane.b32.xlu0 %v5864_v7, %s5798_s27 }
  0x32   :  { %203 = vrot.lane.b32.xlu1 %v27_v8, %s5795_s16  ;;  %201 = vrot.lane.b32.xlu0 %v19_v9, %s5795_s16 }
  0x36   :  { %211 = vrot.lane.b32.xlu1 %v5887_v10, %s5795_s16  ;;  %209 = vrot.lane.b32.xlu0 %v5892_v11, %s5795_s16 }
  0x3a   :  { %294 = vrot.lane.b32.xlu1 %v26_v2, %s5796_s25  ;;  %292 = vrot.lane.b32.xlu0 %v18_v0, %s5796_s25 }
  0x3b   :  { %8 = vsyncpa [#allocation3], 0  ;;  %v41_v12 = vld [vmem:[%s12020_s0 + $0xc8] sm:$0xff]  ;;  %v5925_v14 = vld [vmem:[%s12020_s0 + $0xd0] sm:$0xff]  ;;  %v12024_v39 = vlaneseq }
  0x3c   :  { %v33_v13 = vld [vmem:[%s12020_s0 + $0x88] sm:$0xff]  ;;  %v5930_v15 = vld [vmem:[%s12020_s0 + $0x90] sm:$0xff]  ;;  %v40_v16 = vld [vmem:[%s12020_s0 + $0xc0] sm:$0xff] }
  0x3d   :  { %v32_v17 = vld [vmem:[%s12020_s0 + $0x80] sm:$0xff]  ;;  %v5522_v20 = vld [vmem:[%s12022_s2 + $0x48] sm:$0xff]   ;;  %v5973_v22 = vld [vmem:[%s12020_s0 + $0xf8] sm:$0xff]  ;;  %v6056_v46 = vand.u32 127, %v12024_v39 }
  0x3e   :  { %302 = vrot.lane.b32.xlu1 %v27_v8, %s5796_s25  ;;  %300 = vrot.lane.b32.xlu0 %v19_v9, %s5796_s25  ;;  %v5520_v18 = vld [vmem:[%s12022_s2 + $0x40] sm:$0xff]   ;;  %v5523_v21 = vld [vmem:[%s12022_s2 + $0x8] sm:$0xff]   ;;  %12409 = vst [vmem:[#allocation5_spill] sm:$0xff] %v5973_v22 }
  0x3f   :  { %v5521_v19 = vld [vmem:[%s12022_s2] sm:$0xff]   ;;  %5065 = vmatprep.subr.bf16.mxu0 %v5520_v18  ;;  %v5978_v23 = vld [vmem:[%s12020_s0 + $0xb8] sm:$0xff]  ;;  %v5524_v24 = vld [vmem:[%s12022_s2 + $0x50] sm:$0xff]   ;;  %vm340_vm0 = vcmp.lt.s32.totalorder %v6056_v46, 1  ;;  %vm243_vm1 = vcmp.lt.s32.totalorder %v6056_v46, 127  ;;  %vm12219_vm2 = vcmp.lt.s32.totalorder %v6056_v46, 96 }
  0x40   :  { %5066 = vmatpush3.bf16.msra.mxu0 %v5521_v19  ;;  %12410 = vst [vmem:[#allocation6_spill] sm:$0xff] %v5978_v23  ;;  %v5525_v25 = vld [vmem:[%s12022_s2 + $0x10] sm:$0xff]   ;;  %v5526_v28 = vld [vmem:[%s12022_s2 + $0x58] sm:$0xff]   ;;  %v5528_v32 = vld [vmem:[%s12022_s2 + $0x60] sm:$0xff]   ;;  %vm12218_vm3 = vcmp.lt.s32.totalorder %v6056_v46, 32 }
  0x41   :  { %5067 = vmatprep.subr.bf16.mxu0 %v5522_v20  ;;  %v5527_v29 = vld [vmem:[%s12022_s2 + $0x18] sm:$0xff]   ;;  %v5529_v40 = vld [vmem:[%s12022_s2 + $0x20] sm:$0xff]   ;;  %v5530_v45 = vld [vmem:[%s12022_s2 + $0x68] sm:$0xff]  }
  0x42   :  { %463 = vrot.lane.b32.xlu1 %v27_v8, %s5797_s26  ;;  %461 = vrot.lane.b32.xlu0 %v19_v9, %s5797_s26  ;;  %v6020_v35 = vld [vmem:[%s12020_s0 + $0xd8] sm:$0xff]  ;;  %v6041_v41 = vld [vmem:[%s12020_s0 + $0xe0] sm:$0xff] }
  0x43   :  { %v6025_v36 = vld [vmem:[%s12020_s0 + $0x98] sm:$0xff]  ;;  %v6046_v42 = vld [vmem:[%s12020_s0 + $0xa0] sm:$0xff]  ;;  %v5531_v47 = vld [vmem:[%s12022_s2 + $0x28] sm:$0xff]  }
  0x44   :  { %5068 = vmatpush3.bf16.msra.mxu0 %v5523_v21  ;;  %v5532_v51 = vld [vmem:[%s12022_s2 + $0x70] sm:$0xff]   ;;  %v5534_v60 = vld [vmem:[%s12022_s2 + $0x78] sm:$0xff]  }
  0x45   :  { %5069 = vmatprep.subr.bf16.mxu0 %v5524_v24  ;;  %v5533_v55 = vld [vmem:[%s12022_s2 + $0x30] sm:$0xff]   ;;  %v5535_v63 = vld [vmem:[%s12022_s2 + $0x38] sm:$0xff]  }
  0x46   :  { %471 = vrot.lane.b32.xlu1 %v5887_v10, %s5797_s26  ;;  %469 = vrot.lane.b32.xlu0 %v5892_v11, %s5797_s26 }
  0x48   :  { %5070 = vmatpush3.bf16.msra.mxu0 %v5525_v25 }
  0x49   :  { %5071 = vmatprep.subr.bf16.mxu0 %v5526_v28 }
  0x4a   :  { %552 = vrot.lane.b32.xlu1 %v26_v2, %s5798_s27  ;;  %550 = vrot.lane.b32.xlu0 %v18_v0, %s5798_s27 }
  0x4c   :  { %5072 = vmatpush3.bf16.msra.mxu0 %v5527_v29 }
  0x4d   :  { %5073 = vmatprep.subr.bf16.mxu0 %v5528_v32 }
  0x4e   :  { %560 = vrot.lane.b32.xlu1 %v27_v8, %s5798_s27  ;;  %558 = vrot.lane.b32.xlu0 %v19_v9, %s5798_s27 }
  0x50   :  { %5074 = vmatpush3.bf16.msra.mxu0 %v5529_v40 }
  0x51   :  { %5075 = vmatprep.subr.bf16.mxu0 %v5530_v45 }
  0x52   :  { %191 = vrot.lane.b32.xlu1 %v41_v12, %s5795_s16  ;;  %189 = vrot.lane.b32.xlu0 %v33_v13, %s5795_s16 }
  0x54   :  { %5076 = vmatpush3.bf16.msra.mxu0 %v5531_v47 }
  0x55   :  { %5077 = vmatprep.subr.bf16.mxu0 %v5532_v51 }
  0x56   :  { %199 = vrot.lane.b32.xlu1 %v5925_v14, %s5795_s16  ;;  %197 = vrot.lane.b32.xlu0 %v5930_v15, %s5795_s16 }
  0x58   :  { %5078 = vmatpush3.bf16.msra.mxu0 %v5533_v55 }
  0x59   :  { %5079 = vmatprep.subr.bf16.mxu0 %v5534_v60 }
  0x5a   :  { %282 = vrot.lane.b32.xlu1 %v40_v16, %s5796_s25  ;;  %280 = vrot.lane.b32.xlu0 %v32_v17, %s5796_s25 }
  0x5c   :  { %5080 = vmatpush3.bf16.msra.mxu0 %v5535_v63 }
  0x5e   :  { %290 = vrot.lane.b32.xlu1 %v41_v12, %s5796_s25  ;;  %288 = vrot.lane.b32.xlu0 %v33_v13, %s5796_s25 }
  0x62   :  { %451 = vrot.lane.b32.xlu1 %v41_v12, %s5797_s26  ;;  %449 = vrot.lane.b32.xlu0 %v33_v13, %s5797_s26 }
  0x66   :  { %459 = vrot.lane.b32.xlu1 %v5925_v14, %s5797_s26  ;;  %457 = vrot.lane.b32.xlu0 %v5930_v15, %s5797_s26 }
  0x6a   :  { %540 = vrot.lane.b32.xlu1 %v40_v16, %s5798_s27  ;;  %538 = vrot.lane.b32.xlu0 %v32_v17, %s5798_s27 }
  0x6e   :  { %548 = vrot.lane.b32.xlu1 %v41_v12, %s5798_s27  ;;  %546 = vrot.lane.b32.xlu0 %v33_v13, %s5798_s27 }
  0x72   :  { %183 = vrot.lane.b32.xlu1 %v40_v16, %s5795_s16  ;;  %181 = vrot.lane.b32.xlu0 %v32_v17, %s5795_s16 }
  0x74   :  { %v5986_v26 = vpop.permute.xlu1 %193  ;;  %v5988_v27 = vpop.permute.xlu0 %185 }
  0x75   :  { %v264_v57 = vsel %vm243_vm1, %v5988_v27, %v5986_v26 }
  0x76   :  { %338 = vrot.lane.b32.xlu1 %v5973_v22, %s5796_s25  ;;  %336 = vrot.lane.b32.xlu0 %v5978_v23, %s5796_s25 }
  0x78   :  { %v6000_v30 = vpop.permute.xlu1 %195  ;;  %v6002_v31 = vpop.permute.xlu0 %187 }
  0x79   :  { %v265_v56 = vsel %vm243_vm1, %v6002_v31, %v6000_v30 }
  0x7a   :  { %443 = vrot.lane.b32.xlu1 %v40_v16, %s5797_s26  ;;  %441 = vrot.lane.b32.xlu0 %v32_v17, %s5797_s26 }
  0x7c   :  { %v6009_v33 = vpop.permute.xlu1 %278  ;;  %v6011_v34 = vpop.permute.xlu0 %276 }
  0x7e   :  { %596 = vrot.lane.b32.xlu1 %v5973_v22, %s5798_s27  ;;  %594 = vrot.lane.b32.xlu0 %v5978_v23, %s5798_s27 }
  0x80   :  { %v6027_v37 = vpop.permute.xlu1 %286  ;;  %v6029_v38 = vpop.permute.xlu0 %284 }
  0x81   :  { %v366_v50 = vsel %vm340_vm0, %v6009_v33, %v6027_v37  ;;  %v365_v52 = vsel %vm340_vm0, %v6011_v34, %v6029_v38 }
  0x82   :  { %207 = vrot.lane.b32.xlu1 %v6020_v35, %s5795_s16  ;;  %205 = vrot.lane.b32.xlu0 %v6025_v36, %s5795_s16  ;;  %v382_v58 = vsub.f32 %v265_v56, %v366_v50  ;;  %v374_v59 = vsub.f32 %v264_v57, %v365_v52 }
  0x84   :  { %v6048_v43 = vpop.permute.xlu1 %447  ;;  %v6050_v44 = vpop.permute.xlu0 %445  ;;  %v6127_v4 = vmul.f32 0.5, %v382_v58  ;;  %v6133_v9 = vmul.f32 0.5, %v374_v59  ;;  %v5537_v59 = vld [vmem:[%s12022_s2 + $0x80] sm:$0xff]  }
  0x86   :  { %215 = vrot.lane.b32.xlu1 %v6041_v41, %s5795_s16  ;;  %213 = vrot.lane.b32.xlu0 %v6046_v42, %s5795_s16  ;;  %v6144_v18 = vand.u32 2147483647, %v6127_v4  ;;  %v6154_v20 = vand.u32 2147483647, %v6133_v9  ;;  %vm1833_vm6 = vcmp.lt.f32.partialorder %v6127_v4, 0.0  ;;  %vm1825_vm7 = vcmp.lt.f32.partialorder %v6133_v9, 0.0 }
  0x88   :  { %v6066_v48 = vpop.permute.xlu1 %455  ;;  %v6068_v49 = vpop.permute.xlu0 %453 }
  0x89   :  { %v523_v0 = vsel %vm12219_vm2, %v6048_v43, %v6066_v48  ;;  %v522_v1 = vsel %vm12219_vm2, %v6050_v44, %v6068_v49 }
  0x8a   :  { %298 = vrot.lane.b32.xlu1 %v5925_v14, %s5796_s25  ;;  %296 = vrot.lane.b32.xlu0 %v5930_v15, %s5796_s25 }
  0x8c   :  { %v537_v53 = vpop.permute.xlu1 %536  ;;  %v535_v54 = vpop.permute.xlu0 %534 }
  0x8e   :  { %306 = vrot.lane.b32.xlu1 %v6020_v35, %s5796_s25  ;;  %304 = vrot.lane.b32.xlu0 %v6025_v36, %s5796_s25 }
  0x90   :  { %v6106_v61 = vpop.permute.xlu1 %544  ;;  %v6108_v62 = vpop.permute.xlu0 %542 }
  0x91   :  { %v624_v2 = vsel %vm12218_vm3, %v537_v53, %v6106_v61  ;;  %v623_v3 = vsel %vm12218_vm3, %v535_v54, %v6108_v62 }
  0x92   :  { %v640_v5 = vsub.f32 %v523_v0, %v624_v2  ;;  %v632_v8 = vsub.f32 %v522_v1, %v623_v3  ;;  %467 = vrot.lane.b32.xlu1 %v6020_v35, %s5797_s26  ;;  %465 = vrot.lane.b32.xlu0 %v6025_v36, %s5797_s26 }
  0x94   :  { %v6135_v12 = vmul.f32 0.5, %v640_v5  ;;  %v6137_v13 = vmul.f32 0.5, %v632_v8  ;;  %v6139_v16 = vpop.permute.xlu1 %179  ;;  %v6141_v17 = vpop.permute.xlu0 %177 }
  0x95   :  { %12411 = vst [vmem:[#allocation7_spill] sm:$0xff] %v6139_v16  ;;  %12412 = vst [vmem:[#allocation8_spill] sm:$0xff] %v6141_v17  ;;  %v269_v51 = vsel %vm243_vm1, %v6139_v16, %v6002_v31  ;;  %v268_v60 = vsel %vm243_vm1, %v6141_v17, %v5988_v27  ;;  %v5538_v27 = vld [vmem:[%s12022_s2 + $0xc8] sm:$0xff]  }
  0x96   :  { %v6147_v19 = vand.u32 2147483647, %v6135_v12  ;;  %475 = vrot.lane.b32.xlu1 %v6041_v41, %s5797_s26  ;;  %473 = vrot.lane.b32.xlu0 %v6046_v42, %s5797_s26  ;;  %v6157_v21 = vand.u32 2147483647, %v6137_v13  ;;  %vm1929_vm8 = vcmp.lt.f32.partialorder %v6135_v12, 0.0  ;;  %vm1921_vm9 = vcmp.lt.f32.partialorder %v6137_v13, 0.0 }
  0x98   :  { %v1225_v24 = vmax.f32 %v6144_v18, %v6147_v19  ;;  %v6161_v25 = vpop.permute.xlu1 %334  ;;  %v6163_v28 = vpop.permute.xlu0 %332  ;;  %v1217_v29 = vmax.f32 %v6154_v20, %v6157_v21  ;;  %v1193_v3 = vmin.f32 %v6144_v18, %v6147_v19  ;;  %vm1737_vm4 = vcmp.gt.f32.partialorder %v6147_v19, %v6144_v18 }
  0x99   :  { %12413 = vst [vmem:[#allocation9_spill] sm:$0xff] %v6161_v25  ;;  %12414 = vst [vmem:[#allocation10_spill] sm:$0xff] %v6163_v28  ;;  %v370_v45 = vsel %vm340_vm0, %v6161_v25, %v6009_v33  ;;  %v6195_v33 = vld [vmem:[%s12020_s0 + $0x28] sm:$0xff]  ;;  %v369_v57 = vsel %vm340_vm0, %v6163_v28, %v6011_v34  ;;  %v6231_v34 = vld [vmem:[%s12020_s0 + $0x70] sm:$0xff]  ;;  %vm1729_vm5 = vcmp.gt.f32.partialorder %v6157_v21, %v6154_v20 }
  0x9a   :  { %v1257_v32 = vadd.f32 1e-12, %v1225_v24  ;;  %556 = vrot.lane.b32.xlu1 %v5925_v14, %s5798_s27  ;;  %554 = vrot.lane.b32.xlu0 %v5930_v15, %s5798_s27  ;;  %v1249_v40 = vadd.f32 1e-12, %v1217_v29  ;;  %v381_v14 = vsub.f32 %v269_v51, %v370_v45  ;;  %v6190_v15 = vld [vmem:[%s12020_s0 + $0x68] sm:$0xff]  ;;  %v373_v2 = vsub.f32 %v268_v60, %v369_v57 }
  0x9b   :  { %v5539_v29 = vld [vmem:[%s12022_s2 + $0x88] sm:$0xff]  }
  0x9c   :  { %v6175_v47 = vpop.permute.xlu1 %439  ;;  %v6177_v50 = vpop.permute.xlu0 %437  ;;  %5584 = vrcp.f32 %v1257_v32  ;;  %v6211_v56 = vmul.f32 0.5, %v381_v14 }
  0x9d   :  { %12415 = vst [vmem:[#allocation11_spill] sm:$0xff] %v6175_v47  ;;  %12416 = vst [vmem:[#allocation12_spill] sm:$0xff] %v6177_v50  ;;  %5586 = vrcp.f32 %v1249_v40  ;;  %v1185_v40 = vmin.f32 %v6154_v20, %v6157_v21 }
  0x9e   :  { %564 = vrot.lane.b32.xlu1 %v6020_v35, %s5798_s27  ;;  %562 = vrot.lane.b32.xlu0 %v6025_v36, %s5798_s27  ;;  %v527_v35 = vsel %vm12219_vm2, %v6175_v47, %v6048_v43  ;;  %v5536_v43 = vld [vmem:[%s12022_s2 + $0xc0] sm:$0xff]   ;;  %v6254_v5 = vand.u32 2147483647, %v6211_v56  ;;  %v703_v19 = vmul.f32 %v6211_v56, %v6211_v56 }
  0x9f   :  { %5177 = vmatprep.subr.bf16.mxu1 %v5536_v43  ;;  %v5540_v43 = vld [vmem:[%s12022_s2 + $0xd0] sm:$0xff]  }
  0xa0   :  { %v6197_v52 = vpop.permute.xlu1 %592  ;;  %v6199_v31 = vpop.permute.xlu0 %590  ;;  %5178 = vmatpush3.bf16.msra.mxu1 %v5537_v59  ;;  %v5541_v59 = vld [vmem:[%s12022_s2 + $0x90] sm:$0xff]  }
  0xa1   :  { %12417 = vst [vmem:[#allocation13_spill] sm:$0xff] %v6197_v52  ;;  %12418 = vst [vmem:[#allocation14_spill] sm:$0xff] %v6199_v31  ;;  %v628_v36 = vsel %vm12218_vm3, %v6197_v52, %v537_v53  ;;  %v627_v55 = vsel %vm12218_vm3, %v6199_v31, %v535_v54  ;;  %v526_v53 = vsel %vm12219_vm2, %v6177_v50, %v6050_v44  ;;  %v6236_v54 = vld [vmem:[%s12020_s0 + $0x30] sm:$0xff]  ;;  %5179 = vmatprep.subr.bf16.mxu1 %v5538_v27 }
  0xa2   :  { %v639_v58 = vsub.f32 %v527_v35, %v628_v36  ;;  %219 = vrot.lane.b32.xlu1 %v6190_v15, %s5795_s16  ;;  %217 = vrot.lane.b32.xlu0 %v6195_v33, %s5795_s16  ;;  %v631_v63 = vsub.f32 %v526_v53, %v627_v55  ;;  %v6281_v55 = vmul.f32 0.5, %v373_v2 }
  0xa4   :  { %v6245_v44 = vmul.f32 0.5, %v639_v58  ;;  %v6247_v0 = vpop.permute.xlu1 %203  ;;  %v6249_v1 = vpop.permute.xlu0 %201  ;;  %v6275_v51 = vmul.f32 0.5, %v631_v63  ;;  %5180 = vmatpush3.bf16.msra.mxu1 %v5539_v29 }
  0xa5   :  { %5181 = vmatprep.subr.bf16.mxu1 %v5540_v43 }
  0xa6   :  { %v6257_v8 = vand.u32 2147483647, %v6245_v44  ;;  %227 = vrot.lane.b32.xlu1 %v6231_v34, %s5795_s16  ;;  %225 = vrot.lane.b32.xlu0 %v6236_v54, %s5795_s16  ;;  %v5585_v24 = vpop.eup %5584  ;;  %v6305_v2 = vand.u32 2147483647, %v6275_v51 }
  0xa7   :  { %v6269_v32 = vmul.f32 %v5585_v24, %v1193_v3  ;;  %v5587_v36 = vpop.eup %5586  ;;  %v6312_v24 = vand.u32 2147483647, %v6281_v55 }
  0xa8   :  { %v1224_v45 = vmax.f32 %v6254_v5, %v6257_v8  ;;  %v6277_v14 = vpop.permute.xlu1 %211  ;;  %v6279_v35 = vpop.permute.xlu0 %209  ;;  %v6287_v58 = vmul.f32 %v5587_v36, %v1185_v40  ;;  %12421 = vst [vmem:[#allocation17_spill] sm:$0xff] %v6305_v2  ;;  %5182 = vmatpush3.bf16.msra.mxu1 %v5541_v59  ;;  %v5543_v36 = vld [vmem:[%s12022_s2 + $0x98] sm:$0xff]   ;;  %vm1736_vm14 = vcmp.gt.f32.partialorder %v6257_v8, %v6254_v5 }
  0xa9   :  { %12419 = vst [vmem:[#allocation15_spill] sm:$0xff] %v6277_v14  ;;  %12420 = vst [vmem:[#allocation16_spill] sm:$0xff] %v6279_v35  ;;  %v6285_v57 = vmul.f32 %v6269_v32, %v6269_v32 }
  0xaa   :  { %310 = vrot.lane.b32.xlu1 %v5887_v10, %s5796_s25  ;;  %308 = vrot.lane.b32.xlu0 %v5892_v11, %s5796_s25  ;;  %v1256_v53 = vadd.f32 1e-12, %v1224_v45  ;;  %v6302_v63 = vmul.f32 %v6287_v58, %v6287_v58  ;;  %12422 = vst [vmem:[#allocation18_spill] sm:$0xff] %v6312_v24  ;;  %v5542_v45 = vld [vmem:[%s12022_s2 + $0xd8] sm:$0xff]  }
  0xab   :  { %v1385_v60 = vmul.f32 -0.0117212, %v6285_v57  ;;  %5183 = vmatprep.subr.bf16.mxu1 %v5542_v45 }
  0xac   :  { %v6307_v3 = vpop.permute.xlu1 %294  ;;  %v6309_v27 = vpop.permute.xlu0 %292  ;;  %v1377_v40 = vmul.f32 -0.0117212, %v6302_v63  ;;  %5588 = vrcp.f32 %v1256_v53  ;;  %v1216_v53 = vmax.f32 %v6312_v24, %v6305_v2  ;;  %5184 = vmatpush3.bf16.msra.mxu1 %v5543_v36 }
  0xad   :  { %v1417_v29 = vadd.f32 0.05265332, %v1385_v60 }
  0xae   :  { %318 = vrot.lane.b32.xlu1 %v6190_v15, %s5796_s25  ;;  %316 = vrot.lane.b32.xlu0 %v6195_v33, %s5796_s25  ;;  %v1409_v59 = vadd.f32 0.05265332, %v1377_v40  ;;  %v1248_v17 = vadd.f32 1e-12, %v1216_v53  ;;  %v5545_v40 = vld [vmem:[%s12022_s2 + $0xa0] sm:$0xff]  }
  0xaf   :  { %v1449_v43 = vmul.f32 %v1417_v29, %v6285_v57  ;;  %v5544_v29 = vld [vmem:[%s12022_s2 + $0xe0] sm:$0xff]  }
  0xb0   :  { %v6328_v60 = vpop.permute.xlu1 %302  ;;  %v6330_v39 = vpop.permute.xlu0 %300  ;;  %v1441_v31 = vmul.f32 %v1409_v59, %v6302_v63  ;;  %5590 = vrcp.f32 %v1248_v17  ;;  %5185 = vmatprep.subr.bf16.mxu1 %v5544_v29  ;;  %v1192_v17 = vmin.f32 %v6254_v5, %v6257_v8 }
  0xb1   :  { %12423 = vst [vmem:[#allocation19_spill] sm:$0xff] %v6328_v60  ;;  %12424 = vst [vmem:[#allocation20_spill] sm:$0xff] %v6330_v39  ;;  %v1481_v50 = vadd.f32 -0.11643287, %v1449_v43  ;;  %5186 = vmatpush3.bf16.msra.mxu1 %v5545_v40 }
  0xb2   :  { %479 = vrot.lane.b32.xlu1 %v6190_v15, %s5797_s26  ;;  %477 = vrot.lane.b32.xlu0 %v6195_v33, %s5797_s26  ;;  %v1473_v36 = vadd.f32 -0.11643287, %v1441_v31  ;;  %v5547_v31 = vld [vmem:[%s12022_s2 + $0xa8] sm:$0xff]  }
  0xb3   :  { %v1513_v45 = vmul.f32 %v1481_v50, %v6285_v57  ;;  %v5546_v50 = vld [vmem:[%s12022_s2 + $0xe8] sm:$0xff]  }
  0xb4   :  { %v6344_v43 = vpop.permute.xlu1 %463  ;;  %v6346_v59 = vpop.permute.xlu0 %461  ;;  %v1505_v28 = vmul.f32 %v1473_v36, %v6302_v63  ;;  %5187 = vmatprep.subr.bf16.mxu1 %v5546_v50  ;;  %v362_v50 = vsel %vm340_vm0, %v6027_v37, %v6307_v3 }
  0xb5   :  { %v1545_v53 = vadd.f32 0.19354346, %v1513_v45  ;;  %5188 = vmatpush3.bf16.msra.mxu1 %v5547_v31 }
  0xb6   :  { %487 = vrot.lane.b32.xlu1 %v6231_v34, %s5797_s26  ;;  %485 = vrot.lane.b32.xlu0 %v6236_v54, %s5797_s26  ;;  %v5589_v29 = vpop.eup %5588  ;;  %v1537_v45 = vadd.f32 0.19354346, %v1505_v28  ;;  %v5548_v28 = vld [vmem:[%s12022_s2 + $0xf0] sm:$0xff]  }
  0xb7   :  { %v1577_v40 = vmul.f32 %v1545_v53, %v6285_v57  ;;  %v6364_v47 = vmul.f32 %v5589_v29, %v1192_v17  ;;  %5189 = vmatprep.subr.bf16.mxu1 %v5548_v28  ;;  %v1184_v29 = vmin.f32 %v6312_v24, %v6305_v2  ;;  %v728_v28 = vmul.f32 %v6137_v13, %v6137_v13 }
  0xb8   :  { %v6362_v36 = vpop.permute.xlu1 %471  ;;  %v1569_v16 = vmul.f32 %v1537_v45, %v6302_v63  ;;  %v6367_v25 = vpop.permute.xlu0 %469  ;;  %v361_v2 = vsel %vm340_vm0, %v6029_v38, %v6309_v27  ;;  %v12431_v38 = vlaneseq }
  0xb9   :  { %12425 = vst [vmem:[#allocation21_spill] sm:$0xff] %v6362_v36  ;;  %v1609_v52 = vadd.f32 -0.33262348, %v1577_v40  ;;  %12426 = vst [vmem:[#allocation22_spill] sm:$0xff] %v6367_v25  ;;  %v6378_v53 = vmul.f32 %v6364_v47, %v6364_v47  ;;  %v261_v40 = vsel %vm243_vm1, %v6000_v30, %v6247_v0  ;;  %v736_v30 = vmul.f32 %v6135_v12, %v6135_v12 }
  0xba   :  { %568 = vrot.lane.b32.xlu1 %v5887_v10, %s5798_s27  ;;  %566 = vrot.lane.b32.xlu0 %v5892_v11, %s5798_s27  ;;  %v5549_v10 = vld [vmem:[%s12022_s2 + $0xb0] sm:$0xff]   ;;  %v1601_v17 = vadd.f32 -0.33262348, %v1569_v16  ;;  %v5591_v37 = vpop.eup %5590  ;;  %v383_v16 = vsub.f32 %v261_v40, %v362_v50 }
  0xbb   :  { %v1641_v11 = vmul.f32 %v1609_v52, %v6285_v57  ;;  %v1384_v31 = vmul.f32 -0.0117212, %v6378_v53  ;;  %5190 = vmatpush3.bf16.msra.mxu1 %v5549_v10  ;;  %v5550_v52 = vld [vmem:[%s12022_s2 + $0xf8] sm:$0xff]   ;;  %v6407_v57 = vmul.f32 %v5591_v37, %v1184_v29 }
  0xbc   :  { %v6395_v45 = vpop.permute.xlu1 %552  ;;  %v1633_v23 = vmul.f32 %v1601_v17, %v6302_v63  ;;  %v5551_v63 = vld [vmem:[%s12022_s2 + $0xb8] sm:$0xff]   ;;  %v6422_v10 = vpop.permute.xlu0 %550  ;;  %5191 = vmatprep.subr.bf16.mxu1 %v5550_v52  ;;  %v6432_v22 = vmul.f32 0.5, %v383_v16 }
  0xbd   :  { %v620_v50 = vsel %vm12218_vm3, %v6106_v61, %v6395_v45  ;;  %v1673_v17 = vadd.f32 0.99997723, %v1641_v11  ;;  %v6426_v29 = vmul.f32 %v6407_v57, %v6407_v57  ;;  %v619_v52 = vsel %vm12218_vm3, %v6108_v62, %v6422_v10 }
  0xbe   :  { %576 = vrot.lane.b32.xlu1 %v6190_v15, %s5798_s27  ;;  %574 = vrot.lane.b32.xlu0 %v6195_v33, %s5798_s27  ;;  %v1416_v15 = vadd.f32 0.05265332, %v1384_v31  ;;  %v519_v33 = vsel %vm12219_vm2, %v6066_v48, %v6344_v43  ;;  %v704_v31 = vmul.f32 %v6127_v4, %v6127_v4  ;;  %v696_v48 = vmul.f32 %v6133_v9, %v6133_v9 }
  0xbf   :  { %v641_v40 = vsub.f32 %v519_v33, %v620_v50  ;;  %5192 = vmatpush3.bf16.msra.mxu1 %v5551_v63  ;;  %v1665_v37 = vadd.f32 0.99997723, %v1633_v23  ;;  %12427 = vst [vmem:[#allocation23_spill] sm:$0xff] %v6432_v22  ;;  %v1376_v61 = vmul.f32 -0.0117212, %v6426_v29  ;;  %v1705_v16 = vmul.f32 %v1673_v17, %v6269_v32 }
  0xc0   :  { %v768_v63 = vadd.f32 %v736_v30, %v704_v31  ;;  %v760_v33 = vadd.f32 %v728_v28, %v696_v48  ;;  %v1448_v23 = vmul.f32 %v1416_v15, %v6378_v53  ;;  %v6457_v62 = vand.u32 2147483647, %v6432_v22 }
  0xc1   :  { %v6439_v11 = vmul.f32 0.5, %v641_v40  ;;  %v1408_v50 = vadd.f32 0.05265332, %v1376_v61  ;;  %v518_v40 = vsel %vm12219_vm2, %v6068_v49, %v6346_v59  ;;  %v1697_v24 = vmul.f32 %v1665_v37, %v6287_v58 }
  0xc2   :  { %235 = vrot.lane.b32.xlu1 %v5859_v6, %s5795_s16  ;;  %233 = vrot.lane.b32.xlu0 %v5864_v7, %s5795_s16  ;;  %12429 = vst [vmem:[#allocation25_spill] sm:$0xff] %v6457_v62  ;;  %v633_v32 = vsub.f32 %v518_v40, %v619_v52  ;;  %v6467_v28 = vshrl.u32 %v12431_v38, 7  ;;  %v260_v49 = vsel %vm243_vm1, %v5986_v26, %v6249_v1  ;;  %v6473_v58 = vadd.f32 1e-10, %v768_v63  ;;  %v6491_v63 = vpop.permute.xlu1 %560 }
  0xc3   :  { %12428 = vst [vmem:[#allocation24_spill] sm:$0xff] %v6439_v11  ;;  %v6460_v30 = vand.u32 2147483647, %v6439_v11  ;;  %v1480_v15 = vadd.f32 -0.11643287, %v1448_v23  ;;  %v375_v17 = vsub.f32 %v260_v49, %v361_v2  ;;  %v1440_v61 = vmul.f32 %v1408_v50, %v6426_v29  ;;  %12434 = vst [vmem:[#allocation29_spill] sm:$0xff] %v6491_v63 }
  0xc4   :  { %12432 = vst [vmem:[#allocation27_spill] sm:$0xff] %v6467_v28  ;;  %v1769_v48 = vsub.f32 1.5707964, %v1705_v16  ;;  %v6477_v37 = vadd.f32 1e-10, %v760_v33  ;;  %v6480_v38 = vmul.f32 0.5, %v633_v32  ;;  %v735_v2 = vmul.f32 %v6245_v44, %v6245_v44 }
  0xc5   :  { %12430 = vst [vmem:[#allocation26_spill] sm:$0xff] %v6460_v30  ;;  %v1226_v31 = vmax.f32 %v6457_v62, %v6460_v30  ;;  %v1761_v52 = vsub.f32 1.5707964, %v1697_v24  ;;  %v1054_v26 = vsub.s32 1, %v6467_v28  ;;  %v6496_v33 = vld [vmem:[%s12021_s1] sm:$0xff]  ;;  %5592 = vrsqrt.f32 %v6473_v58  ;;  %v6528_v49 = vld [vmem:[%s12020_s0 + $0xe8] sm:$0xff] }
  0xc6   :  { %326 = vrot.lane.b32.xlu1 %v6231_v34, %s5796_s25  ;;  %324 = vrot.lane.b32.xlu0 %v6236_v54, %s5796_s25  ;;  %12433 = vst [vmem:[#allocation28_spill] sm:$0xff] %v6480_v38  ;;  %v1801_v18 = vsel %vm1737_vm4, %v1769_v48, %v1705_v16  ;;  %5594 = vrsqrt.f32 %v6477_v37  ;;  %v1472_v23 = vadd.f32 -0.11643287, %v1440_v61  ;;  %v6508_v32 = vand.u32 2147483647, %v6480_v38 }
  0xc7   :  { %v1258_v40 = vadd.f32 1e-12, %v1226_v31  ;;  %v1793_v50 = vsel %vm1729_vm5, %v1761_v52, %v1697_v24  ;;  %v616_v20 = vsel %vm12218_vm3, %v6395_v45, %v6491_v63  ;;  %v6519_v21 = vrot.slane %v6496_v33, %v1054_v26 }
  0xc8   :  { %12435 = vst [vmem:[#allocation30_spill] sm:$0xff] %v6508_v32  ;;  %v767_v16 = vadd.f32 %v735_v2, %v703_v19  ;;  %v358_v24 = vsel %vm340_vm0, %v6307_v3, %v6328_v60  ;;  %v515_v3 = vsel %vm12219_vm2, %v6344_v43, %v6362_v36  ;;  %v1857_v31 = vsub.f32 3.1415927, %v1793_v50 }
  0xc9   :  { %5596 = vrcp.f32 %v1258_v40  ;;  %12436 = vst [vmem:[#allocation31_spill] sm:$0xff] %v6519_v21  ;;  %v1504_v48 = vmul.f32 %v1472_v23, %v6426_v29  ;;  %v257_v61 = vsel %vm243_vm1, %v6247_v0, %v6277_v14  ;;  %v642_v52 = vsub.f32 %v515_v3, %v616_v20  ;;  %v6549_v40 = vpop.permute.xlu1 %191  ;;  %v6567_v23 = vld [vmem:[%s12020_s0 + $0xf0] sm:$0xff] }
  0xca   :  { %495 = vrot.lane.b32.xlu1 %v5859_v6, %s5797_s26  ;;  %493 = vrot.lane.b32.xlu0 %v5864_v7, %s5797_s26  ;;  %v1512_v6 = vmul.f32 %v1480_v15, %v6378_v53  ;;  %v6502_v7 = vmul.f32 0.5, %v375_v17  ;;  %v6542_v17 = vpop.permute.xlu0 %558  ;;  %v384_v2 = vsub.f32 %v257_v61, %v358_v24  ;;  %v727_v0 = vmul.f32 %v6275_v51, %v6275_v51  ;;  %v6572_v20 = vld [vmem:[%s12020_s0 + $0xb0] sm:$0xff] }
  0xcb   :  { %12438 = vst [vmem:[#allocation33_spill] sm:$0xff] %v6542_v17  ;;  %v695_v4 = vmul.f32 %v6281_v55, %v6281_v55  ;;  %v1889_v61 = vsel %vm1825_vm7, %v1857_v31, %v1793_v50  ;;  %v1536_v19 = vadd.f32 0.19354346, %v1504_v48  ;;  %v6579_v26 = vmul.f32 0.5, %v642_v52 }
  0xcc   :  { %v1544_v45 = vadd.f32 0.19354346, %v1512_v6  ;;  %v6536_v15 = vand.u32 2147483647, %v6502_v7  ;;  %v6577_v6 = vadd.f32 1e-10, %v767_v16  ;;  %v729_v5 = vmul.f32 %v6480_v38, %v6480_v38 }
  0xcd   :  { %v6583_v36 = vmul.f32 0.5, %v384_v2  ;;  %vm888_vm10 = vcmp.eq.f32.partialorder %v6473_v58, inf  ;;  %v6594_v31 = vpop.permute.xlu1 %199  ;;  %v1953_v52 = vsub.f32 0.0, %v1889_v61  ;;  %vm890_vm11 = vcmp.eq.f32.partialorder %v6473_v58, 0.0 }
  0xce   :  { %584 = vrot.lane.b32.xlu1 %v6231_v34, %s5798_s27  ;;  %582 = vrot.lane.b32.xlu0 %v6236_v54, %s5798_s27  ;;  %v6533_v34 = vld [vmem:[%s12020_s0 + $0xa8] sm:$0xff]  ;;  %v1865_v54 = vsub.f32 3.1415927, %v1801_v18  ;;  %12437 = vst [vmem:[#allocation32_spill] sm:$0xff] %v6536_v15  ;;  %v1218_v43 = vmax.f32 %v6536_v15, %v6508_v32  ;;  %v1576_v9 = vmul.f32 %v1544_v45, %v6378_v53  ;;  %12439 = vst [vmem:[#allocation34_spill] sm:$0xff] %v6594_v31 }
  0xcf   :  { %v5593_v63 = vpop.eup %5592  ;;  %v1194_v45 = vmin.f32 %v6457_v62, %v6460_v30  ;;  %v6611_v14 = vand.u32 2147483647, %v6583_v36  ;;  %vm832_vm12 = vcmp.eq.f32.partialorder %v6477_v37, inf  ;;  %vm834_vm13 = vcmp.eq.f32.partialorder %v6477_v37, 0.0 }
  0xd0   :  { %v1897_v24 = vsel %vm1833_vm6, %v1865_v54, %v1801_v18  ;;  %v1250_v3 = vadd.f32 1e-12, %v1218_v43  ;;  %v6585_v18 = vpop.permute.xlu0 %189  ;;  %v5595_v50 = vpop.eup %5594  ;;  %v759_v54 = vadd.f32 %v727_v0, %v695_v4  ;;  %v1608_v2 = vadd.f32 -0.33262348, %v1576_v9 }
  0xd1   :  { %v1961_v16 = vsub.f32 0.0, %v1897_v24  ;;  %v6597_v43 = vand.u32 2147483647, %v6579_v26  ;;  %v887_v60 = vmul.f32 %v5593_v63, %v6473_v58  ;;  %v1568_v0 = vmul.f32 %v1536_v19, %v6426_v29  ;;  %v6646_v13 = vpop.permute.xlu1 %282 }
  0xd2   :  { %223 = vrot.lane.b32.xlu1 %v6528_v49, %s5795_s16  ;;  %221 = vrot.lane.b32.xlu0 %v6533_v34, %s5795_s16  ;;  %5598 = vrcp.f32 %v1250_v3  ;;  %v615_v3 = vsel %vm12218_vm3, %v6422_v10, %v6542_v17  ;;  %v831_v9 = vmul.f32 %v5595_v50, %v6477_v37  ;;  %v357_v10 = vsel %vm340_vm0, %v6309_v27, %v6330_v39 }
  0xd3   :  { %v5597_v48 = vpop.eup %5596  ;;  %5600 = vrsqrt.f32 %v6577_v6  ;;  %v514_v63 = vsel %vm12219_vm2, %v6346_v59, %v6367_v25  ;;  %v1993_v19 = vsel %vm1929_vm8, %v1961_v16, %v1897_v24  ;;  %v6627_v50 = vadd.f32 1e-10, %v759_v54 }
  0xd4   :  { %v6607_v4 = vmul.f32 %v5597_v48, %v1194_v45  ;;  %v634_v27 = vsub.f32 %v514_v63, %v615_v3  ;;  %v1985_v48 = vsel %vm1921_vm9, %v1953_v52, %v1889_v61  ;;  %v1640_v59 = vmul.f32 %v1608_v2, %v6378_v53  ;;  %v6642_v24 = vpop.permute.xlu0 %197 }
  0xd5   :  { %v256_v25 = vsel %vm243_vm1, %v6249_v1, %v6279_v35  ;;  %v1227_v12 = vmax.f32 %v6611_v14, %v6597_v43  ;;  %12440 = vst [vmem:[#allocation35_spill] sm:$0xff] %v6642_v24  ;;  %v891_v16 = vand.u32 2147483648, %v6473_v58  ;;  %v1600_v54 = vadd.f32 -0.33262348, %v1568_v0 }
  0xd6   :  { %231 = vrot.lane.b32.xlu1 %v6567_v23, %s5795_s16  ;;  %229 = vrot.lane.b32.xlu0 %v6572_v20, %s5795_s16  ;;  %v6631_v45 = vmul.f32 %v6607_v4, %v6607_v4  ;;  %v376_v39 = vsub.f32 %v256_v25, %v357_v10  ;;  %v889_v53 = vsel %vm888_vm10, %v6473_v58, %v887_v60  ;;  %v2025_v61 = vadd.f32 6.2831855, %v1993_v19 }
  0xd7   :  { %v835_v1 = vand.u32 2147483648, %v6477_v37  ;;  %v2017_v25 = vadd.f32 6.2831855, %v1985_v48  ;;  %v1186_v2 = vmin.f32 %v6536_v15, %v6508_v32  ;;  %v6659_v0 = vmul.f32 0.5, %v634_v27 }
  0xd8   :  { %v1386_v3 = vmul.f32 -0.0117212, %v6631_v45  ;;  %v833_v60 = vsel %vm832_vm12, %v6477_v37, %v831_v9  ;;  %v1672_v63 = vadd.f32 0.99997723, %v1640_v59  ;;  %5602 = vrsqrt.f32 %v6627_v50  ;;  %v6677_v59 = vpop.permute.xlu0 %280 }
  0xd9   :  { %12441 = vst [vmem:[#allocation36_spill] sm:$0xff] %v6659_v0  ;;  %v1259_v19 = vadd.f32 1e-12, %v1227_v12  ;;  %v1632_v35 = vmul.f32 %v1600_v54, %v6426_v29  ;;  %v6664_v17 = vmul.f32 0.5, %v376_v39  ;;  %v12442_v27 = vsub.s32 0, %v6467_v28 }
  0xda   :  { %314 = vrot.lane.b32.xlu1 %v6041_v41, %s5796_s25  ;;  %312 = vrot.lane.b32.xlu0 %v6046_v42, %s5796_s25  ;;  %v1418_v52 = vadd.f32 0.05265332, %v1386_v3  ;;  %v892_v3 = vsel %vm890_vm11, %v891_v16, %v889_v53  ;;  %v2057_v29 = vmul.f32 1.2732395, %v2025_v61  ;;  %v836_v58 = vsel %vm834_vm13, %v835_v1, %v833_v60  ;;  %v6686_v16 = vpop.permute.xlu1 %290 }
  0xdb   :  { %v6675_v9 = vrot.slane %v6496_v33, %v12442_v27  ;;  %5604 = vrcp.f32 %v1259_v19  ;;  %v2049_v12 = vmul.f32 1.2732395, %v2017_v25  ;;  %v6684_v37 = vand.u32 2147483647, %v6659_v0  ;;  %12444 = vst [vmem:[#allocation38_spill] sm:$0xff] %v6686_v16 }
  0xdc   :  { %v5599_v10 = vpop.eup %5598  ;;  %v1450_v30 = vmul.f32 %v1418_v52, %v6631_v45  ;;  %v1704_v54 = vmul.f32 %v1672_v63, %v6364_v47  ;;  %v12445_v53 = vsub.s32 2, %v6467_v28  ;;  %v1664_v61 = vadd.f32 0.99997723, %v1632_v35 }
  0xdd   :  { %v6667_v48 = vmul.f32 %v5599_v10, %v1186_v2  ;;  %12443 = vst [vmem:[#allocation37_spill] sm:$0xff] %v6675_v9  ;;  %v5601_v39 = vpop.eup %5600  ;;  %v6701_v1 = vand.u32 2147483647, %v6664_v17  ;;  %v12447_v25 = vsub.s32 3, %v6467_v28  ;;  %v6709_v60 = vmul.f32 %v6519_v21, %v892_v3 }
  0xde   :  { %322 = vrot.lane.b32.xlu1 %v6528_v49, %s5796_s25  ;;  %320 = vrot.lane.b32.xlu0 %v6533_v34, %s5796_s25  ;;  %v6692_v52 = vrot.slane %v6496_v33, %v12445_v53  ;;  %v1482_v2 = vadd.f32 -0.11643287, %v1450_v30  ;;  %v6712_v30 = vmul.f32 %v6519_v21, %v836_v58  ;;  %v880_v63 = vmul.f32 %v5601_v39, %v6577_v6 }
  0xdf   :  { %v6696_v10 = vmul.f32 %v6667_v48, %v6667_v48  ;;  %v6706_v47 = vrot.slane %v6496_v33, %v12447_v25  ;;  %v6720_v35 = vfloor.f32 %v2057_v29  ;;  %v6722_v33 = vfloor.f32 %v2049_v12  ;;  %v6730_v25 = vpop.permute.xlu0 %288 }
  0xe0   :  { %12446 = vst [vmem:[#allocation39_spill] sm:$0xff] %v6692_v52  ;;  %v737_v3 = vmul.f32 %v6439_v11, %v6439_v11  ;;  %v1219_v27 = vmax.f32 %v6701_v1, %v6684_v37  ;;  %vm881_vm15 = vcmp.eq.f32.partialorder %v6577_v6, inf  ;;  %v1768_v39 = vsub.f32 1.5707964, %v1704_v54  ;;  %12449 = vst [vmem:[#allocation41_spill] sm:$0xff] %v6730_v25  ;;  %v6737_v52 = vpop.permute.xlu1 %451 }
  0xe1   :  { %12448 = vst [vmem:[#allocation40_spill] sm:$0xff] %v6706_v47  ;;  %v1378_v19 = vmul.f32 -0.0117212, %v6696_v10  ;;  %v1514_v58 = vmul.f32 %v1482_v2, %v6631_v45  ;;  %vm883_vm4 = vcmp.eq.f32.partialorder %v6577_v6, 0.0  ;;  %v884_v28 = vand.u32 2147483648, %v6577_v6 }
  0xe2   :  { %483 = vrot.lane.b32.xlu1 %v6528_v49, %s5797_s26  ;;  %481 = vrot.lane.b32.xlu0 %v6533_v34, %s5797_s26  ;;  %v1696_v21 = vmul.f32 %v1664_v61, %v6407_v57  ;;  %v705_v47 = vmul.f32 %v6432_v22, %v6432_v22  ;;  %v5603_v11 = vpop.eup %5602  ;;  %vm1832_vm5 = vcmp.lt.f32.partialorder %v6211_v56, 0.0  ;;  %v882_v32 = vsel %vm881_vm15, %v6577_v6, %v880_v63 }
  0xe3   :  { %v1410_v53 = vadd.f32 0.05265332, %v1378_v19  ;;  %vm825_vm6 = vcmp.eq.f32.partialorder %v6627_v50, inf  ;;  %v1251_v19 = vadd.f32 1e-12, %v1219_v27  ;;  %v2121_v57 = vsub.f32 %v2057_v29, %v6720_v35 }
  0xe4   :  { %v2113_v61 = vsub.f32 %v2049_v12, %v6722_v33  ;;  %v769_v15 = vadd.f32 %v737_v3, %v705_v47  ;;  %v1195_v62 = vmin.f32 %v6611_v14, %v6597_v43  ;;  %v1546_v27 = vadd.f32 0.19354346, %v1514_v58  ;;  %v12450_v47 = vld [vmem:[#allocation18_spill] sm:$0xff]  ;;  %v12451_v3 = vld [vmem:[#allocation17_spill] sm:$0xff]  ;;  %v6778_v6 = vpop.permute.xlu1 %459 }
  0xe5   :  { %v1442_v2 = vmul.f32 %v1410_v53, %v6696_v10  ;;  %v5605_v63 = vpop.eup %5604  ;;  %v1800_v53 = vsel %vm1736_vm14, %v1768_v39, %v1704_v54  ;;  %5606 = vrcp.f32 %v1251_v19  ;;  %v1760_v29 = vsub.f32 1.5707964, %v1696_v21  ;;  %v6765_v54 = vpop.permute.xlu0 %449  ;;  %12452 = vst [vmem:[#allocation18_spill] sm:$0xff] %v6778_v6 }
  0xe6   :  { %491 = vrot.lane.b32.xlu1 %v6567_v23, %s5797_s26  ;;  %489 = vrot.lane.b32.xlu0 %v6572_v20, %s5797_s26  ;;  %v6757_v22 = vmul.f32 %v5605_v63, %v1195_v62  ;;  %vm1728_vm7 = vcmp.gt.f32.partialorder %v12451_v3, %v12450_v47  ;;  %vm1824_vm8 = vcmp.lt.f32.partialorder %v6281_v55, 0.0  ;;  %v697_v62 = vmul.f32 %v6502_v7, %v6502_v7 }
  0xe7   :  { %v1474_v0 = vadd.f32 -0.11643287, %v1442_v2  ;;  %v2241_v39 = vsub.f32 1.0, %v2113_v61  ;;  %v1578_v58 = vmul.f32 %v1546_v27, %v6631_v45  ;;  %v4970_v2 = vadd.f32 -8.0, %v6722_v33  ;;  %v12453_v27 = vld [vmem:[#allocation5_spill] sm:$0xff] }
  0xe8   :  { %v1792_v19 = vsel %vm1728_vm7, %v1760_v29, %v1696_v21  ;;  %v6795_v12 = vadd.f32 %v729_v5, %v697_v62  ;;  %vm2145_vm9 = vcmp.ge.f32.partialorder %v6722_v33, 8.0  ;;  %v6801_v38 = vmul.f32 %v2121_v57, %v6709_v60  ;;  %v12455_v29 = vld [vmem:[#allocation6_spill] sm:$0xff] }
  0xe9   :  { %v1506_v8 = vmul.f32 %v1474_v0, %v6696_v10  ;;  %v2249_v0 = vsub.f32 1.0, %v2121_v57  ;;  %vm1928_vm10 = vcmp.lt.f32.partialorder %v6245_v44, 0.0  ;;  %vm827_vm11 = vcmp.eq.f32.partialorder %v6627_v50, 0.0  ;;  %v6816_v56 = vpop.permute.xlu0 %457 }
  0xea   :  { %572 = vrot.lane.b32.xlu1 %v6041_v41, %s5798_s27  ;;  %570 = vrot.lane.b32.xlu0 %v6046_v42, %s5798_s27  ;;  %v885_v41 = vsel %vm883_vm4, %v884_v28, %v882_v32  ;;  %v824_v42 = vmul.f32 %v5603_v11, %v6627_v50  ;;  %v1864_v11 = vsub.f32 3.1415927, %v1800_v53  ;;  %v6772_v28 = vadd.f32 1e-10, %v769_v15  ;;  %12454 = vst [vmem:[#allocation17_spill] sm:$0xff] %v6801_v38 }
  0xeb   :  { %v6776_v32 = vmul.f32 %v6757_v22, %v6757_v22  ;;  %v6811_v47 = vmul.f32 %v2249_v0, %v6709_v60  ;;  %v6814_v3 = vmul.f32 %v2241_v39, %v6712_v30  ;;  %v1856_v57 = vsub.f32 3.1415927, %v1792_v19  ;;  %12458 = vst [vmem:[#allocation42_spill] sm:$0xff] %v6816_v56  ;;  %v6827_v60 = vpop.permute.xlu1 %540 }
  0xec   :  { %v826_v15 = vsel %vm825_vm6, %v6627_v50, %v824_v42  ;;  %v1896_v42 = vsel %vm1832_vm5, %v1864_v11, %v1800_v53  ;;  %5608 = vrsqrt.f32 %v6772_v28  ;;  %v1610_v5 = vadd.f32 -0.33262348, %v1578_v58 }
  0xed   :  { %v1387_v63 = vmul.f32 -0.0117212, %v6776_v32  ;;  %12456 = vst [vmem:[#allocation5_spill] sm:$0xff] %v6811_v47  ;;  %12457 = vst [vmem:[#allocation6_spill] sm:$0xff] %v6814_v3  ;;  %vm2153_vm12 = vcmp.ge.f32.partialorder %v6720_v35, 8.0  ;;  %v6825_v11 = vsel %vm2145_vm9, %v4970_v2, %v6722_v33  ;;  %v6830_v0 = vmul.f32 %v2113_v61, %v6712_v30 }
  0xee   :  { %580 = vrot.lane.b32.xlu1 %v6528_v49, %s5798_s27  ;;  %578 = vrot.lane.b32.xlu0 %v6533_v34, %s5798_s27  ;;  %v6783_v49 = vmul.f32 %v6675_v9, %v885_v41  ;;  %v4978_v34 = vadd.f32 -8.0, %v6720_v35  ;;  %v1538_v41 = vadd.f32 0.19354346, %v1506_v8  ;;  %v1187_v8 = vmin.f32 %v6701_v1, %v6684_v37  ;;  %12459 = vst [vmem:[#allocation43_spill] sm:$0xff] %v6825_v11 }
  0xef   :  { %v1419_v21 = vadd.f32 0.05265332, %v1387_v63  ;;  %v5607_v62 = vpop.eup %5606  ;;  %12460 = vst [vmem:[#allocation44_spill] sm:$0xff] %v6830_v0  ;;  %v1960_v39 = vsub.f32 0.0, %v1896_v42  ;;  %vm2337_vm13 = vcmp.eq.f32.partialorder %v6825_v11, 7.0  ;;  %v1888_v30 = vsel %vm1824_vm8, %v1856_v57, %v1792_v19  ;;  %v5768_v57 = vld [vmem:[%s12020_s0 + $0xf8] sm:$0xff] }
  0xf0   :  { %v1570_v58 = vmul.f32 %v1538_v41, %v6696_v10  ;;  %v6834_v63 = vsel %vm2153_vm12, %v4978_v34, %v6720_v35  ;;  %v1642_v33 = vmul.f32 %v1610_v5, %v6631_v45  ;;  %v368_v35 = vsel %vm340_vm0, %v6646_v13, %v6686_v16 }
  0xf1   :  { %v1451_v53 = vmul.f32 %v1419_v21, %v6776_v32  ;;  %12461 = vst [vmem:[#allocation45_spill] sm:$0xff] %v6834_v63  ;;  %v6838_v21 = vmul.f32 %v5607_v62, %v1187_v8  ;;  %vm2345_vm14 = vcmp.eq.f32.partialorder %v6834_v63, 7.0  ;;  %vm2369_vm15 = vcmp.eq.f32.partialorder %v6825_v11, 0.0 }
  0xf2   :  { %239 = vrot.lane.b32.xlu1 %v12453_v27, %s5795_s16  ;;  %237 = vrot.lane.b32.xlu0 %v12455_v29, %s5795_s16  ;;  %vm2377_vm4 = vcmp.eq.f32.partialorder %v6834_v63, 0.0  ;;  %v2401_v55 = vsel %vm2369_vm15, %v6814_v3, 0.0  ;;  %v1602_v45 = vadd.f32 -0.33262348, %v1570_v58  ;;  %v2433_v34 = vsel %vm2337_vm13, %v6830_v0, 0.0  ;;  %v6870_v29 = vpop.permute.xlu0 %538  ;;  %v6881_v58 = vpop.permute.xlu1 %548 }
  0xf3   :  { %v1483_v27 = vadd.f32 -0.11643287, %v1451_v53  ;;  %v6855_v2 = vmul.f32 %v6838_v21, %v6838_v21  ;;  %v2409_v19 = vsel %vm2377_vm4, %v6811_v47, 0.0  ;;  %v2441_v41 = vsel %vm2345_vm14, %v6801_v38, 0.0  ;;  %12462 = vst [vmem:[#allocation46_spill] sm:$0xff] %v6881_v58 }
  0xf4   :  { %v267_v53 = vsel %vm243_vm1, %v6549_v40, %v6594_v31  ;;  %v2465_v8 = vadd.f32 %v2433_v34, %v2401_v55  ;;  %v2473_v62 = vadd.f32 %v2441_v41, %v2409_v19  ;;  %v12463_v16 = vand.u32 2147483648, %v6627_v50 }
  0xf5   :  { %v1515_v61 = vmul.f32 %v1483_v27, %v6776_v32  ;;  %v1379_v5 = vmul.f32 -0.0117212, %v6855_v2  ;;  %v5769_v27 = vld [vmem:[%s12020_s0 + $0xb8] sm:$0xff]  ;;  %v1952_v3 = vsub.f32 0.0, %v1888_v30  ;;  %v398_v31 = vsub.f32 %v267_v53, %v368_v35 }
  0xf6   :  { %330 = vrot.lane.b32.xlu1 %v6567_v23, %s5796_s25  ;;  %328 = vrot.lane.b32.xlu0 %v6572_v20, %s5796_s25  ;;  %v829_v47 = vsel %vm827_vm11, %v12463_v16, %v826_v15  ;;  %v5609_v55 = vpop.eup %5608  ;;  %v1674_v19 = vadd.f32 0.99997723, %v1642_v33  ;;  %v2497_v63 = vpack.c.bf16 %v2473_v62, %v2465_v8  ;;  %v706_v38 = vmul.f32 %v6583_v36, %v6583_v36 }
  0xf7   :  { %v1547_v34 = vadd.f32 0.19354346, %v1515_v61  ;;  %v1411_v41 = vadd.f32 0.05265332, %v1379_v5  ;;  %v1634_v44 = vmul.f32 %v1602_v45, %v6696_v10  ;;  %v626_v50 = vsel %vm12218_vm3, %v6827_v60, %v6881_v58 }
  0xf8   :  { %vm1920_vm5 = vcmp.lt.f32.partialorder %v6275_v51, 0.0  ;;  %v698_v16 = vmul.f32 %v6664_v17, %v6664_v17  ;;  %v525_v10 = vsel %vm12219_vm2, %v6737_v52, %v6778_v6  ;;  %3904 = vmatprep.mubr.bf16.mxu0 %v2497_v63  ;;  %v1706_v33 = vmul.f32 %v1674_v19, %v6607_v4 }
  0xf9   :  { %v1443_v15 = vmul.f32 %v1411_v41, %v6855_v2  ;;  %v656_v51 = vsub.f32 %v525_v10, %v626_v50  ;;  %v1579_v35 = vmul.f32 %v1547_v34, %v6776_v32  ;;  %v6922_v45 = vmul.f32 0.5, %v398_v31  ;;  %v12465_v10 = vld [vmem:[#allocation23_spill] sm:$0xff] }
  0xfa   :  { %499 = vrot.lane.b32.xlu1 %v5768_v57, %s5797_s26  ;;  %497 = vrot.lane.b32.xlu0 %v5769_v27, %s5797_s26  ;;  %v1992_v57 = vsel %vm1928_vm10, %v1960_v39, %v1896_v42  ;;  %v6896_v27 = vadd.f32 1e-10, %v6795_v12  ;;  %v6916_v42 = vmul.f32 %v6675_v9, %v829_v47  ;;  %v6918_v39 = vpop.permute.xlu0 %546  ;;  %vm895_vm6 = vcmp.eq.f32.partialorder %v6772_v28, inf }
  0xfb   :  { %v2024_v12 = vadd.f32 6.2831855, %v1992_v57  ;;  %12464 = vst [vmem:[#allocation47_spill] sm:$0xff] %v6918_v39  ;;  %v1475_v61 = vadd.f32 -0.11643287, %v1443_v15  ;;  %v6926_v63 = vmul.f32 0.5, %v656_v51  ;;  %v625_v4 = vsel %vm12218_vm3, %v6870_v29, %v6918_v39 }
  0xfc   :  { %5610 = vrsqrt.f32 %v6896_v27  ;;  %v367_v53 = vsel %vm340_vm0, %v6677_v59, %v6730_v25  ;;  %v1770_v62 = vsub.f32 1.5707964, %v1706_v33  ;;  %v1611_v57 = vadd.f32 -0.33262348, %v1579_v35 }
  0xfd   :  { %v2056_v31 = vmul.f32 1.2732395, %v2024_v12  ;;  %v1507_v5 = vmul.f32 %v1475_v61, %v6855_v2  ;;  %v6941_v8 = vand.u32 2147483647, %v6926_v63  ;;  %v524_v19 = vsel %vm12219_vm2, %v6765_v54, %v6816_v56  ;;  %v12466_v12 = vld [vmem:[#allocation36_spill] sm:$0xff] }
  0xfe   :  { %588 = vrot.lane.b32.xlu1 %v6567_v23, %s5798_s27  ;;  %586 = vrot.lane.b32.xlu0 %v6572_v20, %s5798_s27  ;;  %v1984_v23 = vsel %vm1920_vm5, %v1952_v3, %v1888_v30  ;;  %v1666_v20 = vadd.f32 0.99997723, %v1634_v44  ;;  %v894_v3 = vmul.f32 %v5609_v55, %v6772_v28  ;;  %v738_v30 = vmul.f32 %v6579_v26, %v6579_v26  ;;  %v6970_v39 = vpop.permute.xlu0 %181 }
  0xff   :  { %v2016_v47 = vadd.f32 6.2831855, %v1984_v23  ;;  %v6944_v55 = vand.u32 2147483647, %v6922_v45  ;;  %v1539_v41 = vadd.f32 0.19354346, %v1507_v5  ;;  %v266_v44 = vsel %vm243_vm1, %v6585_v18, %v6642_v24 }
 0x100   :  { %v1698_v34 = vmul.f32 %v1666_v20, %v6667_v48  ;;  %v648_v50 = vsub.f32 %v524_v19, %v625_v4  ;;  %vm1834_vm7 = vcmp.lt.f32.partialorder %v12465_v10, 0.0  ;;  %v730_v23 = vmul.f32 %v12466_v12, %v12466_v12  ;;  %v12467_v20 = vld [vmem:[#allocation25_spill] sm:$0xff]  ;;  %v12468_v5 = vld [vmem:[#allocation26_spill] sm:$0xff]  ;;  %v6967_v4 = vpop.permute.xlu1 %183  ;;  %12470 = vst [vmem:[#allocation36_spill] sm:$0xff] %v6970_v39 }
 0x101   :  { %v2048_v15 = vmul.f32 1.2732395, %v2016_v47  ;;  %v390_v51 = vsub.f32 %v266_v44, %v367_v53  ;;  %v1241_v35 = vmax.f32 %v6944_v55, %v6941_v8  ;;  %v896_v48 = vsel %vm895_vm6, %v6772_v28, %v894_v3  ;;  %12469 = vst [vmem:[#allocation23_spill] sm:$0xff] %v6967_v4 }
 0x102   :  { %v898_v61 = vand.u32 2147483648, %v6772_v28  ;;  %vm1738_vm8 = vcmp.gt.f32.partialorder %v12468_v5, %v12467_v20  ;;  %v1571_v47 = vmul.f32 %v1539_v41, %v6855_v2  ;;  %v2088_v19 = vfloor.f32 %v2056_v31 }
 0x103   :  { %v1802_v9 = vsel %vm1738_vm8, %v1770_v62, %v1706_v33  ;;  %v1643_v53 = vmul.f32 %v1611_v57, %v6776_v32  ;;  %v1273_v44 = vadd.f32 1e-12, %v1241_v35  ;;  %v1762_v56 = vsub.f32 1.5707964, %v1698_v34 }
 0x104   :  { %v770_v25 = vadd.f32 %v738_v30, %v706_v38  ;;  %v1603_v6 = vadd.f32 -0.33262348, %v1571_v47  ;;  %v6972_v3 = vmul.f32 0.5, %v648_v50  ;;  %v2080_v58 = vfloor.f32 %v2048_v15  ;;  %v12471_v30 = vld [vmem:[#allocation32_spill] sm:$0xff]  ;;  %v12472_v50 = vld [vmem:[#allocation30_spill] sm:$0xff] }
 0x105   :  { %vm897_vm9 = vcmp.eq.f32.partialorder %v6772_v28, 0.0  ;;  %v762_v20 = vadd.f32 %v730_v23, %v698_v16  ;;  %v6975_v5 = vmul.f32 0.5, %v390_v51  ;;  %vm1826_vm10 = vcmp.lt.f32.partialorder %v6502_v7, 0.0  ;;  %v12473_v47 = vld [vmem:[#allocation24_spill] sm:$0xff] }
 0x106   :  { %v5611_v41 = vpop.eup %5610  ;;  %v899_v33 = vsel %vm897_vm9, %v898_v61, %v896_v48  ;;  %v1866_v62 = vsub.f32 3.1415927, %v1802_v9  ;;  %v1635_v32 = vmul.f32 %v1603_v6, %v6855_v2  ;;  %5612 = vrcp.f32 %v1273_v44  ;;  %v6988_v48 = vpop.permute.xlu1 %338  ;;  %v12475_v2 = vld [vmem:[#allocation39_spill] sm:$0xff] }
 0x107   :  { %v2120_v57 = vsub.f32 %v2056_v31, %v2088_v19  ;;  %vm1730_vm11 = vcmp.gt.f32.partialorder %v12472_v50, %v12471_v30  ;;  %v1675_v35 = vadd.f32 0.99997723, %v1643_v53  ;;  %vm1930_vm12 = vcmp.lt.f32.partialorder %v12473_v47, 0.0  ;;  %12474 = vst [vmem:[#allocation25_spill] sm:$0xff] %v6988_v48  ;;  %v6998_v53 = vpop.permute.xlu0 %336 }
 0x108   :  { %v1794_v28 = vsel %vm1730_vm11, %v1762_v56, %v1698_v34  ;;  %v6983_v16 = vadd.f32 1e-10, %v770_v25  ;;  %v1667_v23 = vadd.f32 0.99997723, %v1635_v32  ;;  %v6986_v51 = vand.u32 2147483647, %v6972_v3 }
 0x109   :  { %v2112_v6 = vsub.f32 %v2048_v15, %v2080_v58  ;;  %v6991_v31 = vmul.f32 %v12475_v2, %v899_v33  ;;  %v6993_v61 = vadd.f32 1e-10, %v762_v20  ;;  %v6996_v44 = vand.u32 2147483647, %v6975_v5  ;;  %12476 = vst [vmem:[#allocation26_spill] sm:$0xff] %v6998_v53 }
 0x10a   :  { %vm2152_vm5 = vcmp.ge.f32.partialorder %v2088_v19, 8.0  ;;  %v4977_v25 = vadd.f32 -8.0, %v2088_v19  ;;  %v1898_v56 = vsel %vm1834_vm7, %v1866_v62, %v1802_v9  ;;  %v1699_v34 = vmul.f32 %v1667_v23, %v6838_v21 }
 0x10b   :  { %v2248_v32 = vsub.f32 1.0, %v2120_v57  ;;  %v1858_v30 = vsub.f32 3.1415927, %v1794_v28  ;;  %v1707_v15 = vmul.f32 %v1675_v35, %v6757_v22  ;;  %v1233_v20 = vmax.f32 %v6996_v44, %v6986_v51 }
 0x10c   :  { %v4969_v33 = vadd.f32 -8.0, %v2080_v58  ;;  %v7007_v50 = vmul.f32 %v5611_v41, %v6896_v27  ;;  %5614 = vrsqrt.f32 %v6983_v16  ;;  %vm1739_vm6 = vcmp.gt.f32.partialorder %v6597_v43, %v6611_v14  ;;  %v7019_v41 = vpop.permute.xlu1 %443 }
 0x10d   :  { %vm2144_vm8 = vcmp.ge.f32.partialorder %v2080_v58, 8.0  ;;  %v2240_v9 = vsub.f32 1.0, %v2112_v6  ;;  %v1962_v10 = vsub.f32 0.0, %v1898_v56  ;;  %v1265_v21 = vadd.f32 1e-12, %v1233_v20  ;;  %12479 = vst [vmem:[#allocation24_spill] sm:$0xff] %v7019_v41 }
 0x10e   :  { %v7013_v62 = vsel %vm2152_vm5, %v4977_v25, %v2088_v19  ;;  %v7016_v22 = vmul.f32 %v2120_v57, %v6783_v49  ;;  %5616 = vrsqrt.f32 %v6993_v61  ;;  %v1763_v35 = vsub.f32 1.5707964, %v1699_v34  ;;  %v7030_v19 = vpop.permute.xlu0 %441 }
 0x10f   :  { %12477 = vst [vmem:[#allocation32_spill] sm:$0xff] %v7013_v62  ;;  %v7022_v23 = vmul.f32 %v2248_v32, %v6783_v49  ;;  %v7026_v38 = vsel %vm1826_vm10, %v1858_v30, %v1794_v28  ;;  %v1771_v24 = vsub.f32 1.5707964, %v1707_v15  ;;  %vm1731_vm7 = vcmp.gt.f32.partialorder %v6684_v37, %v6701_v1  ;;  %12481 = vst [vmem:[#allocation49_spill] sm:$0xff] %v7030_v19 }
 0x110   :  { %12478 = vst [vmem:[#allocation30_spill] sm:$0xff] %v7016_v22  ;;  %v5613_v57 = vpop.eup %5612  ;;  %v7032_v25 = vsel %vm2144_vm8, %v4969_v33, %v2080_v58  ;;  %v7035_v20 = vmul.f32 %v2112_v6, %v6916_v42  ;;  %vm1827_vm9 = vcmp.lt.f32.partialorder %v6664_v17, 0.0  ;;  %v1209_v49 = vmin.f32 %v6944_v55, %v6941_v8  ;;  %v7079_v14 = vpop.permute.xlu1 %596 }
 0x111   :  { %12480 = vst [vmem:[#allocation48_spill] sm:$0xff] %v7022_v23  ;;  %12482 = vst [vmem:[#allocation50_spill] sm:$0xff] %v7032_v25  ;;  %5618 = vrcp.f32 %v1265_v21  ;;  %v7041_v7 = vmul.f32 %v2240_v9, %v6916_v42  ;;  %vm1835_vm10 = vcmp.lt.f32.partialorder %v6583_v36, 0.0  ;;  %v1994_v37 = vsel %vm1930_vm12, %v1962_v10, %v1898_v56  ;;  %v12485_v56 = vld [vmem:[#allocation28_spill] sm:$0xff] }
 0x112   :  { %12483 = vst [vmem:[#allocation51_spill] sm:$0xff] %v7035_v20  ;;  %v271_v1 = vsel %vm243_vm1, %v6967_v4, %v6549_v40  ;;  %v270_v58 = vsel %vm243_vm1, %v6970_v39, %v6585_v18  ;;  %v1954_v28 = vsub.f32 0.0, %v7026_v38  ;;  %v1795_v6 = vsel %vm1731_vm7, %v1763_v35, %v1699_v34  ;;  %12486 = vst [vmem:[#allocation28_spill] sm:$0xff] %v7079_v14 }
 0x113   :  { %12484 = vst [vmem:[#allocation52_spill] sm:$0xff] %v7041_v7  ;;  %v7055_v42 = vmul.f32 %v5613_v57, %v1209_v49  ;;  %v372_v47 = vsel %vm340_vm0, %v6988_v48, %v6646_v13  ;;  %vm1922_vm11 = vcmp.lt.f32.partialorder %v12485_v56, 0.0  ;;  %v1803_v40 = vsel %vm1739_vm6, %v1771_v24, %v1707_v15  ;;  %v7087_v15 = vpop.permute.xlu0 %594 }
 0x114   :  { %v752_v32 = vmul.f32 %v6926_v63, %v6926_v63  ;;  %vm12126_vm12 = vcmp.eq.f32.partialorder %v7032_v25, 7.0  ;;  %vm12087_vm5 = vcmp.eq.f32.partialorder %v7013_v62, 7.0  ;;  %v371_v13 = vsel %vm340_vm0, %v6998_v53, %v6677_v59  ;;  %12487 = vst [vmem:[#allocation53_spill] sm:$0xff] %v7087_v15 }
 0x115   :  { %v7071_v18 = vmul.f32 %v7055_v42, %v7055_v42  ;;  %vm12127_vm8 = vcmp.eq.f32.partialorder %v7032_v25, 0.0  ;;  %vm12083_vm6 = vcmp.eq.f32.partialorder %v7013_v62, 0.0  ;;  %v1859_v43 = vsub.f32 3.1415927, %v1795_v6 }
 0x116   :  { %v397_v24 = vsub.f32 %v271_v1, %v372_v47  ;;  %v2400_v34 = vsel %vm12127_vm8, %v7041_v7, 0.0  ;;  %v2408_v30 = vsel %vm12083_vm6, %v7022_v23, 0.0  ;;  %v5615_v33 = vpop.eup %5614  ;;  %vm839_vm7 = vcmp.eq.f32.partialorder %v6896_v27, inf  ;;  %v12502_v23 = vld [vmem:[#allocation5_spill] sm:$0xff] }
 0x117   :  { %v1867_v59 = vsub.f32 3.1415927, %v1803_v40  ;;  %v1401_v9 = vmul.f32 -0.0117212, %v7071_v18  ;;  %v2432_v10 = vsel %vm12126_vm12, %v7035_v20, 0.0  ;;  %v2440_v21 = vsel %vm12087_vm5, %v7016_v22, 0.0 }
 0x118   :  { %v1201_v35 = vmin.f32 %v6996_v44, %v6986_v51  ;;  %v389_v57 = vsub.f32 %v270_v58, %v371_v13  ;;  %v2464_v49 = vadd.f32 %v2432_v10, %v2400_v34  ;;  %v2472_v1 = vadd.f32 %v2440_v21, %v2408_v30  ;;  %v5617_v47 = vpop.eup %5616 }
 0x119   :  { %vm1931_vm6 = vcmp.lt.f32.partialorder %v6579_v26, 0.0  ;;  %v1433_v39 = vadd.f32 0.05265332, %v1401_v9  ;;  %v529_v53 = vsel %vm12219_vm2, %v7019_v41, %v6737_v52  ;;  %v630_v4 = vsel %vm12218_vm3, %v7079_v14, %v6827_v60 }
 0x11a   :  { %v629_v58 = vsel %vm12218_vm3, %v7087_v15, %v6870_v29  ;;  %vm902_vm5 = vcmp.eq.f32.partialorder %v6983_v16, inf  ;;  %v1891_v13 = vsel %vm1827_vm9, %v1859_v43, %v1795_v6  ;;  %v2496_v34 = vpack.c.bf16 %v2472_v1, %v2464_v49  ;;  %v7124_v15 = vpop.permute.xlu1 %207 }
 0x11b   :  { %v528_v52 = vsel %vm12219_vm2, %v7030_v19, %v6765_v54  ;;  %v655_v30 = vsub.f32 %v529_v53, %v630_v4  ;;  %v5619_v9 = vpop.eup %5618  ;;  %v1899_v60 = vsel %vm1835_vm10, %v1867_v59, %v1803_v40  ;;  %v1465_v10 = vmul.f32 %v1433_v39, %v7071_v18 }
 0x11c   :  { %v7122_v21 = vmul.f32 0.5, %v397_v24  ;;  %v647_v29 = vsub.f32 %v528_v52, %v629_v58  ;;  %v2026_v17 = vadd.f32 6.2831855, %v1994_v37  ;;  %vm1923_vm9 = vcmp.lt.f32.partialorder %v12466_v12, 0.0  ;;  %3905 = vmatmul.mubr.bf16.vlgmr.msra.gmra.mrb[0].mxu0 %v2496_v34 }
 0x11d   :  { %v720_v6 = vmul.f32 %v6922_v45, %v6922_v45  ;;  %v7129_v43 = vmul.f32 %v5619_v9, %v1201_v35  ;;  %v1986_v36 = vsel %vm1922_vm11, %v1954_v28, %v7026_v38  ;;  %v1955_v54 = vsub.f32 0.0, %v1891_v13 }
 0x11e   :  { %v7134_v39 = vmul.f32 0.5, %v655_v30  ;;  %v7136_v4 = vmul.f32 0.5, %v647_v29  ;;  %vm841_vm10 = vcmp.eq.f32.partialorder %v6896_v27, 0.0  ;;  %v1963_v53 = vsub.f32 0.0, %v1899_v60  ;;  %v7165_v34 = vpop.permute.xlu1 %215 }
 0x11f   :  { %v1497_v37 = vadd.f32 -0.11643287, %v1465_v10  ;;  %v7141_v40 = vmul.f32 %v7129_v43, %v7129_v43  ;;  %v7143_v24 = vmul.f32 0.5, %v389_v57  ;;  %v901_v59 = vmul.f32 %v5615_v33, %v6983_v16  ;;  %12490 = vst [vmem:[#allocation56_spill] sm:$0xff] %v7165_v34 }
 0x120   :  { %12488 = vst [vmem:[#allocation54_spill] sm:$0xff] %v7134_v39  ;;  %v784_v35 = vadd.f32 %v752_v32, %v720_v6  ;;  %v7147_v38 = vand.u32 2147483647, %v7122_v21  ;;  %v7150_v28 = vand.u32 2147483647, %v7134_v39  ;;  %v840_v56 = vsel %vm839_vm7, %v6896_v27, %v7007_v50 }
 0x121   :  { %12489 = vst [vmem:[#allocation55_spill] sm:$0xff] %v7143_v24  ;;  %v2018_v49 = vadd.f32 6.2831855, %v1986_v36  ;;  %v1393_v1 = vmul.f32 -0.0117212, %v7141_v40  ;;  %vm904_vm11 = vcmp.eq.f32.partialorder %v6983_v16, 0.0  ;;  %v1987_v32 = vsel %vm1923_vm9, %v1955_v54, %v1891_v13 }
 0x122   :  { %v7158_v57 = vand.u32 2147483647, %v7136_v4  ;;  %v2058_v58 = vmul.f32 1.2732395, %v2026_v17  ;;  %v1240_v33 = vmax.f32 %v7147_v38, %v7150_v28  ;;  %v1995_v50 = vsel %vm1931_vm6, %v1963_v53, %v1899_v60 }
 0x123   :  { %v1529_v52 = vmul.f32 %v1497_v37, %v7071_v18  ;;  %v1425_v30 = vadd.f32 0.05265332, %v1393_v1  ;;  %v7171_v9 = vand.u32 2147483647, %v7143_v24  ;;  %v903_v10 = vsel %vm902_vm5, %v6983_v16, %v901_v59  ;;  %v7184_v37 = vpop.permute.xlu0 %205 }
 0x124   :  { %v845_v12 = vmul.f32 %v5617_v47, %v6993_v61  ;;  %v7177_v13 = vadd.f32 1e-10, %v784_v35  ;;  %v1272_v29 = vadd.f32 1e-12, %v1240_v33  ;;  %v2050_v17 = vmul.f32 1.2732395, %v2018_v49 }
 0x125   :  { %v2019_v6 = vadd.f32 6.2831855, %v1987_v32  ;;  %v1457_v26 = vmul.f32 %v1425_v30, %v7141_v40  ;;  %v1232_v60 = vmax.f32 %v7171_v9, %v7158_v57  ;;  %v2090_v36 = vfloor.f32 %v2058_v58 }
 0x126   :  { %v905_v54 = vand.u32 2147483648, %v6983_v16  ;;  %v2027_v53 = vadd.f32 6.2831855, %v1995_v50  ;;  %vm846_vm6 = vcmp.eq.f32.partialorder %v6993_v61, inf  ;;  %v1561_v59 = vadd.f32 0.19354346, %v1529_v52  ;;  %v7196_v50 = vpop.permute.xlu1 %298 }
 0x127   :  { %v744_v47 = vmul.f32 %v6972_v3, %v6972_v3  ;;  %v1489_v35 = vadd.f32 -0.11643287, %v1457_v26  ;;  %5620 = vrcp.f32 %v1272_v29  ;;  %v12491_v49 = vand.u32 2147483648, %v6896_v27 }
 0x128   :  { %v906_v32 = vsel %vm904_vm11, %v905_v54, %v903_v10  ;;  %v847_v33 = vsel %vm846_vm6, %v6993_v61, %v845_v12  ;;  %5622 = vrsqrt.f32 %v7177_v13  ;;  %v2082_v52 = vfloor.f32 %v2050_v17 }
 0x129   :  { %v843_v1 = vsel %vm841_vm10, %v12491_v49, %v840_v56  ;;  %v2051_v30 = vmul.f32 1.2732395, %v2019_v6  ;;  %v712_v26 = vmul.f32 %v6975_v5, %v6975_v5  ;;  %v1264_v29 = vadd.f32 1e-12, %v1232_v60  ;;  %v12492_v6 = vld [vmem:[#allocation40_spill] sm:$0xff]  ;;  %v7208_v60 = vpop.permute.xlu0 %213 }
 0x12a   :  { %v2122_v19 = vsub.f32 %v2058_v58, %v2090_v36  ;;  %v2059_v14 = vmul.f32 1.2732395, %v2027_v53  ;;  %vm848_vm5 = vcmp.eq.f32.partialorder %v6993_v61, 0.0  ;;  %v849_v27 = vand.u32 2147483648, %v6993_v61  ;;  %12493 = vst [vmem:[#allocation57_spill] sm:$0xff] %v7208_v60 }
 0x12b   :  { %v1593_v16 = vmul.f32 %v1561_v59, %v7071_v18  ;;  %v776_v56 = vadd.f32 %v744_v47, %v712_v26  ;;  %v1521_v10 = vmul.f32 %v1489_v35, %v7141_v40  ;;  %5624 = vrcp.f32 %v1264_v29  ;;  %v12495_v35 = vld [vmem:[#allocation17_spill] sm:$0xff] }
 0x12c   :  { %v4979_v12 = vadd.f32 -8.0, %v2090_v36  ;;  %v1090_v54 = vmul.f32 %v12475_v2, %v843_v1  ;;  %v7206_v49 = vmul.f32 %v12492_v6, %v906_v32  ;;  %v850_v41 = vsel %vm848_vm5, %v849_v27, %v847_v33  ;;  %v12498_v32 = vld [vmem:[#allocation6_spill] sm:$0xff] }
 0x12d   :  { %vm2154_vm7 = vcmp.ge.f32.partialorder %v2090_v36, 8.0  ;;  %v2114_v58 = vsub.f32 %v2050_v17, %v2082_v52  ;;  %v2083_v53 = vfloor.f32 %v2051_v30  ;;  %v7213_v61 = vsel %vm2369_vm15, %v6830_v0, 0.0  ;;  %v7227_v17 = vpop.permute.xlu1 %306 }
 0x12e   :  { %12494 = vst [vmem:[#allocation58_spill] sm:$0xff] %v7213_v61  ;;  %v2250_v59 = vsub.f32 1.0, %v2122_v19  ;;  %v7215_v47 = vfloor.f32 %v2059_v14  ;;  %v7220_v1 = vsel %vm2377_vm4, %v12495_v35, 0.0  ;;  %v7225_v33 = vsel %vm2337_vm13, %v12498_v32, 0.0  ;;  %12500 = vst [vmem:[#allocation61_spill] sm:$0xff] %v7227_v17 }
 0x12f   :  { %12497 = vst [vmem:[#allocation59_spill] sm:$0xff] %v7220_v1  ;;  %12499 = vst [vmem:[#allocation60_spill] sm:$0xff] %v7225_v33  ;;  %v1091_v29 = vmul.f32 %v12492_v6, %v850_v41  ;;  %v1625_v27 = vadd.f32 -0.33262348, %v1593_v16  ;;  %v7230_v48 = vadd.f32 1e-10, %v776_v56  ;;  %v7232_v22 = vsel %vm2154_vm7, %v4979_v12, %v2090_v36 }
 0x130   :  { %v1553_v0 = vadd.f32 0.19354346, %v1521_v10  ;;  %12501 = vst [vmem:[#allocation62_spill] sm:$0xff] %v7232_v22  ;;  %v4971_v20 = vadd.f32 -8.0, %v2082_v52  ;;  %v7237_v35 = vsel %vm2345_vm14, %v12502_v23, 0.0  ;;  %v1208_v7 = vmin.f32 %v7147_v38, %v7150_v28 }
 0x131   :  { %12503 = vst [vmem:[#allocation63_spill] sm:$0xff] %v7237_v35  ;;  %v5621_v33 = vpop.eup %5620  ;;  %v7242_v62 = vmul.f32 %v2122_v19, %v6991_v31  ;;  %vm2146_vm13 = vcmp.ge.f32.partialorder %v2082_v52, 8.0  ;;  %v2242_v41 = vsub.f32 1.0, %v2114_v58  ;;  %v2115_v16 = vsub.f32 %v2051_v30, %v2083_v53  ;;  %v7251_v35 = vpop.permute.xlu0 %296 }
 0x132   :  { %v5623_v56 = vpop.eup %5622  ;;  %v7245_v36 = vmul.f32 %v2250_v59, %v6991_v31  ;;  %v2123_v10 = vsub.f32 %v2059_v14, %v7215_v47  ;;  %vm1000_vm15 = vcmp.eq.f32.partialorder %v7177_v13, inf  ;;  %v7249_v12 = vmul.f32 %v5621_v33, %v1208_v7  ;;  %v7267_v59 = vpop.permute.xlu1 %467 }
 0x133   :  { %12504 = vst [vmem:[#allocation64_spill] sm:$0xff] %v7242_v62  ;;  %v1657_v19 = vmul.f32 %v1625_v27, %v7071_v18  ;;  %5626 = vrsqrt.f32 %v7230_v48  ;;  %v1585_v30 = vmul.f32 %v1553_v0, %v7141_v40  ;;  %v7257_v1 = vsel %vm2146_vm13, %v4971_v20, %v2082_v52 }
 0x134   :  { %12505 = vst [vmem:[#allocation65_spill] sm:$0xff] %v7245_v36  ;;  %12506 = vst [vmem:[#allocation66_spill] sm:$0xff] %v7257_v1  ;;  %v7259_v31 = vmul.f32 %v2114_v58, %v1090_v54  ;;  %v7263_v14 = vmul.f32 %v7249_v12, %v7249_v12  ;;  %v1200_v7 = vmin.f32 %v7171_v9, %v7158_v57  ;;  %v4972_v18 = vadd.f32 -8.0, %v2083_v53 }
 0x135   :  { %v5625_v33 = vpop.eup %5624  ;;  %v7269_v25 = vmul.f32 %v2242_v41, %v1090_v54  ;;  %v2243_v27 = vsub.f32 1.0, %v2115_v16  ;;  %v999_v0 = vmul.f32 %v5623_v56, %v7177_v13  ;;  %v2251_v20 = vsub.f32 1.0, %v2123_v10  ;;  %v7283_v56 = vpop.permute.xlu0 %304 }
 0x136   :  { %12507 = vst [vmem:[#allocation67_spill] sm:$0xff] %v7259_v31  ;;  %v719_v52 = vmul.f32 %v7122_v21, %v7122_v21  ;;  %v1400_v58 = vmul.f32 -0.0117212, %v7263_v14  ;;  %v7275_v61 = vmul.f32 %v5625_v33, %v1200_v7  ;;  %v4980_v23 = vadd.f32 -8.0, %v7215_v47  ;;  %12510 = vst [vmem:[#allocation70_spill] sm:$0xff] %v7283_v56 }
 0x137   :  { %12508 = vst [vmem:[#allocation68_spill] sm:$0xff] %v7269_v25  ;;  %v1689_v32 = vadd.f32 0.99997723, %v1657_v19  ;;  %v1617_v11 = vadd.f32 -0.33262348, %v1585_v30  ;;  %vm2147_vm14 = vcmp.ge.f32.partialorder %v2083_v53, 8.0  ;;  %v7286_v6 = vmul.f32 %v2243_v27, %v1091_v29 }
 0x138   :  { %12509 = vst [vmem:[#allocation69_spill] sm:$0xff] %v7275_v61  ;;  %v1432_v54 = vadd.f32 0.05265332, %v1400_v58  ;;  %v7281_v41 = vmul.f32 %v7275_v61, %v7275_v61  ;;  %vm2155_vm4 = vcmp.ge.f32.partialorder %v7215_v47, 8.0  ;;  %v7291_v7 = vsel %vm1000_vm15, %v7177_v13, %v999_v0  ;;  %v7307_v0 = vpop.permute.xlu1 %475  ;;  %v12520_v61 = vld [vmem:[#allocation35_spill] sm:$0xff] }
 0x139   :  { %12511 = vst [vmem:[#allocation71_spill] sm:$0xff] %v7286_v6  ;;  %v711_v19 = vmul.f32 %v7143_v24, %v7143_v24  ;;  %v7295_v30 = vsel %vm2147_vm14, %v4972_v18, %v2083_v53  ;;  %v7298_v33 = vmul.f32 %v2251_v20, %v7206_v49  ;;  %v7301_v58 = vmul.f32 %v2123_v10, %v7206_v49 }
 0x13a   :  { %12512 = vst [vmem:[#allocation72_spill] sm:$0xff] %v7295_v30  ;;  %vm1753_vm9 = vcmp.gt.f32.partialorder %v6941_v8, %v6944_v55  ;;  %v1464_v27 = vmul.f32 %v1432_v54, %v7263_v14  ;;  %v1392_v26 = vmul.f32 -0.0117212, %v7281_v41  ;;  %12515 = vst [vmem:[#allocation75_spill] sm:$0xff] %v7307_v0  ;;  %v7309_v2 = vmul.f32 %v2115_v16, %v1091_v29  ;;  %v12518_v16 = vld [vmem:[#allocation34_spill] sm:$0xff] }
 0x13b   :  { %12513 = vst [vmem:[#allocation73_spill] sm:$0xff] %v7298_v33  ;;  %12514 = vst [vmem:[#allocation74_spill] sm:$0xff] %v7301_v58  ;;  %v1721_v53 = vmul.f32 %v1689_v32, %v7055_v42  ;;  %v1649_v18 = vmul.f32 %v1617_v11, %v7141_v40  ;;  %v7314_v20 = vsel %vm2155_vm4, %v4980_v23, %v7215_v47  ;;  %vm944_vm10 = vcmp.eq.f32.partialorder %v7230_v48, inf  ;;  %v12519_v23 = vld [vmem:[#allocation38_spill] sm:$0xff]  ;;  %v7334_v32 = vpop.permute.xlu0 %465 }
 0x13c   :  { %12516 = vst [vmem:[#allocation76_spill] sm:$0xff] %v7309_v2  ;;  %12517 = vst [vmem:[#allocation77_spill] sm:$0xff] %v7314_v20  ;;  %v1496_v49 = vadd.f32 -0.11643287, %v1464_v27  ;;  %v1424_v10 = vadd.f32 0.05265332, %v1392_v26  ;;  %v751_v29 = vmul.f32 %v7134_v39, %v7134_v39  ;;  %v263_v11 = vsel %vm243_vm1, %v12518_v16, %v7124_v15  ;;  %v7345_v60 = vpop.permute.xlu1 %556 }
 0x13d   :  { %vm2339_vm11 = vcmp.eq.f32.partialorder %v7295_v30, 7.0  ;;  %vm2371_vm6 = vcmp.eq.f32.partialorder %v7295_v30, 0.0  ;;  %v5627_v54 = vpop.eup %5626  ;;  %v364_v42 = vsel %vm340_vm0, %v12519_v23, %v7196_v50  ;;  %vm12128_vm5 = vcmp.eq.f32.partialorder %v7314_v20, 7.0 }
 0x13e   :  { %v2403_v40 = vsel %vm2371_vm6, %v7286_v6, 0.0  ;;  %v1528_v47 = vmul.f32 %v1496_v49, %v7263_v14  ;;  %v1456_v26 = vmul.f32 %v1424_v10, %v7281_v41  ;;  %vm2379_vm7 = vcmp.eq.f32.partialorder %v7314_v20, 0.0 }
 0x13f   :  { %v1785_v27 = vsub.f32 1.5707964, %v1721_v53  ;;  %v1681_v16 = vadd.f32 0.99997723, %v1649_v18  ;;  %v2411_v23 = vsel %vm2379_vm7, %v7298_v33, 0.0  ;;  %v2435_v6 = vsel %vm2339_vm11, %v7309_v2, 0.0  ;;  %v7381_v55 = vpop.permute.xlu0 %473 }
 0x140   :  { %v943_v49 = vmul.f32 %v5627_v54, %v7230_v48  ;;  %v1560_v24 = vadd.f32 0.19354346, %v1528_v47  ;;  %v1488_v10 = vadd.f32 -0.11643287, %v1456_v26  ;;  %v2467_v39 = vadd.f32 %v2435_v6, %v2403_v40  ;;  %12523 = vst [vmem:[#allocation34_spill] sm:$0xff] %v7381_v55 }
 0x141   :  { %vm1849_vm13 = vcmp.lt.f32.partialorder %v6922_v45, 0.0  ;;  %v743_v18 = vmul.f32 %v7136_v4, %v7136_v4  ;;  %v7354_v33 = vsel %vm243_vm1, %v12520_v61, %v7184_v37  ;;  %v399_v30 = vsub.f32 %v263_v11, %v364_v42  ;;  %v12521_v42 = vld [vmem:[#allocation46_spill] sm:$0xff] }
 0x142   :  { %v2443_v54 = vsel %vm12128_vm5, %v7301_v58, 0.0  ;;  %vm1745_vm15 = vcmp.gt.f32.partialorder %v6986_v51, %v6996_v44  ;;  %v783_v6 = vadd.f32 %v751_v29, %v719_v52  ;;  %v1592_v40 = vmul.f32 %v1560_v24, %v7263_v14  ;;  %v12526_v44 = vld [vmem:[#allocation42_spill] sm:$0xff] }
 0x143   :  { %v1520_v47 = vmul.f32 %v1488_v10, %v7281_v41  ;;  %v2475_v26 = vadd.f32 %v2443_v54, %v2411_v23  ;;  %v1817_v2 = vsel %vm1753_vm9, %v1785_v27, %v1721_v53  ;;  %v1713_v61 = vmul.f32 %v1681_v16, %v7129_v43  ;;  %v12522_v23 = vld [vmem:[#allocation18_spill] sm:$0xff] }
 0x144   :  { %v7371_v11 = vsel %vm243_vm1, %v7124_v15, %v7165_v34  ;;  %v622_v24 = vsel %vm12218_vm3, %v12521_v42, %v7345_v60  ;;  %v1624_v52 = vadd.f32 -0.33262348, %v1592_v40  ;;  %v521_v8 = vsel %vm12219_vm2, %v12522_v23, %v7267_v59  ;;  %v7423_v23 = vpop.permute.xlu0 %554 }
 0x145   :  { %v1552_v29 = vadd.f32 0.19354346, %v1520_v47  ;;  %v2499_v43 = vpack.c.bf16 %v2475_v26, %v2467_v39  ;;  %v945_v15 = vsel %vm944_vm10, %v7230_v48, %v943_v49  ;;  %v775_v53 = vadd.f32 %v743_v18, %v711_v19  ;;  %v12524_v47 = vld [vmem:[#allocation41_spill] sm:$0xff] }
 0x146   :  { %v7386_v27 = vmul.f32 0.5, %v399_v30  ;;  %v657_v16 = vsub.f32 %v521_v8, %v622_v24  ;;  %v1881_v10 = vsub.f32 3.1415927, %v1817_v2  ;;  %v7388_v54 = vadd.f32 1e-10, %v783_v6 }
 0x147   :  { %v1656_v40 = vmul.f32 %v1624_v52, %v7263_v14  ;;  %v363_v42 = vsel %vm340_vm0, %v12524_v47, %v7251_v35  ;;  %4065 = vmatprep.mubr.bf16.mxu1 %v2499_v43  ;;  %v1777_v39 = vsub.f32 1.5707964, %v1713_v61  ;;  %vm12130_vm14 = vcmp.eq.f32.partialorder %v7257_v1, 7.0 }
 0x148   :  { %v7395_v26 = vmul.f32 0.5, %v657_v16  ;;  %vm12129_vm4 = vcmp.eq.f32.partialorder %v7232_v22, 7.0  ;;  %vm1002_vm9 = vcmp.eq.f32.partialorder %v7177_v13, 0.0  ;;  %v1584_v30 = vmul.f32 %v1552_v29, %v7281_v41 }
 0x149   :  { %v1688_v19 = vadd.f32 0.99997723, %v1656_v40  ;;  %vm12188_vm10 = vcmp.eq.f32.partialorder %v7257_v1, 0.0  ;;  %vm12185_vm12 = vcmp.eq.f32.partialorder %v7232_v22, 0.0  ;;  %vm1945_vm8 = vcmp.lt.f32.partialorder %v6926_v63, 0.0  ;;  %v7489_v63 = vpop.permute.xlu0 %562 }
 0x14a   :  { %v7405_v14 = vand.u32 2147483647, %v7386_v27  ;;  %v7408_v49 = vand.u32 2147483647, %v7395_v26  ;;  %v2402_v18 = vsel %vm12188_vm10, %v7269_v25, 0.0  ;;  %v2410_v6 = vsel %vm12185_vm12, %v7245_v36, 0.0 }
 0x14b   :  { %vm1841_vm5 = vcmp.lt.f32.partialorder %v6975_v5, 0.0  ;;  %v1913_v24 = vsel %vm1849_vm13, %v1881_v10, %v1817_v2  ;;  %5628 = vrsqrt.f32 %v7388_v54  ;;  %v7420_v52 = vadd.f32 1e-10, %v775_v53  ;;  %v7436_v53 = vpop.permute.xlu1 %564  ;;  %12531 = vst [vmem:[#allocation46_spill] sm:$0xff] %v7489_v63 }
 0x14c   :  { %v391_v29 = vsub.f32 %v7354_v33, %v363_v42  ;;  %v1809_v8 = vsel %vm1745_vm15, %v1777_v39, %v1713_v61  ;;  %v1242_v43 = vmax.f32 %v7405_v14, %v7408_v49  ;;  %v2434_v45 = vsel %vm12130_vm14, %v7259_v31, 0.0  ;;  %12525 = vst [vmem:[#allocation38_spill] sm:$0xff] %v7436_v53  ;;  %v12527_v42 = vld [vmem:[#allocation47_spill] sm:$0xff] }
 0x14d   :  { %v2442_v2 = vsel %vm12129_vm4, %v7242_v62, 0.0  ;;  %v1720_v33 = vmul.f32 %v1688_v19, %v7249_v12  ;;  %v1616_v16 = vadd.f32 -0.33262348, %v1584_v30  ;;  %v2466_v10 = vadd.f32 %v2434_v45, %v2402_v18 }
 0x14e   :  { %v2474_v40 = vadd.f32 %v2442_v2, %v2410_v6  ;;  %v360_v51 = vsel %vm340_vm0, %v7196_v50, %v7227_v17  ;;  %v520_v61 = vsel %vm12219_vm2, %v12526_v44, %v7334_v32  ;;  %v1274_v47 = vadd.f32 1e-12, %v1242_v43 }
 0x14f   :  { %v621_v39 = vsel %vm12218_vm3, %v12527_v42, %v7423_v23  ;;  %v1977_v12 = vsub.f32 0.0, %v1913_v24  ;;  %v618_v18 = vsel %vm12218_vm3, %v7345_v60, %v7436_v53  ;;  %v1873_v50 = vsub.f32 3.1415927, %v1809_v8 }
 0x150   :  { %v2498_v19 = vpack.c.bf16 %v2474_v40, %v2466_v10  ;;  %v649_v30 = vsub.f32 %v520_v61, %v621_v39  ;;  %5630 = vrsqrt.f32 %v7420_v52  ;;  %v7456_v6 = vmul.f32 0.5, %v391_v29 }
 0x151   :  { %v517_v43 = vsel %vm12219_vm2, %v7267_v59, %v7307_v0  ;;  %v1784_v45 = vsub.f32 1.5707964, %v1720_v33  ;;  %v1648_v2 = vmul.f32 %v1616_v16, %v7281_v41  ;;  %5632 = vrcp.f32 %v1274_v47 }
 0x152   :  { %4066 = vmatmul.mubr.bf16.vlgmr.msra.gmra.mrb[0].mxu1 %v2498_v19  ;;  %v7463_v10 = vmul.f32 0.5, %v649_v30  ;;  %v12528_v60 = vand.u32 2147483648, %v7177_v13  ;;  %vm946_vm13 = vcmp.eq.f32.partialorder %v7230_v48, 0.0  ;;  %v400_v29 = vsub.f32 %v7371_v11, %v360_v51 }
 0x153   :  { %v658_v44 = vsub.f32 %v517_v43, %v618_v18  ;;  %v2009_v59 = vsel %vm1945_vm8, %v1977_v12, %v1913_v24  ;;  %v12529_v41 = vand.u32 2147483648, %v7230_v48  ;;  %vm1937_vm15 = vcmp.lt.f32.partialorder %v6972_v3, 0.0  ;;  %v7505_v12 = vpop.permute.xlu1 %219  ;;  %v12533_v43 = vld [vmem:[#allocation69_spill] sm:$0xff] }
 0x154   :  { %v1004_v40 = vsel %vm1002_vm9, %v12528_v60, %v7291_v7  ;;  %v7478_v61 = vand.u32 2147483647, %v7463_v10  ;;  %v1905_v13 = vsel %vm1841_vm5, %v1873_v50, %v1809_v8  ;;  %vm1752_vm9 = vcmp.gt.f32.partialorder %v7150_v28, %v7147_v38 }
 0x155   :  { %v948_v16 = vsel %vm946_vm13, %v12529_v41, %v945_v15  ;;  %v7485_v7 = vand.u32 2147483647, %v7456_v6  ;;  %v7487_v11 = vmul.f32 0.5, %v658_v44  ;;  %v5629_v48 = vpop.eup %5628  ;;  %v12532_v15 = vld [vmem:[#allocation31_spill] sm:$0xff]  ;;  %vm1848_vm8 = vcmp.lt.f32.partialorder %v7122_v21, 0.0 }
 0x156   :  { %v7492_v24 = vmul.f32 %v12532_v15, %v1004_v40  ;;  %v1816_v51 = vsel %vm1752_vm9, %v1784_v45, %v1720_v33  ;;  %v1680_v47 = vadd.f32 0.99997723, %v1648_v2  ;;  %v2041_v5 = vadd.f32 6.2831855, %v2009_v59  ;;  %v12534_v2 = vld [vmem:[#allocation57_spill] sm:$0xff]  ;;  %v12535_v59 = vld [vmem:[#allocation54_spill] sm:$0xff] }
 0x157   :  { %12530 = vst [vmem:[#allocation35_spill] sm:$0xff] %v7487_v11  ;;  %v7496_v8 = vmul.f32 %v12532_v15, %v948_v16  ;;  %v7498_v38 = vmul.f32 0.5, %v400_v29  ;;  %v1234_v28 = vmax.f32 %v7485_v7, %v7478_v61  ;;  %v1969_v42 = vsub.f32 0.0, %v1905_v13  ;;  %v7531_v16 = vpop.permute.xlu0 %217  ;;  %v7555_v21 = vpop.permute.xlu1 %227 }
 0x158   :  { %vm993_vm5 = vcmp.eq.f32.partialorder %v7388_v54, inf  ;;  %vm995_vm13 = vcmp.eq.f32.partialorder %v7388_v54, 0.0  ;;  %v996_v39 = vand.u32 2147483648, %v7388_v54  ;;  %v1880_v33 = vsub.f32 3.1415927, %v1816_v51 }
 0x159   :  { %vm937_vm9 = vcmp.eq.f32.partialorder %v7420_v52, inf  ;;  %vm1744_vm4 = vcmp.gt.f32.partialorder %v7158_v57, %v7171_v9  ;;  %v359_v19 = vsel %vm340_vm0, %v7251_v35, %v7283_v56  ;;  %v1266_v30 = vadd.f32 1e-12, %v1234_v28  ;;  %v12543_v56 = vld [vmem:[#allocation76_spill] sm:$0xff] }
 0x15a   :  { %v7515_v18 = vand.u32 2147483647, %v7487_v11  ;;  %v992_v50 = vmul.f32 %v5629_v48, %v7388_v54  ;;  %v1712_v45 = vmul.f32 %v1680_v47, %v12533_v43  ;;  %v258_v60 = vsel %vm243_vm1, %v7184_v37, %v12534_v2  ;;  %v5631_v29 = vpop.eup %5630 }
 0x15b   :  { %v753_v40 = vmul.f32 %v7395_v26, %v7395_v26  ;;  %v2073_v44 = vmul.f32 1.2732395, %v2041_v5  ;;  %vm1944_vm14 = vcmp.lt.f32.partialorder %v12535_v59, 0.0  ;;  %v7527_v35 = vand.u32 2147483647, %v7498_v38  ;;  %v5633_v48 = vpop.eup %5632  ;;  %v7594_v9 = vpop.permute.xlu1 %310 }
 0x15c   :  { %v1210_v41 = vmin.f32 %v7405_v14, %v7408_v49  ;;  %5634 = vrcp.f32 %v1266_v30  ;;  %v2001_v37 = vsel %vm1937_vm15, %v1969_v42, %v1905_v13  ;;  %v721_v15 = vmul.f32 %v7386_v27, %v7386_v27 }
 0x15d   :  { %v392_v47 = vsub.f32 %v258_v60, %v359_v19  ;;  %v617_v5 = vsel %vm12218_vm3, %v7423_v23, %v7489_v63  ;;  %v1912_v28 = vsel %vm1848_vm8, %v1880_v33, %v1816_v51  ;;  %v516_v30 = vsel %vm12219_vm2, %v7334_v32, %v7381_v55  ;;  %v12536_v60 = vld [vmem:[#allocation55_spill] sm:$0xff] }
 0x15e   :  { %v7547_v43 = vmul.f32 %v5633_v48, %v1210_v41  ;;  %v1243_v3 = vmax.f32 %v7527_v35, %v7515_v18  ;;  %v994_v13 = vsel %vm993_vm5, %v7388_v54, %v992_v50  ;;  %v936_v42 = vmul.f32 %v5631_v29, %v7420_v52 }
 0x15f   :  { %v1776_v23 = vsub.f32 1.5707964, %v1712_v45  ;;  %v785_v19 = vadd.f32 %v753_v40, %v721_v15  ;;  %v2105_v51 = vfloor.f32 %v2073_v44  ;;  %v2033_v33 = vadd.f32 6.2831855, %v2001_v37  ;;  %v7635_v0 = vpop.permute.xlu1 %318 }
 0x160   :  { %vm939_vm15 = vcmp.eq.f32.partialorder %v7420_v52, 0.0  ;;  %v650_v32 = vsub.f32 %v516_v30, %v617_v5  ;;  %vm1840_vm8 = vcmp.lt.f32.partialorder %v12536_v60, 0.0  ;;  %v1976_v41 = vsub.f32 0.0, %v1912_v28  ;;  %v7574_v5 = vpop.permute.xlu0 %225 }
 0x161   :  { %v940_v48 = vand.u32 2147483648, %v7420_v52  ;;  %v7560_v62 = vmul.f32 0.5, %v392_v47  ;;  %v7564_v50 = vmul.f32 %v7547_v43, %v7547_v43  ;;  %v997_v40 = vsel %vm995_vm13, %v996_v39, %v994_v13 }
 0x162   :  { %v713_v29 = vmul.f32 %v7456_v6, %v7456_v6  ;;  %v7572_v37 = vmul.f32 %v7498_v38, %v7498_v38  ;;  %v1275_v15 = vadd.f32 1e-12, %v1243_v3  ;;  %v938_v47 = vsel %vm937_vm9, %v7420_v52, %v936_v42 }
 0x163   :  { %12537 = vst [vmem:[#allocation18_spill] sm:$0xff] %v7560_v62  ;;  %v1808_v30 = vsel %vm1744_vm4, %v1776_v23, %v1712_v45  ;;  %v7582_v54 = vadd.f32 1e-10, %v785_v19  ;;  %v1402_v39 = vmul.f32 -0.0117212, %v7564_v50  ;;  %v2137_v13 = vsub.f32 %v2073_v44, %v2105_v51 }
 0x164   :  { %v2065_v31 = vmul.f32 1.2732395, %v2033_v33  ;;  %5636 = vrcp.f32 %v1275_v15  ;;  %v7585_v36 = vmul.f32 0.5, %v650_v32  ;;  %v2008_v3 = vsel %vm1944_vm14, %v1976_v41, %v1912_v28 }
 0x165   :  { %v7590_v25 = vand.u32 2147483647, %v7560_v62  ;;  %v1434_v42 = vadd.f32 0.05265332, %v1402_v39  ;;  %v1202_v57 = vmin.f32 %v7485_v7, %v7478_v61  ;;  %v4994_v23 = vadd.f32 -8.0, %v2105_v51 }
 0x166   :  { %12538 = vst [vmem:[#allocation41_spill] sm:$0xff] %v7585_v36  ;;  %v5635_v45 = vpop.eup %5634  ;;  %v941_v44 = vsel %vm939_vm15, %v940_v48, %v938_v47  ;;  %v1872_v19 = vsub.f32 3.1415927, %v1808_v30  ;;  %v7599_v33 = vand.u32 2147483647, %v7585_v36  ;;  %vm2169_vm4 = vcmp.ge.f32.partialorder %v2105_v51, 8.0  ;;  %v7608_v48 = vpop.permute.xlu0 %308 }
 0x167   :  { %5638 = vrsqrt.f32 %v7582_v54  ;;  %v1466_v59 = vmul.f32 %v1434_v42, %v7564_v50  ;;  %v7603_v28 = vmul.f32 %v5635_v45, %v1202_v57  ;;  %v2265_v32 = vsub.f32 1.0, %v2137_v13  ;;  %v12539_v47 = vld [vmem:[#allocation37_spill] sm:$0xff] }
 0x168   :  { %v2097_v41 = vfloor.f32 %v2065_v31  ;;  %v2040_v15 = vadd.f32 6.2831855, %v2008_v3  ;;  %vm1936_vm14 = vcmp.lt.f32.partialorder %v7136_v4, 0.0  ;;  %v1235_v52 = vmax.f32 %v7590_v25, %v7599_v33  ;;  %v12551_v4 = vld [vmem:[#allocation73_spill] sm:$0xff] }
 0x169   :  { %v7611_v39 = vmul.f32 %v12539_v47, %v997_v40  ;;  %v7615_v22 = vmul.f32 %v7560_v62, %v7560_v62  ;;  %v1498_v42 = vadd.f32 -0.11643287, %v1466_v59  ;;  %v7619_v57 = vmul.f32 %v7603_v28, %v7603_v28 }
 0x16a   :  { %v7621_v3 = vsel %vm2169_vm4, %v4994_v23, %v2105_v51  ;;  %v7624_v45 = vmul.f32 %v12539_v47, %v941_v44  ;;  %v1904_v1 = vsel %vm1840_vm8, %v1872_v19, %v1808_v30  ;;  %v1267_v63 = vadd.f32 1e-12, %v1235_v52 }
 0x16b   :  { %12540 = vst [vmem:[#allocation42_spill] sm:$0xff] %v7621_v3  ;;  %v7629_v40 = vmul.f32 %v2137_v13, %v7492_v24  ;;  %v1530_v55 = vmul.f32 %v1498_v42, %v7564_v50  ;;  %v745_v59 = vmul.f32 %v7463_v10, %v7463_v10  ;;  %v1394_v53 = vmul.f32 -0.0117212, %v7619_v57 }
 0x16c   :  { %v7638_v51 = vmul.f32 %v2265_v32, %v7492_v24  ;;  %v2129_v23 = vsub.f32 %v2065_v31, %v2097_v41  ;;  %v2072_v44 = vmul.f32 1.2732395, %v2040_v15  ;;  %v754_v60 = vmul.f32 %v7487_v11, %v7487_v11  ;;  %v7649_v31 = vpop.permute.xlu0 %316 }
 0x16d   :  { %12541 = vst [vmem:[#allocation47_spill] sm:$0xff] %v7629_v40  ;;  %v1968_v30 = vsub.f32 0.0, %v1904_v1  ;;  %v1562_v13 = vadd.f32 0.19354346, %v1530_v55  ;;  %v1426_v19 = vadd.f32 0.05265332, %v1394_v53  ;;  %v1211_v52 = vmin.f32 %v7527_v35, %v7515_v18 }
 0x16e   :  { %12542 = vst [vmem:[#allocation31_spill] sm:$0xff] %v7638_v51  ;;  %v5637_v47 = vpop.eup %5636  ;;  %vm2161_vm5 = vcmp.ge.f32.partialorder %v2097_v41, 8.0  ;;  %v4986_v42 = vadd.f32 -8.0, %v2097_v41  ;;  %v7647_v34 = vsel %vm2371_vm6, %v12543_v56, 0.0  ;;  %5640 = vrcp.f32 %v1267_v63 }
 0x16f   :  { %12545 = vst [vmem:[#allocation69_spill] sm:$0xff] %v7647_v34  ;;  %v1594_v24 = vmul.f32 %v1562_v13, %v7564_v50  ;;  %v777_v32 = vadd.f32 %v745_v59, %v713_v29  ;;  %v1458_v55 = vmul.f32 %v1426_v19, %v7619_v57  ;;  %v7653_v53 = vmul.f32 %v5637_v47, %v1211_v52  ;;  %v7667_v59 = vpop.permute.xlu1 %479  ;;  %v12549_v47 = vld [vmem:[#allocation71_spill] sm:$0xff] }
 0x170   :  { %v2257_v15 = vsub.f32 1.0, %v2129_v23  ;;  %v2104_v17 = vfloor.f32 %v2072_v44  ;;  %v7658_v62 = vsel %vm2379_vm7, %v7301_v58, 0.0  ;;  %v786_v56 = vadd.f32 %v754_v60, %v7572_v37  ;;  %v7696_v58 = vpop.permute.xlu0 %477 }
 0x171   :  { %12546 = vst [vmem:[#allocation54_spill] sm:$0xff] %v7658_v62  ;;  %v5639_v34 = vpop.eup %5638  ;;  %v2000_v63 = vsel %vm1936_vm14, %v1968_v30, %v1904_v1  ;;  %v1626_v11 = vadd.f32 -0.33262348, %v1594_v24  ;;  %v1490_v13 = vadd.f32 -0.11643287, %v1458_v55  ;;  %v7665_v29 = vmul.f32 %v7653_v53, %v7653_v53 }
 0x172   :  { %v7670_v19 = vsel %vm2161_vm5, %v4986_v42, %v2097_v41  ;;  %v7673_v52 = vmul.f32 %v2129_v23, %v7496_v8  ;;  %v7678_v37 = vsel %vm2339_vm11, %v12549_v47, 0.0  ;;  %vm12552_vm6 = vcmp.eq.f32.partialorder %v7314_v20, 7.0  ;;  %v12559_v47 = vld [vmem:[#allocation21_spill] sm:$0xff] }
 0x173   :  { %12547 = vst [vmem:[#allocation55_spill] sm:$0xff] %v7670_v19  ;;  %12550 = vst [vmem:[#allocation78_spill] sm:$0xff] %v7678_v37  ;;  %v7683_v1 = vsel %vm12552_vm6, %v12551_v4, 0.0  ;;  %v1658_v60 = vmul.f32 %v1626_v11, %v7564_v50  ;;  %v7686_v30 = vadd.f32 1e-10, %v777_v32  ;;  %v1522_v41 = vmul.f32 %v1490_v13, %v7619_v57  ;;  %v12557_v13 = vld [vmem:[#allocation19_spill] sm:$0xff] }
 0x174   :  { %12548 = vst [vmem:[#allocation37_spill] sm:$0xff] %v7673_v52  ;;  %12553 = vst [vmem:[#allocation79_spill] sm:$0xff] %v7683_v1  ;;  %v1403_v42 = vmul.f32 -0.0117212, %v7665_v29  ;;  %v7691_v23 = vmul.f32 %v2257_v15, %v7496_v8  ;;  %v2032_v24 = vadd.f32 6.2831855, %v2000_v63  ;;  %v1006_v55 = vmul.f32 %v5639_v34, %v7582_v54  ;;  %v7709_v1 = vpop.permute.xlu1 %487 }
 0x175   :  { %v7694_v37 = vadd.f32 1e-10, %v786_v56  ;;  %v4993_v62 = vadd.f32 -8.0, %v2104_v17  ;;  %vm1007_vm11 = vcmp.eq.f32.partialorder %v7582_v54, inf  ;;  %v1554_v11 = vadd.f32 0.19354346, %v1522_v41 }
 0x176   :  { %12554 = vst [vmem:[#allocation80_spill] sm:$0xff] %v7691_v23  ;;  %v1435_v50 = vadd.f32 0.05265332, %v1403_v42  ;;  %v7699_v32 = vsub.f32 %v2072_v44, %v2104_v17  ;;  %vm2168_vm7 = vcmp.ge.f32.partialorder %v2104_v17, 8.0  ;;  %v12555_v8 = vld [vmem:[#allocation15_spill] sm:$0xff]  ;;  %5642 = vrsqrt.f32 %v7686_v30 }
 0x177   :  { %v253_v15 = vsel %vm243_vm1, %v12555_v8, %v7505_v12  ;;  %v1690_v34 = vadd.f32 0.99997723, %v1658_v60  ;;  %v1586_v56 = vmul.f32 %v1554_v11, %v7619_v57  ;;  %v7711_v44 = vmul.f32 1.2732395, %v2032_v24 }
 0x178   :  { %v1467_v63 = vmul.f32 %v1435_v50, %v7665_v29  ;;  %v5641_v41 = vpop.eup %5640  ;;  %v1008_v42 = vsel %vm1007_vm11, %v7582_v54, %v1006_v55  ;;  %v1203_v4 = vmin.f32 %v7590_v25, %v7599_v33  ;;  %v7717_v8 = vsel %vm2168_vm7, %v4993_v62, %v2104_v17  ;;  %v7731_v17 = vpop.permute.xlu0 %485 }
 0x179   :  { %12556 = vst [vmem:[#allocation15_spill] sm:$0xff] %v7717_v8  ;;  %v1618_v60 = vadd.f32 -0.33262348, %v1586_v56  ;;  %5644 = vrsqrt.f32 %v7694_v37  ;;  %vm1754_vm13 = vcmp.gt.f32.partialorder %v7408_v49, %v7405_v14  ;;  %v746_v24 = vmul.f32 %v7585_v36, %v7585_v36  ;;  %12558 = vst [vmem:[#allocation19_spill] sm:$0xff] %v7731_v17  ;;  %v12564_v14 = vld [vmem:[#allocation20_spill] sm:$0xff] }
 0x17a   :  { %v1499_v11 = vadd.f32 -0.11643287, %v1467_v63  ;;  %v7725_v55 = vmul.f32 %v5641_v41, %v1203_v4  ;;  %v354_v62 = vsel %vm340_vm0, %v12557_v13, %v7594_v9  ;;  %vm1009_vm9 = vcmp.eq.f32.partialorder %v7582_v54, 0.0 }
 0x17b   :  { %v1722_v56 = vmul.f32 %v1690_v34, %v7547_v43  ;;  %v1650_v63 = vmul.f32 %v1618_v60, %v7619_v57  ;;  %vm12176_vm15 = vcmp.eq.f32.partialorder %v7670_v19, 7.0  ;;  %vm12175_vm8 = vcmp.eq.f32.partialorder %v7621_v3, 7.0  ;;  %v7751_v34 = vpop.permute.xlu1 %568 }
 0x17c   :  { %v1531_v50 = vmul.f32 %v1499_v11, %v7665_v29  ;;  %v7740_v4 = vmul.f32 %v7725_v55, %v7725_v55  ;;  %vm2385_vm4 = vcmp.eq.f32.partialorder %v7670_v19, 0.0  ;;  %vm2393_vm14 = vcmp.eq.f32.partialorder %v7621_v3, 0.0  ;;  %v7772_v19 = vpop.permute.xlu0 %566 }
 0x17d   :  { %v1682_v13 = vadd.f32 0.99997723, %v1650_v63  ;;  %v2417_v43 = vsel %vm2385_vm4, %v7691_v23, 0.0  ;;  %v2425_v57 = vsel %vm2393_vm14, %v7638_v51, 0.0  ;;  %v385_v11 = vsub.f32 %v253_v15, %v354_v62 }
 0x17e   :  { %v1563_v41 = vadd.f32 0.19354346, %v1531_v50  ;;  %v1395_v60 = vmul.f32 -0.0117212, %v7740_v4  ;;  %v511_v20 = vsel %vm12219_vm2, %v12559_v47, %v7667_v59  ;;  %v2449_v50 = vsel %vm12176_vm15, %v7673_v52, 0.0  ;;  %v12560_v47 = vld [vmem:[#allocation29_spill] sm:$0xff] }
 0x17f   :  { %v1786_v63 = vsub.f32 1.5707964, %v1722_v56  ;;  %vm1746_vm5 = vcmp.gt.f32.partialorder %v7478_v61, %v7485_v7  ;;  %v2457_v51 = vsel %vm12175_vm8, %v7629_v40, 0.0  ;;  %v2481_v15 = vadd.f32 %v2449_v50, %v2417_v43 }
 0x180   :  { %v1595_v2 = vmul.f32 %v1563_v41, %v7665_v29  ;;  %v1714_v62 = vmul.f32 %v1682_v13, %v7603_v28  ;;  %v1427_v23 = vadd.f32 0.05265332, %v1395_v60  ;;  %v2489_v8 = vadd.f32 %v2457_v51, %v2425_v57  ;;  %v5643_v36 = vpop.eup %5642 }
 0x181   :  { %v612_v52 = vsel %vm12218_vm3, %v12560_v47, %v7751_v34  ;;  %v7776_v41 = vmul.f32 %v7699_v32, %v7611_v39  ;;  %v2096_v3 = vfloor.f32 %v7711_v44  ;;  %vm1850_vm6 = vcmp.lt.f32.partialorder %v7386_v27, 0.0 }
 0x182   :  { %v1627_v43 = vadd.f32 -0.33262348, %v1595_v2  ;;  %v643_v28 = vsub.f32 %v511_v20, %v612_v52  ;;  %v778_v51 = vadd.f32 %v746_v24, %v7615_v22  ;;  %v1459_v13 = vmul.f32 %v1427_v23, %v7740_v4  ;;  %v12562_v2 = vld [vmem:[#allocation33_spill] sm:$0xff] }
 0x183   :  { %12561 = vst [vmem:[#allocation21_spill] sm:$0xff] %v7776_v41  ;;  %v7782_v57 = vmul.f32 0.5, %v385_v11  ;;  %v2505_v60 = vpack.c.bf16 %v2489_v8, %v2481_v15  ;;  %v7784_v50 = vpop.eup %5644  ;;  %v1818_v47 = vsel %vm1754_vm13, %v1786_v63, %v1722_v56  ;;  %v611_v22 = vsel %vm12218_vm3, %v12562_v2, %v7772_v19  ;;  %v12565_v56 = vld [vmem:[#allocation22_spill] sm:$0xff]  ;;  %v12566_v15 = vld [vmem:[#allocation16_spill] sm:$0xff] }
 0x184   :  { %v1659_v40 = vmul.f32 %v1627_v43, %v7665_v29  ;;  %v7790_v41 = vmul.f32 0.5, %v643_v28  ;;  %v12563_v20 = vand.u32 2147483648, %v7582_v54  ;;  %vm951_vm11 = vcmp.eq.f32.partialorder %v7686_v30, inf }
 0x185   :  { %v1778_v23 = vsub.f32 1.5707964, %v1714_v62  ;;  %v1491_v8 = vadd.f32 -0.11643287, %v1459_v13  ;;  %v353_v49 = vsel %vm340_vm0, %v12564_v14, %v7608_v48  ;;  %3912 = vmatprep.mubr.bf16.mxu0 %v2505_v60  ;;  %v2128_v29 = vsub.f32 %v7711_v44, %v2096_v3 }
 0x186   :  { %v1011_v52 = vsel %vm1009_vm9, %v12563_v20, %v1008_v42  ;;  %v1691_v24 = vadd.f32 0.99997723, %v1659_v40  ;;  %v510_v11 = vsel %vm12219_vm2, %v12565_v56, %v7696_v58  ;;  %v7811_v54 = vand.u32 2147483647, %v7790_v41  ;;  %v12567_v40 = vld [vmem:[#allocation39_spill] sm:$0xff] }
 0x187   :  { %vm1842_vm7 = vcmp.lt.f32.partialorder %v7456_v6, 0.0  ;;  %v1882_v42 = vsub.f32 3.1415927, %v1818_v47  ;;  %v1523_v63 = vmul.f32 %v1491_v8, %v7740_v4  ;;  %v252_v43 = vsel %vm243_vm1, %v12566_v15, %v7531_v16 }
 0x188   :  { %v635_v44 = vsub.f32 %v510_v11, %v611_v22  ;;  %v7820_v28 = vmul.f32 %v12567_v40, %v1011_v52  ;;  %vm953_vm13 = vcmp.eq.f32.partialorder %v7686_v30, 0.0  ;;  %v7823_v13 = vadd.f32 1e-10, %v778_v51 }
 0x189   :  { %v7826_v60 = vand.u32 2147483647, %v7782_v57  ;;  %v377_v2 = vsub.f32 %v252_v43, %v353_v49  ;;  %v4985_v20 = vadd.f32 -8.0, %v2096_v3  ;;  %vm1946_vm9 = vcmp.lt.f32.partialorder %v7395_v26, 0.0 }
 0x18a   :  { %v1810_v8 = vsel %vm1746_vm5, %v1778_v23, %v1714_v62  ;;  %v1723_v22 = vmul.f32 %v1691_v24, %v7653_v53  ;;  %v1555_v14 = vadd.f32 0.19354346, %v1523_v63  ;;  %v12568_v52 = vsub.f32 1.0, %v7699_v32 }
 0x18b   :  { %vm2160_vm8 = vcmp.ge.f32.partialorder %v2096_v3, 8.0  ;;  %v950_v51 = vmul.f32 %v5643_v36, %v7686_v30  ;;  %v1228_v49 = vmax.f32 %v7826_v60, %v7811_v54  ;;  %v2256_v11 = vsub.f32 1.0, %v2128_v29 }
 0x18c   :  { %v7836_v56 = vmul.f32 %v12568_v52, %v7611_v39  ;;  %v1914_v15 = vsel %vm1850_vm6, %v1882_v42, %v1818_v47  ;;  %v1017_v61 = vand.u32 2147483648, %v7694_v37  ;;  %v7844_v7 = vmul.f32 0.5, %v635_v44  ;;  %v7903_v52 = vpop.permute.xlu1 %576 }
 0x18d   :  { %v1874_v53 = vsub.f32 3.1415927, %v1810_v8  ;;  %5646 = vrsqrt.f32 %v7823_v13  ;;  %v1587_v39 = vmul.f32 %v1555_v14, %v7740_v4  ;;  %v7848_v32 = vmul.f32 0.5, %v377_v2 }
 0x18e   :  { %12569 = vst [vmem:[#allocation29_spill] sm:$0xff] %v7836_v56  ;;  %v7850_v62 = vsel %vm2160_vm8, %v4985_v20, %v2096_v3  ;;  %vm1014_vm5 = vcmp.eq.f32.partialorder %v7694_v37, inf  ;;  %vm1755_vm15 = vcmp.gt.f32.partialorder %v7515_v18, %v7527_v35  ;;  %v1787_v36 = vsub.f32 1.5707964, %v1723_v22 }
 0x18f   :  { %12570 = vst [vmem:[#allocation33_spill] sm:$0xff] %v7850_v62  ;;  %v249_v27 = vsel %vm243_vm1, %v7505_v12, %v7555_v21  ;;  %v1978_v47 = vsub.f32 0.0, %v1914_v15  ;;  %v952_v23 = vsel %vm951_vm11, %v7686_v30, %v950_v51  ;;  %vm1938_vm6 = vcmp.lt.f32.partialorder %v7463_v10, 0.0 }
 0x190   :  { %v1619_v3 = vadd.f32 -0.33262348, %v1587_v39  ;;  %v1260_v24 = vadd.f32 1e-12, %v1228_v49  ;;  %v7864_v42 = vmul.f32 %v2256_v11, %v7624_v45  ;;  %v7867_v63 = vmul.f32 %v2128_v29, %v7624_v45  ;;  %v7925_v39 = vpop.permute.xlu0 %574 }
 0x191   :  { %vm1851_vm8 = vcmp.lt.f32.partialorder %v7498_v38, 0.0  ;;  %v350_v12 = vsel %vm340_vm0, %v7594_v9, %v7635_v0  ;;  %v7875_v43 = vand.u32 2147483647, %v7844_v7  ;;  %v1906_v44 = vsel %vm1842_vm7, %v1874_v53, %v1810_v8  ;;  %12574 = vst [vmem:[#allocation16_spill] sm:$0xff] %v7925_v39 }
 0x192   :  { %12571 = vst [vmem:[#allocation20_spill] sm:$0xff] %v7864_v42  ;;  %12572 = vst [vmem:[#allocation22_spill] sm:$0xff] %v7867_v63  ;;  %v1651_v2 = vmul.f32 %v1619_v3, %v7740_v4  ;;  %v7881_v20 = vand.u32 2147483647, %v7848_v32  ;;  %5648 = vrcp.f32 %v1260_v24  ;;  %v12573_v45 = vand.u32 2147483648, %v7686_v30 }
 0x193   :  { %v1013_v9 = vmul.f32 %v7784_v50, %v7694_v37  ;;  %v1819_v14 = vsel %vm1755_vm15, %v1787_v36, %v1723_v22  ;;  %v248_v6 = vsel %vm243_vm1, %v7531_v16, %v7574_v5  ;;  %v2010_v4 = vsel %vm1946_vm9, %v1978_v47, %v1914_v15 }
 0x194   :  { %v955_v29 = vsel %vm953_vm13, %v12573_v45, %v952_v23  ;;  %vm1016_vm11 = vcmp.eq.f32.partialorder %v7694_v37, 0.0  ;;  %v1683_v8 = vadd.f32 0.99997723, %v1651_v2  ;;  %v739_v30 = vmul.f32 %v7790_v41, %v7790_v41 }
 0x195   :  { %v1220_v50 = vmax.f32 %v7881_v20, %v7875_v43  ;;  %v1970_v18 = vsub.f32 0.0, %v1906_v44  ;;  %vm1747_vm15 = vcmp.gt.f32.partialorder %v7599_v33, %v7590_v25  ;;  %v386_v35 = vsub.f32 %v249_v27, %v350_v12  ;;  %v12575_v27 = vld [vmem:[#allocation35_spill] sm:$0xff] }
 0x196   :  { %v349_v26 = vsel %vm340_vm0, %v7608_v48, %v7649_v31  ;;  %v1883_v16 = vsub.f32 3.1415927, %v1819_v14  ;;  %v1715_v22 = vmul.f32 %v1683_v8, %v7725_v55  ;;  %v707_v51 = vmul.f32 %v7782_v57, %v7782_v57 }
 0x197   :  { %v1252_v49 = vadd.f32 1e-12, %v1220_v50  ;;  %v2042_v11 = vadd.f32 6.2831855, %v2010_v4  ;;  %v7915_v15 = vmul.f32 %v12567_v40, %v955_v29  ;;  %v507_v53 = vsel %vm12219_vm2, %v7667_v59, %v7709_v1  ;;  %v5647_v55 = vpop.eup %5646  ;;  %v12576_v29 = vld [vmem:[#allocation18_spill] sm:$0xff] }
 0x198   :  { %v608_v48 = vsel %vm12218_vm3, %v7751_v34, %v7903_v52  ;;  %v1015_v36 = vsel %vm1014_vm5, %v7694_v37, %v1013_v9  ;;  %vm1947_vm7 = vcmp.lt.f32.partialorder %v12575_v27, 0.0  ;;  %vm958_vm13 = vcmp.eq.f32.partialorder %v7823_v13, inf }
 0x199   :  { %v378_v40 = vsub.f32 %v248_v6, %v349_v26  ;;  %v771_v47 = vadd.f32 %v739_v30, %v707_v51  ;;  %v2002_v59 = vsel %vm1938_vm6, %v1970_v18, %v1906_v44  ;;  %v7934_v23 = vmul.f32 0.5, %v386_v35 }
 0x19a   :  { %v506_v34 = vsel %vm12219_vm2, %v7696_v58, %v7731_v17  ;;  %5650 = vrcp.f32 %v1252_v49  ;;  %v1915_v3 = vsel %vm1851_vm8, %v1883_v16, %v1819_v14  ;;  %v1779_v24 = vsub.f32 1.5707964, %v1715_v22 }
 0x19b   :  { %v644_v12 = vsub.f32 %v507_v53, %v608_v48  ;;  %v607_v2 = vsel %vm12218_vm3, %v7772_v19, %v7925_v39  ;;  %v2074_v10 = vmul.f32 1.2732395, %v2042_v11  ;;  %v957_v44 = vmul.f32 %v5647_v55, %v7823_v13  ;;  %v12578_v55 = vld [vmem:[#allocation40_spill] sm:$0xff] }
 0x19c   :  { %vm960_vm9 = vcmp.eq.f32.partialorder %v7823_v13, 0.0  ;;  %v1196_v45 = vmin.f32 %v7826_v60, %v7811_v54  ;;  %v5649_v58 = vpop.eup %5648  ;;  %vm1843_vm5 = vcmp.lt.f32.partialorder %v12576_v29, 0.0  ;;  %v2034_v38 = vadd.f32 6.2831855, %v2002_v59 }
 0x19d   :  { %v7951_v9 = vadd.f32 1e-10, %v771_v47  ;;  %v731_v14 = vmul.f32 %v7844_v7, %v7844_v7  ;;  %v7955_v6 = vmul.f32 0.5, %v644_v12  ;;  %v1018_v19 = vsel %vm1016_vm11, %v1017_v61, %v1015_v36  ;;  %v12580_v12 = vld [vmem:[#allocation27_spill] sm:$0xff] }
 0x19e   :  { %v1979_v4 = vsub.f32 0.0, %v1915_v3  ;;  %v7962_v8 = vand.u32 2147483647, %v7934_v23  ;;  %v636_v30 = vsub.f32 %v506_v34, %v607_v2  ;;  %v1811_v50 = vsel %vm1747_vm15, %v1779_v24, %v1715_v22  ;;  %v12579_v24 = vld [vmem:[#allocation41_spill] sm:$0xff] }
 0x19f   :  { %v699_v18 = vmul.f32 %v7848_v32, %v7848_v32  ;;  %v7969_v35 = vmul.f32 0.5, %v378_v40  ;;  %v7971_v26 = vmul.f32 %v5649_v58, %v1196_v45  ;;  %v2106_v16 = vfloor.f32 %v2074_v10 }
 0x1a0   :  { %v959_v37 = vsel %vm958_vm13, %v7823_v13, %v957_v44  ;;  %v961_v61 = vand.u32 2147483648, %v7823_v13  ;;  %v7978_v51 = vand.u32 2147483647, %v7955_v6  ;;  %v2066_v49 = vmul.f32 1.2732395, %v2034_v38 }
 0x1a1   :  { %12577 = vst [vmem:[#allocation39_spill] sm:$0xff] %v7969_v35  ;;  %5652 = vrsqrt.f32 %v7951_v9  ;;  %v7983_v25 = vmul.f32 %v7971_v26, %v7971_v26  ;;  %v763_v33 = vadd.f32 %v731_v14, %v699_v18  ;;  %v2011_v22 = vsel %vm1947_vm7, %v1979_v4, %v1915_v3  ;;  %v5553_v18 = vld [vmem:[%s12022_s2 + $0x100] sm:$0xff]  }
 0x1a2   :  { %v1875_v11 = vsub.f32 3.1415927, %v1811_v50  ;;  %v1229_v53 = vmax.f32 %v7962_v8, %v7978_v51  ;;  %v7989_v48 = vmul.f32 0.5, %v636_v30  ;;  %v7992_v36 = vmul.f32 %v12578_v55, %v1018_v19  ;;  %v5552_v30 = vld [vmem:[%s12022_s2 + $0x140] sm:$0xff]  }
 0x1a3   :  { %v7995_v40 = vand.u32 2147483647, %v7969_v35  ;;  %v1388_v47 = vmul.f32 -0.0117212, %v7983_v25  ;;  %v1188_v59 = vmin.f32 %v7881_v20, %v7875_v43  ;;  %v2138_v27 = vsub.f32 %v2074_v10, %v2106_v16  ;;  %5289 = vmatprep.subr.bf16.mxu0 %v5552_v30 }
 0x1a4   :  { %v5651_v34 = vpop.eup %5650  ;;  %v962_v3 = vsel %vm960_vm9, %v961_v61, %v959_v37  ;;  %vm1939_vm6 = vcmp.lt.f32.partialorder %v12579_v24, 0.0  ;;  %v1066_v2 = vsub.s32 4, %v12580_v12  ;;  %v1261_v44 = vadd.f32 1e-12, %v1229_v53  ;;  %v5554_v37 = vld [vmem:[%s12022_s2 + $0x1c0] sm:$0xff]   ;;  %5290 = vmatpush3.bf16.msra.mxu0 %v5553_v18 }
 0x1a5   :  { %v2043_v45 = vadd.f32 6.2831855, %v2011_v22  ;;  %v1420_v58 = vadd.f32 0.05265332, %v1388_v47  ;;  %v8004_v38 = vadd.f32 1e-10, %v763_v33  ;;  %v8006_v14 = vmul.f32 %v5651_v34, %v1188_v59  ;;  %5401 = vmatprep.subr.bf16.mxu1 %v5554_v37 }
 0x1a6   :  { %v2098_v19 = vfloor.f32 %v2066_v49  ;;  %v1907_v4 = vsel %vm1843_vm5, %v1875_v11, %v1811_v50  ;;  %v708_v10 = vmul.f32 %v7934_v23, %v7934_v23  ;;  %v8013_v13 = vand.u32 2147483647, %v7989_v48  ;;  %v5555_v33 = vld [vmem:[%s12022_s2 + $0x180] sm:$0xff]  }
 0x1a7   :  { %v4995_v29 = vadd.f32 -8.0, %v2106_v16  ;;  %v1452_v50 = vmul.f32 %v1420_v58, %v7983_v25  ;;  %v8027_v61 = vmul.f32 %v8006_v14, %v8006_v14  ;;  %5654 = vrcp.f32 %v1261_v44  ;;  %v8042_v59 = vld [vmem:[%s12021_s1] sm:$0xff]  ;;  %5402 = vmatpush3.bf16.msra.mxu1 %v5555_v33  ;;  %s5800_s1 = smov [#allocation2]  }
 0x1a8   :  { %vm2170_vm8 = vcmp.ge.f32.partialorder %v2106_v16, 8.0  ;;  %v2266_v22 = vsub.f32 1.0, %v2138_v27  ;;  %v8033_v11 = vmul.f32 %v12578_v55, %v962_v3  ;;  %v8037_v53 = vmul.f32 %v7969_v35, %v7969_v35  ;;  %s4958_s14 = sshll.u32 %s5800_s1, 4  ;;  %s4959_s14 = int_to_ptr.vmem [resolvable:$true] %s4958_s14 }
 0x1a9   :  { %v1971_v47 = vsub.f32 0.0, %v1907_v4  ;;  %v8045_v34 = vrot.slane %v8042_v59, %v1066_v2  ;;  %v1484_v44 = vadd.f32 -0.11643287, %v1452_v50  ;;  %v1380_v58 = vmul.f32 -0.0117212, %v8027_v61  ;;  %s5771_s15 = scalar_lea.vmem %s4959_s14, 2048  ;;  %p5776_p1 = scmp.lt.s32.totalorder %s4959_s14, %s4959_s14 }
 0x1aa   :  { %v2130_v55 = vsub.f32 %v2066_v49, %v2098_v19  ;;  %v2075_v3 = vmul.f32 1.2732395, %v2043_v45  ;;  %5656 = vrsqrt.f32 %v8004_v38  ;;  %v1221_v30 = vmax.f32 %v7995_v40, %v8013_v13  ;;  %p5772_p0 = scmp.ne.s32.totalorder %s4959_s14, %s5771_s15  ;;  %p5777_p2 = scmp.lt.s32.totalorder %s5771_s15, %s5771_s15 }
 0x1ab   :  { %12581 = vst [vmem:[#allocation35_spill] sm:$0xff] %v8045_v34  ;;  %v5653_v37 = vpop.eup %5652  ;;  %v8052_v39 = vsel %vm2170_vm8, %v4995_v29, %v2106_v16  ;;  %v8055_v17 = vmul.f32 %v2138_v27, %v7820_v28  ;;  %v1516_v2 = vmul.f32 %v1484_v44, %v7983_v25  ;;  %v1412_v50 = vadd.f32 0.05265332, %v1380_v58 }
 0x1ac   :  { %12582 = vst [vmem:[#allocation18_spill] sm:$0xff] %v8052_v39  ;;  %v8059_v18 = vmul.f32 %v2266_v22, %v7820_v28  ;;  %v4987_v49 = vadd.f32 -8.0, %v2098_v19  ;;  %vm909_vm11 = vcmp.eq.f32.partialorder %v7951_v9, inf  ;;  %v1253_v45 = vadd.f32 1e-12, %v1221_v30  ;;  %p5778_p3 = por %p5777_p2, %p5776_p1 }
 0x1ad   :  { %12583 = vst [vmem:[#allocation40_spill] sm:$0xff] %v8055_v17  ;;  %vm2162_vm15 = vcmp.ge.f32.partialorder %v2098_v19, 8.0  ;;  %v2003_v33 = vsel %vm1939_vm6, %v1971_v47, %v1907_v4  ;;  %v1548_v35 = vadd.f32 0.19354346, %v1516_v2  ;;  %v1444_v16 = vmul.f32 %v1412_v50, %v8027_v61 }
 0x1ae   :  { %12584 = vst [vmem:[#allocation41_spill] sm:$0xff] %v8059_v18  ;;  %v2258_v29 = vsub.f32 1.0, %v2130_v55  ;;  %v2107_v27 = vfloor.f32 %v2075_v3  ;;  %v740_v44 = vmul.f32 %v7955_v6, %v7955_v6  ;;  %5658 = vrcp.f32 %v1253_v45  ;;  %p5779_p4 = pnand %p5778_p3, %p5772_p0 }
 0x1af   :  { %v908_v28 = vmul.f32 %v5653_v37, %v7951_v9  ;;  %vm911_vm7 = vcmp.eq.f32.partialorder %v7951_v9, 0.0  ;;  %v1580_v22 = vmul.f32 %v1548_v35, %v7983_v25  ;;  %v1476_v58 = vadd.f32 -0.11643287, %v1444_v16 }
 0x1b0   :  { %v8070_v30 = vsel %vm2162_vm15, %v4987_v49, %v2098_v19  ;;  %v2035_v24 = vadd.f32 6.2831855, %v2003_v33  ;;  %v912_v4 = vand.u32 2147483648, %v7951_v9  ;;  %v1197_v47 = vmin.f32 %v7962_v8, %v7978_v51 }
 0x1b1   :  { %12585 = vst [vmem:[#allocation27_spill] sm:$0xff] %v8070_v30  ;;  %v5655_v2 = vpop.eup %5654  ;;  %v8076_v50 = vmul.f32 %v2130_v55, %v7915_v15  ;;  %v1612_v45 = vadd.f32 -0.33262348, %v1580_v22  ;;  %v1508_v37 = vmul.f32 %v1476_v58, %v8027_v61  ;;  %v1070_v17 = vsub.s32 5, %v12580_v12 }
 0x1b2   :  { %v8081_v35 = vmul.f32 %v2258_v29, %v7915_v15  ;;  %v2139_v19 = vsub.f32 %v2075_v3, %v2107_v27  ;;  %v772_v49 = vadd.f32 %v740_v44, %v708_v10  ;;  %v8083_v33 = vmul.f32 %v5655_v2, %v1197_v47 }
 0x1b3   :  { %12586 = vst [vmem:[#allocation81_spill] sm:$0xff] %v8076_v50  ;;  %v910_v16 = vsel %vm909_vm11, %v7951_v9, %v908_v28  ;;  %v1644_v18 = vmul.f32 %v1612_v45, %v7983_v25  ;;  %vm853_vm13 = vcmp.eq.f32.partialorder %v8004_v38, inf  ;;  %v1540_v55 = vadd.f32 0.19354346, %v1508_v37 }
 0x1b4   :  { %12587 = vst [vmem:[#allocation82_spill] sm:$0xff] %v8081_v35  ;;  %v5657_v22 = vpop.eup %5656  ;;  %v4996_v58 = vadd.f32 -8.0, %v2107_v27  ;;  %v2067_v50 = vmul.f32 1.2732395, %v2035_v24  ;;  %vm1740_vm9 = vcmp.gt.f32.partialorder %v7811_v54, %v7826_v60  ;;  %v8095_v10 = vmul.f32 %v8083_v33, %v8083_v33 }
 0x1b5   :  { %vm2171_vm5 = vcmp.ge.f32.partialorder %v2107_v27, 8.0  ;;  %v1676_v3 = vadd.f32 0.99997723, %v1644_v18  ;;  %v1572_v29 = vmul.f32 %v1540_v55, %v8027_v61  ;;  %v8099_v25 = vrot.slane %v8042_v59, %v1070_v17  ;;  %v8110_v55 = vpop.permute.xlu1 %235 }
 0x1b6   :  { %v2267_v44 = vsub.f32 1.0, %v2139_v19  ;;  %v913_v28 = vsel %vm911_vm7, %v912_v4, %v910_v16  ;;  %v8103_v24 = vadd.f32 1e-10, %v772_v49  ;;  %v1389_v47 = vmul.f32 -0.0117212, %v8095_v10 }
 0x1b7   :  { %12588 = vst [vmem:[#allocation83_spill] sm:$0xff] %v8099_v25  ;;  %v1708_v2 = vmul.f32 %v1676_v3, %v7971_v26  ;;  %v852_v45 = vmul.f32 %v5657_v22, %v8004_v38  ;;  %v1604_v37 = vadd.f32 -0.33262348, %v1572_v29  ;;  %v1189_v18 = vmin.f32 %v7995_v40, %v8013_v13 }
 0x1b8   :  { %v5659_v17 = vpop.eup %5658  ;;  %v8112_v15 = vsel %vm2171_vm5, %v4996_v58, %v2107_v27  ;;  %v8114_v35 = vfloor.f32 %v2067_v50  ;;  %vm1732_vm6 = vcmp.gt.f32.partialorder %v7875_v43, %v7881_v20  ;;  %v1421_v9 = vadd.f32 0.05265332, %v1389_v47 }
 0x1b9   :  { %12589 = vst [vmem:[#allocation84_spill] sm:$0xff] %v8112_v15  ;;  %v8122_v26 = vsel %vm243_vm1, %v7555_v21, %v8110_v55  ;;  %v8125_v4 = vmul.f32 %v2139_v19, %v7992_v36  ;;  %v1772_v49 = vsub.f32 1.5707964, %v1708_v2  ;;  %v1636_v16 = vmul.f32 %v1604_v37, %v8027_v61  ;;  %v12595_v15 = vld [vmem:[#allocation43_spill] sm:$0xff] }
 0x1ba   :  { %v8128_v27 = vmul.f32 %v5659_v17, %v1189_v18  ;;  %v8131_v22 = vmul.f32 %v2267_v44, %v7992_v36  ;;  %v8134_v58 = vmul.f32 %v8045_v34, %v913_v28  ;;  %vm855_vm8 = vcmp.eq.f32.partialorder %v8004_v38, 0.0  ;;  %v327_v18 = vpop.permute.xlu1 %326  ;;  %v12592_v17 = vld [vmem:[#allocation15_spill] sm:$0xff] }
 0x1bb   :  { %12590 = vst [vmem:[#allocation85_spill] sm:$0xff] %v8125_v4  ;;  %v1453_v3 = vmul.f32 %v1421_v9, %v8095_v10  ;;  %v732_v21 = vmul.f32 %v7989_v48, %v7989_v48  ;;  %v854_v19 = vsel %vm853_vm13, %v8004_v38, %v852_v45  ;;  %v1668_v61 = vadd.f32 0.99997723, %v1636_v16 }
 0x1bc   :  { %12591 = vst [vmem:[#allocation86_spill] sm:$0xff] %v8131_v22  ;;  %5660 = vrsqrt.f32 %v8103_v24  ;;  %v8146_v36 = vmul.f32 %v8128_v27, %v8128_v27  ;;  %v2131_v29 = vsub.f32 %v2067_v50, %v8114_v35  ;;  %vm1836_vm11 = vcmp.lt.f32.partialorder %v7782_v57, 0.0  ;;  %v12599_v57 = vld [vmem:[#allocation58_spill] sm:$0xff] }
 0x1bd   :  { %v1485_v28 = vadd.f32 -0.11643287, %v1453_v3  ;;  %vm12193_vm15 = vcmp.eq.f32.partialorder %v7850_v62, 7.0  ;;  %v1804_v47 = vsel %vm1740_vm9, %v1772_v49, %v1708_v2  ;;  %v1700_v45 = vmul.f32 %v1668_v61, %v8006_v14 }
 0x1be   :  { %v1381_v37 = vmul.f32 -0.0117212, %v8146_v36  ;;  %vm2384_vm7 = vcmp.eq.f32.partialorder %v7850_v62, 0.0  ;;  %vm1828_vm13 = vcmp.lt.f32.partialorder %v7848_v32, 0.0  ;;  %vm12192_vm5 = vcmp.eq.f32.partialorder %v12592_v17, 7.0 }
 0x1bf   :  { %v1517_v50 = vmul.f32 %v1485_v28, %v8095_v10  ;;  %vm2392_vm12 = vcmp.eq.f32.partialorder %v12592_v17, 0.0  ;;  %v2416_v54 = vsel %vm2384_vm7, %v7864_v42, 0.0  ;;  %v1764_v60 = vsub.f32 1.5707964, %v1700_v45 }
 0x1c0   :  { %v764_v14 = vadd.f32 %v732_v21, %v8037_v53  ;;  %v1413_v2 = vadd.f32 0.05265332, %v1381_v37  ;;  %v2424_v9 = vsel %vm2392_vm12, %v7836_v56, 0.0  ;;  %vm2163_vm9 = vcmp.ge.f32.partialorder %v8114_v35, 8.0  ;;  %v12593_v53 = vld [vmem:[#allocation21_spill] sm:$0xff] }
 0x1c1   :  { %v1868_v49 = vsub.f32 3.1415927, %v1804_v47  ;;  %v1549_v16 = vadd.f32 0.19354346, %v1517_v50  ;;  %v2448_v3 = vsel %vm12193_vm15, %v7867_v63, 0.0  ;;  %v1796_v61 = vsel %vm1732_vm6, %v1764_v60, %v1700_v45 }
 0x1c2   :  { %v1445_v28 = vmul.f32 %v1413_v2, %v8146_v36  ;;  %v2456_v21 = vsel %vm12192_vm5, %v12593_v53, 0.0  ;;  %v2480_v37 = vadd.f32 %v2448_v3, %v2416_v54  ;;  %v4988_v44 = vadd.f32 -8.0, %v8114_v35  ;;  %v8189_v2 = vpop.permute.xlu0 %233  ;;  %v496_v54 = vpop.permute.xlu1 %495 }
 0x1c3   :  { %v2259_v39 = vsub.f32 1.0, %v2131_v29  ;;  %v1581_v50 = vmul.f32 %v1549_v16, %v8095_v10  ;;  %v2488_v30 = vadd.f32 %v2456_v21, %v2424_v9  ;;  %vm1932_vm10 = vcmp.lt.f32.partialorder %v7790_v41, 0.0  ;;  %v12596_v16 = vld [vmem:[#allocation45_spill] sm:$0xff] }
 0x1c4   :  { %v12594_v4 = vand.u32 2147483648, %v8004_v38  ;;  %v1860_v20 = vsub.f32 3.1415927, %v1796_v61  ;;  %v8187_v45 = vadd.f32 1e-10, %v764_v14  ;;  %vm2513_vm6 = vcmp.eq.f32.partialorder %v12595_v15, 1.0 }
 0x1c5   :  { %v1477_v60 = vadd.f32 -0.11643287, %v1445_v28  ;;  %v1613_v3 = vadd.f32 -0.33262348, %v1581_v50  ;;  %v2504_v22 = vpack.c.bf16 %v2488_v30, %v2480_v37  ;;  %vm12194_vm5 = vcmp.eq.f32.partialorder %v12596_v16, 1.0  ;;  %v12598_v14 = vld [vmem:[#allocation5_spill] sm:$0xff] }
 0x1c6   :  { %v857_v43 = vsel %vm855_vm8, %v12594_v4, %v854_v19  ;;  %v5661_v9 = vpop.eup %5660  ;;  %v1900_v21 = vsel %vm1836_vm11, %v1868_v49, %v1804_v47  ;;  %vm1924_vm15 = vcmp.lt.f32.partialorder %v7844_v7, 0.0  ;;  %v12597_v4 = vld [vmem:[#allocation6_spill] sm:$0xff]  ;;  %v2553_v30 = vsel %vm12194_vm5, %v12598_v14, 0.0  ;;  %v12600_v49 = vld [vmem:[#allocation59_spill] sm:$0xff] }
 0x1c7   :  { %v1509_v38 = vmul.f32 %v1477_v60, %v8146_v36  ;;  %v2545_v19 = vsel %vm2513_vm6, %v12597_v4, 0.0  ;;  %v8204_v28 = vmul.f32 %v8045_v34, %v857_v43  ;;  %v1645_v37 = vmul.f32 %v1613_v3, %v8095_v10  ;;  %3913 = vmatmul.mubr.bf16.gmra.mrb[4].mxu0 %v2504_v22 }
 0x1c8   :  { %vm1741_vm8 = vcmp.gt.f32.partialorder %v7978_v51, %v7962_v8  ;;  %v2609_v47 = vadd.f32 %v12599_v57, %v2545_v19  ;;  %v2617_v50 = vadd.f32 %v12600_v49, %v2553_v30  ;;  %v8214_v60 = vsel %vm2163_vm9, %v4988_v44, %v8114_v35  ;;  %v12604_v44 = vld [vmem:[#allocation9_spill] sm:$0xff] }
 0x1c9   :  { %12601 = vst [vmem:[#allocation58_spill] sm:$0xff] %v8214_v60  ;;  %v1892_v14 = vsel %vm1828_vm13, %v1860_v20, %v1796_v61  ;;  %vm916_vm11 = vcmp.eq.f32.partialorder %v8103_v24, inf  ;;  %v1541_v43 = vadd.f32 0.19354346, %v1509_v38  ;;  %v346_v10 = vsel %vm340_vm0, %v7635_v0, %v327_v18  ;;  %v325_v20 = vpop.permute.xlu0 %324  ;;  %v585_v38 = vpop.permute.xlu1 %584 }
 0x1ca   :  { %v8223_v22 = vmul.f32 %v2259_v39, %v8033_v11  ;;  %v8226_v3 = vmul.f32 %v2131_v29, %v8033_v11  ;;  %v1964_v19 = vsub.f32 0.0, %v1900_v21  ;;  %5662 = vrsqrt.f32 %v8187_v45  ;;  %v12605_v11 = vld [vmem:[#allocation7_spill] sm:$0xff] }
 0x1cb   :  { %vm1837_vm9 = vcmp.lt.f32.partialorder %v7934_v23, 0.0  ;;  %v1677_v32 = vadd.f32 0.99997723, %v1645_v37  ;;  %v1573_v35 = vmul.f32 %v1541_v43, %v8146_v36  ;;  %v342_v61 = vsel %vm340_vm0, %v327_v18, %v12604_v44 }
 0x1cc   :  { %12602 = vst [vmem:[#allocation59_spill] sm:$0xff] %v8223_v22  ;;  %12603 = vst [vmem:[#allocation87_spill] sm:$0xff] %v8226_v3  ;;  %v2641_v0 = vpack.c.bf16 %v2617_v50, %v2609_v47  ;;  %v1956_v39 = vsub.f32 0.0, %v1892_v14  ;;  %vm918_vm13 = vcmp.eq.f32.partialorder %v8103_v24, 0.0  ;;  %v273_v29 = vsel %vm243_vm1, %v8110_v55, %v12605_v11  ;;  %v12606_v50 = vld [vmem:[#allocation13_spill] sm:$0xff] }
 0x1cd   :  { %v387_v30 = vsub.f32 %v8122_v26, %v346_v10  ;;  %v503_v37 = vsel %vm12219_vm2, %v7709_v1, %v496_v54  ;;  %v915_v57 = vmul.f32 %v5661_v9, %v8103_v24  ;;  %v1709_v18 = vmul.f32 %v1677_v32, %v8083_v33  ;;  %v12608_v32 = vld [vmem:[#allocation10_spill] sm:$0xff] }
 0x1ce   :  { %v1605_v47 = vadd.f32 -0.33262348, %v1573_v35  ;;  %v244_v49 = vsel %vm243_vm1, %v7574_v5, %v8189_v2  ;;  %3920 = vmatprep.mubr.bf16.mxu0 %v2641_v0  ;;  %v1996_v55 = vsel %vm1932_vm10, %v1964_v19, %v1900_v21  ;;  %vm1733_vm5 = vcmp.gt.f32.partialorder %v8013_v13, %v7995_v40  ;;  %v12607_v5 = vld [vmem:[#allocation11_spill] sm:$0xff] }
 0x1cf   :  { %v388_v26 = vsub.f32 %v273_v29, %v342_v61  ;;  %v600_v1 = vsel %vm12218_vm3, %v585_v38, %v12606_v50  ;;  %v604_v33 = vsel %vm12218_vm3, %v7903_v52, %v585_v38  ;;  %v1773_v9 = vsub.f32 1.5707964, %v1709_v18  ;;  %v8276_v61 = vpop.permute.xlu0 %493 }
 0x1d0   :  { %v1637_v43 = vmul.f32 %v1605_v47, %v8146_v36  ;;  %v531_v41 = vsel %vm12219_vm2, %v496_v54, %v12607_v5  ;;  %v645_v21 = vsub.f32 %v503_v37, %v604_v33  ;;  %v1988_v10 = vsel %vm1924_vm15, %v1956_v39, %v1892_v14  ;;  %v12609_v14 = vld [vmem:[#allocation39_spill] sm:$0xff]  ;;  %v12610_v37 = vld [vmem:[#allocation8_spill] sm:$0xff] }
 0x1d1   :  { %v8265_v19 = vmul.f32 0.5, %v387_v30  ;;  %v341_v35 = vsel %vm340_vm0, %v325_v20, %v12608_v32  ;;  %v646_v44 = vsub.f32 %v531_v41, %v600_v1  ;;  %v1805_v52 = vsel %vm1741_vm8, %v1773_v9, %v1709_v18 }
 0x1d2   :  { %v1669_v36 = vadd.f32 0.99997723, %v1637_v43  ;;  %v345_v54 = vsel %vm340_vm0, %v7649_v31, %v325_v20  ;;  %v8278_v7 = vmul.f32 0.5, %v645_v21  ;;  %vm1829_vm10 = vcmp.lt.f32.partialorder %v12609_v14, 0.0 }
 0x1d3   :  { %v2028_v0 = vadd.f32 6.2831855, %v1996_v55  ;;  %v917_v38 = vsel %vm916_vm11, %v8103_v24, %v915_v57  ;;  %v1869_v39 = vsub.f32 3.1415927, %v1805_v52  ;;  %vm1933_vm15 = vcmp.lt.f32.partialorder %v7955_v6, 0.0  ;;  %v583_v5 = vpop.permute.xlu0 %582 }
 0x1d4   :  { %vm860_vm8 = vcmp.eq.f32.partialorder %v8187_v45, inf  ;;  %v8286_v8 = vmul.f32 0.5, %v388_v26  ;;  %v2020_v51 = vadd.f32 6.2831855, %v1988_v10  ;;  %v1701_v31 = vmul.f32 %v1669_v36, %v8128_v27  ;;  %v5663_v29 = vpop.eup %5662  ;;  %v12613_v36 = vld [vmem:[#allocation19_spill] sm:$0xff] }
 0x1d5   :  { %v8289_v20 = vmul.f32 0.5, %v646_v44  ;;  %v8292_v11 = vand.u32 2147483647, %v8278_v7  ;;  %v1901_v30 = vsel %vm1837_vm9, %v1869_v39, %v1805_v52  ;;  %v272_v57 = vsel %vm243_vm1, %v8189_v2, %v12610_v37 }
 0x1d6   :  { %v8301_v18 = vand.u32 2147483647, %v8265_v19  ;;  %v379_v47 = vsub.f32 %v244_v49, %v345_v54  ;;  %v12611_v27 = vand.u32 2147483648, %v8103_v24  ;;  %vm862_vm11 = vcmp.eq.f32.partialorder %v8187_v45, 0.0 }
 0x1d7   :  { %v1765_v26 = vsub.f32 1.5707964, %v1701_v31  ;;  %v380_v50 = vsub.f32 %v272_v57, %v341_v35  ;;  %v2060_v23 = vmul.f32 1.2732395, %v2028_v0  ;;  %v8309_v1 = vand.u32 2147483647, %v8286_v8 }
 0x1d8   :  { %v920_v55 = vsel %vm918_vm13, %v12611_v27, %v917_v38  ;;  %v8312_v33 = vand.u32 2147483647, %v8289_v20  ;;  %v1230_v2 = vmax.f32 %v8301_v18, %v8292_v11  ;;  %v2052_v49 = vmul.f32 1.2732395, %v2020_v51  ;;  %v12614_v38 = vld [vmem:[#allocation16_spill] sm:$0xff] }
 0x1d9   :  { %v1965_v9 = vsub.f32 0.0, %v1901_v30  ;;  %v859_v43 = vmul.f32 %v5663_v29, %v8187_v45  ;;  %v1797_v24 = vsel %vm1733_vm5, %v1765_v26, %v1701_v31  ;;  %v863_v41 = vand.u32 2147483648, %v8187_v45 }
 0x1da   :  { %v1861_v21 = vsub.f32 3.1415927, %v1797_v24  ;;  %v8321_v10 = vmul.f32 0.5, %v379_v47  ;;  %v1231_v32 = vmax.f32 %v8309_v1, %v8312_v33  ;;  %v8326_v35 = vmul.f32 %v8099_v25, %v920_v55 }
 0x1db   :  { %vm1925_vm9 = vcmp.lt.f32.partialorder %v7989_v48, 0.0  ;;  %v709_v44 = vmul.f32 %v8265_v19, %v8265_v19  ;;  %v710_v40 = vmul.f32 %v8286_v8, %v8286_v8  ;;  %v8333_v13 = vmul.f32 0.5, %v380_v50 }
 0x1dc   :  { %v2092_v52 = vfloor.f32 %v2060_v23  ;;  %v502_v54 = vsel %vm12219_vm2, %v12613_v36, %v8276_v61  ;;  %v1262_v0 = vadd.f32 1e-12, %v1230_v2  ;;  %v603_v39 = vsel %vm12218_vm3, %v12614_v38, %v583_v5 }
 0x1dd   :  { %12612 = vst [vmem:[#allocation9_spill] sm:$0xff] %v8333_v13  ;;  %v2084_v51 = vfloor.f32 %v2052_v49  ;;  %v1997_v31 = vsel %vm1933_vm15, %v1965_v9, %v1901_v30  ;;  %v861_v29 = vsel %vm860_vm8, %v8187_v45, %v859_v43  ;;  %v1893_v37 = vsel %vm1829_vm10, %v1861_v21, %v1797_v24  ;;  %v12615_v30 = vld [vmem:[#allocation14_spill] sm:$0xff] }
 0x1de   :  { %v8351_v57 = vmul.f32 %v8321_v10, %v8321_v10  ;;  %v741_v47 = vmul.f32 %v8278_v7, %v8278_v7  ;;  %v1263_v27 = vadd.f32 1e-12, %v1231_v32  ;;  %5664 = vrcp.f32 %v1262_v0  ;;  %v12616_v32 = vld [vmem:[#allocation12_spill] sm:$0xff] }
 0x1df   :  { %v8356_v55 = vand.u32 2147483647, %v8321_v10  ;;  %v742_v6 = vmul.f32 %v8289_v20, %v8289_v20  ;;  %v599_v14 = vsel %vm12218_vm3, %v583_v5, %v12615_v30  ;;  %v637_v26 = vsub.f32 %v502_v54, %v603_v39 }
 0x1e0   :  { %v2124_v50 = vsub.f32 %v2060_v23, %v2092_v52  ;;  %v2029_v2 = vadd.f32 6.2831855, %v1997_v31  ;;  %v864_v9 = vsel %vm862_vm11, %v863_v41, %v861_v29  ;;  %v1957_v43 = vsub.f32 0.0, %v1893_v37 }
 0x1e1   :  { %v4981_v24 = vadd.f32 -8.0, %v2092_v52  ;;  %v2116_v21 = vsub.f32 %v2052_v49, %v2084_v51  ;;  %v530_v36 = vsel %vm12219_vm2, %v8276_v61, %v12616_v32  ;;  %5666 = vrcp.f32 %v1263_v27 }
 0x1e2   :  { %vm2156_vm5 = vcmp.ge.f32.partialorder %v2092_v52, 8.0  ;;  %v773_v0 = vadd.f32 %v741_v47, %v709_v44  ;;  %v638_v38 = vsub.f32 %v530_v36, %v599_v14  ;;  %v8369_v34 = vmul.f32 0.5, %v637_v26 }
 0x1e3   :  { %v8373_v23 = vmul.f32 %v8333_v13, %v8333_v13  ;;  %v8376_v45 = vand.u32 2147483647, %v8333_v13  ;;  %v1074_v49 = vsub.s32 6, %v12580_v12  ;;  %v774_v5 = vadd.f32 %v742_v6, %v710_v40  ;;  %v12637_v13 = vld [vmem:[#allocation80_spill] sm:$0xff] }
 0x1e4   :  { %12617 = vst [vmem:[#allocation7_spill] sm:$0xff] %v8369_v34  ;;  %v2252_v41 = vsub.f32 1.0, %v2124_v50  ;;  %v2061_v54 = vmul.f32 1.2732395, %v2029_v2  ;;  %v1989_v61 = vsel %vm1925_vm9, %v1957_v43, %v1893_v37  ;;  %v1078_v44 = vsub.s32 7, %v12580_v12 }
 0x1e5   :  { %v8382_v39 = vsel %vm2156_vm5, %v4981_v24, %v2092_v52  ;;  %v4973_v31 = vadd.f32 -8.0, %v2084_v51  ;;  %v2244_v29 = vsub.f32 1.0, %v2116_v21  ;;  %v8385_v47 = vmul.f32 %v8099_v25, %v864_v9 }
 0x1e6   :  { %12618 = vst [vmem:[#allocation13_spill] sm:$0xff] %v8382_v39  ;;  %vm2148_vm13 = vcmp.ge.f32.partialorder %v2084_v51, 8.0  ;;  %v8387_v27 = vadd.f32 1e-10, %v773_v0  ;;  %v8389_v30 = vmul.f32 0.5, %v638_v38  ;;  %v8395_v48 = vmul.f32 %v2124_v50, %v8134_v58  ;;  %v12631_v39 = vld [vmem:[#allocation51_spill] sm:$0xff] }
 0x1e7   :  { %v8392_v40 = vand.u32 2147483647, %v8369_v34  ;;  %v2021_v37 = vadd.f32 6.2831855, %v1989_v61  ;;  %v8397_v12 = vadd.f32 1e-10, %v774_v5  ;;  %v1198_v52 = vmin.f32 %v8301_v18, %v8292_v11 }
 0x1e8   :  { %12619 = vst [vmem:[#allocation11_spill] sm:$0xff] %v8389_v30  ;;  %12620 = vst [vmem:[#allocation10_spill] sm:$0xff] %v8395_v48  ;;  %v5665_v6 = vpop.eup %5664  ;;  %v8402_v14 = vmul.f32 %v2252_v41, %v8134_v58  ;;  %v2093_v26 = vfloor.f32 %v2061_v54  ;;  %v8405_v2 = vrot.slane %v8042_v59, %v1074_v49  ;;  %v8408_v9 = vrot.slane %v8042_v59, %v1078_v44  ;;  %v12627_v44 = vld [vmem:[#allocation50_spill] sm:$0xff] }
 0x1e9   :  { %v8410_v43 = vsel %vm2148_vm13, %v4973_v31, %v2084_v51  ;;  %v8413_v50 = vmul.f32 %v2244_v29, %v8204_v28  ;;  %v8416_v24 = vmul.f32 %v2116_v21, %v8204_v28  ;;  %v8418_v32 = vmul.f32 %v5665_v6, %v1198_v52  ;;  %v12628_v31 = vld [vmem:[#allocation32_spill] sm:$0xff] }
 0x1ea   :  { %12621 = vst [vmem:[#allocation39_spill] sm:$0xff] %v8402_v14  ;;  %12622 = vst [vmem:[#allocation8_spill] sm:$0xff] %v8405_v2  ;;  %5668 = vrsqrt.f32 %v8387_v27  ;;  %v1199_v58 = vmin.f32 %v8309_v1, %v8312_v33  ;;  %v8424_v36 = vand.u32 2147483647, %v8389_v30  ;;  %v1222_v59 = vmax.f32 %v8356_v55, %v8392_v40  ;;  %v12629_v52 = vld [vmem:[#allocation52_spill] sm:$0xff] }
 0x1eb   :  { %12623 = vst [vmem:[#allocation19_spill] sm:$0xff] %v8408_v9  ;;  %12624 = vst [vmem:[#allocation16_spill] sm:$0xff] %v8410_v43  ;;  %v5667_v51 = vpop.eup %5666  ;;  %v2053_v0 = vmul.f32 1.2732395, %v2021_v37  ;;  %5670 = vrsqrt.f32 %v8397_v12  ;;  %v8432_v28 = vmul.f32 %v8418_v32, %v8418_v32  ;;  %v8434_v21 = vsub.f32 %v2061_v54, %v2093_v26  ;;  %v12630_v14 = vld [vmem:[#allocation48_spill] sm:$0xff] }
 0x1ec   :  { %12625 = vst [vmem:[#allocation14_spill] sm:$0xff] %v8413_v50  ;;  %12626 = vst [vmem:[#allocation12_spill] sm:$0xff] %v8416_v24  ;;  %vm2157_vm10 = vcmp.ge.f32.partialorder %v2093_v26, 8.0  ;;  %v4982_v49 = vadd.f32 -8.0, %v2093_v26  ;;  %v8436_v5 = vmul.f32 %v5667_v51, %v1199_v58  ;;  %v733_v61 = vmul.f32 %v8369_v34, %v8369_v34  ;;  %v12635_v34 = vld [vmem:[#allocation55_spill] sm:$0xff] }
 0x1ed   :  { %v1390_v41 = vmul.f32 -0.0117212, %v8432_v28  ;;  %vm2512_vm15 = vcmp.eq.f32.partialorder %v12627_v44, 1.0  ;;  %vm2520_vm8 = vcmp.eq.f32.partialorder %v12628_v31, 1.0  ;;  %v1223_v54 = vmax.f32 %v8376_v45, %v8424_v36 }
 0x1ee   :  { %v8445_v29 = vmul.f32 %v8436_v5, %v8436_v5  ;;  %v1254_v37 = vadd.f32 1e-12, %v1222_v59  ;;  %v2544_v6 = vsel %vm2512_vm15, %v12629_v52, 0.0  ;;  %v8452_v58 = vfloor.f32 %v2053_v0 }
 0x1ef   :  { %v1422_v51 = vadd.f32 0.05265332, %v1390_v41  ;;  %v734_v38 = vmul.f32 %v8389_v30, %v8389_v30  ;;  %v2552_v48 = vsel %vm2520_vm8, %v12630_v14, 0.0  ;;  %v1255_v50 = vadd.f32 1e-12, %v1223_v54  ;;  %v12633_v41 = vld [vmem:[#allocation30_spill] sm:$0xff] }
 0x1f0   :  { %v1391_v24 = vmul.f32 -0.0117212, %v8445_v29  ;;  %5672 = vrcp.f32 %v1254_v37  ;;  %vm12632_vm11 = vcmp.eq.f32.partialorder %v12627_v44, 0.0  ;;  %v765_v25 = vadd.f32 %v733_v61, %v8351_v57  ;;  %v12636_v37 = vld [vmem:[#allocation42_spill] sm:$0xff] }
 0x1f1   :  { %v2576_v59 = vsel %vm12632_vm11, %v12631_v39, 0.0  ;;  %v1454_v43 = vmul.f32 %v1422_v51, %v8432_v28  ;;  %vm12634_vm9 = vcmp.eq.f32.partialorder %v12628_v31, 0.0  ;;  %5674 = vrcp.f32 %v1255_v50  ;;  %v12638_v51 = vld [vmem:[#allocation37_spill] sm:$0xff] }
 0x1f2   :  { %v2584_v3 = vsel %vm12634_vm9, %v12633_v41, 0.0  ;;  %v2608_v22 = vadd.f32 %v2576_v59, %v2544_v6  ;;  %v1423_v60 = vadd.f32 0.05265332, %v1391_v24  ;;  %vm2529_vm5 = vcmp.eq.f32.partialorder %v12635_v34, 1.0  ;;  %v12639_v24 = vld [vmem:[#allocation31_spill] sm:$0xff] }
 0x1f3   :  { %v2616_v30 = vadd.f32 %v2584_v3, %v2552_v48  ;;  %v1486_v54 = vadd.f32 -0.11643287, %v1454_v43  ;;  %vm2537_vm13 = vcmp.eq.f32.partialorder %v12636_v37, 1.0  ;;  %v2561_v39 = vsel %vm2529_vm5, %v12637_v13, 0.0  ;;  %v12640_v48 = vld [vmem:[#allocation47_spill] sm:$0xff] }
 0x1f4   :  { %v2593_v57 = vsel %vm2385_vm4, %v12638_v51, 0.0  ;;  %v5669_v61 = vpop.eup %5668  ;;  %v1455_v41 = vmul.f32 %v1423_v60, %v8445_v29  ;;  %v2569_v3 = vsel %vm2537_vm13, %v12639_v24, 0.0  ;;  %v2601_v43 = vsel %vm2393_vm14, %v12640_v48, 0.0 }
 0x1f5   :  { %v2640_v6 = vpack.c.bf16 %v2616_v30, %v2608_v22  ;;  %v8483_v50 = vpop.eup %5670  ;;  %vm923_vm11 = vcmp.eq.f32.partialorder %v8387_v27, inf  ;;  %v1518_v59 = vmul.f32 %v1486_v54, %v8432_v28  ;;  %v766_v51 = vadd.f32 %v734_v38, %v8373_v23  ;;  %v5559_v30 = vld [vmem:[%s12022_s2 + $0x188] sm:$0xff]  }
 0x1f6   :  { %v2625_v13 = vadd.f32 %v2593_v57, %v2561_v39  ;;  %v2633_v34 = vadd.f32 %v2601_v43, %v2569_v3  ;;  %v8489_v60 = vsel %vm2157_vm10, %v4982_v49, %v2093_v26  ;;  %v1487_v24 = vadd.f32 -0.11643287, %v1455_v41  ;;  %v5556_v43 = vld [vmem:[%s12022_s2 + $0x148] sm:$0xff]  }
 0x1f7   :  { %12641 = vst [vmem:[#allocation50_spill] sm:$0xff] %v8489_v60  ;;  %3921 = vmatmul.mubr.bf16.gmra.mrb[8].mxu0 %v2640_v6  ;;  %v8495_v48 = vmul.f32 %v8434_v21, %v8326_v35  ;;  %v1550_v37 = vadd.f32 0.19354346, %v1518_v59  ;;  %v1190_v54 = vmin.f32 %v8356_v55, %v8392_v40  ;;  %v8500_v39 = vsub.f32 %v2053_v0, %v8452_v58  ;;  %v8514_v6 = vpop.permute.xlu1 %223  ;;  %v5557_v59 = vld [vmem:[%s12022_s2 + $0x108] sm:$0xff]  }
 0x1f8   :  { %v2649_v23 = vpack.c.bf16 %v2633_v34, %v2625_v13  ;;  %v1519_v26 = vmul.f32 %v1487_v24, %v8445_v29  ;;  %v8503_v38 = vadd.f32 1e-10, %v765_v25  ;;  %vm12221_vm4 = vcmp.eq.f32.partialorder %v7850_v62, 1.0  ;;  %5291 = vmatprep.subr.bf16.mxu0 %v5556_v43 }
 0x1f9   :  { %12642 = vst [vmem:[#allocation32_spill] sm:$0xff] %v8495_v48  ;;  %v1582_v49 = vmul.f32 %v1550_v37, %v8432_v28  ;;  %v8507_v41 = vadd.f32 1e-10, %v766_v51  ;;  %vm12220_vm14 = vcmp.eq.f32.partialorder %v12592_v17, 1.0  ;;  %v2560_v34 = vsel %vm12221_vm4, %v7864_v42, 0.0  ;;  %5292 = vmatpush3.bf16.msra.mxu0 %v5557_v59 }
 0x1fa   :  { %3928 = vmatprep.mubr.bf16.mxu0 %v2649_v23  ;;  %v5673_v13 = vpop.eup %5672  ;;  %v922_v0 = vmul.f32 %v5669_v61, %v8387_v27  ;;  %v1551_v57 = vadd.f32 0.19354346, %v1519_v26  ;;  %v2568_v25 = vsel %vm12220_vm14, %v7836_v56, 0.0  ;;  %v2592_v37 = vsel %vm2384_vm7, %v7867_v63, 0.0  ;;  %v5558_v23 = vld [vmem:[%s12022_s2 + $0x1c8] sm:$0xff]  }
 0x1fb   :  { %vm2149_vm10 = vcmp.ge.f32.partialorder %v8452_v58, 8.0  ;;  %vm925_vm9 = vcmp.eq.f32.partialorder %v8387_v27, 0.0  ;;  %v1614_v51 = vadd.f32 -0.33262348, %v1582_v49  ;;  %v1191_v24 = vmin.f32 %v8376_v45, %v8424_v36  ;;  %v5675_v26 = vpop.eup %5674  ;;  %5403 = vmatprep.subr.bf16.mxu1 %v5558_v23  ;;  %v8572_v43 = vpop.permute.xlu1 %231 }
 0x1fc   :  { %v8526_v61 = vmul.f32 %v5673_v13, %v1190_v54  ;;  %v2600_v3 = vsel %vm2392_vm12, %v12593_v53, 0.0  ;;  %vm930_vm7 = vcmp.eq.f32.partialorder %v8397_v12, inf  ;;  %v1583_v54 = vmul.f32 %v1551_v57, %v8445_v29  ;;  %5404 = vmatpush3.bf16.msra.mxu1 %v5559_v30  ;;  %12643 = vst [vmem:[#allocation52_spill] sm:$0xff] %v8572_v43 }
 0x1fd   :  { %vm1742_vm12 = vcmp.gt.f32.partialorder %v8292_v11, %v8301_v18  ;;  %5676 = vrsqrt.f32 %v8503_v38  ;;  %v2624_v49 = vadd.f32 %v2592_v37, %v2560_v34  ;;  %v2632_v13 = vadd.f32 %v2600_v3, %v2568_v25 }
 0x1fe   :  { %v1646_v22 = vmul.f32 %v1614_v51, %v8432_v28  ;;  %5678 = vrsqrt.f32 %v8507_v41  ;;  %v8550_v48 = vmul.f32 %v5675_v26, %v1191_v24  ;;  %v8554_v57 = vmul.f32 %v8526_v61, %v8526_v61  ;;  %v12644_v26 = vld [vmem:[#allocation5_spill] sm:$0xff] }
 0x1ff   :  { %v4974_v60 = vadd.f32 -8.0, %v8452_v58  ;;  %v924_v34 = vsel %vm923_vm11, %v8387_v27, %v922_v0  ;;  %v1615_v25 = vadd.f32 -0.33262348, %v1583_v54  ;;  %v2648_v37 = vpack.c.bf16 %v2632_v13, %v2624_v49  ;;  %v12645_v49 = vld [vmem:[#allocation44_spill] sm:$0xff] }
 0x200   :  { %vm932_vm3 = vcmp.eq.f32.partialorder %v8397_v12, 0.0  ;;  %v1678_v28 = vadd.f32 0.99997723, %v1646_v22  ;;  %vm1743_vm2 = vcmp.gt.f32.partialorder %v8312_v33, %v8309_v1  ;;  %v8565_v51 = vmul.f32 %v8550_v48, %v8550_v48 }
 0x201   :  { %v1382_v24 = vmul.f32 -0.0117212, %v8554_v57  ;;  %vm12222_vm14 = vcmp.eq.f32.partialorder %v12595_v15, 2.0  ;;  %v929_v0 = vmul.f32 %v8483_v50, %v8397_v12  ;;  %v1647_v3 = vmul.f32 %v1615_v25, %v8445_v29  ;;  %3929 = vmatmul.mubr.bf16.gmra.mrb[12].mxu0 %v2648_v37  ;;  %v12646_v25 = vld [vmem:[#allocation17_spill] sm:$0xff] }
 0x202   :  { %vm2665_vm11 = vcmp.eq.f32.partialorder %v12596_v16, 2.0  ;;  %v2689_v22 = vsel %vm12222_vm14, %v12597_v4, 0.0  ;;  %vm1838_vm4 = vcmp.lt.f32.partialorder %v8265_v19, 0.0  ;;  %v1710_v59 = vmul.f32 %v1678_v28, %v8418_v32 }
 0x203   :  { %v1383_v30 = vmul.f32 -0.0117212, %v8565_v51  ;;  %v1414_v23 = vadd.f32 0.05265332, %v1382_v24  ;;  %v2697_v29 = vsel %vm2665_vm11, %v12644_v26, 0.0  ;;  %v2245_v50 = vsub.f32 1.0, %v8500_v39  ;;  %v8592_v24 = vpop.permute.xlu0 %221 }
 0x204   :  { %v1679_v54 = vadd.f32 0.99997723, %v1647_v3  ;;  %v2721_v13 = vsel %vm2513_vm6, %v12645_v49, 0.0  ;;  %vm12647_vm14 = vcmp.eq.f32.partialorder %v12596_v16, 1.0  ;;  %v1774_v4 = vsub.f32 1.5707964, %v1710_v59 }
 0x205   :  { %v2729_v37 = vsel %vm12647_vm14, %v12646_v25, 0.0  ;;  %v1415_v32 = vadd.f32 0.05265332, %v1383_v30  ;;  %v1446_v28 = vmul.f32 %v1414_v23, %v8554_v57  ;;  %v2753_v53 = vadd.f32 %v2721_v13, %v2689_v22 }
 0x206   :  { %v12648_v26 = vsub.f32 1.0, %v8434_v21  ;;  %v12650_v3 = vand.u32 2147483648, %v8387_v27  ;;  %v1711_v16 = vmul.f32 %v1679_v54, %v8436_v5  ;;  %v2761_v25 = vadd.f32 %v2729_v37, %v2697_v29 }
 0x207   :  { %v931_v30 = vsel %vm930_vm7, %v8397_v12, %v929_v0  ;;  %v1806_v22 = vsel %vm1742_vm12, %v1774_v4, %v1710_v59  ;;  %v1447_v21 = vmul.f32 %v1415_v32, %v8565_v51  ;;  %v5677_v23 = vpop.eup %5676  ;;  %v8614_v27 = vsel %vm2149_vm10, %v4974_v60, %v8452_v58  ;;  %v8641_v13 = vpop.permute.xlu0 %229 }
 0x208   :  { %v8597_v63 = vmul.f32 %v12648_v26, %v8326_v35  ;;  %v927_v49 = vsel %vm925_vm9, %v12650_v3, %v924_v34  ;;  %v1478_v35 = vadd.f32 -0.11643287, %v1446_v28  ;;  %12651 = vst [vmem:[#allocation88_spill] sm:$0xff] %v8614_v27  ;;  %vm1839_vm6 = vcmp.lt.f32.partialorder %v8286_v8, 0.0  ;;  %v8617_v26 = vpop.permute.xlu1 %314  ;;  %v5679_v29 = vpop.eup %5678  ;;  %12655 = vst [vmem:[#allocation91_spill] sm:$0xff] %v8641_v13  ;;  %v12657_v28 = vld [vmem:[#allocation56_spill] sm:$0xff] }
 0x209   :  { %v1775_v5 = vsub.f32 1.5707964, %v1711_v16  ;;  %v1870_v34 = vsub.f32 3.1415927, %v1806_v22  ;;  %v2785_v0 = vpack.c.bf16 %v2761_v25, %v2753_v53  ;;  %v8620_v11 = vmul.f32 %v2245_v50, %v8385_v47 }
 0x20a   :  { %12649 = vst [vmem:[#allocation48_spill] sm:$0xff] %v8597_v63  ;;  %v8624_v4 = vmul.f32 %v8500_v39, %v8385_v47  ;;  %v1479_v18 = vadd.f32 -0.11643287, %v1447_v21  ;;  %v1510_v59 = vmul.f32 %v1478_v35, %v8554_v57  ;;  %v12654_v58 = vand.u32 2147483648, %v8397_v12  ;;  %v12656_v12 = vld [vmem:[#allocation61_spill] sm:$0xff] }
 0x20b   :  { %12652 = vst [vmem:[#allocation89_spill] sm:$0xff] %v8620_v11  ;;  %v8632_v54 = vmul.f32 %v8405_v2, %v927_v49  ;;  %v1807_v53 = vsel %vm1743_vm2, %v1775_v5, %v1711_v16  ;;  %vm1934_vm14 = vcmp.lt.f32.partialorder %v8278_v7, 0.0  ;;  %vm867_vm10 = vcmp.eq.f32.partialorder %v8503_v38, inf  ;;  %3936 = vmatprep.mubr.bf16.mxu0 %v2785_v0  ;;  %v12658_v0 = vld [vmem:[#allocation57_spill] sm:$0xff]  ;;  %v12683_v11 = vld [vmem:[#allocation59_spill] sm:$0xff] }
 0x20c   :  { %12653 = vst [vmem:[#allocation90_spill] sm:$0xff] %v8624_v4  ;;  %v934_v60 = vsel %vm932_vm3, %v12654_v58, %v931_v30  ;;  %v866_v47 = vmul.f32 %v5677_v23, %v8503_v38  ;;  %v1511_v39 = vmul.f32 %v1479_v18, %v8565_v51  ;;  %v1542_v50 = vadd.f32 0.19354346, %v1510_v59  ;;  %v8681_v59 = vpop.permute.xlu1 %322 }
 0x20d   :  { %v356_v49 = vsel %vm340_vm0, %v12656_v12, %v8617_v26  ;;  %v1902_v16 = vsel %vm1838_vm4, %v1870_v34, %v1806_v22  ;;  %vm869_vm2 = vcmp.eq.f32.partialorder %v8503_v38, 0.0  ;;  %v870_v1 = vand.u32 2147483648, %v8503_v38  ;;  %12659 = vst [vmem:[#allocation61_spill] sm:$0xff] %v8681_v59 }
 0x20e   :  { %v873_v33 = vmul.f32 %v5679_v29, %v8507_v41  ;;  %v1871_v25 = vsub.f32 3.1415927, %v1807_v53  ;;  %v1543_v37 = vadd.f32 0.19354346, %v1511_v39  ;;  %v1574_v32 = vmul.f32 %v1542_v50, %v8554_v57  ;;  %v313_v39 = vpop.permute.xlu0 %312 }
 0x20f   :  { %v255_v3 = vsel %vm243_vm1, %v12657_v28, %v8514_v6  ;;  %v8658_v30 = vmul.f32 %v8408_v9, %v934_v60  ;;  %vm874_vm3 = vcmp.eq.f32.partialorder %v8507_v41, inf  ;;  %vm876_vm4 = vcmp.eq.f32.partialorder %v8507_v41, 0.0 }
 0x210   :  { %v401_v19 = vsub.f32 %v255_v3, %v356_v49  ;;  %v1966_v22 = vsub.f32 0.0, %v1902_v16  ;;  %v868_v21 = vsel %vm867_vm10, %v8503_v38, %v866_v47  ;;  %v1575_v35 = vmul.f32 %v1543_v37, %v8565_v51  ;;  %v12661_v37 = vld [vmem:[#allocation51_spill] sm:$0xff] }
 0x211   :  { %v1606_v23 = vadd.f32 -0.33262348, %v1574_v32  ;;  %vm1935_vm9 = vcmp.lt.f32.partialorder %v8289_v20, 0.0  ;;  %v875_v5 = vsel %vm874_vm3, %v8507_v41, %v873_v33  ;;  %v877_v34 = vand.u32 2147483648, %v8507_v41  ;;  %v12660_v33 = vld [vmem:[#allocation70_spill] sm:$0xff] }
 0x212   :  { %v8673_v29 = vsel %vm243_vm1, %v12658_v0, %v8592_v24  ;;  %v8679_v18 = vsel %vm243_vm1, %v8514_v6, %v8572_v43  ;;  %v1903_v58 = vsel %vm1839_vm6, %v1871_v25, %v1807_v53  ;;  %v1607_v60 = vadd.f32 -0.33262348, %v1575_v35  ;;  %v12662_v32 = vld [vmem:[#allocation30_spill] sm:$0xff] }
 0x213   :  { %v1638_v47 = vmul.f32 %v1606_v23, %v8554_v57  ;;  %vm1734_vm7 = vcmp.gt.f32.partialorder %v8392_v40, %v8356_v55  ;;  %vm2656_vm12 = vcmp.eq.f32.partialorder %v12627_v44, 2.0  ;;  %v871_v50 = vsel %vm869_vm2, %v870_v1, %v868_v21 }
 0x214   :  { %vm1735_vm10 = vcmp.gt.f32.partialorder %v8424_v36, %v8376_v45  ;;  %v8693_v6 = vmul.f32 0.5, %v401_v19  ;;  %vm2664_vm3 = vcmp.eq.f32.partialorder %v12628_v31, 2.0  ;;  %v2688_v8 = vsel %vm2656_vm12, %v12629_v52, 0.0  ;;  %v12663_v19 = vld [vmem:[#allocation9_spill] sm:$0xff] }
 0x215   :  { %v1998_v57 = vsel %vm1934_vm14, %v1966_v22, %v1902_v16  ;;  %v1639_v53 = vmul.f32 %v1607_v60, %v8565_v51  ;;  %v1670_v12 = vadd.f32 0.99997723, %v1638_v47  ;;  %v2696_v38 = vsel %vm2664_vm3, %v12630_v14, 0.0  ;;  %v8744_v47 = vpop.permute.xlu0 %320 }
 0x216   :  { %vm1830_vm6 = vcmp.lt.f32.partialorder %v8321_v10, 0.0  ;;  %v1967_v49 = vsub.f32 0.0, %v1903_v58  ;;  %v878_v1 = vsel %vm876_vm4, %v877_v34, %v875_v5  ;;  %v355_v25 = vsel %vm340_vm0, %v12660_v33, %v313_v39  ;;  %12664 = vst [vmem:[#allocation56_spill] sm:$0xff] %v8744_v47  ;;  %v12669_v33 = vld [vmem:[#allocation37_spill] sm:$0xff] }
 0x217   :  { %v2720_v7 = vsel %vm2512_vm15, %v12661_v37, 0.0  ;;  %v1671_v51 = vadd.f32 0.99997723, %v1639_v53  ;;  %v1702_v16 = vmul.f32 %v1670_v12, %v8526_v61  ;;  %v2728_v28 = vsel %vm2520_vm8, %v12662_v32, 0.0  ;;  %v8727_v61 = vpop.permute.xlu1 %483 }
 0x218   :  { %v2752_v3 = vadd.f32 %v2720_v7, %v2688_v8  ;;  %vm1831_vm14 = vcmp.lt.f32.partialorder %v12663_v19, 0.0  ;;  %v2030_v41 = vadd.f32 6.2831855, %v1998_v57  ;;  %v250_v22 = vsel %vm243_vm1, %v8592_v24, %v8641_v13  ;;  %v12678_v19 = vld [vmem:[#allocation21_spill] sm:$0xff] }
 0x219   :  { %v352_v21 = vsel %vm340_vm0, %v8617_v26, %v8681_v59  ;;  %v2760_v35 = vadd.f32 %v2728_v28, %v2696_v38  ;;  %v8730_v23 = vmul.f32 %v8405_v2, %v871_v50  ;;  %v8733_v5 = vmul.f32 %v8408_v9, %v878_v1  ;;  %v12666_v1 = vld [vmem:[#allocation42_spill] sm:$0xff] }
 0x21a   :  { %v1703_v34 = vmul.f32 %v1671_v51, %v8550_v48  ;;  %v8738_v0 = vmul.f32 %v8693_v6, %v8693_v6  ;;  %v1766_v24 = vsub.f32 1.5707964, %v1702_v16  ;;  %v8741_v60 = vand.u32 2147483647, %v8693_v6  ;;  %v12671_v51 = vld [vmem:[#allocation47_spill] sm:$0xff] }
 0x21b   :  { %v393_v26 = vsub.f32 %v8673_v29, %v355_v25  ;;  %v2784_v8 = vpack.c.bf16 %v2760_v35, %v2752_v3  ;;  %v1999_v50 = vsel %vm1935_vm9, %v1967_v49, %v1903_v58  ;;  %v402_v53 = vsub.f32 %v8679_v18, %v352_v21  ;;  %v12665_v29 = vld [vmem:[#allocation55_spill] sm:$0xff]  ;;  %v12668_v49 = vld [vmem:[#allocation80_spill] sm:$0xff] }
 0x21c   :  { %v1767_v57 = vsub.f32 1.5707964, %v1703_v34  ;;  %v351_v48 = vsel %vm340_vm0, %v313_v39, %v8744_v47  ;;  %v2062_v12 = vmul.f32 1.2732395, %v2030_v41  ;;  %v1798_v38 = vsel %vm1734_vm7, %v1766_v24, %v1702_v16  ;;  %v12667_v18 = vld [vmem:[#allocation7_spill] sm:$0xff]  ;;  %v8773_v16 = vpop.permute.xlu1 %491  ;;  %v12701_v47 = vld [vmem:[#allocation17_spill] sm:$0xff] }
 0x21d   :  { %3937 = vmatmul.mubr.bf16.gmra.mrb[16].mxu0 %v2784_v8  ;;  %vm2673_vm15 = vcmp.eq.f32.partialorder %v12665_v29, 2.0  ;;  %vm2681_vm8 = vcmp.eq.f32.partialorder %v12666_v1, 2.0  ;;  %v1862_v58 = vsub.f32 3.1415927, %v1798_v38  ;;  %vm1926_vm2 = vcmp.lt.f32.partialorder %v12667_v18, 0.0  ;;  %v12670_v25 = vld [vmem:[#allocation31_spill] sm:$0xff] }
 0x21e   :  { %v1799_v20 = vsel %vm1735_vm10, %v1767_v57, %v1703_v34  ;;  %v2705_v39 = vsel %vm2673_vm15, %v12668_v49, 0.0  ;;  %v2737_v55 = vsel %vm2529_vm5, %v12669_v33, 0.0  ;;  %v2713_v7 = vsel %vm2681_vm8, %v12670_v25, 0.0  ;;  %12672 = vst [vmem:[#allocation57_spill] sm:$0xff] %v8773_v16  ;;  %v12673_v34 = vld [vmem:[#allocation11_spill] sm:$0xff] }
 0x21f   :  { %v1863_v40 = vsub.f32 3.1415927, %v1799_v20  ;;  %v2745_v45 = vsel %vm2537_vm13, %v12671_v51, 0.0  ;;  %v2769_v36 = vadd.f32 %v2737_v55, %v2705_v39  ;;  %v2031_v28 = vadd.f32 6.2831855, %v1999_v50  ;;  %v8785_v55 = vpop.permute.xlu0 %481  ;;  %v12676_v50 = vld [vmem:[#allocation22_spill] sm:$0xff] }
 0x220   :  { %v1894_v3 = vsel %vm1830_vm6, %v1862_v58, %v1798_v38  ;;  %v394_v41 = vsub.f32 %v250_v22, %v351_v48  ;;  %v2777_v21 = vadd.f32 %v2745_v45, %v2713_v7  ;;  %v2094_v35 = vfloor.f32 %v2062_v12  ;;  %v12681_v45 = vld [vmem:[#allocation58_spill] sm:$0xff] }
 0x221   :  { %vm1927_vm5 = vcmp.lt.f32.partialorder %v12673_v34, 0.0  ;;  %v8778_v24 = vmul.f32 0.5, %v393_v26  ;;  %v8780_v8 = vmul.f32 0.5, %v402_v53  ;;  %vm2672_vm4 = vcmp.eq.f32.partialorder %v7850_v62, 2.0  ;;  %v12694_v34 = vld [vmem:[#allocation45_spill] sm:$0xff] }
 0x222   :  { %v1895_v57 = vsel %vm1831_vm14, %v1863_v40, %v1799_v20  ;;  %v2793_v39 = vpack.c.bf16 %v2777_v21, %v2769_v36  ;;  %vm2680_vm13 = vcmp.eq.f32.partialorder %v12592_v17, 2.0  ;;  %v2704_v10 = vsel %vm2672_vm4, %v7864_v42, 0.0  ;;  %v12682_v36 = vld [vmem:[#allocation84_spill] sm:$0xff]  ;;  %v8805_v21 = vpop.permute.xlu1 %572 }
 0x223   :  { %12674 = vst [vmem:[#allocation70_spill] sm:$0xff] %v8778_v24  ;;  %12675 = vst [vmem:[#allocation51_spill] sm:$0xff] %v8780_v8  ;;  %v1958_v22 = vsub.f32 0.0, %v1894_v3  ;;  %v2712_v26 = vsel %vm2680_vm13, %v7836_v56, 0.0  ;;  %vm12677_vm9 = vcmp.eq.f32.partialorder %v7850_v62, 1.0  ;;  %vm12679_vm7 = vcmp.eq.f32.partialorder %v12592_v17, 1.0  ;;  %v8826_v2 = vpop.permute.xlu0 %489 }
 0x224   :  { %v2736_v53 = vsel %vm12677_vm9, %v12676_v50, 0.0  ;;  %v2744_v48 = vsel %vm12679_vm7, %v12678_v19, 0.0  ;;  %v2063_v38 = vmul.f32 1.2732395, %v2031_v28  ;;  %v8800_v20 = vmul.f32 0.5, %v394_v41  ;;  %3944 = vmatprep.mubr.bf16.mxu0 %v2793_v39  ;;  %v12684_v39 = vld [vmem:[#allocation86_spill] sm:$0xff] }
 0x225   :  { %v2768_v58 = vadd.f32 %v2736_v53, %v2704_v10  ;;  %v2776_v40 = vadd.f32 %v2744_v48, %v2712_v26  ;;  %v4983_v7 = vadd.f32 -8.0, %v2094_v35  ;;  %vm12236_vm10 = vcmp.eq.f32.partialorder %v12681_v45, 7.0  ;;  %v12685_v26 = vld [vmem:[#allocation87_spill] sm:$0xff]  ;;  %v12686_v48 = vld [vmem:[#allocation85_spill] sm:$0xff]  ;;  %12689 = vst [vmem:[#allocation9_spill] sm:$0xff] %v8826_v2  ;;  %v12697_v62 = vld [vmem:[#allocation44_spill] sm:$0xff] }
 0x226   :  { %12680 = vst [vmem:[#allocation30_spill] sm:$0xff] %v8800_v20  ;;  %vm12251_vm6 = vcmp.eq.f32.partialorder %v12682_v36, 7.0  ;;  %vm2387_vm14 = vcmp.eq.f32.partialorder %v12681_v45, 0.0  ;;  %v1959_v63 = vsub.f32 0.0, %v1895_v57  ;;  %vm2395_vm9 = vcmp.eq.f32.partialorder %v12682_v36, 0.0 }
 0x227   :  { %v2792_v4 = vpack.c.bf16 %v2776_v40, %v2768_v58  ;;  %v2419_v28 = vsel %vm2387_vm14, %v12683_v11, 0.0  ;;  %v1990_v41 = vsel %vm1926_vm2, %v1958_v22, %v1894_v3  ;;  %v2427_v10 = vsel %vm2395_vm9, %v12684_v39, 0.0  ;;  %v12687_v40 = vld [vmem:[#allocation75_spill] sm:$0xff]  ;;  %v12690_v22 = vld [vmem:[#allocation38_spill] sm:$0xff] }
 0x228   :  { %v2451_v53 = vsel %vm12236_vm10, %v12685_v26, 0.0  ;;  %v2459_v58 = vsel %vm12251_vm6, %v12686_v48, 0.0  ;;  %vm12688_vm7 = vcmp.lt.s32.totalorder %v6056_v46, 96  ;;  %vm12691_vm2 = vcmp.lt.s32.totalorder %v6056_v46, 32 }
 0x229   :  { %v513_v27 = vsel %vm12688_vm7, %v12687_v40, %v8727_v61  ;;  %3945 = vmatmul.mubr.bf16.gmra.mrb[20].mxu0 %v2792_v4  ;;  %v2483_v18 = vadd.f32 %v2451_v53, %v2419_v28  ;;  %v2491_v3 = vadd.f32 %v2459_v58, %v2427_v10  ;;  %v614_v9 = vsel %vm12691_vm2, %v12690_v22, %v8805_v21 }
 0x22a   :  { %vm2158_vm10 = vcmp.ge.f32.partialorder %v2094_v35, 8.0  ;;  %v8834_v19 = vmul.f32 %v8778_v24, %v8778_v24  ;;  %v8837_v50 = vand.u32 2147483647, %v8778_v24  ;;  %v659_v56 = vsub.f32 %v513_v27, %v614_v9 }
 0x22b   :  { %v8839_v40 = vsub.f32 %v2062_v12, %v2094_v35  ;;  %v1991_v4 = vsel %vm1927_vm5, %v1959_v63, %v1895_v57  ;;  %v2022_v28 = vadd.f32 6.2831855, %v1990_v41  ;;  %v2507_v10 = vpack.c.bf16 %v2491_v3, %v2483_v18  ;;  %v12696_v18 = vld [vmem:[#allocation5_spill] sm:$0xff] }
 0x22c   :  { %v8843_v53 = vfloor.f32 %v2063_v38  ;;  %v8847_v58 = vmul.f32 %v8780_v8, %v8780_v8  ;;  %v8850_v22 = vand.u32 2147483647, %v8780_v8  ;;  %v8852_v42 = vmul.f32 0.5, %v659_v56  ;;  %v12695_v56 = vld [vmem:[#allocation6_spill] sm:$0xff] }
 0x22d   :  { %v8854_v17 = vsel %vm2158_vm10, %v4983_v7, %v2094_v35  ;;  %v8858_v9 = vmul.f32 %v8800_v20, %v8800_v20  ;;  %v8861_v63 = vand.u32 2147483647, %v8800_v20  ;;  %4073 = vmatprep.mubr.bf16.mxu1 %v2507_v10  ;;  %vm2801_vm5 = vcmp.eq.f32.partialorder %v12595_v15, 3.0 }
 0x22e   :  { %12692 = vst [vmem:[#allocation55_spill] sm:$0xff] %v8852_v42  ;;  %12693 = vst [vmem:[#allocation7_spill] sm:$0xff] %v8854_v17  ;;  %v2023_v27 = vadd.f32 6.2831855, %v1991_v4  ;;  %v755_v12 = vmul.f32 %v8852_v42, %v8852_v42  ;;  %vm12257_vm7 = vcmp.eq.f32.partialorder %v12694_v34, 3.0  ;;  %v2833_v35 = vsel %vm2801_vm5, %v12695_v56, 0.0  ;;  %v571_v4 = vpop.permute.xlu0 %570 }
 0x22f   :  { %v2254_v57 = vsub.f32 1.0, %v8839_v40  ;;  %v2054_v7 = vmul.f32 1.2732395, %v2022_v28  ;;  %v8872_v41 = vand.u32 2147483647, %v8852_v42  ;;  %v2841_v3 = vsel %vm12257_vm7, %v12696_v18, 0.0 }
 0x230   :  { %v8878_v10 = vsub.f32 %v2063_v38, %v8843_v53  ;;  %v4984_v17 = vadd.f32 -8.0, %v8843_v53  ;;  %v787_v20 = vadd.f32 %v755_v12, %v8738_v0  ;;  %vm12698_vm10 = vcmp.eq.f32.partialorder %v12595_v15, 2.0  ;;  %v12699_v28 = vld [vmem:[#allocation34_spill] sm:$0xff]  ;;  %v12716_v42 = vld [vmem:[#allocation73_spill] sm:$0xff] }
 0x231   :  { %v2865_v56 = vsel %vm12698_vm10, %v12697_v62, 0.0  ;;  %vm12700_vm2 = vcmp.lt.s32.totalorder %v6056_v46, 96  ;;  %v1244_v18 = vmax.f32 %v8741_v60, %v8872_v41  ;;  %v2873_v38 = vsel %vm2665_vm11, %v12701_v47, 0.0  ;;  %v12705_v34 = vld [vmem:[#allocation18_spill] sm:$0xff] }
 0x232   :  { %v512_v8 = vsel %vm12700_vm2, %v12699_v28, %v8785_v55  ;;  %v2897_v13 = vadd.f32 %v2865_v56, %v2833_v35  ;;  %vm12702_vm6 = vmmov %vm12700_vm2  ;;  %v2905_v62 = vadd.f32 %v2873_v38, %v2841_v3  ;;  %v12704_v28 = vld [vmem:[#allocation27_spill] sm:$0xff]  ;;  %v2055_v15 = vmul.f32 1.2732395, %v2023_v27  ;;  %v12707_v3 = vld [vmem:[#allocation82_spill] sm:$0xff] }
 0x233   :  { %v509_v0 = vsel %vm12702_vm6, %v8727_v61, %v8773_v16  ;;  %vm12703_vm10 = vmmov %vm12700_vm2  ;;  %vm12261_vm2 = vcmp.eq.f32.partialorder %v12704_v28, 7.0  ;;  %v8903_v24 = vfloor.f32 %v2054_v7  ;;  %v1276_v59 = vadd.f32 1e-12, %v1244_v18  ;;  %v12706_v61 = vld [vmem:[#allocation81_spill] sm:$0xff]  ;;  %v12710_v16 = vld [vmem:[#allocation40_spill] sm:$0xff] }
 0x234   :  { %v508_v12 = vsel %vm12703_vm10, %v8785_v55, %v8826_v2  ;;  %vm12266_vm11 = vcmp.eq.f32.partialorder %v12705_v34, 7.0  ;;  %v8906_v56 = vadd.f32 1e-10, %v787_v20  ;;  %vm12289_vm7 = vcmp.eq.f32.partialorder %v12704_v28, 0.0  ;;  %v12708_v38 = vld [vmem:[#allocation41_spill] sm:$0xff]  ;;  %v8919_v20 = vpop.permute.xlu1 %580  ;;  %v8921_v2 = vpop.permute.xlu0 %578 }
 0x235   :  { %vm12263_vm6 = vcmp.eq.f32.partialorder %v12705_v34, 0.0  ;;  %v2450_v35 = vsel %vm12261_vm2, %v12706_v61, 0.0  ;;  %5680 = vrcp.f32 %v1276_v59  ;;  %v2929_v55 = vpack.c.bf16 %v2905_v62, %v2897_v13  ;;  %12709 = vst [vmem:[#allocation11_spill] sm:$0xff] %v8919_v20  ;;  %v12711_v61 = vld [vmem:[#allocation46_spill] sm:$0xff]  ;;  %v12713_v13 = vld [vmem:[#allocation72_spill] sm:$0xff]  ;;  %v12714_v28 = vld [vmem:[#allocation77_spill] sm:$0xff] }
 0x236   :  { %v2418_v27 = vsel %vm12289_vm7, %v12707_v3, 0.0  ;;  %v2426_v18 = vsel %vm12263_vm6, %v12708_v38, 0.0  ;;  %v2458_v47 = vsel %vm12266_vm11, %v12710_v16, 0.0  ;;  %vm12712_vm10 = vcmp.lt.s32.totalorder %v6056_v46, 32  ;;  %v12715_v38 = vld [vmem:[#allocation71_spill] sm:$0xff] }
 0x237   :  { %v2482_v43 = vadd.f32 %v2450_v35, %v2418_v27  ;;  %v613_v62 = vsel %vm12712_vm10, %v12711_v61, %v571_v4  ;;  %vm12267_vm2 = vcmp.eq.f32.partialorder %v12713_v13, 1.0  ;;  %3952 = vmatprep.mubr.bf16.mxu0 %v2929_v55  ;;  %v2490_v59 = vadd.f32 %v2458_v47, %v2426_v18  ;;  %v12717_v35 = vld [vmem:[#allocation69_spill] sm:$0xff]  ;;  %vm12718_vm11 = vmmov %vm12712_vm10  ;;  %v12719_v18 = vld [vmem:[#allocation54_spill] sm:$0xff] }
 0x238   :  { %v651_v3 = vsub.f32 %v512_v8, %v613_v62  ;;  %vm12288_vm6 = vcmp.eq.f32.partialorder %v12714_v28, 1.0  ;;  %v2547_v48 = vsel %vm12267_vm2, %v12715_v38, 0.0  ;;  %v610_v61 = vsel %vm12712_vm10, %v8805_v21, %v8919_v20 }
 0x239   :  { %v2555_v16 = vsel %vm12288_vm6, %v12716_v42, 0.0  ;;  %v2611_v27 = vadd.f32 %v12717_v35, %v2547_v48  ;;  %v609_v47 = vsel %vm12718_vm11, %v571_v4, %v8921_v2  ;;  %v2506_v8 = vpack.c.bf16 %v2490_v59, %v2482_v43 }
 0x23a   :  { %v8945_v55 = vmul.f32 0.5, %v651_v3  ;;  %v2619_v62 = vadd.f32 %v12719_v18, %v2555_v16  ;;  %v660_v38 = vsub.f32 %v509_v0, %v610_v61  ;;  %vm2159_vm2 = vcmp.ge.f32.partialorder %v8843_v53, 8.0 }
 0x23b   :  { %v8950_v42 = vmul.f32 %v2254_v57, %v8632_v54  ;;  %v8954_v48 = vmul.f32 %v8839_v40, %v8632_v54  ;;  %v652_v21 = vsub.f32 %v508_v12, %v609_v47  ;;  %v2255_v35 = vsub.f32 1.0, %v8878_v10  ;;  %4074 = vmatmul.mubr.bf16.gmra.mrb[4].mxu1 %v2506_v8 }
 0x23c   :  { %v2087_v20 = vfloor.f32 %v2055_v15  ;;  %v8958_v43 = vand.u32 2147483647, %v8945_v55  ;;  %v2643_v4 = vpack.c.bf16 %v2619_v62, %v2611_v27  ;;  %5682 = vrsqrt.f32 %v8906_v56 }
 0x23d   :  { %12720 = vst [vmem:[#allocation75_spill] sm:$0xff] %v8950_v42  ;;  %12721 = vst [vmem:[#allocation38_spill] sm:$0xff] %v8954_v48  ;;  %v747_v16 = vmul.f32 %v8945_v55, %v8945_v55  ;;  %v8963_v57 = vmul.f32 0.5, %v660_v38  ;;  %v8965_v0 = vmul.f32 0.5, %v652_v21  ;;  %v8968_v54 = vsel %vm2159_vm2, %v4984_v17, %v8843_v53 }
 0x23e   :  { %12722 = vst [vmem:[#allocation34_spill] sm:$0xff] %v8968_v54  ;;  %v2118_v40 = vsub.f32 %v2054_v7, %v8903_v24  ;;  %v4975_v12 = vadd.f32 -8.0, %v8903_v24  ;;  %v1236_v3 = vmax.f32 %v8837_v50, %v8958_v43  ;;  %4081 = vmatprep.mubr.bf16.mxu1 %v2643_v4  ;;  %v8976_v59 = vmul.f32 %v8878_v10, %v8658_v30  ;;  %v5566_v54 = vld [vmem:[%s12022_s2 + $0x1d8] sm:$0xff]  }
 0x23f   :  { %vm2150_vm11 = vcmp.ge.f32.partialorder %v8903_v24, 8.0  ;;  %v1212_v38 = vmin.f32 %v8741_v60, %v8872_v41  ;;  %v8982_v17 = vand.u32 2147483647, %v8963_v57  ;;  %v5681_v53 = vpop.eup %5680  ;;  %v8985_v7 = vmul.f32 %v2255_v35, %v8658_v30 }
 0x240   :  { %12723 = vst [vmem:[#allocation18_spill] sm:$0xff] %v8976_v59  ;;  %vm2151_vm2 = vcmp.ge.f32.partialorder %v2087_v20, 8.0  ;;  %v4976_v27 = vadd.f32 -8.0, %v2087_v20  ;;  %v1268_v61 = vadd.f32 1e-12, %v1236_v3  ;;  %v779_v10 = vadd.f32 %v747_v16, %v8834_v19 }
 0x241   :  { %12724 = vst [vmem:[#allocation46_spill] sm:$0xff] %v8985_v7  ;;  %v8987_v47 = vmul.f32 %v5681_v53, %v1212_v38  ;;  %v1245_v8 = vmax.f32 %v8850_v22, %v8982_v17  ;;  %v8993_v18 = vand.u32 2147483647, %v8965_v0  ;;  %v8995_v62 = vsub.f32 %v2055_v15, %v2087_v20 }
 0x242   :  { %v8998_v21 = vsel %vm2150_vm11, %v4975_v12, %v8903_v24  ;;  %v2246_v30 = vsub.f32 1.0, %v2118_v40  ;;  %v9001_v35 = vmul.f32 %v2118_v40, %v8730_v23  ;;  %5684 = vrcp.f32 %v1268_v61 }
 0x243   :  { %12725 = vst [vmem:[#allocation77_spill] sm:$0xff] %v8998_v21  ;;  %v9005_v4 = vmul.f32 %v8987_v47, %v8987_v47  ;;  %v756_v19 = vmul.f32 %v8963_v57, %v8963_v57  ;;  %vm12276_vm10 = vcmp.eq.f32.partialorder %v12627_v44, 3.0  ;;  %v9010_v16 = vsel %vm2151_vm2, %v4976_v27, %v2087_v20 }
 0x244   :  { %12726 = vst [vmem:[#allocation69_spill] sm:$0xff] %v9001_v35  ;;  %12727 = vst [vmem:[#allocation54_spill] sm:$0xff] %v9010_v16  ;;  %v1277_v15 = vadd.f32 1e-12, %v1245_v8  ;;  %vm12275_vm11 = vcmp.eq.f32.partialorder %v12628_v31, 3.0  ;;  %v2832_v24 = vsel %vm12276_vm10, %v12629_v52, 0.0  ;;  %v748_v3 = vmul.f32 %v8965_v0, %v8965_v0 }
 0x245   :  { %v1404_v40 = vmul.f32 -0.0117212, %v9005_v4  ;;  %v9017_v12 = vadd.f32 1e-10, %v779_v10  ;;  %v1237_v38 = vmax.f32 %v8861_v63, %v8993_v18  ;;  %v9026_v53 = vmul.f32 %v8995_v62, %v8733_v5  ;;  %v5564_v35 = vld [vmem:[%s12022_s2 + $0x158] sm:$0xff]  }
 0x246   :  { %v2840_v27 = vsel %vm12275_vm11, %v12630_v14, 0.0  ;;  %v2864_v61 = vsel %vm2656_vm12, %v12661_v37, 0.0  ;;  %v5683_v10 = vpop.eup %5682  ;;  %v788_v48 = vadd.f32 %v756_v19, %v8847_v58  ;;  %5686 = vrcp.f32 %v1277_v15 }
 0x247   :  { %12728 = vst [vmem:[#allocation92_spill] sm:$0xff] %v9026_v53  ;;  %v1436_v8 = vadd.f32 0.05265332, %v1404_v40  ;;  %v1269_v42 = vadd.f32 1e-12, %v1237_v38  ;;  %v9036_v20 = vmul.f32 %v2246_v30, %v8730_v23  ;;  %vm1021_vm2 = vcmp.eq.f32.partialorder %v8906_v56, inf }
 0x248   :  { %v2896_v21 = vadd.f32 %v2864_v61, %v2832_v24  ;;  %5688 = vrsqrt.f32 %v9017_v12  ;;  %v780_v59 = vadd.f32 %v748_v3, %v8858_v9  ;;  %v2872_v58 = vsel %vm2664_vm3, %v12662_v32, 0.0 }
 0x249   :  { %12729 = vst [vmem:[#allocation93_spill] sm:$0xff] %v9036_v20  ;;  %v1468_v7 = vmul.f32 %v1436_v8, %v9005_v4  ;;  %v1020_v19 = vmul.f32 %v5683_v10, %v8906_v56  ;;  %vm1023_vm12 = vcmp.eq.f32.partialorder %v8906_v56, 0.0  ;;  %v1204_v23 = vmin.f32 %v8837_v50, %v8958_v43  ;;  %v12730_v8 = vld [vmem:[#allocation66_spill] sm:$0xff] }
 0x24a   :  { %5690 = vrcp.f32 %v1269_v42  ;;  %v2904_v30 = vadd.f32 %v2872_v58, %v2840_v27  ;;  %v9050_v24 = vadd.f32 1e-10, %v788_v48  ;;  %vm12287_vm11 = vcmp.eq.f32.partialorder %v12665_v29, 3.0  ;;  %v12731_v58 = vld [vmem:[#allocation62_spill] sm:$0xff] }
 0x24b   :  { %v1500_v15 = vadd.f32 -0.11643287, %v1468_v7  ;;  %vm12277_vm10 = vcmp.eq.f32.partialorder %v12666_v1, 3.0  ;;  %v2849_v40 = vsel %vm12287_vm11, %v12668_v49, 0.0  ;;  %v2881_v42 = vsel %vm2673_vm15, %v12669_v33, 0.0 }
 0x24c   :  { %v2928_v9 = vpack.c.bf16 %v2904_v30, %v2896_v21  ;;  %v2857_v3 = vsel %vm12277_vm10, %v12670_v25, 0.0  ;;  %v5685_v7 = vpop.eup %5684  ;;  %v9064_v38 = vadd.f32 1e-10, %v780_v59  ;;  %v2889_v21 = vsel %vm2681_vm8, %v12671_v51, 0.0  ;;  %v5560_v30 = vld [vmem:[%s12022_s2 + $0x150] sm:$0xff]   ;;  %v12736_v51 = vld [vmem:[#allocation64_spill] sm:$0xff] }
 0x24d   :  { %v1532_v48 = vmul.f32 %v1500_v15, %v9005_v4  ;;  %v2913_v27 = vadd.f32 %v2881_v42, %v2849_v40  ;;  %v9069_v61 = vmul.f32 %v5685_v7, %v1204_v23  ;;  %v2921_v10 = vadd.f32 %v2889_v21, %v2857_v3  ;;  %v5561_v59 = vld [vmem:[%s12022_s2 + $0x110] sm:$0xff]   ;;  %v12732_v40 = vld [vmem:[#allocation68_spill] sm:$0xff]  ;;  %v12733_v42 = vld [vmem:[#allocation65_spill] sm:$0xff]  ;;  %5293 = vmatprep.subr.bf16.mxu0 %v5560_v30 }
 0x24e   :  { %3953 = vmatmul.mubr.bf16.gmra.mrb[24].mxu0 %v2928_v9  ;;  %vm12286_vm3 = vcmp.eq.f32.partialorder %v12730_v8, 1.0  ;;  %vm12285_vm10 = vcmp.eq.f32.partialorder %v12731_v58, 1.0  ;;  %v5562_v15 = vld [vmem:[%s12022_s2 + $0x1d0] sm:$0xff]   ;;  %v1213_v9 = vmin.f32 %v8850_v22, %v8982_v17  ;;  %5692 = vrsqrt.f32 %v9050_v24 }
 0x24f   :  { %v1564_v23 = vadd.f32 0.19354346, %v1532_v48  ;;  %v2546_v3 = vsel %vm12286_vm3, %v12732_v40, 0.0  ;;  %v2554_v7 = vsel %vm12285_vm10, %v12733_v42, 0.0  ;;  %v5563_v21 = vld [vmem:[%s12022_s2 + $0x190] sm:$0xff]   ;;  %v1022_v48 = vsel %vm1021_vm2, %v8906_v56, %v1020_v19  ;;  %5405 = vmatprep.subr.bf16.mxu1 %v5562_v15  ;;  %5294 = vmatpush3.bf16.msra.mxu0 %v5561_v59 }
 0x250   :  { %v9101_v20 = vmul.f32 %v9069_v61, %v9069_v61  ;;  %v2937_v53 = vpack.c.bf16 %v2921_v10, %v2913_v27  ;;  %v5687_v16 = vpop.eup %5686  ;;  %5694 = vrsqrt.f32 %v9064_v38  ;;  %v12734_v40 = vld [vmem:[#allocation67_spill] sm:$0xff]  ;;  %vm12735_vm15 = vcmp.eq.f32.partialorder %v12730_v8, 0.0  ;;  %5406 = vmatpush3.bf16.msra.mxu1 %v5563_v21  ;;  %v5565_v27 = vld [vmem:[%s12022_s2 + $0x118] sm:$0xff]   ;;  %5295 = vmatprep.subr.bf16.mxu0 %v5564_v35  ;;  %v9135_v35 = vpop.permute.xlu1 %239 }
 0x251   :  { %v1596_v42 = vmul.f32 %v1564_v23, %v9005_v4  ;;  %v2578_v19 = vsel %vm12735_vm15, %v12734_v40, 0.0  ;;  %vm12737_vm8 = vcmp.eq.f32.partialorder %v12731_v58, 0.0  ;;  %v9119_v30 = vmul.f32 %v5687_v16, %v1213_v9  ;;  %v5567_v40 = vld [vmem:[%s12022_s2 + $0x198] sm:$0xff]   ;;  %5407 = vmatprep.subr.bf16.mxu1 %v5566_v54  ;;  %v12741_v54 = vld [vmem:[#allocation35_spill] sm:$0xff] }
 0x252   :  { %v2586_v25 = vsel %vm12737_vm8, %v12736_v51, 0.0  ;;  %v1396_v10 = vmul.f32 -0.0117212, %v9101_v20  ;;  %3960 = vmatprep.mubr.bf16.mxu0 %v2937_v53  ;;  %v2610_v15 = vadd.f32 %v2578_v19, %v2546_v3  ;;  %v5689_v58 = vpop.eup %5688  ;;  %v12738_v59 = vsub.f32 1.0, %v8995_v62 }
 0x253   :  { %v2618_v23 = vadd.f32 %v2586_v25, %v2554_v7  ;;  %v12740_v51 = vand.u32 2147483648, %v8906_v56  ;;  %v1628_v9 = vadd.f32 -0.33262348, %v1596_v42  ;;  %v1205_v25 = vmin.f32 %v8861_v63, %v8993_v18  ;;  %5296 = vmatpush3.bf16.msra.mxu0 %v5565_v27 }
 0x254   :  { %v9127_v21 = vmul.f32 %v12738_v59, %v8733_v5  ;;  %v5691_v53 = vpop.eup %5690  ;;  %vm1756_vm2 = vcmp.gt.f32.partialorder %v8872_v41, %v8741_v60  ;;  %vm965_vm15 = vcmp.eq.f32.partialorder %v9017_v12, inf  ;;  %v1428_v5 = vadd.f32 0.05265332, %v1396_v10  ;;  %5408 = vmatpush3.bf16.msra.mxu1 %v5567_v40 }
 0x255   :  { %v1025_v16 = vsel %vm1023_vm12, %v12740_v51, %v1022_v48  ;;  %v9142_v62 = vmul.f32 %v9119_v30, %v9119_v30  ;;  %v1660_v51 = vmul.f32 %v1628_v9, %v9005_v4  ;;  %v968_v56 = vand.u32 2147483648, %v9017_v12 }
 0x256   :  { %12739 = vst [vmem:[#allocation94_spill] sm:$0xff] %v9127_v21  ;;  %v9146_v3 = vmul.f32 %v5691_v53, %v1205_v25  ;;  %v2642_v42 = vpack.c.bf16 %v2618_v23, %v2610_v15  ;;  %v9149_v7 = vmul.f32 %v12741_v54, %v1025_v16  ;;  %vm967_vm12 = vcmp.eq.f32.partialorder %v9017_v12, 0.0  ;;  %v331_v53 = vpop.permute.xlu1 %330 }
 0x257   :  { %v1460_v48 = vmul.f32 %v1428_v5, %v9101_v20  ;;  %v1405_v10 = vmul.f32 -0.0117212, %v9142_v62  ;;  %vm1852_vm8 = vcmp.lt.f32.partialorder %v8693_v6, 0.0  ;;  %v1692_v4 = vadd.f32 0.99997723, %v1660_v51  ;;  %v12742_v51 = vld [vmem:[#allocation55_spill] sm:$0xff] }
 0x258   :  { %v964_v59 = vmul.f32 %v5689_v58, %v9017_v12  ;;  %v9159_v27 = vmul.f32 %v9146_v3, %v9146_v3  ;;  %4082 = vmatmul.mubr.bf16.gmra.mrb[8].mxu1 %v2642_v42  ;;  %vm2531_vm10 = vcmp.eq.f32.partialorder %v12681_v45, 1.0  ;;  %vm1028_vm3 = vcmp.eq.f32.partialorder %v9050_v24, inf  ;;  %v5693_v5 = vpop.eup %5692 }
 0x259   :  { %v1492_v15 = vadd.f32 -0.11643287, %v1460_v48  ;;  %v1437_v23 = vadd.f32 0.05265332, %v1405_v10  ;;  %vm12291_vm11 = vcmp.eq.f32.partialorder %v12682_v36, 1.0  ;;  %v2563_v40 = vsel %vm2531_vm10, %v12683_v11, 0.0 }
 0x25a   :  { %v1724_v16 = vmul.f32 %v1692_v4, %v8987_v47  ;;  %vm972_vm6 = vcmp.eq.f32.partialorder %v9064_v38, inf  ;;  %v1397_v58 = vmul.f32 -0.0117212, %v9159_v27  ;;  %v2571_v9 = vsel %vm12291_vm11, %v12684_v39, 0.0  ;;  %v12743_v48 = vld [vmem:[#allocation85_spill] sm:$0xff]  ;;  %v5695_v19 = vpop.eup %5694 }
 0x25b   :  { %v2595_v25 = vsel %vm2387_vm14, %v12685_v26, 0.0  ;;  %vm1948_vm7 = vcmp.lt.f32.partialorder %v12742_v51, 0.0  ;;  %v1524_v42 = vmul.f32 %v1492_v15, %v9101_v20  ;;  %v1469_v47 = vmul.f32 %v1437_v23, %v9142_v62  ;;  %v12744_v26 = vld [vmem:[#allocation52_spill] sm:$0xff]  ;;  %v5568_v15 = vld [vmem:[%s12022_s2 + $0x160] sm:$0xff]  }
 0x25c   :  { %v2603_v10 = vsel %vm2395_vm9, %v12743_v48, 0.0  ;;  %v2627_v4 = vadd.f32 %v2595_v25, %v2563_v40  ;;  %v1788_v21 = vsub.f32 1.5707964, %v1724_v16  ;;  %vm1030_vm11 = vcmp.eq.f32.partialorder %v9050_v24, 0.0  ;;  %v5569_v23 = vld [vmem:[%s12022_s2 + $0x120] sm:$0xff]   ;;  %v238_v48 = vpop.permute.xlu0 %237  ;;  %5297 = vmatprep.subr.bf16.mxu0 %v5568_v15 }
 0x25d   :  { %v1429_v39 = vadd.f32 0.05265332, %v1397_v58  ;;  %v247_v11 = vsel %vm243_vm1, %v12744_v26, %v9135_v35  ;;  %v2635_v45 = vadd.f32 %v2603_v10, %v2571_v9  ;;  %v966_v40 = vsel %vm965_vm15, %v9017_v12, %v964_v59  ;;  %v12745_v36 = vld [vmem:[#allocation61_spill] sm:$0xff]  ;;  %5298 = vmatpush3.bf16.msra.mxu0 %v5569_v23 }
 0x25e   :  { %v1556_v25 = vadd.f32 0.19354346, %v1524_v42  ;;  %v1501_v58 = vadd.f32 -0.11643287, %v1469_v47  ;;  %vm974_vm14 = vcmp.eq.f32.partialorder %v9064_v38, 0.0  ;;  %v348_v26 = vsel %vm340_vm0, %v12745_v36, %v331_v53  ;;  %v5570_v59 = vld [vmem:[%s12022_s2 + $0x1e0] sm:$0xff]  }
 0x25f   :  { %v1820_v9 = vsel %vm1756_vm2, %v1788_v21, %v1724_v16  ;;  %v1027_v10 = vmul.f32 %v5693_v5, %v9050_v24  ;;  %v1461_v8 = vmul.f32 %v1429_v39, %v9159_v27  ;;  %v2651_v49 = vpack.c.bf16 %v2635_v45, %v2627_v4  ;;  %5409 = vmatprep.subr.bf16.mxu1 %v5570_v59  ;;  %v12746_v4 = vld [vmem:[#allocation25_spill] sm:$0xff] }
 0x260   :  { %v1884_v42 = vsub.f32 3.1415927, %v1820_v9  ;;  %v1588_v47 = vmul.f32 %v1556_v25, %v9101_v20  ;;  %v1533_v33 = vmul.f32 %v1501_v58, %v9142_v62  ;;  %v971_v36 = vmul.f32 %v5695_v19, %v9064_v38  ;;  %v329_v23 = vpop.permute.xlu0 %328 }
 0x261   :  { %v969_v60 = vsel %vm967_vm12, %v968_v56, %v966_v40  ;;  %v975_v41 = vand.u32 2147483648, %v9064_v38  ;;  %v1493_v39 = vadd.f32 -0.11643287, %v1461_v8  ;;  %4089 = vmatprep.mubr.bf16.mxu1 %v2651_v49  ;;  %v403_v45 = vsub.f32 %v247_v11, %v348_v26  ;;  %v12747_v49 = vld [vmem:[#allocation23_spill] sm:$0xff]  ;;  %v5571_v40 = vld [vmem:[%s12022_s2 + $0x1a0] sm:$0xff]   ;;  %v12749_v26 = vld [vmem:[#allocation70_spill] sm:$0xff] }
 0x262   :  { %v1916_v21 = vsel %vm1852_vm8, %v1884_v42, %v1820_v9  ;;  %v1620_v16 = vadd.f32 -0.33262348, %v1588_v47  ;;  %v1565_v5 = vadd.f32 0.19354346, %v1533_v33  ;;  %v344_v15 = vsel %vm340_vm0, %v331_v53, %v12746_v4  ;;  %5410 = vmatpush3.bf16.msra.mxu1 %v5571_v40 }
 0x263   :  { %v1980_v19 = vsub.f32 0.0, %v1916_v21  ;;  %vm1748_vm9 = vcmp.gt.f32.partialorder %v8958_v43, %v8837_v50  ;;  %v1029_v12 = vsel %vm1028_vm3, %v9050_v24, %v1027_v10  ;;  %v1525_v11 = vmul.f32 %v1493_v39, %v9159_v27  ;;  %v12752_v39 = vld [vmem:[#allocation26_spill] sm:$0xff] }
 0x264   :  { %v275_v6 = vsel %vm243_vm1, %v9135_v35, %v12747_v49  ;;  %v9230_v33 = vmul.f32 %v12741_v54, %v969_v60  ;;  %v1652_v8 = vmul.f32 %v1620_v16, %v9101_v20  ;;  %v1597_v56 = vmul.f32 %v1565_v5, %v9142_v62  ;;  %v12754_v5 = vld [vmem:[#allocation83_spill] sm:$0xff] }
 0x265   :  { %v973_v53 = vsel %vm972_vm6, %v9064_v38, %v971_v36  ;;  %v2012_v25 = vsel %vm1948_vm7, %v1980_v19, %v1916_v21  ;;  %v1557_v35 = vadd.f32 0.19354346, %v1525_v11  ;;  %v404_v58 = vsub.f32 %v275_v6, %v344_v15  ;;  %v12751_v36 = vld [vmem:[#allocation91_spill] sm:$0xff]  ;;  %v12753_v38 = vld [vmem:[#allocation56_spill] sm:$0xff] }
 0x266   :  { %v9242_v54 = vmul.f32 0.5, %v403_v45  ;;  %vm1844_vm3 = vcmp.lt.f32.partialorder %v12749_v26, 0.0  ;;  %v2044_v20 = vadd.f32 6.2831855, %v2012_v25  ;;  %v1684_v9 = vadd.f32 0.99997723, %v1652_v8 }
 0x267   :  { %v12750_v10 = vand.u32 2147483648, %v9050_v24  ;;  %v1629_v42 = vadd.f32 -0.33262348, %v1597_v56  ;;  %v976_v47 = vsel %vm974_vm14, %v975_v41, %v973_v53  ;;  %v1589_v51 = vmul.f32 %v1557_v35, %v9159_v27  ;;  %v12755_v19 = vld [vmem:[#allocation36_spill] sm:$0xff]  ;;  %v12757_v8 = vld [vmem:[#allocation51_spill] sm:$0xff]  ;;  %v5574_v26 = vld [vmem:[%s12022_s2 + $0x1e8] sm:$0xff]  }
 0x268   :  { %12748 = vst [vmem:[#allocation35_spill] sm:$0xff] %v9242_v54  ;;  %v246_v60 = vsel %vm243_vm1, %v12751_v36, %v238_v48  ;;  %v343_v45 = vsel %vm340_vm0, %v329_v23, %v12752_v39  ;;  %v2076_v21 = vmul.f32 1.2732395, %v2044_v20  ;;  %v1716_v16 = vmul.f32 %v1684_v9, %v9069_v61  ;;  %v12759_v35 = vld [vmem:[#allocation15_spill] sm:$0xff]  ;;  %v12761_v9 = vld [vmem:[#allocation30_spill] sm:$0xff]  ;;  %5411 = vmatprep.subr.bf16.mxu1 %v5574_v26 }
 0x269   :  { %v1032_v59 = vsel %vm1030_vm11, %v12750_v10, %v1029_v12  ;;  %v1661_v24 = vmul.f32 %v1629_v42, %v9142_v62  ;;  %vm1757_vm7 = vcmp.gt.f32.partialorder %v8982_v17, %v8850_v22  ;;  %v347_v41 = vsel %vm340_vm0, %v12753_v38, %v329_v23  ;;  %v12762_v42 = vld [vmem:[#allocation29_spill] sm:$0xff]  ;;  %v12763_v36 = vld [vmem:[#allocation22_spill] sm:$0xff] }
 0x26a   :  { %vm1940_vm6 = vcmp.lt.f32.partialorder %v8945_v55, 0.0  ;;  %v9267_v4 = vmul.f32 %v12754_v5, %v1032_v59  ;;  %v1621_v15 = vadd.f32 -0.33262348, %v1589_v51  ;;  %v274_v12 = vsel %vm243_vm1, %v238_v48, %v12755_v19  ;;  %v12758_v48 = vld [vmem:[#allocation33_spill] sm:$0xff]  ;;  %v5573_v39 = vld [vmem:[%s12022_s2 + $0x128] sm:$0xff]  }
 0x26b   :  { %v9272_v61 = vmul.f32 0.5, %v404_v58  ;;  %v1780_v62 = vsub.f32 1.5707964, %v1716_v16  ;;  %v1693_v11 = vadd.f32 0.99997723, %v1661_v24  ;;  %v9275_v49 = vmul.f32 %v12754_v5, %v976_v47  ;;  %v12760_v58 = vld [vmem:[#allocation20_spill] sm:$0xff] }
 0x26c   :  { %vm1749_vm0 = vcmp.gt.f32.partialorder %v8993_v18, %v8861_v63  ;;  %v9280_v6 = vand.u32 2147483647, %v9242_v54  ;;  %vm1853_vm11 = vcmp.lt.f32.partialorder %v12757_v8, 0.0  ;;  %v1653_v56 = vmul.f32 %v1621_v15, %v9159_v27  ;;  %v12764_v38 = vld [vmem:[#allocation21_spill] sm:$0xff]  ;;  %v12769_v22 = vld [vmem:[#allocation6_spill] sm:$0xff] }
 0x26d   :  { %12756 = vst [vmem:[#allocation55_spill] sm:$0xff] %v9272_v61  ;;  %v395_v53 = vsub.f32 %v246_v60, %v347_v41  ;;  %v396_v23 = vsub.f32 %v274_v12, %v343_v45  ;;  %vm2816_vm1 = vcmp.eq.f32.partialorder %v12758_v48, 3.0  ;;  %v9285_v40 = vfloor.f32 %v2076_v21  ;;  %v5572_v60 = vld [vmem:[%s12022_s2 + $0x168] sm:$0xff]  }
 0x26e   :  { %v1812_v25 = vsel %vm1748_vm9, %v1780_v62, %v1716_v16  ;;  %vm2824_vm2 = vcmp.eq.f32.partialorder %v12759_v35, 3.0  ;;  %v2848_v20 = vsel %vm2816_vm1, %v12760_v58, 0.0  ;;  %vm1845_vm15 = vcmp.lt.f32.partialorder %v12761_v9, 0.0  ;;  %5299 = vmatprep.subr.bf16.mxu0 %v5572_v60  ;;  %v12771_v60 = vld [vmem:[#allocation44_spill] sm:$0xff]  ;;  %v5575_v18 = vld [vmem:[%s12022_s2 + $0x1a8] sm:$0xff]  }
 0x26f   :  { %v1876_v10 = vsub.f32 3.1415927, %v1812_v25  ;;  %v1725_v27 = vmul.f32 %v1693_v11, %v9119_v30  ;;  %v1685_v59 = vadd.f32 0.99997723, %v1653_v56  ;;  %v2856_v47 = vsel %vm2824_vm2, %v12762_v42, 0.0  ;;  %5300 = vmatpush3.bf16.msra.mxu0 %v5573_v39  ;;  %5412 = vmatpush3.bf16.msra.mxu1 %v5575_v18 }
 0x270   :  { %vm1949_vm12 = vcmp.lt.f32.partialorder %v8963_v57, 0.0  ;;  %v9302_v50 = vmul.f32 %v9242_v54, %v9242_v54  ;;  %v9306_v43 = vmul.f32 %v9272_v61, %v9272_v61  ;;  %v9309_v51 = vand.u32 2147483647, %v9272_v61 }
 0x271   :  { %v2880_v30 = vsel %vm2672_vm4, %v12763_v36, 0.0  ;;  %v1908_v45 = vsel %vm1844_vm3, %v1876_v10, %v1812_v25  ;;  %v1789_v16 = vsub.f32 1.5707964, %v1725_v27  ;;  %v1717_v24 = vmul.f32 %v1685_v59, %v9146_v3  ;;  %v12767_v10 = vld [vmem:[#allocation43_spill] sm:$0xff] }
 0x272   :  { %v2888_v41 = vsel %vm2680_vm13, %v12764_v38, 0.0  ;;  %v1972_v5 = vsub.f32 0.0, %v1908_v45  ;;  %vm1941_vm4 = vcmp.lt.f32.partialorder %v8965_v0, 0.0  ;;  %v9327_v15 = vmul.f32 0.5, %v395_v53 }
 0x273   :  { %v2912_v19 = vadd.f32 %v2880_v30, %v2848_v20  ;;  %v2920_v12 = vadd.f32 %v2888_v41, %v2856_v47  ;;  %v9333_v62 = vsub.f32 %v2076_v21, %v9285_v40  ;;  %v1821_v3 = vsel %vm1757_vm7, %v1789_v16, %v1725_v27  ;;  %v12768_v47 = vld [vmem:[#allocation45_spill] sm:$0xff] }
 0x274   :  { %12765 = vst [vmem:[#allocation52_spill] sm:$0xff] %v9327_v15  ;;  %v1781_v11 = vsub.f32 1.5707964, %v1717_v24  ;;  %v9338_v56 = vmul.f32 0.5, %v396_v23  ;;  %v2004_v53 = vsel %vm1940_vm6, %v1972_v5, %v1908_v45  ;;  %v1885_v25 = vsub.f32 3.1415927, %v1821_v3 }
 0x275   :  { %v2936_v20 = vpack.c.bf16 %v2920_v12, %v2912_v19  ;;  %vm2945_vm13 = vcmp.eq.f32.partialorder %v12767_v10, 4.0  ;;  %v2036_v59 = vadd.f32 6.2831855, %v2004_v53  ;;  %vm2953_vm8 = vcmp.eq.f32.partialorder %v12768_v47, 4.0  ;;  %v12770_v27 = vld [vmem:[#allocation5_spill] sm:$0xff]  ;;  %v12774_v12 = vld [vmem:[#allocation27_spill] sm:$0xff] }
 0x276   :  { %12766 = vst [vmem:[#allocation61_spill] sm:$0xff] %v9338_v56  ;;  %v1813_v21 = vsel %vm1749_vm0, %v1781_v11, %v1717_v24  ;;  %v2977_v17 = vsel %vm2945_vm13, %v12769_v22, 0.0  ;;  %v1917_v55 = vsel %vm1853_vm11, %v1885_v25, %v1821_v3  ;;  %v2985_v30 = vsel %vm2953_vm8, %v12770_v27, 0.0  ;;  %v12772_v16 = vld [vmem:[#allocation17_spill] sm:$0xff]  ;;  %v12775_v11 = vld [vmem:[#allocation82_spill] sm:$0xff] }
 0x277   :  { %v1877_v23 = vsub.f32 3.1415927, %v1813_v21  ;;  %3961 = vmatmul.mubr.bf16.gmra.mrb[28].mxu0 %v2936_v20  ;;  %v3009_v63 = vsel %vm2801_vm5, %v12771_v60, 0.0  ;;  %v2068_v39 = vmul.f32 1.2732395, %v2036_v59  ;;  %v1981_v45 = vsub.f32 0.0, %v1917_v55 }
 0x278   :  { %vm12773_vm14 = vcmp.eq.f32.partialorder %v12768_v47, 3.0  ;;  %v3041_v24 = vadd.f32 %v3009_v63, %v2977_v17  ;;  %v4997_v41 = vadd.f32 -8.0, %v9285_v40  ;;  %vm12328_vm9 = vcmp.eq.f32.partialorder %v12774_v12, 1.0  ;;  %v12776_v17 = vld [vmem:[#allocation41_spill] sm:$0xff] }
 0x279   :  { %v3017_v8 = vsel %vm12773_vm14, %v12772_v16, 0.0  ;;  %v1909_v5 = vsel %vm1845_vm15, %v1877_v23, %v1813_v21  ;;  %v2013_v26 = vsel %vm1949_vm12, %v1981_v45, %v1917_v55  ;;  %vm12317_vm5 = vcmp.eq.f32.partialorder %v12705_v34, 1.0  ;;  %v5576_v21 = vld [vmem:[%s12022_s2 + $0x170] sm:$0xff]   ;;  %v500_v23 = vpop.permute.xlu1 %499 }
 0x27a   :  { %v3049_v19 = vadd.f32 %v3017_v8, %v2985_v30  ;;  %v1973_v3 = vsub.f32 0.0, %v1909_v5  ;;  %v2562_v53 = vsel %vm12328_vm9, %v12775_v11, 0.0  ;;  %v2100_v25 = vfloor.f32 %v2068_v39  ;;  %v12777_v30 = vld [vmem:[#allocation81_spill] sm:$0xff]  ;;  %v12779_v8 = vld [vmem:[#allocation40_spill] sm:$0xff]  ;;  %5301 = vmatprep.subr.bf16.mxu0 %v5576_v21 }
 0x27b   :  { %v2045_v20 = vadd.f32 6.2831855, %v2013_v26  ;;  %v2570_v9 = vsel %vm12317_vm5, %v12776_v17, 0.0  ;;  %vm2172_vm3 = vcmp.ge.f32.partialorder %v9285_v40, 8.0  ;;  %v2268_v57 = vsub.f32 1.0, %v9333_v62 }
 0x27c   :  { %v3073_v59 = vpack.c.bf16 %v3049_v19, %v3041_v24  ;;  %v2005_v55 = vsel %vm1941_vm4, %v1973_v3, %v1909_v5  ;;  %vm12778_vm7 = vcmp.eq.f32.partialorder %v12774_v12, 0.0  ;;  %vm12780_vm6 = vcmp.eq.f32.partialorder %v12705_v34, 0.0 }
 0x27d   :  { %v2594_v63 = vsel %vm12778_vm7, %v12777_v30, 0.0  ;;  %v2077_v18 = vmul.f32 1.2732395, %v2045_v20  ;;  %v2037_v45 = vadd.f32 6.2831855, %v2005_v55  ;;  %v2602_v24 = vsel %vm12780_vm6, %v12779_v8, 0.0  ;;  %v498_v20 = vpop.permute.xlu0 %497 }
 0x27e   :  { %3968 = vmatprep.mubr.bf16.mxu0 %v3073_v59  ;;  %v2626_v19 = vadd.f32 %v2594_v63, %v2562_v53  ;;  %v9392_v26 = vmul.f32 %v9327_v15, %v9327_v15  ;;  %v9396_v0 = vmul.f32 %v9338_v56, %v9338_v56  ;;  %v9399_v5 = vand.u32 2147483647, %v9327_v15  ;;  %v5577_v63 = vld [vmem:[%s12022_s2 + $0x130] sm:$0xff]  }
 0x27f   :  { %v2634_v3 = vadd.f32 %v2602_v24, %v2570_v9  ;;  %v9404_v59 = vsel %vm2172_vm3, %v4997_v41, %v9285_v40  ;;  %v2132_v53 = vsub.f32 %v2068_v39, %v2100_v25  ;;  %v4989_v21 = vadd.f32 -8.0, %v2100_v25  ;;  %5302 = vmatpush3.bf16.msra.mxu0 %v5577_v63  ;;  %v12784_v39 = vld [vmem:[#allocation57_spill] sm:$0xff]  ;;  %v5578_v63 = vld [vmem:[%s12022_s2 + $0x178] sm:$0xff]  }
 0x280   :  { %12781 = vst [vmem:[#allocation25_spill] sm:$0xff] %v9404_v59  ;;  %v9407_v55 = vand.u32 2147483647, %v9338_v56  ;;  %v9414_v15 = vmul.f32 %v9333_v62, %v9149_v7  ;;  %vm2164_vm0 = vcmp.ge.f32.partialorder %v2100_v25, 8.0  ;;  %v2069_v9 = vmul.f32 1.2732395, %v2037_v45  ;;  %5303 = vmatprep.subr.bf16.mxu0 %v5578_v63 }
 0x281   :  { %v2650_v24 = vpack.c.bf16 %v2634_v3, %v2626_v19  ;;  %v9417_v8 = vmul.f32 %v2268_v57, %v9149_v7  ;;  %v2109_v40 = vfloor.f32 %v2077_v18  ;;  %vm12316_vm11 = vcmp.eq.f32.partialorder %v12713_v13, 2.0  ;;  %v12786_v59 = vld [vmem:[#allocation24_spill] sm:$0xff]  ;;  %v12788_v45 = vld [vmem:[#allocation71_spill] sm:$0xff]  ;;  %v12789_v57 = vld [vmem:[#allocation73_spill] sm:$0xff]  ;;  %v589_v3 = vpop.permute.xlu1 %588  ;;  %v587_v17 = vpop.permute.xlu0 %586 }
 0x282   :  { %12782 = vst [vmem:[#allocation23_spill] sm:$0xff] %v9414_v15  ;;  %vm12315_vm15 = vcmp.eq.f32.partialorder %v12714_v28, 2.0  ;;  %vm12785_vm12 = vcmp.lt.s32.totalorder %v6056_v46, 96  ;;  %v2691_v7 = vsel %vm12316_vm11, %v12788_v45, 0.0  ;;  %vm12792_vm14 = vcmp.eq.f32.partialorder %v12713_v13, 1.0  ;;  %v12793_v15 = vld [vmem:[#allocation74_spill] sm:$0xff] }
 0x283   :  { %12783 = vst [vmem:[#allocation70_spill] sm:$0xff] %v9417_v8  ;;  %v505_v41 = vsel %vm12785_vm12, %v12784_v39, %v500_v23  ;;  %vm12787_vm4 = vmmov %vm12785_vm12  ;;  %4090 = vmatmul.mubr.bf16.gmra.mrb[12].mxu1 %v2650_v24  ;;  %v2699_v19 = vsel %vm12315_vm15, %v12789_v57, 0.0  ;;  %v5579_v39 = vld [vmem:[%s12022_s2 + $0x138] sm:$0xff]   ;;  %vm12794_vm3 = vcmp.eq.f32.partialorder %v12714_v28, 1.0  ;;  %v9449_v57 = vmul.f32 %v2132_v53, %v9230_v33 }
 0x284   :  { %v533_v62 = vsel %vm12787_vm4, %v500_v23, %v12786_v59  ;;  %v9440_v23 = vsel %vm2164_vm0, %v4989_v21, %v2100_v25  ;;  %v2260_v59 = vsub.f32 1.0, %v2132_v53  ;;  %v12791_v24 = vld [vmem:[#allocation76_spill] sm:$0xff]  ;;  %v2731_v56 = vsel %vm12794_vm3, %v12793_v15, 0.0  ;;  %v12796_v21 = vld [vmem:[#allocation9_spill] sm:$0xff]  ;;  %vm12797_vm7 = vmmov %vm12787_vm4  ;;  %5304 = vmatpush3.bf16.msra.mxu0 %v5579_v39 }
 0x285   :  { %12790 = vst [vmem:[#allocation91_spill] sm:$0xff] %v9440_v23  ;;  %v2723_v8 = vsel %vm12792_vm14, %v12791_v24, 0.0  ;;  %12795 = vst [vmem:[#allocation26_spill] sm:$0xff] %v9449_v57  ;;  %v2101_v45 = vfloor.f32 %v2069_v9  ;;  %v2763_v30 = vadd.f32 %v2731_v56, %v2699_v19  ;;  %v2141_v54 = vsub.f32 %v2077_v18, %v2109_v40  ;;  %v12798_v13 = vld [vmem:[#allocation28_spill] sm:$0xff]  ;;  %v5580_v53 = vld [vmem:[%s12022_s2 + $0x1f0] sm:$0xff]  }
 0x286   :  { %v2755_v61 = vadd.f32 %v2723_v8, %v2691_v7  ;;  %v4998_v25 = vadd.f32 -8.0, %v2109_v40  ;;  %v504_v23 = vsel %vm12797_vm7, %v12796_v21, %v498_v20  ;;  %vm12799_vm6 = vcmp.lt.s32.totalorder %v6056_v46, 32  ;;  %v12800_v56 = vld [vmem:[#allocation11_spill] sm:$0xff]  ;;  %v12802_v19 = vld [vmem:[#allocation49_spill] sm:$0xff]  ;;  %5413 = vmatprep.subr.bf16.mxu1 %v5580_v53 }
 0x287   :  { %v602_v24 = vsel %vm12799_vm6, %v589_v3, %v12798_v13  ;;  %vm2173_vm0 = vcmp.ge.f32.partialorder %v2109_v40, 8.0  ;;  %vm12801_vm12 = vmmov %vm12799_vm6  ;;  %v532_v63 = vsel %vm12787_vm4, %v498_v20, %v12802_v19  ;;  %v12803_v57 = vld [vmem:[#allocation53_spill] sm:$0xff]  ;;  %vm2165_vm7 = vcmp.ge.f32.partialorder %v2101_v45, 8.0 }
 0x288   :  { %v2787_v8 = vpack.c.bf16 %v2763_v30, %v2755_v61  ;;  %v606_v18 = vsel %vm12801_vm12, %v12800_v56, %v589_v3  ;;  %v662_v7 = vsub.f32 %v533_v62, %v602_v24  ;;  %vm12804_vm14 = vmmov %vm12799_vm6  ;;  %v2133_v61 = vsub.f32 %v2069_v9, %v2101_v45 }
 0x289   :  { %v661_v21 = vsub.f32 %v505_v41, %v606_v18  ;;  %v601_v13 = vsel %vm12804_vm14, %v587_v17, %v12803_v57  ;;  %vm12805_vm3 = vmmov %vm12799_vm6  ;;  %v9475_v24 = vmul.f32 %v2260_v59, %v9230_v33  ;;  %v9477_v20 = vsel %vm2173_vm0, %v4998_v25, %v2109_v40  ;;  %v5581_v33 = vld [vmem:[%s12022_s2 + $0x1b0] sm:$0xff]  }
 0x28a   :  { %v605_v39 = vsel %vm12805_vm3, %v8921_v2, %v587_v17  ;;  %4097 = vmatprep.mubr.bf16.mxu1 %v2787_v8  ;;  %v9472_v30 = vmul.f32 0.5, %v662_v7  ;;  %v654_v62 = vsub.f32 %v532_v63, %v601_v13  ;;  %12807 = vst [vmem:[#allocation83_spill] sm:$0xff] %v9477_v20  ;;  %v2269_v41 = vsub.f32 1.0, %v2141_v54  ;;  %5414 = vmatpush3.bf16.msra.mxu1 %v5581_v33 }
 0x28b   :  { %v653_v3 = vsub.f32 %v504_v23, %v605_v39  ;;  %12806 = vst [vmem:[#allocation56_spill] sm:$0xff] %v9475_v24  ;;  %v9479_v56 = vmul.f32 0.5, %v661_v21  ;;  %v9482_v57 = vmul.f32 %v2141_v54, %v9267_v4  ;;  %v4990_v23 = vadd.f32 -8.0, %v2101_v45 }
 0x28c   :  { %v758_v46 = vmul.f32 %v9472_v30, %v9472_v30  ;;  %v9487_v2 = vand.u32 2147483647, %v9472_v30  ;;  %v9499_v54 = vmul.f32 0.5, %v654_v62  ;;  %v2261_v59 = vsub.f32 1.0, %v2133_v61 }
 0x28d   :  { %12808 = vst [vmem:[#allocation36_spill] sm:$0xff] %v9482_v57  ;;  %v9489_v17 = vmul.f32 0.5, %v653_v3  ;;  %v757_v9 = vmul.f32 %v9479_v56, %v9479_v56  ;;  %v9497_v40 = vand.u32 2147483647, %v9479_v56  ;;  %v9505_v8 = vmul.f32 %v2269_v41, %v9267_v4 }
 0x28e   :  { %v790_v25 = vadd.f32 %v758_v46, %v9306_v43  ;;  %v1247_v53 = vmax.f32 %v9309_v51, %v9487_v2  ;;  %vm12314_vm6 = vcmp.eq.f32.partialorder %v12627_v44, 4.0  ;;  %v750_v21 = vmul.f32 %v9499_v54, %v9499_v54 }
 0x28f   :  { %12809 = vst [vmem:[#allocation51_spill] sm:$0xff] %v9505_v8  ;;  %v789_v18 = vadd.f32 %v757_v9, %v9302_v50  ;;  %v1246_v7 = vmax.f32 %v9280_v6, %v9497_v40  ;;  %v749_v43 = vmul.f32 %v9489_v17, %v9489_v17  ;;  %v9518_v13 = vmul.f32 %v2133_v61, %v9275_v49 }
 0x290   :  { %v9511_v19 = vadd.f32 1e-10, %v790_v25  ;;  %v1279_v63 = vadd.f32 1e-12, %v1247_v53  ;;  %v9523_v39 = vand.u32 2147483647, %v9489_v17  ;;  %v9526_v3 = vsel %vm2165_vm7, %v4990_v23, %v2101_v45 }
 0x291   :  { %12810 = vst [vmem:[#allocation33_spill] sm:$0xff] %v9518_v13  ;;  %v9520_v4 = vadd.f32 1e-10, %v789_v18  ;;  %v1278_v50 = vadd.f32 1e-12, %v1246_v7  ;;  %12811 = vst [vmem:[#allocation15_spill] sm:$0xff] %v9526_v3  ;;  %v9529_v62 = vmul.f32 %v2261_v59, %v9275_v49  ;;  %v781_v49 = vadd.f32 %v749_v43, %v9392_v26 }
 0x292   :  { %5696 = vrsqrt.f32 %v9511_v19  ;;  %v2976_v41 = vsel %vm12314_vm6, %v12629_v52, 0.0  ;;  %vm12320_vm0 = vcmp.eq.f32.partialorder %v12628_v31, 4.0  ;;  %vm12813_vm12 = vcmp.eq.f32.partialorder %v12627_v44, 3.0  ;;  %v5583_v13 = vld [vmem:[%s12022_s2 + $0x1b8] sm:$0xff]   ;;  %v12825_v3 = vld [vmem:[#allocation66_spill] sm:$0xff] }
 0x293   :  { %12812 = vst [vmem:[#allocation30_spill] sm:$0xff] %v9529_v62  ;;  %5698 = vrsqrt.f32 %v9520_v4  ;;  %v3008_v45 = vsel %vm12813_vm12, %v12661_v37, 0.0  ;;  %v782_v46 = vadd.f32 %v750_v21, %v9396_v0  ;;  %v9545_v33 = vand.u32 2147483647, %v9499_v54  ;;  %v9558_v0 = vpop.f32.mrb[0].mxu0 }
 0x294   :  { %5700 = vrcp.f32 %v1278_v50  ;;  %v1214_v9 = vmin.f32 %v9280_v6, %v9497_v40  ;;  %v1238_v23 = vmax.f32 %v9399_v5, %v9523_v39  ;;  %v3040_v59 = vadd.f32 %v3008_v45, %v2976_v41  ;;  %12814 = vst [vmem:[#allocation22_spill] sm:$0xff] %v9558_v0 }
 0x295   :  { %5702 = vrcp.f32 %v1279_v63  ;;  %vm1042_vm4 = vcmp.eq.f32.partialorder %v9511_v19, inf  ;;  %v9552_v25 = vadd.f32 1e-10, %v781_v49  ;;  %v9554_v53 = vadd.f32 1e-10, %v782_v46  ;;  %v9563_v63 = vpop.f32.mrb[1].mxu0 }
 0x296   :  { %v1239_v26 = vmax.f32 %v9407_v55, %v9545_v33  ;;  %vm1035_vm14 = vcmp.eq.f32.partialorder %v9520_v4, inf  ;;  %vm1044_vm3 = vcmp.eq.f32.partialorder %v9511_v19, 0.0  ;;  %v1045_v18 = vand.u32 2147483648, %v9511_v19  ;;  %12815 = vst [vmem:[#allocation21_spill] sm:$0xff] %v9563_v63  ;;  %v9570_v50 = vpop.f32.mrb[2].mxu0  ;;  %v12819_v49 = vld [vmem:[#allocation37_spill] sm:$0xff] }
 0x297   :  { %v1270_v7 = vadd.f32 1e-12, %v1238_v23  ;;  %vm1037_vm7 = vcmp.eq.f32.partialorder %v9520_v4, 0.0  ;;  %v1038_v43 = vand.u32 2147483648, %v9520_v4  ;;  %5704 = vrsqrt.f32 %v9552_v25  ;;  %12816 = vst [vmem:[#allocation43_spill] sm:$0xff] %v9570_v50  ;;  %v9577_v46 = vpop.f32.mrb[3].mxu0 }
 0x298   :  { %5706 = vrsqrt.f32 %v9554_v53  ;;  %12817 = vst [vmem:[#allocation45_spill] sm:$0xff] %v9577_v46  ;;  %v5582_v23 = vld [vmem:[%s12022_s2 + $0x1f8] sm:$0xff]   ;;  %v1271_v61 = vadd.f32 1e-12, %v1239_v26  ;;  %v2984_v21 = vsel %vm12320_vm0, %v12630_v14, 0.0  ;;  %vm12818_vm12 = vcmp.eq.f32.partialorder %v12628_v31, 3.0 }
 0x299   :  { %5708 = vrcp.f32 %v1270_v7  ;;  %v3016_v41 = vsel %vm12818_vm12, %v12662_v32, 0.0  ;;  %vm12327_vm6 = vcmp.eq.f32.partialorder %v12665_v29, 4.0  ;;  %vm12325_vm15 = vcmp.eq.f32.partialorder %v12666_v1, 4.0  ;;  %5415 = vmatprep.subr.bf16.mxu1 %v5582_v23  ;;  %v12821_v7 = vld [vmem:[#allocation80_spill] sm:$0xff]  ;;  %v12822_v63 = vld [vmem:[#allocation31_spill] sm:$0xff]  ;;  %s5799_s2 = smov 64  }
 0x29a   :  { %v3048_v45 = vadd.f32 %v3016_v41, %v2984_v21  ;;  %vm12820_vm11 = vcmp.eq.f32.partialorder %v12665_v29, 3.0  ;;  %vm979_vm5 = vcmp.eq.f32.partialorder %v9552_v25, inf  ;;  %5710 = vrcp.f32 %v1271_v61  ;;  %v12823_v41 = vld [vmem:[#allocation47_spill] sm:$0xff]  ;;  %5416 = vmatpush3.bf16.msra.mxu1 %v5583_v13 }
 0x29b   :  { %v3025_v46 = vsel %vm12820_vm11, %v12819_v49, 0.0  ;;  %v2993_v50 = vsel %vm12327_vm6, %v12821_v7, 0.0  ;;  %v3001_v21 = vsel %vm12325_vm15, %v12822_v63, 0.0  ;;  %vm12824_vm12 = vcmp.eq.f32.partialorder %v12666_v1, 3.0  ;;  %v12832_v13 = vld [vmem:[#allocation19_spill] sm:$0xff] }
 0x29c   :  { %v5697_v26 = vpop.eup %5696  ;;  %v3033_v0 = vsel %vm12824_vm12, %v12823_v41, 0.0  ;;  %vm981_vm11 = vcmp.eq.f32.partialorder %v9552_v25, 0.0  ;;  %vm986_vm0 = vcmp.eq.f32.partialorder %v9554_v53, inf  ;;  %v3072_v61 = vpack.c.bf16 %v3048_v45, %v3040_v59  ;;  %v12826_v41 = vld [vmem:[#allocation62_spill] sm:$0xff] }
 0x29d   :  { %v5699_v24 = vpop.eup %5698  ;;  %v1041_v8 = vmul.f32 %v5697_v26, %v9511_v19  ;;  %v3057_v23 = vadd.f32 %v3025_v46, %v2993_v50  ;;  %v3065_v57 = vadd.f32 %v3033_v0, %v3001_v21  ;;  %vm988_vm15 = vcmp.eq.f32.partialorder %v9554_v53, 0.0  ;;  %v12827_v26 = vld [vmem:[#allocation67_spill] sm:$0xff] }
 0x29e   :  { %v5701_v62 = vpop.eup %5700  ;;  %v1034_v20 = vmul.f32 %v5699_v24, %v9520_v4  ;;  %vm2658_vm12 = vcmp.eq.f32.partialorder %v12825_v3, 2.0  ;;  %vm2666_vm6 = vcmp.eq.f32.partialorder %v12826_v41, 2.0  ;;  %vm12828_vm9 = vcmp.eq.f32.partialorder %v12825_v3, 1.0  ;;  %3969 = vmatmul.mubr.bf16.gmra.mrb[32].mxu0 %v3072_v61  ;;  %v12829_v24 = vld [vmem:[#allocation68_spill] sm:$0xff]  ;;  %v12842_v3 = vld [vmem:[#allocation86_spill] sm:$0xff] }
 0x29f   :  { %v2722_v49 = vsel %vm12828_vm9, %v12827_v26, 0.0  ;;  %v5703_v59 = vpop.eup %5702  ;;  %v1043_v0 = vsel %vm1042_vm4, %v9511_v19, %v1041_v8  ;;  %v9619_v50 = vmul.f32 %v5701_v62, %v1214_v9  ;;  %v3081_v45 = vpack.c.bf16 %v3065_v57, %v3057_v23  ;;  %v12831_v62 = vld [vmem:[#allocation65_spill] sm:$0xff]  ;;  %v12834_v19 = vld [vmem:[#allocation64_spill] sm:$0xff] }
 0x2a0   :  { %v2690_v46 = vsel %vm2658_vm12, %v12829_v24, 0.0  ;;  %v1036_v21 = vsel %vm1035_vm14, %v9520_v4, %v1034_v20  ;;  %v1046_v26 = vsel %vm1044_vm3, %v1045_v18, %v1043_v0  ;;  %v12830_v63 = vmin.f32 %v9309_v51, %v9487_v2  ;;  %v12836_v23 = vld [vmem:[#allocation8_spill] sm:$0xff] }
 0x2a1   :  { %v2698_v57 = vsel %vm2666_vm6, %v12831_v62, 0.0  ;;  %v1039_v9 = vsel %vm1037_vm7, %v1038_v43, %v1036_v21  ;;  %v9640_v61 = vmul.f32 %v12832_v13, %v1046_v26  ;;  %v9644_v20 = vmul.f32 %v9619_v50, %v9619_v50  ;;  %3976 = vmatprep.mubr.bf16.mxu0 %v3081_v45  ;;  %v12838_v45 = vld [vmem:[#allocation58_spill] sm:$0xff]  ;;  %v12839_v24 = vld [vmem:[#allocation84_spill] sm:$0xff] }
 0x2a2   :  { %v9632_v8 = vmul.f32 %v5703_v59, %v12830_v63  ;;  %vm12835_vm9 = vcmp.eq.f32.partialorder %v12826_v41, 1.0  ;;  %v5705_v63 = vpop.eup %5704  ;;  %v9650_v59 = vmul.f32 %v12836_v23, %v1039_v9  ;;  %v2754_v43 = vadd.f32 %v2722_v49, %v2690_v46 }
 0x2a3   :  { %12833 = vst [vmem:[#allocation6_spill] sm:$0xff] %v9640_v61  ;;  %v2730_v18 = vsel %vm12835_vm9, %v12834_v19, 0.0  ;;  %v5707_v0 = vpop.eup %5706  ;;  %v1406_v21 = vmul.f32 -0.0117212, %v9644_v20  ;;  %v978_v62 = vmul.f32 %v5705_v63, %v9552_v25  ;;  %vm2675_vm4 = vcmp.eq.f32.partialorder %v12838_v45, 2.0 }
 0x2a4   :  { %12837 = vst [vmem:[#allocation5_spill] sm:$0xff] %v9650_v59  ;;  %v9654_v4 = vmul.f32 %v9632_v8, %v9632_v8  ;;  %v2762_v26 = vadd.f32 %v2730_v18, %v2698_v57  ;;  %vm2683_vm14 = vcmp.eq.f32.partialorder %v12839_v24, 2.0  ;;  %v5709_v19 = vpop.eup %5708  ;;  %v985_v9 = vmul.f32 %v5707_v0, %v9554_v53  ;;  %v12840_v59 = vld [vmem:[#allocation59_spill] sm:$0xff] }
 0x2a5   :  { %v2707_v49 = vsel %vm2675_vm4, %v12840_v59, 0.0  ;;  %v1438_v46 = vadd.f32 0.05265332, %v1406_v21  ;;  %v980_v57 = vsel %vm979_vm5, %v9552_v25, %v978_v62  ;;  %v12841_v18 = vmin.f32 %v9399_v5, %v9523_v39  ;;  %v5711_v0 = vpop.eup %5710  ;;  %v12844_v59 = vld [vmem:[#allocation87_spill] sm:$0xff] }
 0x2a6   :  { %v1407_v41 = vmul.f32 -0.0117212, %v9654_v4  ;;  %v2786_v61 = vpack.c.bf16 %v2762_v26, %v2754_v43  ;;  %v2715_v7 = vsel %vm2683_vm14, %v12842_v3, 0.0  ;;  %v12843_v26 = vand.u32 2147483648, %v9552_v25 }
 0x2a7   :  { %v9671_v63 = vmul.f32 %v5709_v19, %v12841_v18  ;;  %v987_v62 = vsel %vm986_vm0, %v9554_v53, %v985_v9  ;;  %v2739_v19 = vsel %vm2531_vm10, %v12844_v59, 0.0  ;;  %v1470_v18 = vmul.f32 %v1438_v46, %v9644_v20 }
 0x2a8   :  { %v1439_v43 = vadd.f32 0.05265332, %v1407_v41  ;;  %v983_v21 = vsel %vm981_vm11, %v12843_v26, %v980_v57  ;;  %4098 = vmatmul.mubr.bf16.gmra.mrb[16].mxu1 %v2786_v61  ;;  %v12845_v3 = vand.u32 2147483648, %v9554_v53  ;;  %v12846_v25 = vmin.f32 %v9407_v55, %v9545_v33  ;;  %v12847_v26 = vld [vmem:[#allocation85_spill] sm:$0xff] }
 0x2a9   :  { %v9692_v1 = vmul.f32 %v12836_v23, %v983_v21  ;;  %v9705_v46 = vmul.f32 %v9671_v63, %v9671_v63  ;;  %vm12848_vm10 = vcmp.eq.f32.partialorder %v12839_v24, 1.0  ;;  %v1502_v53 = vadd.f32 -0.11643287, %v1470_v18 }
 0x2aa   :  { %v990_v41 = vsel %vm988_vm15, %v12845_v3, %v987_v62  ;;  %v9697_v57 = vmul.f32 %v5711_v0, %v12846_v25  ;;  %v1471_v61 = vmul.f32 %v1439_v43, %v9654_v4  ;;  %v2747_v3 = vsel %vm12848_vm10, %v12847_v26, 0.0 }
 0x2ab   :  { %v9701_v9 = vmul.f32 %v12832_v13, %v990_v41  ;;  %v2771_v0 = vadd.f32 %v2739_v19, %v2707_v49  ;;  %v2779_v21 = vadd.f32 %v2747_v3, %v2715_v7  ;;  %v1398_v43 = vmul.f32 -0.0117212, %v9705_v46 }
 0x2ac   :  { %v9712_v23 = vmul.f32 %v9697_v57, %v9697_v57  ;;  %v1503_v62 = vadd.f32 -0.11643287, %v1471_v61  ;;  %vm2960_vm5 = vcmp.eq.f32.partialorder %v12758_v48, 4.0  ;;  %vm12342_vm15 = vcmp.eq.f32.partialorder %v12759_v35, 4.0 }
 0x2ad   :  { %v1534_v13 = vmul.f32 %v1502_v53, %v9644_v20  ;;  %v2795_v25 = vpack.c.bf16 %v2779_v21, %v2771_v0  ;;  %v2992_v18 = vsel %vm2960_vm5, %v12760_v58, 0.0  ;;  %v1430_v49 = vadd.f32 0.05265332, %v1398_v43 }
 0x2ae   :  { %v1399_v41 = vmul.f32 -0.0117212, %v9712_v23  ;;  %v1535_v26 = vmul.f32 %v1503_v62, %v9654_v4  ;;  %v3000_v7 = vsel %vm12342_vm15, %v12762_v42, 0.0  ;;  %v3024_v19 = vsel %vm2816_vm1, %v12763_v36, 0.0 }
 0x2af   :  { %v1566_v61 = vadd.f32 0.19354346, %v1534_v13  ;;  %4105 = vmatprep.mubr.bf16.mxu1 %v2795_v25  ;;  %v3032_v53 = vsel %vm2824_vm2, %v12764_v38, 0.0  ;;  %v3056_v0 = vadd.f32 %v3024_v19, %v2992_v18  ;;  %v1462_v62 = vmul.f32 %v1430_v49, %v9705_v46 }
 0x2b0   :  { %v1431_v3 = vadd.f32 0.05265332, %v1399_v41  ;;  %v1567_v21 = vadd.f32 0.19354346, %v1535_v26  ;;  %v3064_v43 = vadd.f32 %v3032_v53, %v3000_v7  ;;  %vm12340_vm0 = vcmp.eq.f32.partialorder %v12767_v10, 5.0 }
 0x2b1   :  { %v1598_v42 = vmul.f32 %v1566_v61, %v9644_v20  ;;  %vm12339_vm1 = vcmp.eq.f32.partialorder %v12768_v47, 5.0  ;;  %v3121_v13 = vsel %vm12340_vm0, %v12769_v22, 0.0  ;;  %v1494_v25 = vadd.f32 -0.11643287, %v1462_v62 }
 0x2b2   :  { %v1463_v58 = vmul.f32 %v1431_v3, %v9712_v23  ;;  %v1599_v41 = vmul.f32 %v1567_v21, %v9654_v4  ;;  %v3080_v18 = vpack.c.bf16 %v3064_v43, %v3056_v0  ;;  %v3129_v26 = vsel %vm12339_vm1, %v12770_v27, 0.0 }
 0x2b3   :  { %v1630_v49 = vadd.f32 -0.33262348, %v1598_v42  ;;  %v3153_v19 = vsel %vm2945_vm13, %v12771_v60, 0.0  ;;  %v3161_v61 = vsel %vm2953_vm8, %v12772_v16, 0.0  ;;  %vm1758_vm2 = vcmp.gt.f32.partialorder %v9497_v40, %v9280_v6  ;;  %v12865_v6 = vld [vmem:[#allocation61_spill] sm:$0xff] }
 0x2b4   :  { %v1495_v7 = vadd.f32 -0.11643287, %v1463_v58  ;;  %v1631_v3 = vadd.f32 -0.33262348, %v1599_v41  ;;  %v1526_v53 = vmul.f32 %v1494_v25, %v9705_v46  ;;  %3977 = vmatmul.mubr.bf16.gmra.mrb[36].mxu0 %v3080_v18  ;;  %v3185_v0 = vadd.f32 %v3153_v19, %v3121_v13  ;;  %v12849_v25 = vld [vmem:[#allocation35_spill] sm:$0xff] }
 0x2b5   :  { %v3193_v21 = vadd.f32 %v3161_v61, %v3129_v26  ;;  %v1662_v42 = vmul.f32 %v1630_v49, %v9644_v20  ;;  %vm1759_vm3 = vcmp.gt.f32.partialorder %v9487_v2, %v9309_v51  ;;  %vm12338_vm13 = vcmp.eq.f32.partialorder %v12774_v12, 2.0  ;;  %v12850_v26 = vld [vmem:[#allocation41_spill] sm:$0xff]  ;;  %v12853_v61 = vld [vmem:[#allocation55_spill] sm:$0xff] }
 0x2b6   :  { %v1527_v58 = vmul.f32 %v1495_v7, %v9712_v23  ;;  %vm12337_vm8 = vcmp.eq.f32.partialorder %v12705_v34, 2.0  ;;  %v1663_v62 = vmul.f32 %v1631_v3, %v9654_v4  ;;  %v1558_v43 = vadd.f32 0.19354346, %v1526_v53  ;;  %v12851_v7 = vld [vmem:[#allocation81_spill] sm:$0xff]  ;;  %v12854_v53 = vld [vmem:[#allocation40_spill] sm:$0xff] }
 0x2b7   :  { %v3217_v41 = vpack.c.bf16 %v3193_v21, %v3185_v0  ;;  %v2706_v13 = vsel %vm12338_vm13, %v12775_v11, 0.0  ;;  %vm1854_vm7 = vcmp.lt.f32.partialorder %v12849_v25, 0.0  ;;  %v1694_v20 = vadd.f32 0.99997723, %v1662_v42  ;;  %v12856_v11 = vld [vmem:[#allocation72_spill] sm:$0xff] }
 0x2b8   :  { %v1559_v18 = vadd.f32 0.19354346, %v1527_v58  ;;  %v2714_v49 = vsel %vm12337_vm8, %v12850_v26, 0.0  ;;  %vm12852_vm11 = vcmp.eq.f32.partialorder %v12774_v12, 1.0  ;;  %vm1855_vm9 = vcmp.lt.f32.partialorder %v12853_v61, 0.0 }
 0x2b9   :  { %v2738_v19 = vsel %vm12852_vm11, %v12851_v7, 0.0  ;;  %v1695_v4 = vadd.f32 0.99997723, %v1663_v62  ;;  %v1590_v3 = vmul.f32 %v1558_v43, %v9705_v46  ;;  %3984 = vmatprep.mubr.bf16.mxu0 %v3217_v41  ;;  %vm12855_vm10 = vcmp.eq.f32.partialorder %v12705_v34, 1.0  ;;  %v12857_v43 = vld [vmem:[#allocation71_spill] sm:$0xff] }
 0x2ba   :  { %v2746_v0 = vsel %vm12855_vm10, %v12854_v53, 0.0  ;;  %v2770_v21 = vadd.f32 %v2738_v19, %v2706_v13  ;;  %v1726_v42 = vmul.f32 %v1694_v20, %v9619_v50  ;;  %v1591_v58 = vmul.f32 %v1559_v18, %v9712_v23  ;;  %v12858_v20 = vld [vmem:[#allocation73_spill] sm:$0xff]  ;;  %v12859_v19 = vld [vmem:[#allocation76_spill] sm:$0xff] }
 0x2bb   :  { %v2778_v26 = vadd.f32 %v2746_v0, %v2714_v49  ;;  %vm12341_vm8 = vcmp.eq.f32.partialorder %v12856_v11, 3.0  ;;  %v1727_v7 = vmul.f32 %v1695_v4, %v9632_v8  ;;  %vm1950_vm11 = vcmp.lt.f32.partialorder %v9479_v56, 0.0 }
 0x2bc   :  { %v1622_v62 = vadd.f32 -0.33262348, %v1590_v3  ;;  %vm12343_vm13 = vcmp.eq.f32.partialorder %v12714_v28, 3.0  ;;  %v2835_v41 = vsel %vm12341_vm8, %v12857_v43, 0.0  ;;  %v1790_v53 = vsub.f32 1.5707964, %v1726_v42 }
 0x2bd   :  { %vm1951_vm10 = vcmp.lt.f32.partialorder %v9472_v30, 0.0  ;;  %v1623_v50 = vadd.f32 -0.33262348, %v1591_v58  ;;  %vm1750_vm1 = vcmp.gt.f32.partialorder %v9523_v39, %v9399_v5  ;;  %v2794_v13 = vpack.c.bf16 %v2778_v26, %v2770_v21  ;;  %v9803_v58 = vpop.f32.mrb[0].mxu1 }
 0x2be   :  { %v2843_v8 = vsel %vm12343_vm13, %v12858_v20, 0.0  ;;  %v1791_v18 = vsub.f32 1.5707964, %v1727_v7  ;;  %v1654_v49 = vmul.f32 %v1622_v62, %v9705_v46  ;;  %vm1751_vm0 = vcmp.gt.f32.partialorder %v9545_v33, %v9407_v55  ;;  %12862 = vst [vmem:[#allocation44_spill] sm:$0xff] %v9803_v58  ;;  %v12863_v62 = vld [vmem:[#allocation52_spill] sm:$0xff]  ;;  %v12875_v33 = vld [vmem:[#allocation47_spill] sm:$0xff] }
 0x2bf   :  { %vm12860_vm8 = vcmp.eq.f32.partialorder %v12856_v11, 2.0  ;;  %vm12861_vm15 = vcmp.eq.f32.partialorder %v12714_v28, 2.0  ;;  %v1822_v26 = vsel %vm1758_vm2, %v1790_v53, %v1726_v42  ;;  %v1655_v0 = vmul.f32 %v1623_v50, %v9712_v23  ;;  %4106 = vmatmul.mubr.bf16.gmra.mrb[20].mxu1 %v2794_v13 }
 0x2c0   :  { %v2867_v4 = vsel %vm12860_vm8, %v12859_v19, 0.0  ;;  %v2875_v3 = vsel %vm12861_vm15, %v12793_v15, 0.0  ;;  %vm1846_vm13 = vcmp.lt.f32.partialorder %v12863_v62, 0.0  ;;  %v1823_v20 = vsel %vm1759_vm3, %v1791_v18, %v1727_v7  ;;  %v9810_v15 = vpop.f32.mrb[1].mxu1  ;;  %v12877_v62 = vld [vmem:[#allocation66_spill] sm:$0xff] }
 0x2c1   :  { %v2899_v21 = vadd.f32 %v2867_v4, %v2835_v41  ;;  %v2907_v46 = vadd.f32 %v2875_v3, %v2843_v8  ;;  %v1886_v19 = vsub.f32 3.1415927, %v1822_v26  ;;  %v1686_v43 = vadd.f32 0.99997723, %v1654_v49  ;;  %12864 = vst [vmem:[#allocation17_spill] sm:$0xff] %v9810_v15  ;;  %v9814_v42 = vpop.f32.mrb[2].mxu1 }
 0x2c2   :  { %vm12345_vm15 = vcmp.eq.f32.partialorder %v12627_v44, 5.0  ;;  %vm1847_vm2 = vcmp.lt.f32.partialorder %v12865_v6, 0.0  ;;  %v1887_v40 = vsub.f32 3.1415927, %v1823_v20  ;;  %v1687_v23 = vadd.f32 0.99997723, %v1655_v0 }
 0x2c3   :  { %v2931_v53 = vpack.c.bf16 %v2907_v46, %v2899_v21  ;;  %vm12346_vm8 = vcmp.eq.f32.partialorder %v12628_v31, 5.0  ;;  %12866 = vst [vmem:[#allocation27_spill] sm:$0xff] %v9814_v42  ;;  %v1918_v41 = vsel %vm1854_vm7, %v1886_v19, %v1822_v26  ;;  %v1718_v51 = vmul.f32 %v1686_v43, %v9671_v63  ;;  %v9825_v50 = vpop.f32.mrb[3].mxu1  ;;  %v12870_v0 = vld [vmem:[#allocation42_spill] sm:$0xff] }
 0x2c4   :  { %v3120_v2 = vsel %vm12345_vm15, %v12629_v52, 0.0  ;;  %v3128_v7 = vsel %vm12346_vm8, %v12630_v14, 0.0  ;;  %12867 = vst [vmem:[#allocation57_spill] sm:$0xff] %v9825_v50  ;;  %v1919_v13 = vsel %vm1855_vm9, %v1887_v40, %v1823_v20  ;;  %v1982_v8 = vsub.f32 0.0, %v1918_v41 }
 0x2c5   :  { %v1719_v18 = vmul.f32 %v1687_v23, %v9697_v57  ;;  %vm1942_vm3 = vcmp.lt.f32.partialorder %v9489_v17, 0.0  ;;  %4113 = vmatprep.mubr.bf16.mxu1 %v2931_v53  ;;  %vm12868_vm7 = vcmp.eq.f32.partialorder %v12627_v44, 4.0  ;;  %v1983_v25 = vsub.f32 0.0, %v1919_v13 }
 0x2c6   :  { %v3152_v63 = vsel %vm12868_vm7, %v12661_v37, 0.0  ;;  %v1782_v43 = vsub.f32 1.5707964, %v1718_v51  ;;  %vm1943_vm15 = vcmp.lt.f32.partialorder %v9499_v54, 0.0  ;;  %vm12869_vm8 = vcmp.eq.f32.partialorder %v12628_v31, 4.0 }
 0x2c7   :  { %v3160_v49 = vsel %vm12869_vm8, %v12662_v32, 0.0  ;;  %v3184_v61 = vadd.f32 %v3152_v63, %v3120_v2  ;;  %v2014_v20 = vsel %vm1950_vm11, %v1982_v8, %v1918_v41  ;;  %v1783_v57 = vsub.f32 1.5707964, %v1719_v18  ;;  %v12871_v41 = vld [vmem:[#allocation80_spill] sm:$0xff]  ;;  %v12872_v2 = vld [vmem:[#allocation31_spill] sm:$0xff] }
 0x2c8   :  { %v3192_v19 = vadd.f32 %v3160_v49, %v3128_v7  ;;  %vm3105_vm9 = vcmp.eq.f32.partialorder %v12665_v29, 5.0  ;;  %v2015_v4 = vsel %vm1951_vm10, %v1983_v25, %v1919_v13  ;;  %v2046_v3 = vadd.f32 6.2831855, %v2014_v20  ;;  %v12873_v7 = vld [vmem:[#allocation37_spill] sm:$0xff] }
 0x2c9   :  { %v1814_v26 = vsel %vm1750_vm1, %v1782_v43, %v1718_v51  ;;  %vm3113_vm7 = vcmp.eq.f32.partialorder %v12870_v0, 5.0  ;;  %v2047_v21 = vadd.f32 6.2831855, %v2015_v4  ;;  %v1815_v56 = vsel %vm1751_vm0, %v1783_v57, %v1719_v18 }
 0x2ca   :  { %v1878_v46 = vsub.f32 3.1415927, %v1814_v26  ;;  %v3216_v40 = vpack.c.bf16 %v3192_v19, %v3184_v61  ;;  %v2078_v23 = vmul.f32 1.2732395, %v2046_v3  ;;  %v1879_v53 = vsub.f32 3.1415927, %v1815_v56 }
 0x2cb   :  { %v3137_v30 = vsel %vm3105_vm9, %v12871_v41, 0.0  ;;  %v3145_v5 = vsel %vm3113_vm7, %v12872_v2, 0.0  ;;  %v2079_v39 = vmul.f32 1.2732395, %v2047_v21  ;;  %vm12874_vm0 = vcmp.eq.f32.partialorder %v12665_v29, 4.0 }
 0x2cc   :  { %v1910_v51 = vsel %vm1846_vm13, %v1878_v46, %v1814_v26  ;;  %3985 = vmatmul.mubr.bf16.gmra.mrb[40].mxu0 %v3216_v40  ;;  %v3169_v55 = vsel %vm12874_vm0, %v12873_v7, 0.0  ;;  %vm12876_vm1 = vcmp.eq.f32.partialorder %v12870_v0, 4.0  ;;  %v2110_v8 = vfloor.f32 %v2078_v23 }
 0x2cd   :  { %v3177_v13 = vsel %vm12876_vm1, %v12875_v33, 0.0  ;;  %v1911_v18 = vsel %vm1847_vm2, %v1879_v53, %v1815_v56  ;;  %v1974_v63 = vsub.f32 0.0, %v1910_v51  ;;  %v3201_v25 = vadd.f32 %v3169_v55, %v3137_v30  ;;  %v12879_v56 = vld [vmem:[#allocation5_spill] sm:$0xff]  ;;  %v12882_v30 = vld [vmem:[#allocation6_spill] sm:$0xff] }
 0x2ce   :  { %v2111_v43 = vfloor.f32 %v2079_v39  ;;  %v1975_v49 = vsub.f32 0.0, %v1911_v18  ;;  %v3209_v61 = vadd.f32 %v3177_v13, %v3145_v5  ;;  %vm2802_vm13 = vcmp.eq.f32.partialorder %v12877_v62, 3.0  ;;  %v12885_v55 = vld [vmem:[#allocation62_spill] sm:$0xff] }
 0x2cf   :  { %v2142_v20 = vsub.f32 %v2078_v23, %v2110_v8  ;;  %vm2174_vm11 = vcmp.ge.f32.partialorder %v2110_v8, 8.0  ;;  %v4999_v57 = vadd.f32 -8.0, %v2110_v8  ;;  %v2006_v19 = vsel %vm1942_vm3, %v1974_v63, %v1910_v51 }
 0x2d0   :  { %v2143_v4 = vsub.f32 %v2079_v39, %v2111_v43  ;;  %vm2175_vm10 = vcmp.ge.f32.partialorder %v2111_v43, 8.0  ;;  %v5000_v3 = vadd.f32 -8.0, %v2111_v43  ;;  %v2007_v6 = vsel %vm1943_vm15, %v1975_v49, %v1911_v18  ;;  %v12887_v18 = vld [vmem:[#allocation68_spill] sm:$0xff] }
 0x2d1   :  { %v9871_v26 = vsel %vm2174_vm11, %v4999_v57, %v2110_v8  ;;  %v2270_v21 = vsub.f32 1.0, %v2142_v20  ;;  %v9874_v46 = vmul.f32 %v2142_v20, %v12879_v56  ;;  %v2038_v40 = vadd.f32 6.2831855, %v2006_v19  ;;  %v12889_v57 = vld [vmem:[#allocation67_spill] sm:$0xff] }
 0x2d2   :  { %12878 = vst [vmem:[#allocation24_spill] sm:$0xff] %v9871_v26  ;;  %v9876_v53 = vsel %vm2175_vm10, %v5000_v3, %v2111_v43  ;;  %v2271_v23 = vsub.f32 1.0, %v2143_v4  ;;  %v9879_v5 = vmul.f32 %v2143_v4, %v12882_v30  ;;  %v2039_v17 = vadd.f32 6.2831855, %v2007_v6  ;;  %v12888_v43 = vld [vmem:[#allocation65_spill] sm:$0xff] }
 0x2d3   :  { %12880 = vst [vmem:[#allocation9_spill] sm:$0xff] %v9874_v46  ;;  %12881 = vst [vmem:[#allocation28_spill] sm:$0xff] %v9876_v53  ;;  %v9882_v39 = vmul.f32 %v2270_v21, %v12879_v56  ;;  %v2070_v51 = vmul.f32 1.2732395, %v2038_v40  ;;  %v3225_v54 = vpack.c.bf16 %v3209_v61, %v3201_v25  ;;  %vm2810_vm15 = vcmp.eq.f32.partialorder %v12885_v55, 3.0  ;;  %v12890_v61 = vld [vmem:[#allocation64_spill] sm:$0xff] }
 0x2d4   :  { %12883 = vst [vmem:[#allocation11_spill] sm:$0xff] %v9879_v5  ;;  %v9886_v13 = vmul.f32 %v2271_v23, %v12882_v30  ;;  %v2071_v8 = vmul.f32 1.2732395, %v2039_v17  ;;  %v2834_v63 = vsel %vm2802_vm13, %v12887_v18, 0.0  ;;  %v2842_v49 = vsel %vm2810_vm15, %v12888_v43, 0.0  ;;  %v12891_v40 = vld [vmem:[#allocation59_spill] sm:$0xff] }
 0x2d5   :  { %12884 = vst [vmem:[#allocation49_spill] sm:$0xff] %v9882_v39  ;;  %v2102_v20 = vfloor.f32 %v2070_v51  ;;  %3992 = vmatprep.mubr.bf16.mxu0 %v3225_v54  ;;  %v2866_v25 = vsel %vm2658_vm12, %v12889_v57, 0.0  ;;  %v2874_v19 = vsel %vm2666_vm6, %v12890_v61, 0.0  ;;  %vm2819_vm2 = vcmp.eq.f32.partialorder %v12838_v45, 3.0  ;;  %v12908_v46 = vld [vmem:[#allocation40_spill] sm:$0xff]  ;;  %v12920_v5 = vld [vmem:[#allocation63_spill] sm:$0xff] }
 0x2d6   :  { %12886 = vst [vmem:[#allocation53_spill] sm:$0xff] %v9886_v13  ;;  %v2103_v4 = vfloor.f32 %v2071_v8  ;;  %v2898_v3 = vadd.f32 %v2866_v25, %v2834_v63  ;;  %v2906_v6 = vadd.f32 %v2874_v19, %v2842_v49  ;;  %vm2827_vm8 = vcmp.eq.f32.partialorder %v12839_v24, 3.0  ;;  %v12894_v63 = vld [vmem:[#allocation86_spill] sm:$0xff] }
 0x2d7   :  { %v2134_v21 = vsub.f32 %v2070_v51, %v2102_v20  ;;  %vm2166_vm3 = vcmp.ge.f32.partialorder %v2102_v20, 8.0  ;;  %v4991_v56 = vadd.f32 -8.0, %v2102_v20  ;;  %v2851_v23 = vsel %vm2819_vm2, %v12891_v40, 0.0 }
 0x2d8   :  { %v2135_v30 = vsub.f32 %v2071_v8, %v2103_v4  ;;  %vm2167_vm12 = vcmp.ge.f32.partialorder %v2103_v4, 8.0  ;;  %v4992_v17 = vadd.f32 -8.0, %v2103_v4  ;;  %v2930_v54 = vpack.c.bf16 %v2906_v6, %v2898_v3  ;;  %v12898_v3 = vld [vmem:[#allocation85_spill] sm:$0xff] }
 0x2d9   :  { %v9905_v50 = vsel %vm2166_vm3, %v4991_v56, %v2102_v20  ;;  %v2262_v42 = vsub.f32 1.0, %v2134_v21  ;;  %v9908_v15 = vmul.f32 %v2134_v21, %v9692_v1  ;;  %v2859_v51 = vsel %vm2827_vm8, %v12894_v63, 0.0 }
 0x2da   :  { %12892 = vst [vmem:[#allocation19_spill] sm:$0xff] %v9905_v50  ;;  %v9913_v49 = vsel %vm2167_vm12, %v4992_v17, %v2103_v4  ;;  %v2263_v25 = vsub.f32 1.0, %v2135_v30  ;;  %v9916_v19 = vmul.f32 %v2135_v30, %v9701_v9  ;;  %4114 = vmatmul.mubr.bf16.gmra.mrb[24].mxu1 %v2930_v54  ;;  %v2883_v8 = vsel %vm2675_vm4, %v12844_v59, 0.0  ;;  %v12900_v30 = vld [vmem:[#allocation20_spill] sm:$0xff]  ;;  %v12901_v54 = vld [vmem:[#allocation29_spill] sm:$0xff] }
 0x2db   :  { %12893 = vst [vmem:[#allocation8_spill] sm:$0xff] %v9908_v15  ;;  %12895 = vst [vmem:[#allocation58_spill] sm:$0xff] %v9913_v49  ;;  %v9922_v20 = vmul.f32 %v2262_v42, %v9692_v1  ;;  %v2891_v6 = vsel %vm2683_vm14, %v12898_v3, 0.0  ;;  %v2915_v21 = vadd.f32 %v2883_v8, %v2851_v23  ;;  %vm3104_vm6 = vcmp.eq.f32.partialorder %v12758_v48, 5.0  ;;  %v12974_v49 = vld [vmem:[#allocation22_spill] sm:$0xff] }
 0x2dc   :  { %12896 = vst [vmem:[#allocation84_spill] sm:$0xff] %v9916_v19  ;;  %v9929_v4 = vmul.f32 %v2263_v25, %v9701_v9  ;;  %v2923_v56 = vadd.f32 %v2891_v6, %v2859_v51  ;;  %vm3112_vm0 = vcmp.eq.f32.partialorder %v12759_v35, 5.0  ;;  %v3136_v17 = vsel %vm3104_vm6, %v12900_v30, 0.0 }
 0x2dd   :  { %12897 = vst [vmem:[#allocation87_spill] sm:$0xff] %v9922_v20  ;;  %v3144_v1 = vsel %vm3112_vm0, %v12901_v54, 0.0  ;;  %v3168_v42 = vsel %vm2960_vm5, %v12763_v36, 0.0  ;;  %vm12902_vm4 = vcmp.eq.f32.partialorder %v12759_v35, 4.0  ;;  %vm3233_vm14 = vcmp.eq.f32.partialorder %v12767_v10, 6.0  ;;  %v12912_v20 = vld [vmem:[#allocation76_spill] sm:$0xff] }
 0x2de   :  { %12899 = vst [vmem:[#allocation35_spill] sm:$0xff] %v9929_v4  ;;  %v3176_v9 = vsel %vm12902_vm4, %v12764_v38, 0.0  ;;  %v2939_v23 = vpack.c.bf16 %v2923_v56, %v2915_v21  ;;  %v3200_v51 = vadd.f32 %v3168_v42, %v3136_v17  ;;  %vm3241_vm1 = vcmp.eq.f32.partialorder %v12768_v47, 6.0  ;;  %v12906_v42 = vld [vmem:[#allocation81_spill] sm:$0xff] }
 0x2df   :  { %v3208_v25 = vadd.f32 %v3176_v9, %v3144_v1  ;;  %v3265_v8 = vsel %vm3233_vm14, %v12769_v22, 0.0  ;;  %v3273_v6 = vsel %vm3241_vm1, %v12770_v27, 0.0  ;;  %vm12903_vm5 = vcmp.eq.f32.partialorder %v12767_v10, 5.0  ;;  %v12905_v22 = vld [vmem:[#allocation82_spill] sm:$0xff] }
 0x2e0   :  { %v3297_v58 = vsel %vm12903_vm5, %v12771_v60, 0.0  ;;  %vm12904_vm11 = vcmp.eq.f32.partialorder %v12768_v47, 5.0  ;;  %4121 = vmatprep.mubr.bf16.mxu1 %v2939_v23  ;;  %vm2818_vm10 = vcmp.eq.f32.partialorder %v12774_v12, 3.0  ;;  %vm12351_vm3 = vcmp.eq.f32.partialorder %v12705_v34, 3.0 }
 0x2e1   :  { %v3305_v21 = vsel %vm12904_vm11, %v12772_v16, 0.0  ;;  %v3224_v56 = vpack.c.bf16 %v3208_v25, %v3200_v51  ;;  %v3329_v17 = vadd.f32 %v3297_v58, %v3265_v8  ;;  %v2850_v27 = vsel %vm2818_vm10, %v12905_v22, 0.0  ;;  %v12910_v58 = vld [vmem:[#allocation41_spill] sm:$0xff] }
 0x2e2   :  { %v3337_v1 = vadd.f32 %v3305_v21, %v3273_v6  ;;  %vm12907_vm12 = vcmp.eq.f32.partialorder %v12774_v12, 2.0  ;;  %vm12909_vm4 = vcmp.eq.f32.partialorder %v12705_v34, 2.0  ;;  %v2858_v51 = vsel %vm12351_vm3, %v12910_v58, 0.0  ;;  %v12911_v6 = vld [vmem:[#allocation71_spill] sm:$0xff] }
 0x2e3   :  { %v2882_v9 = vsel %vm12907_vm12, %v12906_v42, 0.0  ;;  %v2890_v39 = vsel %vm12909_vm4, %v12908_v46, 0.0  ;;  %3993 = vmatmul.mubr.bf16.gmra.mrb[44].mxu0 %v3224_v56  ;;  %vm12352_vm5 = vcmp.eq.f32.partialorder %v12856_v11, 4.0  ;;  %vm12355_vm11 = vcmp.eq.f32.partialorder %v12714_v28, 4.0  ;;  %v12914_v56 = vld [vmem:[#allocation73_spill] sm:$0xff] }
 0x2e4   :  { %v3361_v23 = vpack.c.bf16 %v3337_v1, %v3329_v17  ;;  %v2914_v25 = vadd.f32 %v2882_v9, %v2850_v27  ;;  %v2922_v8 = vadd.f32 %v2890_v39, %v2858_v51  ;;  %v2979_v21 = vsel %vm12352_vm5, %v12911_v6, 0.0  ;;  %v12915_v1 = vld [vmem:[#allocation74_spill] sm:$0xff] }
 0x2e5   :  { %vm12913_vm12 = vcmp.eq.f32.partialorder %v12856_v11, 3.0  ;;  %v2987_v17 = vsel %vm12355_vm11, %v12914_v56, 0.0  ;;  %vm12916_vm4 = vcmp.eq.f32.partialorder %v12714_v28, 3.0  ;;  %vm12356_vm3 = vcmp.eq.f32.partialorder %v12627_v44, 6.0 }
 0x2e6   :  { %v3011_v15 = vsel %vm12913_vm12, %v12912_v20, 0.0  ;;  %4000 = vmatprep.mubr.bf16.mxu0 %v3361_v23  ;;  %v3019_v27 = vsel %vm12916_vm4, %v12915_v1, 0.0  ;;  %v2938_v9 = vpack.c.bf16 %v2922_v8, %v2914_v25  ;;  %vm3240_vm5 = vcmp.eq.f32.partialorder %v12628_v31, 6.0 }
 0x2e7   :  { %v3043_v39 = vadd.f32 %v3011_v15, %v2979_v21  ;;  %v3051_v51 = vadd.f32 %v3019_v27, %v2987_v17  ;;  %v3264_v26 = vsel %vm12356_vm3, %v12629_v52, 0.0  ;;  %v3272_v23 = vsel %vm3240_vm5, %v12630_v14, 0.0 }
 0x2e8   :  { %vm12917_vm12 = vcmp.eq.f32.partialorder %v12627_v44, 5.0  ;;  %vm12918_vm4 = vcmp.eq.f32.partialorder %v12628_v31, 5.0  ;;  %vm3249_vm11 = vcmp.eq.f32.partialorder %v12665_v29, 6.0  ;;  %4122 = vmatmul.mubr.bf16.gmra.mrb[28].mxu1 %v2938_v9  ;;  %vm3257_vm3 = vcmp.eq.f32.partialorder %v12870_v0, 6.0 }
 0x2e9   :  { %v3296_v50 = vsel %vm12917_vm12, %v12661_v37, 0.0  ;;  %v3304_v15 = vsel %vm12918_vm4, %v12662_v32, 0.0  ;;  %v3075_v25 = vpack.c.bf16 %v3051_v51, %v3043_v39  ;;  %v3281_v17 = vsel %vm3249_vm11, %v12871_v41, 0.0 }
 0x2ea   :  { %v3328_v8 = vadd.f32 %v3296_v50, %v3264_v26  ;;  %v3336_v21 = vadd.f32 %v3304_v15, %v3272_v23  ;;  %v3289_v27 = vsel %vm3257_vm3, %v12872_v2, 0.0  ;;  %v3313_v13 = vsel %vm3105_vm9, %v12873_v7, 0.0 }
 0x2eb   :  { %v3321_v39 = vsel %vm3113_vm7, %v12875_v33, 0.0  ;;  %4129 = vmatprep.mubr.bf16.mxu1 %v3075_v25  ;;  %v3345_v26 = vadd.f32 %v3313_v13, %v3281_v17  ;;  %vm2946_vm12 = vcmp.eq.f32.partialorder %v12877_v62, 4.0  ;;  %vm2954_vm4 = vcmp.eq.f32.partialorder %v12885_v55, 4.0 }
 0x2ec   :  { %v3360_v50 = vpack.c.bf16 %v3336_v21, %v3328_v8  ;;  %v3353_v9 = vadd.f32 %v3321_v39, %v3289_v27  ;;  %v2978_v51 = vsel %vm2946_vm12, %v12887_v18, 0.0  ;;  %v3010_v23 = vsel %vm2802_vm13, %v12889_v57, 0.0 }
 0x2ed   :  { %v3018_v15 = vsel %vm2810_vm15, %v12890_v61, 0.0  ;;  %v2986_v13 = vsel %vm2954_vm4, %v12888_v43, 0.0  ;;  %v3042_v8 = vadd.f32 %v3010_v23, %v2978_v51  ;;  %vm2963_vm9 = vcmp.eq.f32.partialorder %v12838_v45, 4.0 }
 0x2ee   :  { %4001 = vmatmul.mubr.bf16.gmra.mrb[48].mxu0 %v3360_v50  ;;  %v3369_v25 = vpack.c.bf16 %v3353_v9, %v3345_v26  ;;  %v3050_v21 = vadd.f32 %v3018_v15, %v2986_v13  ;;  %vm2971_vm7 = vcmp.eq.f32.partialorder %v12839_v24, 4.0  ;;  %v2995_v17 = vsel %vm2963_vm9, %v12891_v40, 0.0 }
 0x2ef   :  { %v3027_v27 = vsel %vm2819_vm2, %v12844_v59, 0.0  ;;  %v3003_v39 = vsel %vm2971_vm7, %v12894_v63, 0.0  ;;  %v3035_v50 = vsel %vm2827_vm8, %v12898_v3, 0.0  ;;  %vm3248_vm13 = vcmp.eq.f32.partialorder %v12758_v48, 6.0 }
 0x2f0   :  { %4008 = vmatprep.mubr.bf16.mxu0 %v3369_v25  ;;  %v3059_v26 = vadd.f32 %v3027_v27, %v2995_v17  ;;  %v3074_v9 = vpack.c.bf16 %v3050_v21, %v3042_v8  ;;  %v3067_v51 = vadd.f32 %v3035_v50, %v3003_v39  ;;  %vm3256_vm15 = vcmp.eq.f32.partialorder %v12759_v35, 6.0  ;;  %v12919_v50 = vld [vmem:[#allocation60_spill] sm:$0xff] }
 0x2f1   :  { %v3280_v23 = vsel %vm3248_vm13, %v12900_v30, 0.0  ;;  %v3288_v15 = vsel %vm3256_vm15, %v12901_v54, 0.0  ;;  %v3312_v25 = vsel %vm3104_vm6, %v12763_v36, 0.0  ;;  %v3320_v13 = vsel %vm3112_vm0, %v12764_v38, 0.0 }
 0x2f2   :  { %v3409_v8 = vsel %vm3233_vm14, %v12771_v60, 0.0  ;;  %4130 = vmatmul.mubr.bf16.gmra.mrb[32].mxu1 %v3074_v9  ;;  %v3083_v21 = vpack.c.bf16 %v3067_v51, %v3059_v26  ;;  %v3344_v17 = vadd.f32 %v3312_v25, %v3280_v23  ;;  %v3352_v27 = vadd.f32 %v3320_v13, %v3288_v15 }
 0x2f3   :  { %v3417_v39 = vsel %vm3241_vm1, %v12772_v16, 0.0  ;;  %v3441_v4 = vadd.f32 %v3409_v8, %v12919_v50  ;;  %vm2962_vm2 = vcmp.eq.f32.partialorder %v12774_v12, 4.0  ;;  %vm2970_vm8 = vcmp.eq.f32.partialorder %v12705_v34, 4.0 }
 0x2f4   :  { %v3449_v19 = vadd.f32 %v3417_v39, %v12920_v5  ;;  %4137 = vmatprep.mubr.bf16.mxu1 %v3083_v21  ;;  %v3368_v53 = vpack.c.bf16 %v3352_v27, %v3344_v17  ;;  %v2994_v10 = vsel %vm2962_vm2, %v12905_v22, 0.0  ;;  %v3002_v60 = vsel %vm2970_vm8, %v12910_v58, 0.0 }
 0x2f5   :  { %v3026_v47 = vsel %vm2818_vm10, %v12906_v42, 0.0  ;;  %vm12921_vm6 = vcmp.eq.f32.partialorder %v12705_v34, 3.0  ;;  %vm12362_vm0 = vcmp.eq.f32.partialorder %v12856_v11, 5.0  ;;  %vm3099_vm14 = vcmp.eq.f32.partialorder %v12714_v28, 5.0 }
 0x2f6   :  { %v3473_v16 = vpack.c.bf16 %v3449_v19, %v3441_v4  ;;  %v3034_v5 = vsel %vm12921_vm6, %v12908_v46, 0.0  ;;  %v3058_v26 = vadd.f32 %v3026_v47, %v2994_v10  ;;  %4009 = vmatmul.mubr.bf16.gmra.mrb[52].mxu0 %v3368_v53  ;;  %v3123_v51 = vsel %vm12362_vm0, %v12911_v6, 0.0 }
 0x2f7   :  { %v3066_v9 = vadd.f32 %v3034_v5, %v3002_v60  ;;  %vm12922_vm1 = vcmp.eq.f32.partialorder %v12856_v11, 4.0  ;;  %v3131_v19 = vsel %vm3099_vm14, %v12914_v56, 0.0  ;;  %vm12923_vm10 = vcmp.eq.f32.partialorder %v12714_v28, 4.0 }
 0x2f8   :  { %v3155_v23 = vsel %vm12922_vm1, %v12912_v20, 0.0  ;;  %4016 = vmatprep.mubr.bf16.mxu0 %v3473_v16  ;;  %v3163_v53 = vsel %vm12923_vm10, %v12915_v1, 0.0  ;;  %vm12924_vm6 = vcmp.eq.f32.partialorder %v12627_v44, 7.0  ;;  %vm12925_vm0 = vcmp.eq.f32.partialorder %v12628_v31, 7.0 }
 0x2f9   :  { %v3187_v4 = vadd.f32 %v3155_v23, %v3123_v51  ;;  %v3376_v15 = vsel %vm12924_vm6, %v12629_v52, 0.0  ;;  %v3082_v25 = vpack.c.bf16 %v3066_v9, %v3058_v26  ;;  %v3195_v13 = vadd.f32 %v3163_v53, %v3131_v19 }
 0x2fa   :  { %v3384_v8 = vsel %vm12925_vm0, %v12630_v14, 0.0  ;;  %vm12926_vm1 = vcmp.eq.f32.partialorder %v12627_v44, 6.0  ;;  %v3416_v17 = vsel %vm3240_vm5, %v12662_v32, 0.0  ;;  %vm12927_vm10 = vcmp.eq.f32.partialorder %v12665_v29, 7.0 }
 0x2fb   :  { %v3408_v21 = vsel %vm12926_vm1, %v12661_v37, 0.0  ;;  %v3393_v39 = vsel %vm12927_vm10, %v12871_v41, 0.0  ;;  %vm12928_vm6 = vcmp.eq.f32.partialorder %v12870_v0, 7.0  ;;  %4138 = vmatmul.mubr.bf16.gmra.mrb[36].mxu1 %v3082_v25  ;;  %v3219_v50 = vpack.c.bf16 %v3195_v13, %v3187_v4  ;;  %v10118_v41 = vpop.f32.mrb[4].mxu0 }
 0x2fc   :  { %v3440_v27 = vadd.f32 %v3408_v21, %v3376_v15  ;;  %v3401_v52 = vsel %vm12928_vm6, %v12872_v2, 0.0  ;;  %v3448_v14 = vadd.f32 %v3416_v17, %v3384_v8  ;;  %v3425_v44 = vsel %vm3249_vm11, %v12873_v7, 0.0  ;;  %12929 = vst [vmem:[#allocation55_spill] sm:$0xff] %v10118_v41  ;;  %v10129_v7 = vpop.f32.mrb[5].mxu0 }
 0x2fd   :  { %v3433_v31 = vsel %vm3257_vm3, %v12875_v33, 0.0  ;;  %v3457_v37 = vadd.f32 %v3425_v44, %v3393_v39  ;;  %vm3090_vm5 = vcmp.eq.f32.partialorder %v12877_v62, 5.0  ;;  %vm3098_vm0 = vcmp.eq.f32.partialorder %v12885_v55, 5.0  ;;  %4145 = vmatprep.mubr.bf16.mxu1 %v3219_v50  ;;  %12930 = vst [vmem:[#allocation72_spill] sm:$0xff] %v10129_v7  ;;  %v10135_v16 = vpop.f32.mrb[6].mxu0  ;;  %v12936_v39 = vld [vmem:[#allocation50_spill] sm:$0xff] }
 0x2fe   :  { %v3465_v32 = vadd.f32 %v3433_v31, %v3401_v52  ;;  %v3472_v2 = vpack.c.bf16 %v3448_v14, %v3440_v27  ;;  %v3122_v10 = vsel %vm3090_vm5, %v12887_v18, 0.0  ;;  %v3130_v29 = vsel %vm3098_vm0, %v12888_v43, 0.0  ;;  %12931 = vst [vmem:[#allocation52_spill] sm:$0xff] %v10135_v16  ;;  %v10144_v51 = vpop.f32.mrb[7].mxu0  ;;  %v12937_v44 = vld [vmem:[#allocation89_spill] sm:$0xff]  ;;  %v12973_v7 = vld [vmem:[#allocation79_spill] sm:$0xff] }
 0x2ff   :  { %v3154_v0 = vsel %vm2946_vm12, %v12889_v57, 0.0  ;;  %v3162_v60 = vsel %vm2954_vm4, %v12890_v61, 0.0  ;;  %vm3107_vm3 = vcmp.eq.f32.partialorder %v12838_v45, 5.0  ;;  %vm3115_vm11 = vcmp.eq.f32.partialorder %v12839_v24, 5.0  ;;  %12932 = vst [vmem:[#allocation61_spill] sm:$0xff] %v10144_v51  ;;  %v12972_v51 = vld [vmem:[#allocation78_spill] sm:$0xff] }
 0x300   :  { %v3481_v33 = vpack.c.bf16 %v3465_v32, %v3457_v37  ;;  %v3186_v47 = vadd.f32 %v3154_v0, %v3122_v10  ;;  %4017 = vmatmul.mubr.bf16.gmra.mrb[56].mxu0 %v3472_v2  ;;  %v3194_v5 = vadd.f32 %v3162_v60, %v3130_v29  ;;  %v3139_v26 = vsel %vm3107_vm3, %v12891_v40, 0.0  ;;  %v12938_v37 = vld [vmem:[#allocation90_spill] sm:$0xff]  ;;  %v12939_v2 = vld [vmem:[#allocation32_spill] sm:$0xff]  ;;  %v10191_v29 = vpop.f32.mrb[8].mxu0 }
 0x301   :  { %v3171_v9 = vsel %vm2963_vm9, %v12844_v59, 0.0  ;;  %v3147_v23 = vsel %vm3115_vm11, %v12894_v63, 0.0  ;;  %v3179_v19 = vsel %vm2971_vm7, %v12898_v3, 0.0  ;;  %vm12933_vm12 = vcmp.eq.f32.partialorder %v12758_v48, 7.0  ;;  %12940 = vst [vmem:[#allocation42_spill] sm:$0xff] %v10191_v29 }
 0x302   :  { %4024 = vmatprep.mubr.bf16.mxu0 %v3481_v33  ;;  %v3203_v53 = vadd.f32 %v3171_v9, %v3139_v26  ;;  %v3392_v4 = vsel %vm12933_vm12, %v12900_v30, 0.0  ;;  %v3218_v15 = vpack.c.bf16 %v3194_v5, %v3186_v47  ;;  %v3211_v25 = vadd.f32 %v3179_v19, %v3147_v23  ;;  %v12941_v33 = vld [vmem:[#allocation48_spill] sm:$0xff]  ;;  %v10197_v5 = vpop.f32.mrb[9].mxu0 }
 0x303   :  { %vm12934_vm4 = vcmp.eq.f32.partialorder %v12759_v35, 7.0  ;;  %v3424_v8 = vsel %vm3248_vm13, %v12763_v36, 0.0  ;;  %v3432_v21 = vsel %vm3256_vm15, %v12764_v38, 0.0  ;;  %vm3106_vm9 = vcmp.eq.f32.partialorder %v12774_v12, 5.0  ;;  %v12935_v38 = vld [vmem:[#allocation88_spill] sm:$0xff]  ;;  %12942 = vst [vmem:[#allocation80_spill] sm:$0xff] %v10197_v5 }
 0x304   :  { %v3400_v13 = vsel %vm12934_vm4, %v12901_v54, 0.0  ;;  %v3456_v17 = vadd.f32 %v3424_v8, %v3392_v4  ;;  %vm3114_vm7 = vcmp.eq.f32.partialorder %v12705_v34, 5.0  ;;  %4146 = vmatmul.mubr.bf16.gmra.mrb[40].mxu1 %v3218_v15  ;;  %v3227_v30 = vpack.c.bf16 %v3211_v25, %v3203_v53  ;;  %v10206_v19 = vpop.f32.mrb[10].mxu0  ;;  %v12945_v25 = vld [vmem:[#allocation16_spill] sm:$0xff] }
 0x305   :  { %v3464_v27 = vadd.f32 %v3432_v21, %v3400_v13  ;;  %v3138_v54 = vsel %vm3106_vm9, %v12905_v22, 0.0  ;;  %v3146_v48 = vsel %vm3114_vm7, %v12910_v58, 0.0  ;;  %v3170_v35 = vsel %vm2962_vm2, %v12906_v42, 0.0  ;;  %12944 = vst [vmem:[#allocation31_spill] sm:$0xff] %v10206_v19  ;;  %v10215_v13 = vpop.f32.mrb[11].mxu0  ;;  %v12947_v21 = vld [vmem:[#allocation13_spill] sm:$0xff] }
 0x306   :  { %v3178_v36 = vsel %vm2970_vm8, %v12908_v46, 0.0  ;;  %vm12364_vm13 = vcmp.eq.f32.partialorder %v12935_v38, 7.0  ;;  %vm12363_vm15 = vcmp.eq.f32.partialorder %v12936_v39, 7.0  ;;  %4153 = vmatprep.mubr.bf16.mxu1 %v3227_v30  ;;  %v3202_v50 = vadd.f32 %v3170_v35, %v3138_v54  ;;  %12946 = vst [vmem:[#allocation37_spill] sm:$0xff] %v10215_v13  ;;  %v12949_v30 = vld [vmem:[#allocation12_spill] sm:$0xff]  ;;  %v12950_v54 = vld [vmem:[#allocation10_spill] sm:$0xff] }
 0x307   :  { %v3480_v52 = vpack.c.bf16 %v3464_v27, %v3456_v17  ;;  %v3210_v14 = vadd.f32 %v3178_v36, %v3146_v48  ;;  %vm2373_vm1 = vcmp.eq.f32.partialorder %v12935_v38, 0.0  ;;  %vm2381_vm10 = vcmp.eq.f32.partialorder %v12936_v39, 0.0  ;;  %v12948_v17 = vld [vmem:[#allocation14_spill] sm:$0xff]  ;;  %v12951_v36 = vld [vmem:[#allocation39_spill] sm:$0xff] }
 0x308   :  { %v2405_v31 = vsel %vm2373_vm1, %v12937_v44, 0.0  ;;  %v2437_v32 = vsel %vm12364_vm13, %v12938_v37, 0.0  ;;  %v2445_v10 = vsel %vm12363_vm15, %v12939_v2, 0.0  ;;  %v2413_v60 = vsel %vm2381_vm10, %v12941_v33, 0.0  ;;  %v12966_v13 = vld [vmem:[#allocation23_spill] sm:$0xff] }
 0x309   :  { %4025 = vmatmul.mubr.bf16.gmra.mrb[60].mxu0 %v3480_v52  ;;  %v3226_v0 = vpack.c.bf16 %v3210_v14, %v3202_v50  ;;  %v2469_v47 = vadd.f32 %v2437_v32, %v2405_v31  ;;  %vm3235_vm2 = vcmp.eq.f32.partialorder %v12856_v11, 6.0  ;;  %v2477_v26 = vadd.f32 %v2445_v10, %v2413_v60 }
 0x30a   :  { %vm3243_vm8 = vcmp.eq.f32.partialorder %v12714_v28, 6.0  ;;  %v3267_v9 = vsel %vm3235_vm2, %v12911_v6, 0.0  ;;  %vm12943_vm6 = vcmp.eq.f32.partialorder %v12856_v11, 5.0  ;;  %v3307_v4 = vsel %vm3099_vm14, %v12915_v1, 0.0  ;;  %v12976_v11 = vld [vmem:[#allocation43_spill] sm:$0xff] }
 0x30b   :  { %v3299_v23 = vsel %vm12943_vm6, %v12912_v20, 0.0  ;;  %v3275_v53 = vsel %vm3243_vm8, %v12914_v56, 0.0  ;;  %vm12366_vm12 = vcmp.eq.f32.partialorder %v12945_v25, 7.0  ;;  %v2501_v6 = vpack.c.bf16 %v2477_v26, %v2469_v47  ;;  %v12952_v47 = vld [vmem:[#allocation15_spill] sm:$0xff] }
 0x30c   :  { %v3331_v15 = vadd.f32 %v3299_v23, %v3267_v9  ;;  %v3339_v8 = vadd.f32 %v3307_v4, %v3275_v53  ;;  %vm12365_vm4 = vcmp.eq.f32.partialorder %v12947_v21, 7.0  ;;  %vm2372_vm6 = vcmp.eq.f32.partialorder %v12945_v25, 0.0  ;;  %4154 = vmatmul.mubr.bf16.gmra.mrb[44].mxu1 %v3226_v0  ;;  %v12953_v23 = vld [vmem:[#allocation83_spill] sm:$0xff]  ;;  %v10249_v53 = vpop.f32.mrb[12].mxu0  ;;  %v12955_v4 = vld [vmem:[#allocation30_spill] sm:$0xff] }
 0x30d   :  { %vm2380_vm15 = vcmp.eq.f32.partialorder %v12947_v21, 0.0  ;;  %v2404_v56 = vsel %vm2372_vm6, %v12948_v17, 0.0  ;;  %v2436_v27 = vsel %vm12366_vm12, %v12949_v30, 0.0  ;;  %v2444_v48 = vsel %vm12365_vm4, %v12950_v54, 0.0  ;;  %4226 = vmatprep.mubr.bf16.mxu0 %v2501_v6  ;;  %12954 = vst [vmem:[#allocation47_spill] sm:$0xff] %v10249_v53  ;;  %v12956_v6 = vld [vmem:[#allocation33_spill] sm:$0xff] }
 0x30e   :  { %v3363_v35 = vpack.c.bf16 %v3339_v8, %v3331_v15  ;;  %v2412_v52 = vsel %vm2380_vm15, %v12951_v36, 0.0  ;;  %v2468_v50 = vadd.f32 %v2436_v27, %v2404_v56  ;;  %vm12367_vm14 = vcmp.eq.f32.partialorder %v12877_v62, 6.0  ;;  %v12957_v56 = vld [vmem:[#allocation36_spill] sm:$0xff] }
 0x30f   :  { %v2476_v14 = vadd.f32 %v2444_v48, %v2412_v52  ;;  %vm3242_vm13 = vcmp.eq.f32.partialorder %v12885_v55, 6.0  ;;  %v3266_v31 = vsel %vm12367_vm14, %v12887_v18, 0.0  ;;  %v3298_v32 = vsel %vm3090_vm5, %v12889_v57, 0.0  ;;  %v10261_v48 = vpop.f32.mrb[13].mxu0  ;;  %v12959_v52 = vld [vmem:[#allocation51_spill] sm:$0xff] }
 0x310   :  { %4161 = vmatprep.mubr.bf16.mxu1 %v3363_v35  ;;  %v3274_v10 = vsel %vm3242_vm13, %v12888_v43, 0.0  ;;  %v3306_v0 = vsel %vm3098_vm0, %v12890_v61, 0.0  ;;  %v3330_v60 = vadd.f32 %v3298_v32, %v3266_v31  ;;  %vm12368_vm4 = vcmp.eq.f32.partialorder %v12952_v47, 7.0  ;;  %12958 = vst [vmem:[#allocation66_spill] sm:$0xff] %v10261_v48  ;;  %v10267_v31 = vpop.f32.mrb[14].mxu0  ;;  %v12965_v48 = vld [vmem:[#allocation26_spill] sm:$0xff] }
 0x311   :  { %v2500_v26 = vpack.c.bf16 %v2476_v14, %v2468_v50  ;;  %v3338_v9 = vadd.f32 %v3306_v0, %v3274_v10  ;;  %vm12369_vm12 = vcmp.eq.f32.partialorder %v12953_v23, 7.0  ;;  %vm2389_vm14 = vcmp.eq.f32.partialorder %v12952_v47, 0.0  ;;  %12960 = vst [vmem:[#allocation5_spill] sm:$0xff] %v10267_v31  ;;  %v12963_v31 = vld [vmem:[#allocation25_spill] sm:$0xff] }
 0x312   :  { %vm12371_vm5 = vcmp.eq.f32.partialorder %v12953_v23, 0.0  ;;  %v2421_v15 = vsel %vm2389_vm14, %v12955_v4, 0.0  ;;  %v2453_v8 = vsel %vm12368_vm4, %v12956_v6, 0.0  ;;  %v2461_v27 = vsel %vm12369_vm12, %v12957_v56, 0.0 }
 0x313   :  { %4227 = vmatmul.mubr.bf16.vlgmr.msra.gmra.mrb[64].mxu0 %v2500_v26  ;;  %v3362_v35 = vpack.c.bf16 %v3338_v9, %v3330_v60  ;;  %v2429_v50 = vsel %vm12371_vm5, %v12959_v52, 0.0  ;;  %v2485_v14 = vadd.f32 %v2453_v8, %v2421_v15  ;;  %vm12370_vm0 = vcmp.eq.f32.partialorder %v12838_v45, 6.0  ;;  %v10276_v60 = vpop.f32.mrb[15].mxu0  ;;  %v12962_v8 = vld [vmem:[#allocation91_spill] sm:$0xff] }
 0x314   :  { %v2493_v32 = vadd.f32 %v2461_v27, %v2429_v50  ;;  %vm3259_vm4 = vcmp.eq.f32.partialorder %v12839_v24, 6.0  ;;  %v3283_v10 = vsel %vm12370_vm0, %v12891_v40, 0.0  ;;  %v3315_v0 = vsel %vm3107_vm3, %v12844_v59, 0.0  ;;  %12961 = vst [vmem:[#allocation6_spill] sm:$0xff] %v10276_v60 }
 0x315   :  { %4162 = vmatmul.mubr.bf16.gmra.mrb[48].mxu1 %v3362_v35  ;;  %v3291_v26 = vsel %vm3259_vm4, %v12894_v63, 0.0  ;;  %v3323_v9 = vsel %vm3115_vm11, %v12898_v3, 0.0  ;;  %v3347_v15 = vadd.f32 %v3315_v0, %v3283_v10  ;;  %vm12380_vm12 = vcmp.eq.f32.partialorder %v12962_v8, 7.0  ;;  %v12964_v35 = vld [vmem:[#allocation56_spill] sm:$0xff] }
 0x316   :  { %v2509_v27 = vpack.c.bf16 %v2493_v32, %v2485_v14  ;;  %v3355_v50 = vadd.f32 %v3323_v9, %v3291_v26  ;;  %vm12373_vm0 = vcmp.eq.f32.partialorder %v12963_v31, 7.0  ;;  %vm12372_vm3 = vcmp.eq.f32.partialorder %v12962_v8, 0.0  ;;  %v12967_v32 = vld [vmem:[#allocation70_spill] sm:$0xff] }
 0x317   :  { %vm2396_vm5 = vcmp.eq.f32.partialorder %v12963_v31, 0.0  ;;  %v2420_v60 = vsel %vm12372_vm3, %v12964_v35, 0.0  ;;  %v2452_v53 = vsel %vm12380_vm12, %v12965_v48, 0.0  ;;  %v2460_v10 = vsel %vm12373_vm0, %v12966_v13, 0.0 }
 0x318   :  { %4234 = vmatprep.mubr.bf16.mxu0 %v2509_v27  ;;  %v3371_v14 = vpack.c.bf16 %v3355_v50, %v3347_v15  ;;  %v2428_v0 = vsel %vm2396_vm5, %v12967_v32, 0.0  ;;  %v2484_v26 = vadd.f32 %v2452_v53, %v2420_v60  ;;  %vm3250_vm11 = vcmp.eq.f32.partialorder %v12774_v12, 6.0  ;;  %v10308_v27 = vpop.f32.mrb[16].mxu0 }
 0x319   :  { %v2492_v9 = vadd.f32 %v2460_v10, %v2428_v0  ;;  %vm3258_vm3 = vcmp.eq.f32.partialorder %v12705_v34, 6.0  ;;  %v3282_v19 = vsel %vm3250_vm11, %v12905_v22, 0.0  ;;  %v3314_v5 = vsel %vm3106_vm9, %v12906_v42, 0.0  ;;  %12968 = vst [vmem:[#allocation62_spill] sm:$0xff] %v10308_v27  ;;  %v10317_v50 = vpop.f32.mrb[17].mxu0 }
 0x31a   :  { %4169 = vmatprep.mubr.bf16.mxu1 %v3371_v14  ;;  %v3290_v53 = vsel %vm3258_vm3, %v12910_v58, 0.0  ;;  %v3322_v60 = vsel %vm3114_vm7, %v12908_v46, 0.0  ;;  %v3346_v15 = vadd.f32 %v3314_v5, %v3282_v19  ;;  %vm2517_vm0 = vcmp.eq.f32.partialorder %v12935_v38, 1.0  ;;  %12969 = vst [vmem:[#allocation68_spill] sm:$0xff] %v10317_v50  ;;  %v10323_v27 = vpop.f32.mrb[18].mxu0 }
 0x31b   :  { %v2508_v10 = vpack.c.bf16 %v2492_v9, %v2484_v26  ;;  %v3354_v0 = vadd.f32 %v3322_v60, %v3290_v53  ;;  %vm2525_vm9 = vcmp.eq.f32.partialorder %v12936_v39, 1.0  ;;  %v2549_v14 = vsel %vm2517_vm0, %v12937_v44, 0.0  ;;  %12970 = vst [vmem:[#allocation65_spill] sm:$0xff] %v10323_v27  ;;  %v10337_v9 = vpop.f32.mrb[19].mxu0 }
 0x31c   :  { %v2557_v29 = vsel %vm2525_vm9, %v12941_v33, 0.0  ;;  %v2581_v5 = vsel %vm2373_vm1, %v12938_v37, 0.0  ;;  %v2589_v19 = vsel %vm2381_vm10, %v12939_v2, 0.0  ;;  %v3411_v26 = vsel %vm3235_vm2, %v12912_v20, 0.0  ;;  %12971 = vst [vmem:[#allocation67_spill] sm:$0xff] %v10337_v9  ;;  %v12975_v2 = vld [vmem:[#allocation21_spill] sm:$0xff] }
 0x31d   :  { %4235 = vmatmul.mubr.bf16.gmra.mrb[68].mxu0 %v2508_v10  ;;  %v3370_v53 = vpack.c.bf16 %v3354_v0, %v3346_v15  ;;  %v2613_v60 = vadd.f32 %v2581_v5, %v2549_v14  ;;  %v2621_v27 = vadd.f32 %v2589_v19, %v2557_v29  ;;  %v3419_v50 = vsel %vm3243_vm8, %v12915_v1, 0.0  ;;  %v12977_v20 = vld [vmem:[#allocation45_spill] sm:$0xff] }
 0x31e   :  { %v3443_v16 = vadd.f32 %v3411_v26, %v12972_v51  ;;  %v3451_v41 = vadd.f32 %v3419_v50, %v12973_v7  ;;  %v10346_v37 = vadd.f32 %v12975_v2, %v12974_v49  ;;  %v10350_v33 = vadd.f32 %v12977_v20, %v12976_v11  ;;  %v10366_v2 = vpop.f32.mrb[20].mxu0  ;;  %v13034_v9 = vld [vmem:[#allocation57_spill] sm:$0xff] }
 0x31f   :  { %4170 = vmatmul.mubr.bf16.gmra.mrb[52].mxu1 %v3370_v53  ;;  %v2645_v15 = vpack.c.bf16 %v2621_v27, %v2613_v60  ;;  %vm2516_vm7 = vcmp.eq.f32.partialorder %v12945_v25, 1.0  ;;  %vm2524_vm1 = vcmp.eq.f32.partialorder %v12947_v21, 1.0  ;;  %v2580_v28 = vsel %vm2372_vm6, %v12949_v30, 0.0  ;;  %12978 = vst [vmem:[#allocation64_spill] sm:$0xff] %v10366_v2  ;;  %v10374_v50 = vpop.f32.mrb[21].mxu0  ;;  %v13033_v2 = vld [vmem:[#allocation27_spill] sm:$0xff] }
 0x320   :  { %v3475_v1 = vpack.c.bf16 %v3451_v41, %v3443_v16  ;;  %v2548_v49 = vsel %vm2516_vm7, %v12948_v17, 0.0  ;;  %v2556_v7 = vsel %vm2524_vm1, %v12951_v36, 0.0  ;;  %v2588_v51 = vsel %vm2380_vm15, %v12950_v54, 0.0  ;;  %12981 = vst [vmem:[#allocation59_spill] sm:$0xff] %v10374_v50  ;;  %v10386_v14 = vpop.f32.mrb[22].mxu0 }
 0x321   :  { %4242 = vmatprep.mubr.bf16.mxu0 %v2645_v15  ;;  %v2612_v29 = vadd.f32 %v2580_v28, %v2548_v49  ;;  %v2620_v27 = vadd.f32 %v2588_v51, %v2556_v7  ;;  %vm12979_vm10 = vcmp.eq.f32.partialorder %v12877_v62, 7.0  ;;  %vm12980_vm2 = vcmp.eq.f32.partialorder %v12885_v55, 7.0  ;;  %12984 = vst [vmem:[#allocation85_spill] sm:$0xff] %v10386_v14  ;;  %v10393_v26 = vpop.f32.mrb[23].mxu0  ;;  %v13025_v14 = vld [vmem:[#allocation8_spill] sm:$0xff] }
 0x322   :  { %v3378_v41 = vsel %vm12979_vm10, %v12887_v18, 0.0  ;;  %v3386_v16 = vsel %vm12980_vm2, %v12888_v43, 0.0  ;;  %4177 = vmatprep.mubr.bf16.mxu1 %v3475_v1  ;;  %vm12982_vm8 = vcmp.eq.f32.partialorder %v12877_v62, 6.0  ;;  %v3418_v0 = vsel %vm3242_vm13, %v12890_v61, 0.0  ;;  %v10384_v18 = vpop.f32.mrb[4].mxu1  ;;  %12986 = vst [vmem:[#allocation29_spill] sm:$0xff] %v10393_v26 }
 0x323   :  { %v3410_v10 = vsel %vm12982_vm8, %v12889_v57, 0.0  ;;  %vm2533_vm15 = vcmp.eq.f32.partialorder %v12952_v47, 1.0  ;;  %vm2541_vm6 = vcmp.eq.f32.partialorder %v12953_v23, 1.0  ;;  %12983 = vst [vmem:[#allocation86_spill] sm:$0xff] %v10384_v18  ;;  %v2644_v43 = vpack.c.bf16 %v2620_v27, %v2612_v29  ;;  %v10391_v57 = vpop.f32.mrb[5].mxu1  ;;  %v13024_v26 = vld [vmem:[#allocation24_spill] sm:$0xff] }
 0x324   :  { %v3442_v5 = vadd.f32 %v3410_v10, %v3378_v41  ;;  %v3450_v19 = vadd.f32 %v3418_v0, %v3386_v16  ;;  %v2565_v62 = vsel %vm2533_vm15, %v12955_v4, 0.0  ;;  %12985 = vst [vmem:[#allocation20_spill] sm:$0xff] %v10391_v57  ;;  %v2573_v55 = vsel %vm2541_vm6, %v12959_v52, 0.0  ;;  %v10407_v11 = vpop.f32.mrb[6].mxu1 }
 0x325   :  { %v2597_v61 = vsel %vm2389_vm14, %v12956_v6, 0.0  ;;  %vm12987_vm13 = vcmp.eq.f32.partialorder %v12953_v23, 0.0  ;;  %vm12988_vm10 = vcmp.eq.f32.partialorder %v12838_v45, 7.0  ;;  %12989 = vst [vmem:[#allocation82_spill] sm:$0xff] %v10407_v11  ;;  %4243 = vmatmul.mubr.bf16.gmra.mrb[72].mxu0 %v2644_v43  ;;  %vm12990_vm2 = vcmp.eq.f32.partialorder %v12839_v24, 7.0  ;;  %v10412_v49 = vpop.f32.mrb[7].mxu1 }
 0x326   :  { %v2605_v53 = vsel %vm12987_vm13, %v12957_v56, 0.0  ;;  %v3395_v60 = vsel %vm12988_vm10, %v12891_v40, 0.0  ;;  %v3474_v20 = vpack.c.bf16 %v3450_v19, %v3442_v5  ;;  %v2629_v15 = vadd.f32 %v2597_v61, %v2565_v62  ;;  %12991 = vst [vmem:[#allocation81_spill] sm:$0xff] %v10412_v49 }
 0x327   :  { %v2637_v28 = vadd.f32 %v2605_v53, %v2573_v55  ;;  %v3403_v1 = vsel %vm12990_vm2, %v12894_v63, 0.0  ;;  %vm12992_vm14 = vcmp.eq.f32.partialorder %v12838_v45, 6.0  ;;  %v3435_v40 = vsel %vm3259_vm4, %v12898_v3, 0.0  ;;  %v12996_v55 = vld [vmem:[#allocation48_spill] sm:$0xff]  ;;  %v12999_v53 = vld [vmem:[#allocation54_spill] sm:$0xff] }
 0x328   :  { %v3427_v7 = vsel %vm12992_vm14, %v12844_v59, 0.0  ;;  %vm2532_vm8 = vcmp.eq.f32.partialorder %v12962_v8, 1.0  ;;  %vm2540_vm13 = vcmp.eq.f32.partialorder %v12963_v31, 1.0  ;;  %4178 = vmatmul.mubr.bf16.gmra.mrb[56].mxu1 %v3474_v20  ;;  %v3467_v27 = vadd.f32 %v3435_v40, %v3403_v1  ;;  %v13001_v1 = vld [vmem:[#allocation92_spill] sm:$0xff]  ;;  %v13002_v40 = vld [vmem:[#allocation18_spill] sm:$0xff] }
 0x329   :  { %v2653_v51 = vpack.c.bf16 %v2637_v28, %v2629_v15  ;;  %v3459_v29 = vadd.f32 %v3427_v7, %v3395_v60  ;;  %v2564_v63 = vsel %vm2532_vm8, %v12964_v35, 0.0  ;;  %v2572_v59 = vsel %vm2540_vm13, %v12967_v32, 0.0  ;;  %v13000_v28 = vld [vmem:[#allocation34_spill] sm:$0xff] }
 0x32a   :  { %vm12993_vm10 = vcmp.eq.f32.partialorder %v12962_v8, 0.0  ;;  %v2604_v45 = vsel %vm2396_vm5, %v12966_v13, 0.0  ;;  %vm12994_vm4 = vcmp.eq.f32.partialorder %v12774_v12, 7.0  ;;  %vm12995_vm2 = vcmp.eq.f32.partialorder %v12705_v34, 7.0 }
 0x32b   :  { %v2596_v24 = vsel %vm12993_vm10, %v12965_v48, 0.0  ;;  %v3394_v3 = vsel %vm12994_vm4, %v12905_v22, 0.0  ;;  %4250 = vmatprep.mubr.bf16.mxu0 %v2653_v51  ;;  %v3483_v41 = vpack.c.bf16 %v3467_v27, %v3459_v29  ;;  %v2636_v10 = vadd.f32 %v2604_v45, %v2572_v59  ;;  %v13003_v27 = vld [vmem:[#allocation94_spill] sm:$0xff] }
 0x32c   :  { %v2628_v16 = vadd.f32 %v2596_v24, %v2564_v63  ;;  %v3402_v0 = vsel %vm12995_vm2, %v12910_v58, 0.0  ;;  %v3426_v43 = vsel %vm3250_vm11, %v12906_v42, 0.0  ;;  %v3434_v5 = vsel %vm3258_vm3, %v12908_v46, 0.0  ;;  %v12997_v42 = vld [vmem:[#allocation90_spill] sm:$0xff]  ;;  %v12998_v46 = vld [vmem:[#allocation32_spill] sm:$0xff] }
 0x32d   :  { %vm2661_vm5 = vcmp.eq.f32.partialorder %v12935_v38, 2.0  ;;  %vm2669_vm14 = vcmp.eq.f32.partialorder %v12936_v39, 2.0  ;;  %4185 = vmatprep.mubr.bf16.mxu1 %v3483_v41  ;;  %v3458_v19 = vadd.f32 %v3426_v43, %v3394_v3  ;;  %v3466_v62 = vadd.f32 %v3434_v5, %v3402_v0  ;;  %v13004_v59 = vld [vmem:[#allocation46_spill] sm:$0xff] }
 0x32e   :  { %v2652_v22 = vpack.c.bf16 %v2636_v10, %v2628_v16  ;;  %v2693_v58 = vsel %vm2661_vm5, %v12937_v44, 0.0  ;;  %v2701_v12 = vsel %vm2669_vm14, %v12996_v55, 0.0  ;;  %v2725_v34 = vsel %vm2517_vm0, %v12997_v42, 0.0 }
 0x32f   :  { %v2733_v61 = vsel %vm2525_vm9, %v12998_v46, 0.0  ;;  %vm12379_vm3 = vcmp.eq.f32.partialorder %v12999_v53, 7.0  ;;  %v3482_v60 = vpack.c.bf16 %v3466_v62, %v3458_v19  ;;  %v2757_v20 = vadd.f32 %v2725_v34, %v2693_v58 }
 0x330   :  { %4251 = vmatmul.mubr.bf16.gmra.mrb[76].mxu0 %v2652_v22  ;;  %v2765_v15 = vadd.f32 %v2733_v61, %v2701_v12  ;;  %vm12378_vm11 = vcmp.eq.f32.partialorder %v13000_v28, 7.0  ;;  %vm2375_vm10 = vcmp.eq.f32.partialorder %v12999_v53, 0.0  ;;  %vm2383_vm4 = vcmp.eq.f32.partialorder %v13000_v28, 0.0 }
 0x331   :  { %v2439_v7 = vsel %vm12379_vm3, %v13001_v1, 0.0  ;;  %v2447_v51 = vsel %vm12378_vm11, %v13002_v40, 0.0  ;;  %4186 = vmatmul.mubr.bf16.gmra.mrb[60].mxu1 %v3482_v60  ;;  %v2407_v63 = vsel %vm2375_vm10, %v13003_v27, 0.0  ;;  %v2415_v24 = vsel %vm2383_vm4, %v13004_v59, 0.0 }
 0x332   :  { %v2789_v29 = vpack.c.bf16 %v2765_v15, %v2757_v20  ;;  %vm2660_vm0 = vcmp.eq.f32.partialorder %v12945_v25, 2.0  ;;  %v2471_v45 = vadd.f32 %v2439_v7, %v2407_v63  ;;  %v2479_v3 = vadd.f32 %v2447_v51, %v2415_v24  ;;  %v13005_v20 = vld [vmem:[#allocation77_spill] sm:$0xff]  ;;  %v10505_v15 = vpop.f32.mrb[24].mxu0  ;;  %v13007_v7 = vld [vmem:[#allocation7_spill] sm:$0xff] }
 0x333   :  { %vm2668_vm9 = vcmp.eq.f32.partialorder %v12947_v21, 2.0  ;;  %v2692_v41 = vsel %vm2660_vm0, %v12948_v17, 0.0  ;;  %v2724_v10 = vsel %vm2516_vm7, %v12949_v30, 0.0  ;;  %v2732_v0 = vsel %vm2524_vm1, %v12950_v54, 0.0  ;;  %13006 = vst [vmem:[#allocation40_spill] sm:$0xff] %v10505_v15  ;;  %v13008_v51 = vld [vmem:[#allocation69_spill] sm:$0xff] }
 0x334   :  { %4258 = vmatprep.mubr.bf16.mxu0 %v2789_v29  ;;  %v2700_v16 = vsel %vm2668_vm9, %v12951_v36, 0.0  ;;  %vm2677_vm2 = vcmp.eq.f32.partialorder %v12952_v47, 2.0  ;;  %v2503_v43 = vpack.c.bf16 %v2479_v3, %v2471_v45  ;;  %v2756_v5 = vadd.f32 %v2724_v10, %v2692_v41  ;;  %v10513_v63 = vpop.f32.mrb[25].mxu0  ;;  %v13010_v45 = vld [vmem:[#allocation93_spill] sm:$0xff]  ;;  %v13011_v41 = vld [vmem:[#allocation75_spill] sm:$0xff]  ;;  %v13012_v10 = vld [vmem:[#allocation38_spill] sm:$0xff] }
 0x335   :  { %v2764_v22 = vadd.f32 %v2732_v0, %v2700_v16  ;;  %vm2685_vm11 = vcmp.eq.f32.partialorder %v12953_v23, 2.0  ;;  %v2709_v19 = vsel %vm2677_vm2, %v12955_v4, 0.0  ;;  %v2741_v58 = vsel %vm2533_vm15, %v12956_v6, 0.0  ;;  %13009 = vst [vmem:[#allocation41_spill] sm:$0xff] %v10513_v63 }
 0x336   :  { %v2717_v62 = vsel %vm2685_vm11, %v12959_v52, 0.0  ;;  %v2749_v12 = vsel %vm2541_vm6, %v12957_v56, 0.0  ;;  %4387 = vmatprep.mubr.bf16.mxu1 %v2503_v43  ;;  %v2773_v61 = vadd.f32 %v2741_v58, %v2709_v19  ;;  %vm12381_vm7 = vcmp.eq.f32.partialorder %v13005_v20, 7.0  ;;  %v10524_v43 = vpop.f32.mrb[26].mxu0  ;;  %v13014_v19 = vld [vmem:[#allocation58_spill] sm:$0xff] }
 0x337   :  { %v2788_v34 = vpack.c.bf16 %v2764_v22, %v2756_v5  ;;  %v2781_v60 = vadd.f32 %v2749_v12, %v2717_v62  ;;  %vm12383_vm1 = vcmp.eq.f32.partialorder %v13007_v7, 7.0  ;;  %vm12382_vm3 = vcmp.eq.f32.partialorder %v13005_v20, 0.0  ;;  %13013 = vst [vmem:[#allocation71_spill] sm:$0xff] %v10524_v43  ;;  %v13015_v62 = vld [vmem:[#allocation28_spill] sm:$0xff]  ;;  %v10528_v58 = vpop.f32.mrb[27].mxu0 }
 0x338   :  { %vm12384_vm12 = vcmp.eq.f32.partialorder %v13007_v7, 0.0  ;;  %v2438_v29 = vsel %vm12381_vm7, %v13008_v51, 0.0  ;;  %v2406_v3 = vsel %vm12382_vm3, %v13010_v45, 0.0  ;;  %v2446_v0 = vsel %vm12383_vm1, %v13012_v10, 0.0  ;;  %13016 = vst [vmem:[#allocation76_spill] sm:$0xff] %v10528_v58  ;;  %v13017_v12 = vld [vmem:[#allocation84_spill] sm:$0xff] }
 0x339   :  { %4259 = vmatmul.mubr.bf16.gmra.mrb[80].mxu0 %v2788_v34  ;;  %v2797_v24 = vpack.c.bf16 %v2781_v60, %v2773_v61  ;;  %v2414_v16 = vsel %vm12384_vm12, %v13011_v41, 0.0  ;;  %v2470_v5 = vadd.f32 %v2438_v29, %v2406_v3  ;;  %vm12386_vm15 = vcmp.eq.f32.partialorder %v13014_v19, 7.0  ;;  %v13018_v61 = vld [vmem:[#allocation11_spill] sm:$0xff] }
 0x33a   :  { %v2478_v22 = vadd.f32 %v2446_v0, %v2414_v16  ;;  %vm12385_vm6 = vcmp.eq.f32.partialorder %v13015_v62, 7.0  ;;  %vm2391_vm7 = vcmp.eq.f32.partialorder %v13014_v19, 0.0  ;;  %vm2399_vm3 = vcmp.eq.f32.partialorder %v13015_v62, 0.0  ;;  %v13019_v3 = vld [vmem:[#allocation35_spill] sm:$0xff]  ;;  %v13020_v0 = vld [vmem:[#allocation53_spill] sm:$0xff] }
 0x33b   :  { %4266 = vmatprep.mubr.bf16.mxu0 %v2797_v24  ;;  %v2455_v34 = vsel %vm12386_vm15, %v13017_v12, 0.0  ;;  %v2463_v60 = vsel %vm12385_vm6, %v13018_v61, 0.0  ;;  %v2423_v16 = vsel %vm2391_vm7, %v13019_v3, 0.0  ;;  %v2431_v24 = vsel %vm2399_vm3, %v13020_v0, 0.0 }
 0x33c   :  { %v2502_v29 = vpack.c.bf16 %v2478_v22, %v2470_v5  ;;  %vm2676_vm1 = vcmp.eq.f32.partialorder %v12962_v8, 2.0  ;;  %v2487_v58 = vadd.f32 %v2455_v34, %v2423_v16  ;;  %v2495_v43 = vadd.f32 %v2463_v60, %v2431_v24 }
 0x33d   :  { %vm2684_vm12 = vcmp.eq.f32.partialorder %v12963_v31, 2.0  ;;  %v2708_v63 = vsel %vm2676_vm1, %v12964_v35, 0.0  ;;  %v2740_v22 = vsel %vm2532_vm8, %v12965_v48, 0.0  ;;  %v2748_v34 = vsel %vm2540_vm13, %v12966_v13, 0.0 }
 0x33e   :  { %4388 = vmatmul.mubr.bf16.vlgmr.msra.gmra.mrb[64].mxu1 %v2502_v29  ;;  %v2716_v5 = vsel %vm2684_vm12, %v12967_v32, 0.0  ;;  %vm2805_vm6 = vcmp.eq.f32.partialorder %v12935_v38, 3.0  ;;  %v2511_v60 = vpack.c.bf16 %v2495_v43, %v2487_v58  ;;  %v2772_v16 = vadd.f32 %v2740_v22, %v2708_v63  ;;  %v10572_v63 = vpop.f32.mrb[8].mxu1 }
 0x33f   :  { %v2780_v24 = vadd.f32 %v2748_v34, %v2716_v5  ;;  %vm12387_vm15 = vcmp.eq.f32.partialorder %v12936_v39, 3.0  ;;  %v2837_v29 = vsel %vm2805_vm6, %v12937_v44, 0.0  ;;  %v2869_v49 = vsel %vm2661_vm5, %v12997_v42, 0.0  ;;  %13021 = vst [vmem:[#allocation73_spill] sm:$0xff] %v10572_v63  ;;  %v13022_v34 = vld [vmem:[#allocation19_spill] sm:$0xff]  ;;  %v10575_v11 = vpop.f32.mrb[9].mxu1 }
 0x340   :  { %v2845_v15 = vsel %vm12387_vm15, %v12996_v55, 0.0  ;;  %v2877_v43 = vsel %vm2669_vm14, %v12998_v46, 0.0  ;;  %4395 = vmatprep.mubr.bf16.mxu1 %v2511_v60  ;;  %v2901_v5 = vadd.f32 %v2869_v49, %v2837_v29  ;;  %vm12388_vm8 = vcmp.eq.f32.partialorder %v13022_v34, 7.0  ;;  %13023 = vst [vmem:[#allocation74_spill] sm:$0xff] %v10575_v11  ;;  %v10583_v18 = vpop.f32.mrb[10].mxu1  ;;  %v13027_v49 = vld [vmem:[#allocation87_spill] sm:$0xff] }
 0x341   :  { %v2796_v58 = vpack.c.bf16 %v2780_v24, %v2772_v16  ;;  %v2909_v22 = vadd.f32 %v2877_v43, %v2845_v15  ;;  %vm12390_vm13 = vcmp.eq.f32.partialorder %v13024_v26, 7.0  ;;  %vm2390_vm15 = vcmp.eq.f32.partialorder %v13022_v34, 0.0  ;;  %13026 = vst [vmem:[#allocation60_spill] sm:$0xff] %v10583_v18  ;;  %v13028_v16 = vld [vmem:[#allocation49_spill] sm:$0xff]  ;;  %v10594_v11 = vpop.f32.mrb[11].mxu1 }
 0x342   :  { %vm2398_vm5 = vcmp.eq.f32.partialorder %v13024_v26, 0.0  ;;  %v2454_v57 = vsel %vm12388_vm8, %v13025_v14, 0.0  ;;  %v2422_v15 = vsel %vm2390_vm15, %v13027_v49, 0.0  ;;  %v13029_v29 = vld [vmem:[#allocation9_spill] sm:$0xff]  ;;  %13030 = vst [vmem:[#allocation63_spill] sm:$0xff] %v10594_v11  ;;  %vm2519_vm14 = vcmp.eq.f32.partialorder %v12999_v53, 1.0 }
 0x343   :  { %4267 = vmatmul.mubr.bf16.gmra.mrb[84].mxu0 %v2796_v58  ;;  %v2933_v60 = vpack.c.bf16 %v2909_v22, %v2901_v5  ;;  %v2430_v24 = vsel %vm2398_vm5, %v13028_v16, 0.0  ;;  %v2462_v43 = vsel %vm12390_vm13, %v13029_v29, 0.0  ;;  %v2486_v63 = vadd.f32 %v2454_v57, %v2422_v15  ;;  %v13032_v11 = vld [vmem:[#allocation17_spill] sm:$0xff] }
 0x344   :  { %v2494_v50 = vadd.f32 %v2462_v43, %v2430_v24  ;;  %vm12391_vm8 = vcmp.eq.f32.partialorder %v13000_v28, 1.0  ;;  %v2551_v58 = vsel %vm2519_vm14, %v13003_v27, 0.0  ;;  %v2583_v22 = vsel %vm2375_vm10, %v13001_v1, 0.0 }
 0x345   :  { %4274 = vmatprep.mubr.bf16.mxu0 %v2933_v60  ;;  %v2559_v5 = vsel %vm12391_vm8, %v13004_v59, 0.0  ;;  %v2591_v57 = vsel %vm2383_vm4, %v13002_v40, 0.0  ;;  %v2615_v24 = vadd.f32 %v2583_v22, %v2551_v58  ;;  %v13031_v60 = vld [vmem:[#allocation44_spill] sm:$0xff]  ;;  %v5198_v27 = vadd.f32 %v13034_v9, %v13033_v2 }
 0x346   :  { %v2510_v15 = vpack.c.bf16 %v2494_v50, %v2486_v63  ;;  %v2623_v43 = vadd.f32 %v2591_v57, %v2559_v5  ;;  %v5195_v18 = vadd.f32 %v13032_v11, %v13031_v60  ;;  %vm2804_vm13 = vcmp.eq.f32.partialorder %v12945_v25, 3.0 }
 0x347   :  { %vm2812_vm8 = vcmp.eq.f32.partialorder %v12947_v21, 3.0  ;;  %v2868_v1 = vsel %vm2660_vm0, %v12949_v30, 0.0  ;;  %v2836_v11 = vsel %vm2804_vm13, %v12948_v17, 0.0  ;;  %v10629_v2 = vadd.f32 %v5198_v27, %v10350_v33 }
 0x348   :  { %4396 = vmatmul.mubr.bf16.gmra.mrb[68].mxu1 %v2510_v15  ;;  %v2647_v59 = vpack.c.bf16 %v2623_v43, %v2615_v24  ;;  %v10620_v50 = vadd.f32 %v5195_v18, %v10346_v37  ;;  %v2844_v9 = vsel %vm2812_vm8, %v12951_v36, 0.0  ;;  %v2876_v63 = vsel %vm2668_vm9, %v12950_v54, 0.0 }
 0x349   :  { %13036 = vst [vmem:[#allocation50_spill] sm:$0xff] %v10629_v2  ;;  %v2900_v58 = vadd.f32 %v2868_v1, %v2836_v11  ;;  %vm2821_vm10 = vcmp.eq.f32.partialorder %v12952_v47, 3.0  ;;  %v2908_v37 = vadd.f32 %v2876_v63, %v2844_v9  ;;  %vm12394_vm4 = vcmp.eq.f32.partialorder %v12953_v23, 3.0 }
 0x34a   :  { %13035 = vst [vmem:[#allocation88_spill] sm:$0xff] %v10620_v50  ;;  %4403 = vmatprep.mubr.bf16.mxu1 %v2647_v59  ;;  %v2853_v18 = vsel %vm2821_vm10, %v12955_v4, 0.0  ;;  %v2885_v33 = vsel %vm2677_vm2, %v12956_v6, 0.0  ;;  %v2861_v27 = vsel %vm12394_vm4, %v12959_v52, 0.0  ;;  %v2893_v1 = vsel %vm2685_vm11, %v12957_v56, 0.0 }
 0x34b   :  { %v2917_v59 = vadd.f32 %v2885_v33, %v2853_v18  ;;  %vm12395_vm0 = vcmp.eq.f32.partialorder %v13005_v20, 1.0  ;;  %v2932_v5 = vpack.c.bf16 %v2908_v37, %v2900_v58  ;;  %v2925_v22 = vadd.f32 %v2893_v1, %v2861_v27 }
 0x34c   :  { %vm2526_vm9 = vcmp.eq.f32.partialorder %v13007_v7, 1.0  ;;  %v2550_v57 = vsel %vm12395_vm0, %v13010_v45, 0.0  ;;  %vm13037_vm2 = vcmp.eq.f32.partialorder %v13005_v20, 0.0  ;;  %vm13038_vm11 = vcmp.eq.f32.partialorder %v13007_v7, 0.0 }
 0x34d   :  { %v2558_v15 = vsel %vm2526_vm9, %v13011_v41, 0.0  ;;  %v2582_v24 = vsel %vm13037_vm2, %v13008_v51, 0.0  ;;  %v2590_v43 = vsel %vm13038_vm11, %v13012_v10, 0.0  ;;  %vm2535_vm4 = vcmp.eq.f32.partialorder %v13014_v19, 1.0  ;;  %4275 = vmatmul.mubr.bf16.gmra.mrb[88].mxu0 %v2932_v5 }
 0x34e   :  { %v2941_v60 = vpack.c.bf16 %v2925_v22, %v2917_v59  ;;  %v2614_v11 = vadd.f32 %v2582_v24, %v2550_v57  ;;  %v2622_v9 = vadd.f32 %v2590_v43, %v2558_v15  ;;  %vm2543_vm0 = vcmp.eq.f32.partialorder %v13015_v62, 1.0 }
 0x34f   :  { %v2567_v63 = vsel %vm2535_vm4, %v13019_v3, 0.0  ;;  %v2575_v58 = vsel %vm2543_vm0, %v13020_v0, 0.0  ;;  %v2599_v37 = vsel %vm2391_vm7, %v13017_v12, 0.0  ;;  %v2607_v18 = vsel %vm2399_vm3, %v13018_v61, 0.0 }
 0x350   :  { %4282 = vmatprep.mubr.bf16.mxu0 %v2941_v60  ;;  %v2646_v33 = vpack.c.bf16 %v2622_v9, %v2614_v11  ;;  %v2631_v27 = vadd.f32 %v2599_v37, %v2567_v63  ;;  %v2639_v1 = vadd.f32 %v2607_v18, %v2575_v58  ;;  %vm2820_vm2 = vcmp.eq.f32.partialorder %v12962_v8, 3.0 }
 0x351   :  { %vm2828_vm11 = vcmp.eq.f32.partialorder %v12963_v31, 3.0  ;;  %v2852_v59 = vsel %vm2820_vm2, %v12964_v35, 0.0  ;;  %v2884_v5 = vsel %vm2676_vm1, %v12965_v48, 0.0  ;;  %v2892_v22 = vsel %vm2684_vm12, %v12966_v13, 0.0 }
 0x352   :  { %4404 = vmatmul.mubr.bf16.gmra.mrb[72].mxu1 %v2646_v33  ;;  %v2655_v57 = vpack.c.bf16 %v2639_v1, %v2631_v27  ;;  %v2860_v15 = vsel %vm2828_vm11, %v12967_v32, 0.0  ;;  %v2916_v24 = vadd.f32 %v2884_v5, %v2852_v59  ;;  %vm12396_vm3 = vcmp.eq.f32.partialorder %v12935_v38, 4.0 }
 0x353   :  { %v2924_v43 = vadd.f32 %v2892_v22, %v2860_v15  ;;  %vm2957_vm7 = vcmp.eq.f32.partialorder %v12936_v39, 4.0  ;;  %v2981_v60 = vsel %vm12396_vm3, %v12937_v44, 0.0  ;;  %v3013_v11 = vsel %vm2805_vm6, %v12997_v42, 0.0  ;;  %v13040_v15 = vld [vmem:[#allocation94_spill] sm:$0xff] }
 0x354   :  { %4411 = vmatprep.mubr.bf16.mxu1 %v2655_v57  ;;  %v2989_v9 = vsel %vm2957_vm7, %v12996_v55, 0.0  ;;  %vm13039_vm12 = vcmp.eq.f32.partialorder %v12936_v39, 3.0  ;;  %v3045_v58 = vadd.f32 %v3013_v11, %v2981_v60  ;;  %vm2534_vm1 = vcmp.eq.f32.partialorder %v13022_v34, 1.0  ;;  %v13042_v11 = vld [vmem:[#allocation92_spill] sm:$0xff] }
 0x355   :  { %v3021_v63 = vsel %vm13039_vm12, %v12998_v46, 0.0  ;;  %v2940_v37 = vpack.c.bf16 %v2924_v43, %v2916_v24  ;;  %vm2542_vm3 = vcmp.eq.f32.partialorder %v13024_v26, 1.0  ;;  %v2566_v33 = vsel %vm2534_vm1, %v13027_v49, 0.0  ;;  %v13041_v43 = vld [vmem:[#allocation46_spill] sm:$0xff] }
 0x356   :  { %v3053_v18 = vadd.f32 %v3021_v63, %v2989_v9  ;;  %v2574_v27 = vsel %vm2542_vm3, %v13028_v16, 0.0  ;;  %v2598_v1 = vsel %vm2390_vm15, %v13025_v14, 0.0  ;;  %v2606_v59 = vsel %vm2398_vm5, %v13029_v29, 0.0 }
 0x357   :  { %vm12397_vm6 = vcmp.eq.f32.partialorder %v12999_v53, 2.0  ;;  %4283 = vmatmul.mubr.bf16.gmra.mrb[92].mxu0 %v2940_v37  ;;  %v2630_v22 = vadd.f32 %v2598_v1, %v2566_v33  ;;  %v2638_v57 = vadd.f32 %v2606_v59, %v2574_v27  ;;  %vm2671_vm12 = vcmp.eq.f32.partialorder %v13000_v28, 2.0 }
 0x358   :  { %v3077_v5 = vpack.c.bf16 %v3053_v18, %v3045_v58  ;;  %v2695_v24 = vsel %vm12397_vm6, %v13040_v15, 0.0  ;;  %v2703_v60 = vsel %vm2671_vm12, %v13041_v43, 0.0  ;;  %v2727_v9 = vsel %vm2519_vm14, %v13042_v11, 0.0 }
 0x359   :  { %vm13043_vm15 = vcmp.eq.f32.partialorder %v13000_v28, 1.0  ;;  %v2654_v58 = vpack.c.bf16 %v2638_v57, %v2630_v22  ;;  %v2759_v37 = vadd.f32 %v2727_v9, %v2695_v24  ;;  %vm2948_vm5 = vcmp.eq.f32.partialorder %v12945_v25, 4.0  ;;  %v10747_v57 = vpop.f32.mrb[28].mxu0 }
 0x35a   :  { %v2735_v63 = vsel %vm13043_vm15, %v13002_v40, 0.0  ;;  %4290 = vmatprep.mubr.bf16.mxu0 %v3077_v5  ;;  %vm2956_vm6 = vcmp.eq.f32.partialorder %v12947_v21, 4.0  ;;  %v2980_v33 = vsel %vm2948_vm5, %v12948_v17, 0.0  ;;  %v3012_v27 = vsel %vm2804_vm13, %v12949_v30, 0.0  ;;  %13044 = vst [vmem:[#allocation89_spill] sm:$0xff] %v10747_v57 }
 0x35b   :  { %v2767_v18 = vadd.f32 %v2735_v63, %v2703_v60  ;;  %v3020_v1 = vsel %vm2812_vm8, %v12950_v54, 0.0  ;;  %4412 = vmatmul.mubr.bf16.gmra.mrb[76].mxu1 %v2654_v58  ;;  %v2988_v5 = vsel %vm2956_vm6, %v12951_v36, 0.0  ;;  %v3044_v22 = vadd.f32 %v3012_v27, %v2980_v33  ;;  %v10756_v63 = vpop.f32.mrb[29].mxu0 }
 0x35c   :  { %vm2965_vm14 = vcmp.eq.f32.partialorder %v12952_v47, 4.0  ;;  %v3052_v24 = vadd.f32 %v3020_v1, %v2988_v5  ;;  %vm12398_vm15 = vcmp.eq.f32.partialorder %v12953_v23, 4.0  ;;  %v3029_v9 = vsel %vm2821_vm10, %v12956_v6, 0.0  ;;  %13045 = vst [vmem:[#allocation16_spill] sm:$0xff] %v10756_v63  ;;  %v10765_v33 = vpop.f32.mrb[30].mxu0  ;;  %v13063_v63 = vld [vmem:[#allocation61_spill] sm:$0xff] }
 0x35d   :  { %v2791_v59 = vpack.c.bf16 %v2767_v18, %v2759_v37  ;;  %v2997_v60 = vsel %vm2965_vm14, %v12955_v4, 0.0  ;;  %v3005_v58 = vsel %vm12398_vm15, %v12959_v52, 0.0  ;;  %vm13046_vm8 = vcmp.eq.f32.partialorder %v12953_v23, 3.0  ;;  %13047 = vst [vmem:[#allocation13_spill] sm:$0xff] %v10765_v33  ;;  %v10771_v5 = vpop.f32.mrb[31].mxu0 }
 0x35e   :  { %v3037_v37 = vsel %vm13046_vm8, %v12957_v56, 0.0  ;;  %v3061_v18 = vadd.f32 %v3029_v9, %v2997_v60  ;;  %vm12399_vm13 = vcmp.eq.f32.partialorder %v13005_v20, 2.0  ;;  %v3076_v27 = vpack.c.bf16 %v3052_v24, %v3044_v22  ;;  %13048 = vst [vmem:[#allocation14_spill] sm:$0xff] %v10771_v5 }
 0x35f   :  { %4419 = vmatprep.mubr.bf16.mxu1 %v2791_v59  ;;  %v3069_v1 = vadd.f32 %v3037_v37, %v3005_v58  ;;  %vm2670_vm10 = vcmp.eq.f32.partialorder %v13007_v7, 2.0  ;;  %v2694_v59 = vsel %vm12399_vm13, %v13010_v45, 0.0  ;;  %vm13049_vm8 = vcmp.eq.f32.partialorder %v13005_v20, 1.0 }
 0x360   :  { %v2702_v2 = vsel %vm2670_vm10, %v13011_v41, 0.0  ;;  %v2726_v60 = vsel %vm13049_vm8, %v13008_v51, 0.0  ;;  %v2734_v22 = vsel %vm2526_vm9, %v13012_v10, 0.0  ;;  %vm2679_vm15 = vcmp.eq.f32.partialorder %v13014_v19, 2.0  ;;  %4291 = vmatmul.mubr.bf16.gmra.mrb[96].mxu0 %v3076_v27 }
 0x361   :  { %v3085_v24 = vpack.c.bf16 %v3069_v1, %v3061_v18  ;;  %v2758_v9 = vadd.f32 %v2726_v60, %v2694_v59  ;;  %v2766_v58 = vadd.f32 %v2734_v22, %v2702_v2  ;;  %vm2687_vm13 = vcmp.eq.f32.partialorder %v13015_v62, 2.0 }
 0x362   :  { %v2711_v37 = vsel %vm2679_vm15, %v13019_v3, 0.0  ;;  %v2719_v50 = vsel %vm2687_vm13, %v13020_v0, 0.0  ;;  %v2743_v5 = vsel %vm2535_vm4, %v13017_v12, 0.0  ;;  %v2751_v18 = vsel %vm2543_vm0, %v13018_v61, 0.0 }
 0x363   :  { %4298 = vmatprep.mubr.bf16.mxu0 %v3085_v24  ;;  %v2790_v2 = vpack.c.bf16 %v2766_v58, %v2758_v9  ;;  %v2775_v27 = vadd.f32 %v2743_v5, %v2711_v37  ;;  %v2783_v1 = vadd.f32 %v2751_v18, %v2719_v50  ;;  %vm2964_vm9 = vcmp.eq.f32.partialorder %v12962_v8, 4.0 }
 0x364   :  { %vm2972_vm8 = vcmp.eq.f32.partialorder %v12963_v31, 4.0  ;;  %v2996_v59 = vsel %vm2964_vm9, %v12964_v35, 0.0  ;;  %v3028_v60 = vsel %vm2820_vm2, %v12965_v48, 0.0  ;;  %v3036_v22 = vsel %vm2828_vm11, %v12966_v13, 0.0 }
 0x365   :  { %4420 = vmatmul.mubr.bf16.gmra.mrb[80].mxu1 %v2790_v2  ;;  %v2799_v24 = vpack.c.bf16 %v2783_v1, %v2775_v27  ;;  %v3004_v50 = vsel %vm2972_vm8, %v12967_v32, 0.0  ;;  %v3060_v5 = vadd.f32 %v3028_v60, %v2996_v59  ;;  %vm12400_vm4 = vcmp.eq.f32.partialorder %v12935_v38, 5.0  ;;  %v10825_v1 = vpop.f32.mrb[12].mxu1 }
 0x366   :  { %v3068_v9 = vadd.f32 %v3036_v22, %v3004_v50  ;;  %vm3101_vm0 = vcmp.eq.f32.partialorder %v12936_v39, 5.0  ;;  %v3125_v58 = vsel %vm12400_vm4, %v12937_v44, 0.0  ;;  %vm13050_vm2 = vcmp.eq.f32.partialorder %v12935_v38, 4.0  ;;  %13051 = vst [vmem:[#allocation12_spill] sm:$0xff] %v10825_v1 }
 0x367   :  { %v3157_v37 = vsel %vm13050_vm2, %v12997_v42, 0.0  ;;  %4427 = vmatprep.mubr.bf16.mxu1 %v2799_v24  ;;  %v3133_v18 = vsel %vm3101_vm0, %v12996_v55, 0.0  ;;  %v3165_v2 = vsel %vm2957_vm7, %v12998_v46, 0.0  ;;  %vm2678_vm11 = vcmp.eq.f32.partialorder %v13022_v34, 2.0  ;;  %v10831_v24 = vpop.f32.mrb[13].mxu1 }
 0x368   :  { %v3189_v27 = vadd.f32 %v3157_v37, %v3125_v58  ;;  %v3084_v59 = vpack.c.bf16 %v3068_v9, %v3060_v5  ;;  %v3197_v60 = vadd.f32 %v3165_v2, %v3133_v18  ;;  %vm2686_vm4 = vcmp.eq.f32.partialorder %v13024_v26, 2.0  ;;  %13052 = vst [vmem:[#allocation10_spill] sm:$0xff] %v10831_v24  ;;  %v10843_v9 = vpop.f32.mrb[14].mxu1 }
 0x369   :  { %v2710_v22 = vsel %vm2678_vm11, %v13027_v49, 0.0  ;;  %v2718_v50 = vsel %vm2686_vm4, %v13028_v16, 0.0  ;;  %v2742_v58 = vsel %vm2534_vm1, %v13025_v14, 0.0  ;;  %v2750_v5 = vsel %vm2542_vm3, %v13029_v29, 0.0  ;;  %13053 = vst [vmem:[#allocation39_spill] sm:$0xff] %v10843_v9  ;;  %v10846_v33 = vpop.f32.mrb[15].mxu1 }
 0x36a   :  { %vm12401_vm7 = vcmp.eq.f32.partialorder %v12999_v53, 3.0  ;;  %4299 = vmatmul.mubr.bf16.gmra.mrb[100].mxu0 %v3084_v59  ;;  %v3221_v37 = vpack.c.bf16 %v3197_v60, %v3189_v27  ;;  %v2774_v18 = vadd.f32 %v2742_v58, %v2710_v22  ;;  %v2782_v2 = vadd.f32 %v2750_v5, %v2718_v50  ;;  %13054 = vst [vmem:[#allocation15_spill] sm:$0xff] %v10846_v33  ;;  %v13062_v33 = vld [vmem:[#allocation52_spill] sm:$0xff] }
 0x36b   :  { %vm2815_vm2 = vcmp.eq.f32.partialorder %v13000_v28, 3.0  ;;  %v2839_v24 = vsel %vm12401_vm7, %v13040_v15, 0.0  ;;  %vm13055_vm3 = vcmp.eq.f32.partialorder %v12999_v53, 2.0  ;;  %v2879_v27 = vsel %vm2671_vm12, %v13002_v40, 0.0 }
 0x36c   :  { %v2847_v1 = vsel %vm2815_vm2, %v13041_v43, 0.0  ;;  %v2871_v9 = vsel %vm13055_vm3, %v13042_v11, 0.0  ;;  %4306 = vmatprep.mubr.bf16.mxu0 %v3221_v37  ;;  %v2798_v59 = vpack.c.bf16 %v2782_v2, %v2774_v18  ;;  %vm3092_vm1 = vcmp.eq.f32.partialorder %v12945_v25, 5.0 }
 0x36d   :  { %v2903_v60 = vadd.f32 %v2871_v9, %v2839_v24  ;;  %v2911_v22 = vadd.f32 %v2879_v27, %v2847_v1  ;;  %vm3100_vm7 = vcmp.eq.f32.partialorder %v12947_v21, 5.0  ;;  %v3124_v50 = vsel %vm3092_vm1, %v12948_v17, 0.0 }
 0x36e   :  { %v3156_v58 = vsel %vm2948_vm5, %v12949_v30, 0.0  ;;  %v3164_v5 = vsel %vm2956_vm6, %v12950_v54, 0.0  ;;  %4428 = vmatmul.mubr.bf16.gmra.mrb[84].mxu1 %v2798_v59  ;;  %v3132_v1 = vsel %vm3100_vm7, %v12951_v36, 0.0  ;;  %vm12402_vm12 = vcmp.eq.f32.partialorder %v12952_v47, 5.0 }
 0x36f   :  { %v2935_v37 = vpack.c.bf16 %v2911_v22, %v2903_v60  ;;  %v3188_v24 = vadd.f32 %v3156_v58, %v3124_v50  ;;  %v3196_v9 = vadd.f32 %v3164_v5, %v3132_v1  ;;  %vm3117_vm3 = vcmp.eq.f32.partialorder %v12953_v23, 5.0 }
 0x370   :  { %v3141_v18 = vsel %vm12402_vm12, %v12955_v4, 0.0  ;;  %v3173_v2 = vsel %vm2965_vm14, %v12956_v6, 0.0  ;;  %v3149_v27 = vsel %vm3117_vm3, %v12959_v52, 0.0  ;;  %vm13056_vm6 = vcmp.eq.f32.partialorder %v12953_v23, 4.0 }
 0x371   :  { %4435 = vmatprep.mubr.bf16.mxu1 %v2935_v37  ;;  %v3181_v59 = vsel %vm13056_vm6, %v12957_v56, 0.0  ;;  %v3205_v60 = vadd.f32 %v3173_v2, %v3141_v18  ;;  %vm12403_vm5 = vcmp.eq.f32.partialorder %v13005_v20, 3.0  ;;  %v3220_v22 = vpack.c.bf16 %v3196_v9, %v3188_v24 }
 0x372   :  { %v3213_v50 = vadd.f32 %v3181_v59, %v3149_v27  ;;  %vm2814_vm12 = vcmp.eq.f32.partialorder %v13007_v7, 3.0  ;;  %v2838_v58 = vsel %vm12403_vm5, %v13010_v45, 0.0  ;;  %vm13057_vm14 = vcmp.eq.f32.partialorder %v13005_v20, 2.0 }
 0x373   :  { %v2846_v5 = vsel %vm2814_vm12, %v13011_v41, 0.0  ;;  %v2870_v37 = vsel %vm13057_vm14, %v13008_v51, 0.0  ;;  %v2878_v1 = vsel %vm2670_vm10, %v13012_v10, 0.0  ;;  %vm2823_vm6 = vcmp.eq.f32.partialorder %v13014_v19, 3.0  ;;  %4307 = vmatmul.mubr.bf16.gmra.mrb[104].mxu0 %v3220_v22 }
 0x374   :  { %v3229_v24 = vpack.c.bf16 %v3213_v50, %v3205_v60  ;;  %v2902_v9 = vadd.f32 %v2870_v37, %v2838_v58  ;;  %v2910_v18 = vadd.f32 %v2878_v1, %v2846_v5  ;;  %vm2831_vm5 = vcmp.eq.f32.partialorder %v13015_v62, 3.0 }
 0x375   :  { %v2855_v2 = vsel %vm2823_vm6, %v13019_v3, 0.0  ;;  %v2863_v27 = vsel %vm2831_vm5, %v13020_v0, 0.0  ;;  %v2887_v59 = vsel %vm2679_vm15, %v13017_v12, 0.0  ;;  %v2895_v60 = vsel %vm2687_vm13, %v13018_v61, 0.0 }
 0x376   :  { %4314 = vmatprep.mubr.bf16.mxu0 %v3229_v24  ;;  %v2934_v22 = vpack.c.bf16 %v2910_v18, %v2902_v9  ;;  %v2919_v50 = vadd.f32 %v2887_v59, %v2855_v2  ;;  %v2927_v58 = vadd.f32 %v2895_v60, %v2863_v27  ;;  %vm3108_vm10 = vcmp.eq.f32.partialorder %v12962_v8, 5.0 }
 0x377   :  { %vm3116_vm14 = vcmp.eq.f32.partialorder %v12963_v31, 5.0  ;;  %v3140_v5 = vsel %vm3108_vm10, %v12964_v35, 0.0  ;;  %v3172_v37 = vsel %vm2964_vm9, %v12965_v48, 0.0  ;;  %v3180_v1 = vsel %vm2972_vm8, %v12966_v13, 0.0 }
 0x378   :  { %4436 = vmatmul.mubr.bf16.gmra.mrb[88].mxu1 %v2934_v22  ;;  %v2943_v24 = vpack.c.bf16 %v2927_v58, %v2919_v50  ;;  %v3148_v9 = vsel %vm3116_vm14, %v12967_v32, 0.0  ;;  %v3204_v18 = vadd.f32 %v3172_v37, %v3140_v5  ;;  %vm12404_vm15 = vcmp.eq.f32.partialorder %v12935_v38, 6.0 }
 0x379   :  { %v3212_v2 = vadd.f32 %v3180_v1, %v3148_v9  ;;  %vm3245_vm13 = vcmp.eq.f32.partialorder %v12936_v39, 6.0  ;;  %v3269_v27 = vsel %vm12404_vm15, %v12937_v44, 0.0  ;;  %vm13058_vm9 = vcmp.eq.f32.partialorder %v12935_v38, 5.0 }
 0x37a   :  { %v3301_v59 = vsel %vm13058_vm9, %v12997_v42, 0.0  ;;  %4443 = vmatprep.mubr.bf16.mxu1 %v2943_v24  ;;  %v3277_v60 = vsel %vm3245_vm13, %v12996_v55, 0.0  ;;  %v3309_v22 = vsel %vm3101_vm0, %v12998_v46, 0.0  ;;  %vm2822_vm8 = vcmp.eq.f32.partialorder %v13022_v34, 3.0 }
 0x37b   :  { %v3333_v50 = vadd.f32 %v3301_v59, %v3269_v27  ;;  %v3228_v58 = vpack.c.bf16 %v3212_v2, %v3204_v18  ;;  %v3341_v5 = vadd.f32 %v3309_v22, %v3277_v60  ;;  %vm2830_vm15 = vcmp.eq.f32.partialorder %v13024_v26, 3.0 }
 0x37c   :  { %v2854_v37 = vsel %vm2822_vm8, %v13027_v49, 0.0  ;;  %v2862_v1 = vsel %vm2830_vm15, %v13028_v16, 0.0  ;;  %v2886_v24 = vsel %vm2678_vm11, %v13025_v14, 0.0  ;;  %v2894_v9 = vsel %vm2686_vm4, %v13029_v29, 0.0 }
 0x37d   :  { %vm2951_vm0 = vcmp.eq.f32.partialorder %v12999_v53, 4.0  ;;  %4315 = vmatmul.mubr.bf16.gmra.mrb[108].mxu0 %v3228_v58  ;;  %v3365_v18 = vpack.c.bf16 %v3341_v5, %v3333_v50  ;;  %v2918_v2 = vadd.f32 %v2886_v24, %v2854_v37  ;;  %v2926_v27 = vadd.f32 %v2894_v9, %v2862_v1  ;;  %v13060_v1 = vld [vmem:[#allocation55_spill] sm:$0xff]  ;;  %v13061_v24 = vld [vmem:[#allocation72_spill] sm:$0xff] }
 0x37e   :  { %vm2959_vm9 = vcmp.eq.f32.partialorder %v13000_v28, 4.0  ;;  %v2983_v59 = vsel %vm2951_vm0, %v13040_v15, 0.0  ;;  %vm13059_vm11 = vcmp.eq.f32.partialorder %v12999_v53, 3.0  ;;  %v3023_v50 = vsel %vm2815_vm2, %v13002_v40, 0.0 }
 0x37f   :  { %v2991_v60 = vsel %vm2959_vm9, %v13041_v43, 0.0  ;;  %v3015_v22 = vsel %vm13059_vm11, %v13042_v11, 0.0  ;;  %4322 = vmatprep.mubr.bf16.mxu0 %v3365_v18  ;;  %v2942_v58 = vpack.c.bf16 %v2926_v27, %v2918_v2  ;;  %v10974_v9 = vadd.f32 %v13061_v24, %v13060_v1 }
 0x380   :  { %v3047_v5 = vadd.f32 %v3015_v22, %v2983_v59  ;;  %v3055_v37 = vadd.f32 %v3023_v50, %v2991_v60  ;;  %v10978_v57 = vadd.f32 %v13063_v63, %v13062_v33  ;;  %vm3236_vm4 = vcmp.eq.f32.partialorder %v12945_v25, 6.0 }
 0x381   :  { %vm12406_vm11 = vcmp.eq.f32.partialorder %v12947_v21, 6.0  ;;  %v3300_v40 = vsel %vm3092_vm1, %v12949_v30, 0.0  ;;  %4444 = vmatmul.mubr.bf16.gmra.mrb[92].mxu1 %v2942_v58  ;;  %v3268_v2 = vsel %vm3236_vm4, %v12948_v17, 0.0  ;;  %v3308_v63 = vsel %vm3100_vm7, %v12950_v54, 0.0  ;;  %v11008_v58 = vpop.f32.mrb[32].mxu0 }
 0x382   :  { %13064 = vst [vmem:[#allocation83_spill] sm:$0xff] %v10978_v57  ;;  %v3079_v18 = vpack.c.bf16 %v3055_v37, %v3047_v5  ;;  %v3276_v27 = vsel %vm12406_vm11, %v12951_v36, 0.0  ;;  %v3332_v33 = vadd.f32 %v3300_v40, %v3268_v2  ;;  %vm12407_vm2 = vcmp.eq.f32.partialorder %v12952_v47, 6.0  ;;  %13066 = vst [vmem:[#allocation30_spill] sm:$0xff] %v11008_v58  ;;  %v11011_v24 = vpop.f32.mrb[33].mxu0  ;;  %v13074_v58 = vld [vmem:[#allocation37_spill] sm:$0xff] }
 0x383   :  { %v3340_v59 = vadd.f32 %v3308_v63, %v3276_v27  ;;  %vm3261_vm1 = vcmp.eq.f32.partialorder %v12953_v23, 6.0  ;;  %v3285_v60 = vsel %vm12407_vm2, %v12955_v4, 0.0  ;;  %vm13065_vm11 = vcmp.eq.f32.partialorder %v12952_v47, 5.0  ;;  %13067 = vst [vmem:[#allocation33_spill] sm:$0xff] %v11011_v24  ;;  %v11023_v63 = vpop.f32.mrb[34].mxu0  ;;  %v13073_v24 = vld [vmem:[#allocation31_spill] sm:$0xff] }
 0x384   :  { %4451 = vmatprep.mubr.bf16.mxu1 %v3079_v18  ;;  %v3293_v22 = vsel %vm3261_vm1, %v12959_v52, 0.0  ;;  %v3317_v50 = vsel %vm13065_vm11, %v12956_v6, 0.0  ;;  %v3325_v40 = vsel %vm3117_vm3, %v12957_v56, 0.0  ;;  %vm2950_vm7 = vcmp.eq.f32.partialorder %v13005_v20, 4.0  ;;  %13069 = vst [vmem:[#allocation36_spill] sm:$0xff] %v11023_v63 }
 0x385   :  { %v3364_v5 = vpack.c.bf16 %v3340_v59, %v3332_v33  ;;  %v3349_v37 = vadd.f32 %v3317_v50, %v3285_v60  ;;  %v3357_v1 = vadd.f32 %v3325_v40, %v3293_v22  ;;  %vm2958_vm2 = vcmp.eq.f32.partialorder %v13007_v7, 4.0  ;;  %v11029_v22 = vpop.f32.mrb[35].mxu0 }
 0x386   :  { %v2982_v18 = vsel %vm2950_vm7, %v13010_v45, 0.0  ;;  %vm13068_vm11 = vcmp.eq.f32.partialorder %v13005_v20, 3.0  ;;  %v3022_v27 = vsel %vm2814_vm12, %v13012_v10, 0.0  ;;  %v2990_v59 = vsel %vm2958_vm2, %v13011_v41, 0.0  ;;  %13070 = vst [vmem:[#allocation51_spill] sm:$0xff] %v11029_v22 }
 0x387   :  { %v3014_v2 = vsel %vm13068_vm11, %v13008_v51, 0.0  ;;  %4323 = vmatmul.mubr.bf16.gmra.mrb[112].mxu0 %v3364_v5  ;;  %v3373_v33 = vpack.c.bf16 %v3357_v1, %v3349_v37  ;;  %vm2967_vm3 = vcmp.eq.f32.partialorder %v13014_v19, 4.0  ;;  %v3054_v50 = vadd.f32 %v3022_v27, %v2990_v59  ;;  %v13072_v27 = vld [vmem:[#allocation80_spill] sm:$0xff] }
 0x388   :  { %v3046_v60 = vadd.f32 %v3014_v2, %v2982_v18  ;;  %vm2975_vm11 = vcmp.eq.f32.partialorder %v13015_v62, 4.0  ;;  %v2999_v40 = vsel %vm2967_vm3, %v13019_v3, 0.0  ;;  %v3031_v5 = vsel %vm2823_vm6, %v13017_v12, 0.0  ;;  %v13071_v2 = vld [vmem:[#allocation42_spill] sm:$0xff] }
 0x389   :  { %4330 = vmatprep.mubr.bf16.mxu0 %v3373_v33  ;;  %v3007_v37 = vsel %vm2975_vm11, %v13020_v0, 0.0  ;;  %v3039_v1 = vsel %vm2831_vm5, %v13018_v61, 0.0  ;;  %v3063_v18 = vadd.f32 %v3031_v5, %v2999_v40  ;;  %v11046_v59 = vadd.f32 %v13072_v27, %v13071_v2 }
 0x38a   :  { %v3078_v22 = vpack.c.bf16 %v3054_v50, %v3046_v60  ;;  %v3071_v63 = vadd.f32 %v3039_v1, %v3007_v37  ;;  %v11050_v57 = vadd.f32 %v13074_v58, %v13073_v24  ;;  %vm3252_vm12 = vcmp.eq.f32.partialorder %v12962_v8, 6.0  ;;  %v11063_v50 = vpop.f32.mrb[16].mxu1 }
 0x38b   :  { %vm12408_vm6 = vcmp.eq.f32.partialorder %v12963_v31, 6.0  ;;  %v3284_v33 = vsel %vm3252_vm12, %v12964_v35, 0.0  ;;  %v3316_v40 = vsel %vm3108_vm10, %v12965_v48, 0.0  ;;  %v3324_v60 = vsel %vm3116_vm14, %v12966_v13, 0.0  ;;  %v11071_v1 = vpop.f32.mrb[17].mxu1 }
 0x38c   :  { %4452 = vmatmul.mubr.bf16.gmra.mrb[96].mxu1 %v3078_v22  ;;  %v3087_v58 = vpack.c.bf16 %v3071_v63, %v3063_v18  ;;  %v3292_v24 = vsel %vm12408_vm6, %v12967_v32, 0.0  ;;  %v3348_v5 = vadd.f32 %v3316_v40, %v3284_v33  ;;  %vm13075_vm5 = vcmp.eq.f32.partialorder %v12935_v38, 7.0  ;;  %v11082_v18 = vpop.f32.mrb[18].mxu1 }
 0x38d   :  { %v3381_v37 = vsel %vm13075_vm5, %v12937_v44, 0.0  ;;  %v3356_v2 = vadd.f32 %v3324_v60, %v3292_v24  ;;  %vm13076_vm10 = vcmp.eq.f32.partialorder %v12936_v39, 7.0  ;;  %vm13077_vm14 = vcmp.eq.f32.partialorder %v12935_v38, 6.0  ;;  %13078 = vst [vmem:[#allocation91_spill] sm:$0xff] %v11082_v18  ;;  %v11086_v40 = vpop.f32.mrb[19].mxu1 }
 0x38e   :  { %v3389_v27 = vsel %vm13076_vm10, %v12996_v55, 0.0  ;;  %v3413_v63 = vsel %vm13077_vm14, %v12997_v42, 0.0  ;;  %v3421_v22 = vsel %vm3245_vm13, %v12998_v46, 0.0  ;;  %4459 = vmatprep.mubr.bf16.mxu1 %v3087_v58  ;;  %vm2966_vm5 = vcmp.eq.f32.partialorder %v13022_v34, 4.0  ;;  %13079 = vst [vmem:[#allocation25_spill] sm:$0xff] %v11086_v40 }
 0x38f   :  { %v3445_v33 = vadd.f32 %v3413_v63, %v3381_v37  ;;  %v3453_v44 = vadd.f32 %v3421_v22, %v3389_v27  ;;  %vm2974_vm6 = vcmp.eq.f32.partialorder %v13024_v26, 4.0  ;;  %v3372_v55 = vpack.c.bf16 %v3356_v2, %v3348_v5  ;;  %v13080_v27 = vld [vmem:[#allocation18_spill] sm:$0xff] }
 0x390   :  { %v2998_v38 = vsel %vm2966_vm5, %v13027_v49, 0.0  ;;  %v3006_v39 = vsel %vm2974_vm6, %v13028_v16, 0.0  ;;  %v3030_v42 = vsel %vm2822_vm8, %v13025_v14, 0.0  ;;  %v3038_v60 = vsel %vm2830_vm15, %v13029_v29, 0.0 }
 0x391   :  { %v3477_v46 = vpack.c.bf16 %v3453_v44, %v3445_v33  ;;  %v3062_v58 = vadd.f32 %v3030_v42, %v2998_v38  ;;  %vm3095_vm13 = vcmp.eq.f32.partialorder %v12999_v53, 5.0  ;;  %4331 = vmatmul.mubr.bf16.gmra.mrb[116].mxu0 %v3372_v55  ;;  %v3070_v24 = vadd.f32 %v3038_v60, %v3006_v39  ;;  %v13081_v33 = vld [vmem:[#allocation47_spill] sm:$0xff]  ;;  %v13082_v44 = vld [vmem:[#allocation66_spill] sm:$0xff]  ;;  %v13083_v42 = vld [vmem:[#allocation5_spill] sm:$0xff] }
 0x392   :  { %vm3103_vm10 = vcmp.eq.f32.partialorder %v13000_v28, 5.0  ;;  %v3127_v5 = vsel %vm3095_vm13, %v13040_v15, 0.0  ;;  %v3159_v37 = vsel %vm2951_vm0, %v13042_v11, 0.0  ;;  %v3167_v63 = vsel %vm2959_vm9, %v13080_v27, 0.0  ;;  %v13084_v60 = vld [vmem:[#allocation6_spill] sm:$0xff] }
 0x393   :  { %4338 = vmatprep.mubr.bf16.mxu0 %v3477_v46  ;;  %v3135_v2 = vsel %vm3103_vm10, %v13041_v43, 0.0  ;;  %v3191_v22 = vadd.f32 %v3159_v37, %v3127_v5  ;;  %v11116_v55 = vadd.f32 %v13082_v44, %v13081_v33  ;;  %v3086_v38 = vpack.c.bf16 %v3070_v24, %v3062_v58 }
 0x394   :  { %v3199_v39 = vadd.f32 %v3167_v63, %v3135_v2  ;;  %v11120_v40 = vadd.f32 %v13084_v60, %v13083_v42  ;;  %vm13085_vm15 = vcmp.eq.f32.partialorder %v12945_v25, 7.0  ;;  %vm13086_vm8 = vcmp.eq.f32.partialorder %v12947_v21, 7.0 }
 0x395   :  { %v3380_v46 = vsel %vm13085_vm15, %v12948_v17, 0.0  ;;  %v3388_v18 = vsel %vm13086_vm8, %v12951_v36, 0.0  ;;  %v3412_v5 = vsel %vm3236_vm4, %v12949_v30, 0.0  ;;  %vm13087_vm0 = vcmp.eq.f32.partialorder %v12947_v21, 6.0  ;;  %4460 = vmatmul.mubr.bf16.gmra.mrb[100].mxu1 %v3086_v38 }
 0x396   :  { %v3420_v58 = vsel %vm13087_vm0, %v12950_v54, 0.0  ;;  %vm13088_vm9 = vcmp.eq.f32.partialorder %v12952_v47, 7.0  ;;  %v3223_v37 = vpack.c.bf16 %v3199_v39, %v3191_v22  ;;  %v3444_v2 = vadd.f32 %v3412_v5, %v3380_v46 }
 0x397   :  { %v3397_v24 = vsel %vm13088_vm9, %v12955_v4, 0.0  ;;  %v3452_v17 = vadd.f32 %v3420_v58, %v3388_v18  ;;  %vm13089_vm14 = vcmp.eq.f32.partialorder %v12953_v23, 7.0  ;;  %vm13090_vm15 = vcmp.eq.f32.partialorder %v12952_v47, 6.0  ;;  %v11151_v18 = vpop.f32.mrb[36].mxu0 }
 0x398   :  { %v3405_v36 = vsel %vm13089_vm14, %v12959_v52, 0.0  ;;  %v3429_v25 = vsel %vm13090_vm15, %v12956_v6, 0.0  ;;  %v3437_v21 = vsel %vm3261_vm1, %v12957_v56, 0.0  ;;  %vm3094_vm4 = vcmp.eq.f32.partialorder %v13005_v20, 5.0  ;;  %4467 = vmatprep.mubr.bf16.mxu1 %v3223_v37  ;;  %v11163_v56 = vpop.f32.mrb[37].mxu0  ;;  %v13091_v37 = vld [vmem:[#allocation62_spill] sm:$0xff] }
 0x399   :  { %vm3102_vm8 = vcmp.eq.f32.partialorder %v13007_v7, 5.0  ;;  %v3476_v30 = vpack.c.bf16 %v3452_v17, %v3444_v2  ;;  %v3461_v54 = vadd.f32 %v3429_v25, %v3397_v24  ;;  %v3469_v4 = vadd.f32 %v3437_v21, %v3405_v36  ;;  %v11166_v44 = vpop.f32.mrb[38].mxu0  ;;  %v13092_v2 = vld [vmem:[#allocation68_spill] sm:$0xff]  ;;  %v13093_v36 = vld [vmem:[#allocation65_spill] sm:$0xff]  ;;  %v13094_v25 = vld [vmem:[#allocation67_spill] sm:$0xff] }
 0x39a   :  { %v3126_v52 = vsel %vm3094_vm4, %v13010_v45, 0.0  ;;  %v3134_v47 = vsel %vm3102_vm8, %v13011_v41, 0.0  ;;  %v3158_v23 = vsel %vm2950_vm7, %v13008_v51, 0.0  ;;  %v3166_v6 = vsel %vm2958_vm2, %v13012_v10, 0.0  ;;  %v11180_v46 = vpop.f32.mrb[39].mxu0 }
 0x39b   :  { %vm3111_vm1 = vcmp.eq.f32.partialorder %v13014_v19, 5.0  ;;  %4339 = vmatmul.mubr.bf16.gmra.mrb[120].mxu0 %v3476_v30  ;;  %v3485_v63 = vpack.c.bf16 %v3469_v4, %v3461_v54  ;;  %v3190_v22 = vadd.f32 %v3158_v23, %v3126_v52  ;;  %v3198_v33 = vadd.f32 %v3166_v6, %v3134_v47 }
 0x39c   :  { %vm3119_vm0 = vcmp.eq.f32.partialorder %v13015_v62, 5.0  ;;  %v3143_v38 = vsel %vm3111_vm1, %v13019_v3, 0.0  ;;  %v3175_v42 = vsel %vm2967_vm3, %v13017_v12, 0.0  ;;  %v3183_v60 = vsel %vm2975_vm11, %v13018_v61, 0.0 }
 0x39d   :  { %v3151_v39 = vsel %vm3119_vm0, %v13020_v0, 0.0  ;;  %4346 = vmatprep.mubr.bf16.mxu0 %v3485_v63  ;;  %v3222_v5 = vpack.c.bf16 %v3198_v33, %v3190_v22  ;;  %v3207_v58 = vadd.f32 %v3175_v42, %v3143_v38  ;;  %v11184_v17 = vadd.f32 %v13092_v2, %v13091_v37  ;;  %v11221_v33 = vpop.f32.mrb[20].mxu1 }
 0x39e   :  { %v3215_v24 = vadd.f32 %v3183_v60, %v3151_v39  ;;  %v11188_v21 = vadd.f32 %v13094_v25, %v13093_v36  ;;  %vm13095_vm2 = vcmp.eq.f32.partialorder %v12962_v8, 7.0  ;;  %vm13096_vm7 = vcmp.eq.f32.partialorder %v12963_v31, 7.0  ;;  %v13098_v60 = vld [vmem:[#allocation64_spill] sm:$0xff]  ;;  %v13100_v25 = vld [vmem:[#allocation86_spill] sm:$0xff] }
 0x39f   :  { %v3396_v30 = vsel %vm13095_vm2, %v12964_v35, 0.0  ;;  %v3404_v54 = vsel %vm13096_vm7, %v12967_v32, 0.0  ;;  %v3428_v4 = vsel %vm3252_vm12, %v12965_v48, 0.0  ;;  %4468 = vmatmul.mubr.bf16.gmra.mrb[104].mxu1 %v3222_v5  ;;  %vm13097_vm3 = vcmp.eq.f32.partialorder %v12963_v31, 6.0  ;;  %v13099_v5 = vld [vmem:[#allocation59_spill] sm:$0xff] }
 0x3a0   :  { %v3231_v52 = vpack.c.bf16 %v3215_v24, %v3207_v58  ;;  %v3436_v47 = vsel %vm13097_vm3, %v12966_v13, 0.0  ;;  %v3460_v23 = vadd.f32 %v3428_v4, %v3396_v30  ;;  %vm3110_vm11 = vcmp.eq.f32.partialorder %v13022_v34, 5.0  ;;  %v11236_v24 = vpop.f32.mrb[21].mxu1  ;;  %v13101_v30 = vld [vmem:[#allocation20_spill] sm:$0xff] }
 0x3a1   :  { %v3468_v6 = vadd.f32 %v3436_v47, %v3404_v54  ;;  %vm3118_vm9 = vcmp.eq.f32.partialorder %v13024_v26, 5.0  ;;  %v3142_v35 = vsel %vm3110_vm11, %v13027_v49, 0.0  ;;  %v3174_v48 = vsel %vm2966_vm5, %v13025_v14, 0.0  ;;  %v11240_v4 = vpop.f32.mrb[22].mxu1  ;;  %v13103_v47 = vld [vmem:[#allocation29_spill] sm:$0xff] }
 0x3a2   :  { %4475 = vmatprep.mubr.bf16.mxu1 %v3231_v52  ;;  %v3150_v31 = vsel %vm3118_vm9, %v13028_v16, 0.0  ;;  %v3182_v13 = vsel %vm2974_vm6, %v13029_v29, 0.0  ;;  %v3206_v8 = vadd.f32 %v3174_v48, %v3142_v35  ;;  %vm3239_vm12 = vcmp.eq.f32.partialorder %v12999_v53, 6.0  ;;  %v13102_v52 = vld [vmem:[#allocation85_spill] sm:$0xff] }
 0x3a3   :  { %v3484_v32 = vpack.c.bf16 %v3468_v6, %v3460_v23  ;;  %v3214_v63 = vadd.f32 %v3182_v13, %v3150_v31  ;;  %vm3247_vm14 = vcmp.eq.f32.partialorder %v13000_v28, 6.0  ;;  %v3271_v22 = vsel %vm3239_vm12, %v13040_v15, 0.0  ;;  %v13104_v6 = vld [vmem:[#allocation82_spill] sm:$0xff]  ;;  %v13105_v35 = vld [vmem:[#allocation81_spill] sm:$0xff]  ;;  %v11250_v31 = vpop.f32.mrb[23].mxu1 }
 0x3a4   :  { %v3279_v38 = vsel %vm3247_vm14, %v13041_v43, 0.0  ;;  %v3303_v39 = vsel %vm3095_vm13, %v13042_v11, 0.0  ;;  %v3311_v42 = vsel %vm3103_vm10, %v13080_v27, 0.0  ;;  %v11234_v58 = vadd.f32 %v13099_v5, %v13098_v60 }
 0x3a5   :  { %4347 = vmatmul.mubr.bf16.gmra.mrb[124].mxu0 %v3484_v32  ;;  %v3230_v37 = vpack.c.bf16 %v3214_v63, %v3206_v8  ;;  %v3335_v2 = vadd.f32 %v3303_v39, %v3271_v22  ;;  %v3343_v36 = vadd.f32 %v3311_v42, %v3279_v38  ;;  %v5201_v54 = vadd.f32 %v13101_v30, %v13100_v25  ;;  %v13107_v22 = vld [vmem:[#allocation83_spill] sm:$0xff]  ;;  %v13109_v25 = vld [vmem:[#allocation40_spill] sm:$0xff]  ;;  %v13110_v30 = vld [vmem:[#allocation41_spill] sm:$0xff] }
 0x3a6   :  { %v11244_v23 = vadd.f32 %v13103_v47, %v13102_v52  ;;  %v5204_v48 = vadd.f32 %v13105_v35, %v13104_v6  ;;  %vm3238_vm6 = vcmp.eq.f32.partialorder %v13005_v20, 6.0  ;;  %vm3246_vm5 = vcmp.eq.f32.partialorder %v13007_v7, 6.0  ;;  %v13111_v6 = vld [vmem:[#allocation73_spill] sm:$0xff]  ;;  %v13112_v35 = vld [vmem:[#allocation74_spill] sm:$0xff] }
 0x3a7   :  { %v3367_v13 = vpack.c.bf16 %v3343_v36, %v3335_v2  ;;  %v11253_v8 = vadd.f32 %v5201_v54, %v10974_v9  ;;  %v3270_v32 = vsel %vm3238_vm6, %v13010_v45, 0.0  ;;  %v3278_v63 = vsel %vm3246_vm5, %v13011_v41, 0.0  ;;  %4476 = vmatmul.mubr.bf16.gmra.mrb[108].mxu1 %v3230_v37 }
 0x3a8   :  { %v11262_v38 = vadd.f32 %v5204_v48, %v13107_v22  ;;  %v3302_v39 = vsel %vm3094_vm4, %v13008_v51, 0.0  ;;  %v3310_v9 = vsel %vm3102_vm8, %v13012_v10, 0.0  ;;  %vm3255_vm13 = vcmp.eq.f32.partialorder %v13014_v19, 6.0  ;;  %v13116_v22 = vld [vmem:[#allocation60_spill] sm:$0xff] }
 0x3a9   :  { %13106 = vst [vmem:[#allocation56_spill] sm:$0xff] %v11253_v8  ;;  %4483 = vmatprep.mubr.bf16.mxu1 %v3367_v13  ;;  %v3334_v42 = vadd.f32 %v3302_v39, %v3270_v32  ;;  %v3342_v60 = vadd.f32 %v3310_v9, %v3278_v63  ;;  %vm3263_vm10 = vcmp.eq.f32.partialorder %v13015_v62, 6.0  ;;  %v3287_v5 = vsel %vm3255_vm13, %v13019_v3, 0.0  ;;  %v13113_v13 = vld [vmem:[#allocation71_spill] sm:$0xff]  ;;  %v13114_v32 = vld [vmem:[#allocation76_spill] sm:$0xff]  ;;  %v5141_v8 = vpop.f32.mrb[40].mxu0 }
 0x3aa   :  { %13108 = vst [vmem:[#allocation26_spill] sm:$0xff] %v11262_v38  ;;  %v3295_v37 = vsel %vm3263_vm10, %v13020_v0, 0.0  ;;  %v3319_v2 = vsel %vm3111_vm1, %v13017_v12, 0.0  ;;  %v3327_v36 = vsel %vm3119_vm0, %v13018_v61, 0.0  ;;  %v11286_v54 = vadd.f32 %v13110_v30, %v13109_v25  ;;  %v13117_v39 = vld [vmem:[#allocation63_spill] sm:$0xff] }
 0x3ab   :  { %v3351_v52 = vadd.f32 %v3319_v2, %v3287_v5  ;;  %v3359_v47 = vadd.f32 %v3327_v36, %v3295_v37  ;;  %v5207_v48 = vadd.f32 %v13112_v35, %v13111_v6  ;;  %v11292_v63 = vadd.f32 %v13114_v32, %v13113_v13  ;;  %v5142_v2 = vpop.f32.mrb[41].mxu0  ;;  %v13122_v6 = vld [vmem:[#allocation89_spill] sm:$0xff]  ;;  %v13124_v35 = vld [vmem:[#allocation12_spill] sm:$0xff] }
 0x3ac   :  { %v5210_v9 = vadd.f32 %v13117_v39, %v13116_v22  ;;  %vm3254_vm15 = vcmp.eq.f32.partialorder %v13022_v34, 6.0  ;;  %v3366_v25 = vpack.c.bf16 %v3342_v60, %v3334_v42  ;;  %vm3262_vm4 = vcmp.eq.f32.partialorder %v13024_v26, 6.0  ;;  %v5144_v42 = vpop.f32.mrb[42].mxu0 }
 0x3ad   :  { %13115 = vst [vmem:[#allocation23_spill] sm:$0xff] %v11292_v63  ;;  %v11297_v38 = vadd.f32 %v5207_v48, %v11046_v59  ;;  %v3286_v37 = vsel %vm3254_vm15, %v13027_v49, 0.0  ;;  %v3375_v36 = vpack.c.bf16 %v3359_v47, %v3351_v52  ;;  %v3294_v59 = vsel %vm3262_vm4, %v13028_v16, 0.0  ;;  %v13123_v52 = vld [vmem:[#allocation16_spill] sm:$0xff]  ;;  %v13125_v48 = vld [vmem:[#allocation10_spill] sm:$0xff]  ;;  %v5145_v32 = vpop.f32.mrb[43].mxu0 }
 0x3ae   :  { %v11301_v5 = vadd.f32 %v5210_v9, %v11050_v57  ;;  %v3318_v30 = vsel %vm3110_vm11, %v13025_v14, 0.0  ;;  %vm13120_vm8 = vcmp.eq.f32.partialorder %v12999_v53, 7.0  ;;  %vm13121_vm1 = vcmp.eq.f32.partialorder %v13000_v28, 7.0  ;;  %v13126_v9 = vld [vmem:[#allocation13_spill] sm:$0xff] }
 0x3af   :  { %13118 = vst [vmem:[#allocation70_spill] sm:$0xff] %v11297_v38  ;;  %4484 = vmatmul.mubr.bf16.gmra.mrb[112].mxu1 %v3366_v25  ;;  %v3383_v57 = vsel %vm13120_vm8, %v13040_v15, 0.0  ;;  %v3391_v60 = vsel %vm13121_vm1, %v13041_v43, 0.0  ;;  %v11321_v47 = vadd.f32 %v13123_v52, %v13122_v6  ;;  %v5213_v13 = vadd.f32 %v13125_v48, %v13124_v35  ;;  %v13127_v15 = vld [vmem:[#allocation14_spill] sm:$0xff]  ;;  %v13129_v43 = vld [vmem:[#allocation15_spill] sm:$0xff]  ;;  %v13137_v48 = vld [vmem:[#allocation25_spill] sm:$0xff] }
 0x3b0   :  { %13119 = vst [vmem:[#allocation78_spill] sm:$0xff] %v11301_v5  ;;  %4491 = vmatprep.mubr.bf16.mxu1 %v3375_v36  ;;  %v3326_v22 = vsel %vm3118_vm9, %v13029_v29, 0.0  ;;  %v3350_v39 = vadd.f32 %v3318_v30, %v3286_v37  ;;  %v11330_v25 = vadd.f32 %v13127_v15, %v13126_v9  ;;  %v13128_v5 = vld [vmem:[#allocation39_spill] sm:$0xff]  ;;  %v3415_v6 = vsel %vm3239_vm12, %v13042_v11, 0.0  ;;  %v13132_v11 = vld [vmem:[#allocation30_spill] sm:$0xff] }
 0x3b1   :  { %v5216_v38 = vadd.f32 %v13129_v43, %v13128_v5  ;;  %v3358_v63 = vadd.f32 %v3326_v22, %v3294_v59  ;;  %v3423_v36 = vsel %vm3247_vm14, %v13080_v27, 0.0  ;;  %v11341_v52 = vadd.f32 %v5213_v13, %v11116_v55  ;;  %v13133_v59 = vld [vmem:[#allocation33_spill] sm:$0xff] }
 0x3b2   :  { %v3447_v37 = vadd.f32 %v3415_v6, %v3383_v57  ;;  %v3455_v30 = vadd.f32 %v3423_v36, %v3391_v60  ;;  %vm13130_vm0 = vcmp.eq.f32.partialorder %v13005_v20, 7.0  ;;  %vm13131_vm2 = vcmp.eq.f32.partialorder %v13007_v7, 7.0  ;;  %v13135_v57 = vld [vmem:[#allocation51_spill] sm:$0xff] }
 0x3b3   :  { %v11344_v35 = vadd.f32 %v5216_v38, %v11120_v40  ;;  %v3382_v5 = vsel %vm13130_vm0, %v13010_v45, 0.0  ;;  %v3390_v53 = vsel %vm13131_vm2, %v13011_v41, 0.0  ;;  %v11354_v28 = vadd.f32 %v13133_v59, %v13132_v11  ;;  %v13134_v38 = vld [vmem:[#allocation36_spill] sm:$0xff]  ;;  %v13136_v45 = vld [vmem:[#allocation91_spill] sm:$0xff] }
 0x3b4   :  { %v5219_v27 = vadd.f32 %v11071_v1, %v11063_v50  ;;  %v3374_v55 = vpack.c.bf16 %v3358_v63, %v3350_v39  ;;  %v3414_v40 = vsel %vm3238_vm6, %v13008_v51, 0.0  ;;  %v11363_v60 = vadd.f32 %v13135_v57, %v13134_v38 }
 0x3b5   :  { %v5222_v13 = vadd.f32 %v13137_v48, %v13136_v45  ;;  %v3479_v41 = vpack.c.bf16 %v3455_v30, %v3447_v37  ;;  %v3422_v22 = vsel %vm3246_vm5, %v13012_v10, 0.0  ;;  %v3446_v9 = vadd.f32 %v3414_v40, %v3382_v5 }
 0x3b6   :  { %v11371_v50 = vadd.f32 %v5219_v27, %v11184_v17  ;;  %v3454_v1 = vadd.f32 %v3422_v22, %v3390_v53  ;;  %vm13138_vm7 = vcmp.eq.f32.partialorder %v13014_v19, 7.0  ;;  %vm13139_vm3 = vcmp.eq.f32.partialorder %v13015_v62, 7.0 }
 0x3b7   :  { %4492 = vmatmul.mubr.bf16.gmra.mrb[116].mxu1 %v3374_v55  ;;  %v3399_v20 = vsel %vm13138_vm7, %v13019_v3, 0.0  ;;  %v3407_v51 = vsel %vm13139_vm3, %v13020_v0, 0.0  ;;  %v11380_v63 = vadd.f32 %v5222_v13, %v11188_v21  ;;  %v3431_v7 = vsel %vm3255_vm13, %v13017_v12, 0.0 }
 0x3b8   :  { %4499 = vmatprep.mubr.bf16.mxu1 %v3479_v41  ;;  %v11387_v10 = vadd.f32 %v11163_v56, %v11151_v18  ;;  %v5225_v17 = vadd.f32 %v11236_v24, %v11221_v33  ;;  %v11393_v3 = vadd.f32 %v11180_v46, %v11166_v44  ;;  %v3439_v0 = vsel %vm3263_vm10, %v13018_v61, 0.0  ;;  %v5229_v33 = vpop.f32.mrb[24].mxu1 }
 0x3b9   :  { %v5228_v21 = vadd.f32 %v11250_v31, %v11240_v4  ;;  %v11400_v19 = vadd.f32 %v5142_v2, %v5141_v8  ;;  %v11402_v12 = vadd.f32 %v5145_v32, %v5144_v42  ;;  %v3463_v18 = vadd.f32 %v3431_v7, %v3399_v20  ;;  %v5230_v46 = vpop.f32.mrb[25].mxu1  ;;  %v13142_v32 = vld [vmem:[#allocation23_spill] sm:$0xff] }
 0x3ba   :  { %v3471_v56 = vadd.f32 %v3439_v0, %v3407_v51  ;;  %v11405_v39 = vadd.f32 %v5225_v17, %v11234_v58  ;;  %v5231_v24 = vadd.f32 %v5230_v46, %v5229_v33  ;;  %v5232_v62 = vpop.f32.mrb[26].mxu1  ;;  %v3478_v61 = vpack.c.bf16 %v3454_v1, %v3446_v9 }
 0x3bb   :  { %v11408_v44 = vadd.f32 %v5228_v21, %v11244_v23  ;;  %vm13140_vm11 = vcmp.eq.f32.partialorder %v13022_v34, 7.0  ;;  %v5233_v31 = vpop.f32.mrb[27].mxu1  ;;  %vm13141_vm9 = vcmp.eq.f32.partialorder %v13024_v26, 7.0  ;;  %v3430_v23 = vsel %vm3254_vm15, %v13025_v14, 0.0 }
 0x3bc   :  { %v3398_v4 = vsel %vm13140_vm11, %v13027_v49, 0.0  ;;  %v3487_v8 = vpack.c.bf16 %v3471_v56, %v3463_v18  ;;  %v3406_v2 = vsel %vm13141_vm9, %v13028_v16, 0.0  ;;  %v11417_v58 = vadd.f32 %v5231_v24, %v11286_v54  ;;  %v5147_v16 = vpop.f32.mrb[44].mxu0  ;;  %v5235_v14 = vpop.f32.mrb[28].mxu1 }
 0x3bd   :  { %v5234_v42 = vadd.f32 %v5233_v31, %v5232_v62  ;;  %v3438_v49 = vsel %vm3262_vm4, %v13029_v29, 0.0  ;;  %v3462_v43 = vadd.f32 %v3430_v23, %v3398_v4  ;;  %v5148_v36 = vpop.f32.mrb[45].mxu0  ;;  %v5236_v34 = vpop.f32.mrb[29].mxu1  ;;  %vm4580_vm12 = vcmask 523264  }
 0x3be   :  { %v3470_v6 = vadd.f32 %v3438_v49, %v3406_v2  ;;  %v11428_v54 = vadd.f32 %v5148_v36, %v5147_v16  ;;  %v5150_v37 = vpop.f32.mrb[46].mxu0  ;;  %v5237_v11 = vadd.f32 %v5236_v34, %v5235_v14  ;;  %v5238_v26 = vpop.f32.mrb[30].mxu1 }
 0x3bf   :  { %4500 = vmatmul.mubr.bf16.gmra.mrb[120].mxu1 %v3478_v61  ;;  %v11426_v15 = vadd.f32 %v5234_v42, %v13142_v32  ;;  %v5151_v5 = vpop.f32.mrb[47].mxu0  ;;  %v5239_v29 = vpop.f32.mrb[31].mxu1 }
 0x3c0   :  { %4507 = vmatprep.mubr.bf16.mxu1 %v3487_v8  ;;  %v3486_v30 = vpack.c.bf16 %v3470_v6, %v3462_v43  ;;  %v11430_v53 = vadd.f32 %v5151_v5, %v5150_v37  ;;  %v11433_v59 = vadd.f32 %v5237_v11, %v11321_v47  ;;  %v5240_v27 = vadd.f32 %v5239_v29, %v5238_v26 }
 0x3c1   :  { %v5153_v55 = vpop.f32.mrb[48].mxu0 }
 0x3c2   :  { %v5154_v40 = vpop.f32.mrb[49].mxu0  ;;  %v11436_v38 = vadd.f32 %v5240_v27, %v11330_v25 }
 0x3c3   :  { %v11438_v57 = vadd.f32 %v5154_v40, %v5153_v55  ;;  %v5156_v45 = vpop.f32.mrb[50].mxu0 }
 0x3c4   :  { %v5157_v48 = vpop.f32.mrb[51].mxu0 }
 0x3c5   :  { %v11440_v13 = vadd.f32 %v5157_v48, %v5156_v45  ;;  %v5241_v41 = vpop.f32.mrb[32].mxu1 }
 0x3c6   :  { %v5242_v22 = vpop.f32.mrb[33].mxu1 }
 0x3c7   :  { %4508 = vmatmul.mubr.bf16.gmra.mrb[124].mxu1 %v3486_v30  ;;  %v5243_v9 = vadd.f32 %v5242_v22, %v5241_v41  ;;  %v5244_v1 = vpop.f32.mrb[34].mxu1 }
 0x3c8   :  { %v5245_v20 = vpop.f32.mrb[35].mxu1 }
 0x3c9   :  { %v11443_v47 = vadd.f32 %v5243_v9, %v11354_v28  ;;  %v5246_v51 = vadd.f32 %v5245_v20, %v5244_v1  ;;  %v5159_v7 = vpop.f32.mrb[52].mxu0 }
 0x3ca   :  { %v5160_v17 = vpop.f32.mrb[53].mxu0 }
 0x3cb   :  { %v11446_v25 = vadd.f32 %v5246_v51, %v11363_v60  ;;  %v11448_v0 = vadd.f32 %v5160_v17, %v5159_v7  ;;  %v5162_v21 = vpop.f32.mrb[54].mxu0  ;;  %v13143_v17 = vld [vmem:[#allocation88_spill] sm:$0xff] }
 0x3cc   :  { %v5163_v18 = vpop.f32.mrb[55].mxu0 }
 0x3cd   :  { %v11450_v33 = vadd.f32 %v5163_v18, %v5162_v21 }
 0x3ce   :  { %v5247_v56 = vpop.f32.mrb[36].mxu1 }
 0x3cf   :  { %v5248_v46 = vpop.f32.mrb[37].mxu1 }
 0x3d0   :  { %v5249_v24 = vadd.f32 %v5248_v46, %v5247_v56  ;;  %v5250_v62 = vpop.f32.mrb[38].mxu1 }
 0x3d1   :  { %v5251_v61 = vpop.f32.mrb[39].mxu1 }
 0x3d2   :  { %v11453_v28 = vadd.f32 %v5249_v24, %v11387_v10  ;;  %v5252_v4 = vadd.f32 %v5251_v61, %v5250_v62  ;;  %v13144_v62 = vld [vmem:[#allocation50_spill] sm:$0xff] }
 0x3d3   :  { %v5165_v31 = vpop.f32.mrb[56].mxu0 }
 0x3d4   :  { %v5166_v8 = vpop.f32.mrb[57].mxu0  ;;  %v11456_v60 = vadd.f32 %v5252_v4, %v11393_v3 }
 0x3d5   :  { %v11458_v2 = vadd.f32 %v5166_v8, %v5165_v31  ;;  %v5168_v42 = vpop.f32.mrb[58].mxu0 }
 0x3d6   :  { %v5169_v23 = vpop.f32.mrb[59].mxu0 }
 0x3d7   :  { %v5253_v49 = vpop.f32.mrb[40].mxu1  ;;  %v11460_v32 = vadd.f32 %v5169_v23, %v5168_v42 }
 0x3d8   :  { %v5254_v43 = vpop.f32.mrb[41].mxu1 }
 0x3d9   :  { %v5255_v6 = vadd.f32 %v5254_v43, %v5253_v49  ;;  %v5256_v16 = vpop.f32.mrb[42].mxu1 }
 0x3da   :  { %v5257_v36 = vpop.f32.mrb[43].mxu1 }
 0x3db   :  { %v11463_v10 = vadd.f32 %v5255_v6, %v11400_v19  ;;  %v5258_v37 = vadd.f32 %v5257_v36, %v5256_v16  ;;  %v13145_v16 = vld [vmem:[#allocation56_spill] sm:$0xff] }
 0x3dc   :  { %v5171_v30 = vpop.f32.mrb[60].mxu0 }
 0x3dd   :  { %v5172_v5 = vpop.f32.mrb[61].mxu0  ;;  %v11466_v3 = vadd.f32 %v5258_v37, %v11402_v12 }
 0x3de   :  { %v11468_v14 = vadd.f32 %v5172_v5, %v5171_v30  ;;  %v5174_v34 = vpop.f32.mrb[62].mxu0 }
 0x3df   :  { %v5175_v11 = vpop.f32.mrb[63].mxu0  ;;  %v5259_v26 = vpop.f32.mrb[44].mxu1 }
 0x3e0   :  { %v11470_v29 = vadd.f32 %v5175_v11, %v5174_v34  ;;  %v5260_v27 = vpop.f32.mrb[45].mxu1  ;;  %v13146_v11 = vld [vmem:[#allocation26_spill] sm:$0xff] }
 0x3e1   :  { %v5261_v55 = vadd.f32 %v5260_v27, %v5259_v26  ;;  %v5262_v40 = vpop.f32.mrb[46].mxu1 }
 0x3e2   :  { %v5263_v45 = vpop.f32.mrb[47].mxu1 }
 0x3e3   :  { %v11473_v19 = vadd.f32 %v5261_v55, %v11428_v54  ;;  %v5264_v48 = vadd.f32 %v5263_v45, %v5262_v40 }
 0x3e5   :  { %v11476_v41 = vadd.f32 %v5264_v48, %v11430_v53 }
 0x3e6   :  { %v5305_v12 = vpop.f32.mrb[64].mxu0 }
 0x3e7   :  { %v5306_v22 = vpop.f32.mrb[65].mxu0 }
 0x3e8   :  { %v5265_v9 = vpop.f32.mrb[48].mxu1  ;;  %v5307_v1 = vadd.f32 %v5306_v22, %v5305_v12  ;;  %v5308_v20 = vpop.f32.mrb[66].mxu0 }
 0x3e9   :  { %v5266_v51 = vpop.f32.mrb[49].mxu1  ;;  %v5309_v7 = vpop.f32.mrb[67].mxu0 }
 0x3ea   :  { %v11479_v21 = vadd.f32 %v5307_v1, %v13143_v17  ;;  %v5267_v18 = vadd.f32 %v5266_v51, %v5265_v9  ;;  %v5268_v56 = vpop.f32.mrb[50].mxu1  ;;  %v5310_v46 = vadd.f32 %v5309_v7, %v5308_v20  ;;  %v13147_v1 = vld [vmem:[#allocation70_spill] sm:$0xff] }
 0x3eb   :  { %v5269_v24 = vpop.f32.mrb[51].mxu1 }
 0x3ec   :  { %v11482_v54 = vadd.f32 %v5267_v18, %v11438_v57  ;;  %v11485_v53 = vadd.f32 %v5310_v46, %v13144_v62  ;;  %v5270_v61 = vadd.f32 %v5269_v24, %v5268_v56  ;;  %v13148_v56 = vld [vmem:[#allocation78_spill] sm:$0xff] }
 0x3ee   :  { %v11488_v4 = vadd.f32 %v5270_v61, %v11440_v13 }
 0x3f0   :  { %v5311_v31 = vpop.f32.mrb[68].mxu0 }
 0x3f1   :  { %v5312_v8 = vpop.f32.mrb[69].mxu0 }
 0x3f2   :  { %v5271_v42 = vpop.f32.mrb[52].mxu1  ;;  %v5313_v23 = vadd.f32 %v5312_v8, %v5311_v31  ;;  %v5314_v49 = vpop.f32.mrb[70].mxu0 }
 0x3f3   :  { %v5272_v43 = vpop.f32.mrb[53].mxu1  ;;  %v5315_v6 = vpop.f32.mrb[71].mxu0 }
 0x3f4   :  { %v11491_v36 = vadd.f32 %v5313_v23, %v13145_v16  ;;  %v5273_v37 = vadd.f32 %v5272_v43, %v5271_v42  ;;  %v5274_v57 = vpop.f32.mrb[54].mxu1  ;;  %v5316_v30 = vadd.f32 %v5315_v6, %v5314_v49 }
 0x3f5   :  { %v5275_v5 = vpop.f32.mrb[55].mxu1 }
 0x3f6   :  { %v11494_v34 = vadd.f32 %v5273_v37, %v11448_v0  ;;  %v11497_v13 = vadd.f32 %v5316_v30, %v13146_v11  ;;  %v5276_v26 = vadd.f32 %v5275_v5, %v5274_v57 }
 0x3f8   :  { %v11500_v27 = vadd.f32 %v5276_v26, %v11450_v33  ;;  %v5317_v55 = vpop.f32.mrb[72].mxu0 }
 0x3f9   :  { %v5318_v40 = vpop.f32.mrb[73].mxu0 }
 0x3fa   :  { %v5319_v48 = vadd.f32 %v5318_v40, %v5317_v55  ;;  %v5320_v12 = vpop.f32.mrb[74].mxu0 }
 0x3fb   :  { %v5277_v45 = vpop.f32.mrb[56].mxu1  ;;  %v5321_v9 = vpop.f32.mrb[75].mxu0 }
 0x3fc   :  { %v5278_v22 = vpop.f32.mrb[57].mxu1  ;;  %v11503_v20 = vadd.f32 %v5319_v48, %v13147_v1  ;;  %v5322_v7 = vadd.f32 %v5321_v9, %v5320_v12 }
 0x3fd   :  { %v5279_v51 = vadd.f32 %v5278_v22, %v5277_v45  ;;  %v5280_v0 = vpop.f32.mrb[58].mxu1 }
 0x3fe   :  { %v5281_v17 = vpop.f32.mrb[59].mxu1  ;;  %v11509_v33 = vadd.f32 %v5322_v7, %v13148_v56 }
 0x3ff   :  { %v11506_v18 = vadd.f32 %v5279_v51, %v11458_v2  ;;  %v5282_v46 = vadd.f32 %v5281_v17, %v5280_v0 }
 0x401   :  { %v11512_v24 = vadd.f32 %v5282_v46, %v11460_v32 }
 0x403   :  { %v5323_v62 = vpop.f32.mrb[76].mxu0 }
 0x404   :  { %v5324_v61 = vpop.f32.mrb[77].mxu0  ;;  %v5283_v31 = vpop.f32.mrb[60].mxu1 }
 0x405   :  { %v5325_v8 = vadd.f32 %v5324_v61, %v5323_v62  ;;  %v5326_v42 = vpop.f32.mrb[78].mxu0  ;;  %v5284_v23 = vpop.f32.mrb[61].mxu1 }
 0x406   :  { %v5327_v49 = vpop.f32.mrb[79].mxu0  ;;  %v5285_v6 = vadd.f32 %v5284_v23, %v5283_v31  ;;  %v5286_v2 = vpop.f32.mrb[62].mxu1 }
 0x407   :  { %v11515_v43 = vadd.f32 %v5325_v8, %v11341_v52  ;;  %v5328_v16 = vadd.f32 %v5327_v49, %v5326_v42  ;;  %v5287_v37 = vpop.f32.mrb[63].mxu1 }
 0x408   :  { %v11518_v57 = vadd.f32 %v5285_v6, %v11468_v14  ;;  %v5288_v30 = vadd.f32 %v5287_v37, %v5286_v2 }
 0x409   :  { %v11521_v32 = vadd.f32 %v5328_v16, %v11344_v35 }
 0x40a   :  { %v11524_v5 = vadd.f32 %v5288_v30, %v11470_v29 }
 0x40c   :  { %v5329_v11 = vpop.f32.mrb[80].mxu0 }
 0x40d   :  { %v5330_v26 = vpop.f32.mrb[81].mxu0 }
 0x40e   :  { %v5331_v55 = vadd.f32 %v5330_v26, %v5329_v11  ;;  %v5332_v40 = vpop.f32.mrb[82].mxu0 }
 0x40f   :  { %v5333_v52 = vpop.f32.mrb[83].mxu0 }
 0x410   :  { %v11527_v45 = vadd.f32 %v5331_v55, %v11371_v50  ;;  %v5334_v48 = vadd.f32 %v5333_v52, %v5332_v40 }
 0x411   :  { %v5417_v12 = vpop.f32.mrb[64].mxu1 }
 0x412   :  { %v5418_v22 = vpop.f32.mrb[65].mxu1  ;;  %v11530_v14 = vadd.f32 %v5334_v48, %v11380_v63 }
 0x413   :  { %v5419_v35 = vadd.f32 %v5418_v22, %v5417_v12  ;;  %v5420_v9 = vpop.f32.mrb[66].mxu1 }
 0x414   :  { %v5421_v1 = vpop.f32.mrb[67].mxu1 }
 0x415   :  { %v11533_v29 = vadd.f32 %v5419_v35, %v11479_v21  ;;  %v5422_v51 = vadd.f32 %v5421_v1, %v5420_v9 }
 0x416   :  { %v5335_v0 = vpop.f32.mrb[84].mxu0 }
 0x417   :  { %v11536_v7 = vadd.f32 %v5422_v51, %v11485_v53  ;;  %v5336_v17 = vpop.f32.mrb[85].mxu0 }
 0x418   :  { %v5337_v50 = vadd.f32 %v5336_v17, %v5335_v0  ;;  %v5338_v56 = vpop.f32.mrb[86].mxu0 }
 0x419   :  { %v5339_v46 = vpop.f32.mrb[87].mxu0 }
 0x41a   :  { %v11539_v62 = vadd.f32 %v5337_v50, %v11405_v39  ;;  %v5340_v63 = vadd.f32 %v5339_v46, %v5338_v56 }
 0x41b   :  { %v5423_v61 = vpop.f32.mrb[68].mxu1 }
 0x41c   :  { %v5424_v31 = vpop.f32.mrb[69].mxu1  ;;  %v11542_v8 = vadd.f32 %v5340_v63, %v11408_v44 }
 0x41d   :  { %v5425_v21 = vadd.f32 %v5424_v31, %v5423_v61  ;;  %v5426_v42 = vpop.f32.mrb[70].mxu1 }
 0x41e   :  { %v5427_v23 = vpop.f32.mrb[71].mxu1 }
 0x41f   :  { %v11545_v49 = vadd.f32 %v5425_v21, %v11491_v36  ;;  %v5428_v53 = vadd.f32 %v5427_v23, %v5426_v42 }
 0x420   :  { %v5341_v2 = vpop.f32.mrb[88].mxu0 }
 0x421   :  { %v11548_v6 = vadd.f32 %v5428_v53, %v11497_v13  ;;  %v5342_v16 = vpop.f32.mrb[89].mxu0 }
 0x422   :  { %v5343_v39 = vadd.f32 %v5342_v16, %v5341_v2  ;;  %v5344_v37 = vpop.f32.mrb[90].mxu0 }
 0x423   :  { %v5345_v30 = vpop.f32.mrb[91].mxu0 }
 0x424   :  { %v11551_v11 = vadd.f32 %v5343_v39, %v11417_v58  ;;  %v5346_v26 = vadd.f32 %v5345_v30, %v5344_v37 }
 0x425   :  { %v5429_v44 = vpop.f32.mrb[72].mxu1 }
 0x426   :  { %v5430_v55 = vpop.f32.mrb[73].mxu1  ;;  %v11554_v52 = vadd.f32 %v5346_v26, %v11426_v15 }
 0x427   :  { %v5431_v40 = vadd.f32 %v5430_v55, %v5429_v44  ;;  %v5432_v36 = vpop.f32.mrb[74].mxu1 }
 0x428   :  { %v5433_v48 = vpop.f32.mrb[75].mxu1 }
 0x429   :  { %v4406_v13 = vadd.f32 %v5431_v40, %v11503_v20  ;;  %v5434_v12 = vadd.f32 %v5433_v48, %v5432_v36 }
 0x42a   :  { %v5347_v22 = vpop.f32.mrb[92].mxu0 }
 0x42b   :  { %v4409_v35 = vadd.f32 %v5434_v12, %v11509_v33  ;;  %4520 = vrot.lane.b32.xlu0 %v4406_v13, %s5799_s2  ;;  %v5348_v58 = vpop.f32.mrb[93].mxu0 }
 0x42c   :  { %v5349_v9 = vadd.f32 %v5348_v58, %v5347_v22  ;;  %v5350_v1 = vpop.f32.mrb[94].mxu0 }
 0x42d   :  { %4522 = vrot.lane.b32.xlu1 %v4409_v35, %s5799_s2  ;;  %v5351_v51 = vpop.f32.mrb[95].mxu0 }
 0x42e   :  { %v11561_v15 = vadd.f32 %v5349_v9, %v11433_v59  ;;  %v5435_v0 = vpop.f32.mrb[76].mxu1  ;;  %v5352_v17 = vadd.f32 %v5351_v51, %v5350_v1 }
 0x42f   :  { %v5436_v50 = vpop.f32.mrb[77].mxu1 }
 0x430   :  { %v5437_v20 = vadd.f32 %v5436_v50, %v5435_v0  ;;  %v11564_v56 = vadd.f32 %v5352_v17, %v11436_v38  ;;  %v5438_v33 = vpop.f32.mrb[78].mxu1 }
 0x431   :  { %v5439_v46 = vpop.f32.mrb[79].mxu1 }
 0x432   :  { %v4414_v63 = vadd.f32 %v5437_v20, %v11515_v43  ;;  %v5440_v61 = vadd.f32 %v5439_v46, %v5438_v33 }
 0x433   :  { %v5353_v31 = vpop.f32.mrb[96].mxu0 }
 0x434   :  { %v4417_v21 = vadd.f32 %v5440_v61, %v11521_v32  ;;  %4524 = vrot.lane.b32.xlu0 %v4414_v63, %s5799_s2  ;;  %v5354_v42 = vpop.f32.mrb[97].mxu0 }
 0x435   :  { %v5355_v59 = vadd.f32 %v5354_v42, %v5353_v31  ;;  %v5356_v23 = vpop.f32.mrb[98].mxu0 }
 0x436   :  { %4526 = vrot.lane.b32.xlu1 %v4417_v21, %s5799_s2  ;;  %v5357_v53 = vpop.f32.mrb[99].mxu0 }
 0x437   :  { %v11571_v2 = vadd.f32 %v5355_v59, %v11443_v47  ;;  %v5358_v16 = vadd.f32 %v5357_v53, %v5356_v23 }
 0x438   :  { %v5441_v38 = vpop.f32.mrb[80].mxu1 }
 0x439   :  { %v5442_v39 = vpop.f32.mrb[81].mxu1  ;;  %v11574_v43 = vadd.f32 %v5358_v16, %v11446_v25 }
 0x43a   :  { %v5443_v37 = vadd.f32 %v5442_v39, %v5441_v38  ;;  %v5444_v30 = vpop.f32.mrb[82].mxu1 }
 0x43b   :  { %v5445_v32 = vpop.f32.mrb[83].mxu1 }
 0x43c   :  { %v11577_v44 = vadd.f32 %v5443_v37, %v11527_v45  ;;  %v5446_v26 = vadd.f32 %v5445_v32, %v5444_v30 }
 0x43d   :  { %v5359_v55 = vpop.f32.mrb[100].mxu0 }
 0x43e   :  { %v11580_v40 = vadd.f32 %v5446_v26, %v11530_v14  ;;  %v5360_v36 = vpop.f32.mrb[101].mxu0 }
 0x43f   :  { %v5361_v47 = vadd.f32 %v5360_v36, %v5359_v55  ;;  %v5362_v48 = vpop.f32.mrb[102].mxu0 }
 0x440   :  { %v5363_v13 = vpop.f32.mrb[103].mxu0 }
 0x441   :  { %v11583_v12 = vadd.f32 %v5361_v47, %v11453_v28  ;;  %v5447_v22 = vpop.f32.mrb[84].mxu1  ;;  %v5364_v25 = vadd.f32 %v5363_v13, %v5362_v48 }
 0x442   :  { %v5448_v35 = vpop.f32.mrb[85].mxu1 }
 0x443   :  { %v5449_v58 = vadd.f32 %v5448_v35, %v5447_v22  ;;  %v11586_v9 = vadd.f32 %v5364_v25, %v11456_v60  ;;  %v5450_v45 = vpop.f32.mrb[86].mxu1 }
 0x444   :  { %v5451_v1 = vpop.f32.mrb[87].mxu1 }
 0x445   :  { %v11589_v51 = vadd.f32 %v5449_v58, %v11539_v62  ;;  %v5452_v14 = vadd.f32 %v5451_v1, %v5450_v45 }
 0x446   :  { %v5365_v0 = vpop.f32.mrb[104].mxu0 }
 0x447   :  { %v11592_v17 = vadd.f32 %v5452_v14, %v11542_v8  ;;  %v5366_v50 = vpop.f32.mrb[105].mxu0 }
 0x448   :  { %v5367_v28 = vadd.f32 %v5366_v50, %v5365_v0  ;;  %v5368_v20 = vpop.f32.mrb[106].mxu0 }
 0x449   :  { %v5369_v33 = vpop.f32.mrb[107].mxu0 }
 0x44a   :  { %v11595_v46 = vadd.f32 %v5367_v28, %v11463_v10  ;;  %v5370_v60 = vadd.f32 %v5369_v33, %v5368_v20 }
 0x44b   :  { %v5453_v63 = vpop.f32.mrb[88].mxu1 }
 0x44c   :  { %v5454_v61 = vpop.f32.mrb[89].mxu1  ;;  %v11598_v21 = vadd.f32 %v5370_v60, %v11466_v3 }
 0x44d   :  { %v5455_v31 = vadd.f32 %v5454_v61, %v5453_v63  ;;  %v5456_v62 = vpop.f32.mrb[90].mxu1 }
 0x44e   :  { %v5457_v42 = vpop.f32.mrb[91].mxu1 }
 0x44f   :  { %v4438_v59 = vadd.f32 %v5455_v31, %v11551_v11  ;;  %v5458_v8 = vadd.f32 %v5457_v42, %v5456_v62 }
 0x450   :  { %v5371_v23 = vpop.f32.mrb[108].mxu0 }
 0x451   :  { %v4441_v53 = vadd.f32 %v5458_v8, %v11554_v52  ;;  %4536 = vrot.lane.b32.xlu0 %v4438_v59, %s5799_s2  ;;  %v5372_v38 = vpop.f32.mrb[109].mxu0 }
 0x452   :  { %v5373_v10 = vadd.f32 %v5372_v38, %v5371_v23  ;;  %v5374_v16 = vpop.f32.mrb[110].mxu0 }
 0x453   :  { %4538 = vrot.lane.b32.xlu1 %v4441_v53, %s5799_s2  ;;  %v5375_v39 = vpop.f32.mrb[111].mxu0 }
 0x454   :  { %v11605_v37 = vadd.f32 %v5373_v10, %v11473_v19  ;;  %v5459_v3 = vpop.f32.mrb[92].mxu1  ;;  %v5376_v30 = vadd.f32 %v5375_v39, %v5374_v16 }
 0x455   :  { %v5460_v32 = vpop.f32.mrb[93].mxu1 }
 0x456   :  { %v5461_v26 = vadd.f32 %v5460_v32, %v5459_v3  ;;  %v11608_v11 = vadd.f32 %v5376_v30, %v11476_v41  ;;  %v5462_v55 = vpop.f32.mrb[94].mxu1 }
 0x457   :  { %v5463_v52 = vpop.f32.mrb[95].mxu1 }
 0x458   :  { %v4446_v36 = vadd.f32 %v5461_v26, %v11561_v15  ;;  %v5464_v47 = vadd.f32 %v5463_v52, %v5462_v55 }
 0x45a   :  { %v5377_v48 = vpop.f32.mrb[112].mxu0  ;;  %v4449_v13 = vadd.f32 %v5464_v47, %v11564_v56  ;;  %4540 = vrot.lane.b32.xlu0 %v4446_v36, %s5799_s2 }
 0x45b   :  { %v5378_v22 = vpop.f32.mrb[113].mxu0 }
 0x45c   :  { %v5379_v19 = vadd.f32 %v5378_v22, %v5377_v48  ;;  %v5380_v25 = vpop.f32.mrb[114].mxu0  ;;  %4542 = vrot.lane.b32.xlu1 %v4449_v13, %s5799_s2 }
 0x45d   :  { %v5381_v35 = vpop.f32.mrb[115].mxu0 }
 0x45e   :  { %v11615_v58 = vadd.f32 %v5379_v19, %v11482_v54  ;;  %v5382_v41 = vadd.f32 %v5381_v35, %v5380_v25 }
 0x45f   :  { %v5465_v45 = vpop.f32.mrb[96].mxu1 }
 0x460   :  { %v5466_v1 = vpop.f32.mrb[97].mxu1  ;;  %v11618_v15 = vadd.f32 %v5382_v41, %v11488_v4 }
 0x461   :  { %v5467_v14 = vadd.f32 %v5466_v1, %v5465_v45  ;;  %v5468_v0 = vpop.f32.mrb[98].mxu1 }
 0x462   :  { %v5469_v56 = vpop.f32.mrb[99].mxu1 }
 0x463   :  { %v11621_v50 = vadd.f32 %v5467_v14, %v11571_v2  ;;  %v5470_v28 = vadd.f32 %v5469_v56, %v5468_v0 }
 0x464   :  { %v5383_v20 = vpop.f32.mrb[116].mxu0 }
 0x465   :  { %v11624_v33 = vadd.f32 %v5470_v28, %v11574_v43  ;;  %v5384_v63 = vpop.f32.mrb[117].mxu0 }
 0x466   :  { %v5385_v54 = vadd.f32 %v5384_v63, %v5383_v20  ;;  %v5386_v60 = vpop.f32.mrb[118].mxu0 }
 0x467   :  { %v5387_v61 = vpop.f32.mrb[119].mxu0 }
 0x468   :  { %v4333_v31 = vadd.f32 %v5385_v54, %v11494_v34  ;;  %v5471_v62 = vpop.f32.mrb[100].mxu1  ;;  %v5388_v4 = vadd.f32 %v5387_v61, %v5386_v60 }
 0x469   :  { %v5472_v42 = vpop.f32.mrb[101].mxu1 }
 0x46a   :  { %v5473_v59 = vadd.f32 %v5472_v42, %v5471_v62  ;;  %v4336_v8 = vadd.f32 %v5388_v4, %v11500_v27  ;;  %v5474_v23 = vpop.f32.mrb[102].mxu1 }
 0x46b   :  { %v5475_v2 = vpop.f32.mrb[103].mxu1 }
 0x46c   :  { %v11629_v53 = vadd.f32 %v5473_v59, %v11583_v12  ;;  %v5476_v38 = vadd.f32 %v5475_v2, %v5474_v23 }
 0x46e   :  { %v5389_v43 = vpop.f32.mrb[120].mxu0  ;;  %v11632_v16 = vadd.f32 %v5476_v38, %v11586_v9 }
 0x46f   :  { %v5390_v10 = vpop.f32.mrb[121].mxu0 }
 0x470   :  { %v5391_v39 = vadd.f32 %v5390_v10, %v5389_v43  ;;  %v5392_v3 = vpop.f32.mrb[122].mxu0 }
 0x471   :  { %v5393_v34 = vpop.f32.mrb[123].mxu0 }
 0x472   :  { %v4341_v30 = vadd.f32 %v5391_v39, %v11506_v18  ;;  %v5477_v32 = vpop.f32.mrb[104].mxu1  ;;  %v5394_v26 = vadd.f32 %v5393_v34, %v5392_v3 }
 0x473   :  { %v5478_v55 = vpop.f32.mrb[105].mxu1 }
 0x474   :  { %v5479_v27 = vadd.f32 %v5478_v55, %v5477_v32  ;;  %v4344_v52 = vadd.f32 %v5394_v26, %v11512_v24  ;;  %v5480_v36 = vpop.f32.mrb[106].mxu1 }
 0x475   :  { %v5481_v12 = vpop.f32.mrb[107].mxu1 }
 0x476   :  { %v4470_v47 = vadd.f32 %v5479_v27, %v11595_v46  ;;  %v5482_v48 = vadd.f32 %v5481_v12, %v5480_v36 }
 0x478   :  { %v5395_v13 = vpop.f32.mrb[124].mxu0  ;;  %v4473_v9 = vadd.f32 %v5482_v48, %v11598_v21  ;;  %4552 = vrot.lane.b32.xlu0 %v4470_v47, %s5799_s2 }
 0x479   :  { %v5396_v22 = vpop.f32.mrb[125].mxu0 }
 0x47a   :  { %v5397_v19 = vadd.f32 %v5396_v22, %v5395_v13  ;;  %v5398_v25 = vpop.f32.mrb[126].mxu0  ;;  %v5483_v18 = vpop.f32.mrb[108].mxu1  ;;  %4554 = vrot.lane.b32.xlu1 %v4473_v9, %s5799_s2 }
 0x47b   :  { %v5399_v35 = vpop.f32.mrb[127].mxu0  ;;  %v5484_v24 = vpop.f32.mrb[109].mxu1 }
 0x47c   :  { %v4349_v41 = vadd.f32 %v5397_v19, %v11518_v57  ;;  %v5400_v45 = vadd.f32 %v5399_v35, %v5398_v25  ;;  %v5485_v1 = vadd.f32 %v5484_v24, %v5483_v18  ;;  %v5486_v14 = vpop.f32.mrb[110].mxu1 }
 0x47d   :  { %v5487_v0 = vpop.f32.mrb[111].mxu1 }
 0x47e   :  { %v4352_v46 = vadd.f32 %v5400_v45, %v11524_v5  ;;  %v4478_v21 = vadd.f32 %v5485_v1, %v11605_v37  ;;  %v5488_v56 = vadd.f32 %v5487_v0, %v5486_v14 }
 0x480   :  { %v4481_v28 = vadd.f32 %v5488_v56, %v11608_v11  ;;  %4556 = vrot.lane.b32.xlu0 %v4478_v21, %s5799_s2 }
 0x482   :  { %v5489_v20 = vpop.f32.mrb[112].mxu1  ;;  %4558 = vrot.lane.b32.xlu1 %v4481_v28, %s5799_s2 }
 0x483   :  { %v5490_v63 = vpop.f32.mrb[113].mxu1 }
 0x484   :  { %v5491_v54 = vadd.f32 %v5490_v63, %v5489_v20  ;;  %v5492_v57 = vpop.f32.mrb[114].mxu1 }
 0x485   :  { %v5493_v60 = vpop.f32.mrb[115].mxu1 }
 0x486   :  { %v4486_v61 = vadd.f32 %v5491_v54, %v11615_v58  ;;  %v5494_v62 = vadd.f32 %v5493_v60, %v5492_v57 }
 0x488   :  { %v11648_v5 = vadd.f32 %v5494_v62, %v11618_v15 }
 0x48a   :  { %v5495_v4 = vpop.f32.mrb[116].mxu1 }
 0x48b   :  { %v5496_v37 = vpop.f32.mrb[117].mxu1 }
 0x48c   :  { %v5497_v42 = vadd.f32 %v5496_v37, %v5495_v4  ;;  %v5498_v59 = vpop.f32.mrb[118].mxu1 }
 0x48d   :  { %v5499_v11 = vpop.f32.mrb[119].mxu1 }
 0x48e   :  { %v11650_v23 = vadd.f32 %v5497_v42, %v4333_v31  ;;  %v5500_v2 = vadd.f32 %v5499_v11, %v5498_v59 }
 0x490   :  { %v11652_v38 = vadd.f32 %v5500_v2, %v4336_v8 }
 0x492   :  { %v5501_v43 = vpop.f32.mrb[120].mxu1 }
 0x493   :  { %v5502_v10 = vpop.f32.mrb[121].mxu1 }
 0x494   :  { %v5503_v39 = vadd.f32 %v5502_v10, %v5501_v43  ;;  %v5504_v3 = vpop.f32.mrb[122].mxu1 }
 0x495   :  { %v5505_v34 = vpop.f32.mrb[123].mxu1 }
 0x496   :  { %v4502_v58 = vadd.f32 %v5503_v39, %v4341_v30  ;;  %v5506_v32 = vadd.f32 %v5505_v34, %v5504_v3 }
 0x498   :  { %v4505_v26 = vadd.f32 %v5506_v32, %v4344_v52  ;;  %4568 = vrot.lane.b32.xlu0 %v4502_v58, %s5799_s2 }
 0x49a   :  { %v5507_v15 = vpop.f32.mrb[124].mxu1  ;;  %4570 = vrot.lane.b32.xlu1 %v4505_v26, %s5799_s2 }
 0x49b   :  { %v5508_v55 = vpop.f32.mrb[125].mxu1 }
 0x49c   :  { %v5509_v27 = vadd.f32 %v5508_v55, %v5507_v15  ;;  %v5510_v31 = vpop.f32.mrb[126].mxu1 }
 0x49d   :  { %v5511_v36 = vpop.f32.mrb[127].mxu1  ;;  %v4521_v48 = vpop.permute.xlu0 %4520 }
 0x49e   :  { %v4510_v12 = vadd.f32 %v5509_v27, %v4349_v41  ;;  %v5512_v8 = vadd.f32 %v5511_v36, %v5510_v31  ;;  %v11664_v24 = vsel %vm4580_vm12, %v11533_v29, %v4521_v48 }
 0x49f   :  { %v4523_v30 = vpop.permute.xlu1 %4522 }
 0x4a0   :  { %v4513_v47 = vadd.f32 %v5512_v8, %v4352_v46  ;;  %4572 = vrot.lane.b32.xlu0 %v4510_v12, %s5799_s2 }
 0x4a2   :  { %4574 = vrot.lane.b32.xlu1 %v4513_v47, %s5799_s2 }
 0x4a6   :  { %v4525_v13 = vpop.permute.xlu0 %4524 }
 0x4a7   :  { %v11701_v4 = vsel %vm4580_vm12, %v11545_v49, %v4525_v13 }
 0x4a8   :  { %v4527_v52 = vpop.permute.xlu1 %4526  ;;  %v4605_v49 = vmul.f32 %v11701_v4, %v11701_v4 }
 0x4c3   :  { %v4537_v9 = vpop.permute.xlu0 %4536 }
 0x4c4   :  { %v11660_v35 = vsel %vm4580_vm12, %v11577_v44, %v4537_v9  ;;  %v11678_v44 = vsel %vm4580_vm12, %v11536_v7, %v4523_v30 }
 0x4c5   :  { %v4539_v22 = vpop.permute.xlu1 %4538  ;;  %v4598_v14 = vmul.f32 %v11660_v35, %v11660_v35  ;;  %v4601_v56 = vmul.f32 %v11678_v44, %v11678_v44 }
 0x4c6   :  { %v11668_v45 = vsel %vm4580_vm12, %v11580_v40, %v4539_v22  ;;  %v4597_v40 = vmul.f32 %v11664_v24, %v11664_v24 }
 0x4c7   :  { %v4602_v0 = vmul.f32 %v11668_v45, %v11668_v45 }
 0x4c8   :  { %v4613_v28 = vadd.f32 %v4598_v14, %v4597_v40 }
 0x4c9   :  { %v4618_v54 = vadd.f32 %v4602_v0, %v4601_v56 }
 0x4cc   :  { %v4541_v19 = vpop.permute.xlu0 %4540 }
 0x4ce   :  { %v4543_v25 = vpop.permute.xlu1 %4542 }
 0x4cf   :  { %v11713_v2 = vsel %vm4580_vm12, %v11592_v17, %v4543_v25 }
 0x4d0   :  { %v4610_v17 = vmul.f32 %v11713_v2, %v11713_v2 }
 0x4ea   :  { %v4553_v18 = vpop.permute.xlu0 %4552 }
 0x4eb   :  { %v11672_v1 = vsel %vm4580_vm12, %v11621_v50, %v4553_v18 }
 0x4ec   :  { %v4555_v41 = vpop.permute.xlu1 %4554  ;;  %v4599_v50 = vmul.f32 %v11672_v1, %v11672_v1 }
 0x4ed   :  { %v11682_v29 = vsel %vm4580_vm12, %v11624_v33, %v4555_v41  ;;  %v11696_v33 = vsel %vm4580_vm12, %v11589_v51, %v4541_v19 }
 0x4ee   :  { %v4603_v7 = vmul.f32 %v11682_v29, %v11682_v29  ;;  %v4614_v57 = vadd.f32 %v4613_v28, %v4599_v50  ;;  %v4606_v51 = vmul.f32 %v11696_v33, %v11696_v33 }
 0x4f0   :  { %v4619_v59 = vadd.f32 %v4618_v54, %v4603_v7  ;;  %v4623_v39 = vadd.f32 %v4606_v51, %v4605_v49 }
 0x4f2   :  { %v4557_v46 = vpop.permute.xlu0 %4556 }
 0x4f3   :  { %v11705_v37 = vsel %vm4580_vm12, %v11629_v53, %v4557_v46 }
 0x4f4   :  { %v4559_v21 = vpop.permute.xlu1 %4558  ;;  %v4607_v53 = vmul.f32 %v11705_v37, %v11705_v37 }
 0x4f5   :  { %v11725_v10 = vsel %vm4580_vm12, %v11632_v16, %v4559_v21 }
 0x4f6   :  { %v4624_v32 = vadd.f32 %v4623_v39, %v4607_v53 }
 0x50a   :  { %v4569_v20 = vpop.permute.xlu0 %4568 }
 0x50b   :  { %v4593_v63 = vsel %vm4580_vm12, %v4486_v61, %v4569_v20 }
 0x50c   :  { %v4600_v60 = vmul.f32 %v4593_v63, %v4593_v63  ;;  %v4571_v62 = vpop.permute.xlu1 %4570 }
 0x50d   :  { %v4594_v42 = vsel %vm4580_vm12, %v11648_v5, %v4571_v62  ;;  %v11721_v5 = vsel %vm4580_vm12, %v11548_v6, %v4527_v52  ;;  %v4611_v6 = vmul.f32 %v11725_v10, %v11725_v10 }
 0x50e   :  { %v4604_v61 = vmul.f32 %v4594_v42, %v4594_v42  ;;  %v4615_v11 = vadd.f32 %v4614_v57, %v4600_v60  ;;  %v4609_v58 = vmul.f32 %v11721_v5, %v11721_v5 }
 0x510   :  { %4616 = vadd.xlane.f32.xlu0 %v4615_v11  ;;  %v4620_v43 = vadd.f32 %v4619_v59, %v4604_v61  ;;  %v4628_v55 = vadd.f32 %v4610_v17, %v4609_v58 }
 0x512   :  { %4621 = vadd.xlane.f32.xlu1 %v4620_v43  ;;  %v4573_v3 = vpop.permute.xlu0 %4572  ;;  %v4629_v31 = vadd.f32 %v4628_v55, %v4611_v6 }
 0x513   :  { %v11731_v34 = vsel %vm4580_vm12, %v11650_v23, %v4573_v3 }
 0x514   :  { %v4608_v16 = vmul.f32 %v11731_v34, %v11731_v34  ;;  %v4575_v26 = vpop.permute.xlu1 %4574 }
 0x515   :  { %v11741_v15 = vsel %vm4580_vm12, %v11652_v38, %v4575_v26 }
 0x516   :  { %v4612_v23 = vmul.f32 %v11741_v15, %v11741_v15  ;;  %v4625_v27 = vadd.f32 %v4624_v32, %v4608_v16 }
 0x518   :  { %4626 = vadd.xlane.f32.xlu0 %v4625_v27  ;;  %v4630_v36 = vadd.f32 %v4629_v31, %v4612_v23 }
 0x51c   :  { %4631 = vadd.xlane.f32.xlu0 %v4630_v36 }
 0x59d   :  { %v4617_v12 = vpop.xlane.xlu0 %4616 }
 0x59e   :  { %v4633_v8 = vadd.f32 1e-08, %v4617_v12 }
 0x59f   :  { %v4622_v47 = vpop.xlane.xlu1 %4621 }
 0x5a0   :  { %5712 = vrsqrt.f32 %v4633_v8  ;;  %v4634_v48 = vadd.f32 1e-08, %v4622_v47 }
 0x5a2   :  { %5714 = vrsqrt.f32 %v4634_v48 }
 0x5a5   :  { %v4627_v30 = vpop.xlane.xlu0 %4626 }
 0x5a6   :  { %v4635_v13 = vadd.f32 1e-08, %v4627_v30 }
 0x5a8   :  { %5716 = vrsqrt.f32 %v4635_v13 }
 0x5a9   :  { %v4632_v38 = vpop.xlane.xlu0 %4631 }
 0x5aa   :  { %v5713_v52 = vpop.eup %5712  ;;  %v4636_v9 = vadd.f32 1e-08, %v4632_v38 }
 0x5ab   :  { %v4641_v22 = vmul.f32 %v5713_v52, %v11664_v24  ;;  %v4642_v19 = vmul.f32 %v5713_v52, %v11660_v35  ;;  %v4643_v25 = vmul.f32 %v5713_v52, %v11672_v1  ;;  %v4644_v18 = vmul.f32 %v5713_v52, %v4593_v63 }
 0x5ac   :  { %v5715_v41 = vpop.eup %5714  ;;  %5718 = vrsqrt.f32 %v4636_v9 }
 0x5ad   :  { %v4657_v14 = vmax.f32 %v4641_v22, 0.0  ;;  %v4658_v46 = vmax.f32 %v4642_v19, 0.0  ;;  %v4659_v40 = vmax.f32 %v4643_v25, 0.0  ;;  %v4660_v0 = vmax.f32 %v4644_v18, 0.0 }
 0x5ae   :  { %v4645_v50 = vmul.f32 %v5715_v41, %v11678_v44  ;;  %v4646_v21 = vmul.f32 %v5715_v41, %v11668_v45  ;;  %v4647_v56 = vmul.f32 %v5715_v41, %v11682_v29  ;;  %v4648_v28 = vmul.f32 %v5715_v41, %v4594_v42 }
 0x5af   :  { %v11751_v7 = vmin.f32 %v4657_v14, 0.2  ;;  %v11753_v24 = vmin.f32 %v4658_v46, 0.2  ;;  %v11755_v35 = vmin.f32 %v4659_v40, 0.2 }
 0x5b0   :  { %v11757_v1 = vmin.f32 %v4660_v0, 0.2  ;;  %v4661_v20 = vmax.f32 %v4645_v50, 0.0  ;;  %v4662_v63 = vmax.f32 %v4646_v21, 0.0  ;;  %v4663_v54 = vmax.f32 %v4647_v56, 0.0 }
 0x5b1   :  { %v4689_v57 = vmul.f32 %v11751_v7, %v11751_v7  ;;  %v4690_v45 = vmul.f32 %v11753_v24, %v11753_v24  ;;  %v4664_v44 = vmax.f32 %v4648_v28, 0.0  ;;  %v4691_v60 = vmul.f32 %v11755_v35, %v11755_v35 }
 0x5b2   :  { %v5717_v29 = vpop.eup %5716  ;;  %v11765_v62 = vmin.f32 %v4661_v20, 0.2  ;;  %v11767_v42 = vmin.f32 %v4662_v63, 0.2  ;;  %v11769_v51 = vmin.f32 %v4663_v54, 0.2  ;;  %v4692_v53 = vmul.f32 %v11757_v1, %v11757_v1 }
 0x5b3   :  { %v4705_v59 = vadd.f32 %v4690_v45, %v4689_v57  ;;  %v11771_v61 = vmin.f32 %v4664_v44, 0.2  ;;  %v4649_v11 = vmul.f32 %v5717_v29, %v11701_v4  ;;  %v4650_v49 = vmul.f32 %v5717_v29, %v11696_v33 }
 0x5b4   :  { %v4693_v43 = vmul.f32 %v11765_v62, %v11765_v62  ;;  %v4694_v39 = vmul.f32 %v11767_v42, %v11767_v42  ;;  %v4651_v17 = vmul.f32 %v5717_v29, %v11705_v37  ;;  %v4695_v58 = vmul.f32 %v11769_v51, %v11769_v51 }
 0x5b5   :  { %v4706_v3 = vadd.f32 %v4705_v59, %v4691_v60  ;;  %v4652_v32 = vmul.f32 %v5717_v29, %v11731_v34  ;;  %v4665_v4 = vmax.f32 %v4649_v11, 0.0  ;;  %v4696_v33 = vmul.f32 %v11771_v61, %v11771_v61 }
 0x5b6   :  { %v5719_v6 = vpop.eup %5718  ;;  %v4710_v16 = vadd.f32 %v4694_v39, %v4693_v43  ;;  %v4666_v26 = vmax.f32 %v4650_v49, 0.0  ;;  %v4667_v55 = vmax.f32 %v4651_v17, 0.0 }
 0x5b7   :  { %v4707_v23 = vadd.f32 %v4706_v3, %v4692_v53  ;;  %v4668_v27 = vmax.f32 %v4652_v32, 0.0  ;;  %v11787_v31 = vmin.f32 %v4665_v4, 0.2  ;;  %v4653_v37 = vmul.f32 %v5719_v6, %v11721_v5 }
 0x5b8   :  { %v4711_v36 = vadd.f32 %v4710_v16, %v4695_v58  ;;  %v11790_v12 = vmin.f32 %v4666_v26, 0.2  ;;  %v11792_v8 = vmin.f32 %v4667_v55, 0.2  ;;  %v4654_v34 = vmul.f32 %v5719_v6, %v11713_v2 }
 0x5b9   :  { %4708 = vadd.xlane.f32.xlu1 %v4707_v23  ;;  %v4697_v47 = vmul.f32 %v11787_v31, %v11787_v31  ;;  %v4655_v48 = vmul.f32 %v5719_v6, %v11725_v10  ;;  %v4656_v30 = vmul.f32 %v5719_v6, %v11741_v15  ;;  %v11799_v38 = vmin.f32 %v4668_v27, 0.2 }
 0x5ba   :  { %v4712_v13 = vadd.f32 %v4711_v36, %v4696_v33  ;;  %v4698_v5 = vmul.f32 %v11790_v12, %v11790_v12  ;;  %v4669_v52 = vmax.f32 %v4653_v37, 0.0  ;;  %v4670_v9 = vmax.f32 %v4654_v34, 0.0 }
 0x5bb   :  { %v4671_v22 = vmax.f32 %v4655_v48, 0.0  ;;  %v4672_v19 = vmax.f32 %v4656_v30, 0.0  ;;  %v4699_v2 = vmul.f32 %v11792_v8, %v11792_v8  ;;  %v4700_v41 = vmul.f32 %v11799_v38, %v11799_v38 }
 0x5bc   :  { %4713 = vadd.xlane.f32.xlu0 %v4712_v13  ;;  %v4715_v25 = vadd.f32 %v4698_v5, %v4697_v47  ;;  %v11805_v18 = vmin.f32 %v4669_v52, 0.2  ;;  %v11807_v10 = vmin.f32 %v4670_v9, 0.2 }
 0x5bd   :  { %v11809_v15 = vmin.f32 %v4671_v22, 0.2  ;;  %v11815_v40 = vmin.f32 %v4672_v19, 0.2 }
 0x5be   :  { %v4716_v14 = vadd.f32 %v4715_v25, %v4699_v2  ;;  %v4701_v46 = vmul.f32 %v11805_v18, %v11805_v18  ;;  %v4702_v0 = vmul.f32 %v11807_v10, %v11807_v10 }
 0x5bf   :  { %v4703_v21 = vmul.f32 %v11809_v15, %v11809_v15  ;;  %v4704_v28 = vmul.f32 %v11815_v40, %v11815_v40 }
 0x5c0   :  { %v4717_v50 = vadd.f32 %v4716_v14, %v4700_v41  ;;  %v4720_v56 = vadd.f32 %v4702_v0, %v4701_v46 }
 0x5c2   :  { %4718 = vadd.xlane.f32.xlu1 %v4717_v50  ;;  %v4721_v20 = vadd.f32 %v4720_v56, %v4703_v21 }
 0x5c4   :  { %v4722_v63 = vadd.f32 %v4721_v20, %v4704_v28 }
 0x5c6   :  { %4723 = vadd.xlane.f32.xlu0 %v4722_v63 }
 0x646   :  { %v4709_v54 = vpop.xlane.xlu1 %4708 }
 0x647   :  { %v4725_v57 = vadd.f32 1e-08, %v4709_v54 }
 0x649   :  { %5720 = vrsqrt.f32 %v4725_v57  ;;  %v4714_v45 = vpop.xlane.xlu0 %4713 }
 0x64a   :  { %v4726_v44 = vadd.f32 1e-08, %v4714_v45 }
 0x64c   :  { %5722 = vrsqrt.f32 %v4726_v44 }
 0x64f   :  { %v4719_v29 = vpop.xlane.xlu1 %4718 }
 0x650   :  { %v4727_v60 = vadd.f32 1e-08, %v4719_v29 }
 0x652   :  { %5724 = vrsqrt.f32 %v4727_v60 }
 0x653   :  { %v5721_v59 = vpop.eup %5720  ;;  %v4724_v11 = vpop.xlane.xlu0 %4723 }
 0x654   :  { %v11824_v49 = vmul.f32 %v5721_v59, %v11751_v7  ;;  %v11827_v53 = vmul.f32 %v5721_v59, %v11753_v24  ;;  %v11830_v43 = vmul.f32 %v5721_v59, %v11755_v35  ;;  %v4728_v39 = vadd.f32 1e-08, %v4724_v11 }
 0x655   :  { %v4736_v3 = vmul.f32 %v5721_v59, %v11757_v1 }
 0x656   :  { %v5723_v17 = vpop.eup %5722  ;;  %v4749_v58 = vand.u32 2147483647, %v11824_v49  ;;  %v4750_v32 = vand.u32 2147483647, %v11827_v53  ;;  %5726 = vrsqrt.f32 %v4728_v39  ;;  %v4751_v24 = vand.u32 2147483647, %v11830_v43 }
 0x657   :  { %v11836_v4 = vmul.f32 %v5723_v17, %v11765_v62  ;;  %v11839_v7 = vmul.f32 %v5723_v17, %v11767_v42  ;;  %v4739_v35 = vmul.f32 %v5723_v17, %v11769_v51  ;;  %v11844_v33 = vmul.f32 %v5723_v17, %v11771_v61 }
 0x658   :  { %v4765_v6 = vadd.f32 %v4750_v32, %v4749_v58  ;;  %v4752_v26 = vand.u32 2147483647, %v4736_v3 }
 0x659   :  { %v4753_v1 = vand.u32 2147483647, %v11836_v4  ;;  %v4754_v16 = vand.u32 2147483647, %v11839_v7  ;;  %v4755_v23 = vand.u32 2147483647, %v4739_v35 }
 0x65a   :  { %v4766_v55 = vadd.f32 %v4765_v6, %v4751_v24  ;;  %v4756_v42 = vand.u32 2147483647, %v11844_v33 }
 0x65b   :  { %v4770_v62 = vadd.f32 %v4754_v16, %v4753_v1 }
 0x65c   :  { %v5725_v27 = vpop.eup %5724  ;;  %v4767_v37 = vadd.f32 %v4766_v55, %v4752_v26 }
 0x65d   :  { %v4771_v36 = vadd.f32 %v4770_v62, %v4755_v23  ;;  %v11850_v34 = vmul.f32 %v5725_v27, %v11787_v31  ;;  %v11853_v51 = vmul.f32 %v5725_v27, %v11790_v12  ;;  %v11856_v61 = vmul.f32 %v5725_v27, %v11792_v8 }
 0x65e   :  { %4768 = vadd.xlane.f32.xlu1 %v4767_v37  ;;  %v11859_v48 = vmul.f32 %v5725_v27, %v11799_v38 }
 0x65f   :  { %v4772_v47 = vadd.f32 %v4771_v36, %v4756_v42  ;;  %v4757_v30 = vand.u32 2147483647, %v11850_v34  ;;  %v4758_v13 = vand.u32 2147483647, %v11853_v51  ;;  %v4759_v31 = vand.u32 2147483647, %v11856_v61 }
 0x660   :  { %v5727_v5 = vpop.eup %5726  ;;  %v4760_v38 = vand.u32 2147483647, %v11859_v48 }
 0x661   :  { %4773 = vadd.xlane.f32.xlu0 %v4772_v47  ;;  %v4775_v52 = vadd.f32 %v4758_v13, %v4757_v30  ;;  %v11865_v12 = vmul.f32 %v5727_v5, %v11805_v18  ;;  %v11868_v8 = vmul.f32 %v5727_v5, %v11807_v10  ;;  %v11871_v9 = vmul.f32 %v5727_v5, %v11809_v15 }
 0x662   :  { %v11875_v19 = vmul.f32 %v5727_v5, %v11815_v40 }
 0x663   :  { %v4776_v22 = vadd.f32 %v4775_v52, %v4759_v31  ;;  %v4761_v2 = vand.u32 2147483647, %v11865_v12  ;;  %v4762_v25 = vand.u32 2147483647, %v11868_v8  ;;  %v4763_v18 = vand.u32 2147483647, %v11871_v9 }
 0x664   :  { %v4764_v10 = vand.u32 2147483647, %v11875_v19 }
 0x665   :  { %v4777_v41 = vadd.f32 %v4776_v22, %v4760_v38  ;;  %v4780_v14 = vadd.f32 %v4762_v25, %v4761_v2 }
 0x667   :  { %4778 = vadd.xlane.f32.xlu1 %v4777_v41  ;;  %v4781_v46 = vadd.f32 %v4780_v14, %v4763_v18 }
 0x669   :  { %v4782_v15 = vadd.f32 %v4781_v46, %v4764_v10 }
 0x66b   :  { %4783 = vadd.xlane.f32.xlu0 %v4782_v15 }
 0x6eb   :  { %v4769_v0 = vpop.xlane.xlu1 %4768 }
 0x6ec   :  { %v4785_v50 = vadd.f32 1e-08, %v4769_v0 }
 0x6ee   :  { %5728 = vrcp.f32 %v4785_v50  ;;  %v4774_v21 = vpop.xlane.xlu0 %4773 }
 0x6ef   :  { %v4786_v40 = vadd.f32 1e-08, %v4774_v21 }
 0x6f1   :  { %5730 = vrcp.f32 %v4786_v40 }
 0x6f4   :  { %v4779_v56 = vpop.xlane.xlu1 %4778 }
 0x6f5   :  { %v4787_v28 = vadd.f32 1e-08, %v4779_v56 }
 0x6f7   :  { %5732 = vrcp.f32 %v4787_v28 }
 0x6f8   :  { %v5729_v20 = vpop.eup %5728 }
 0x6f9   :  { %v4793_v63 = vmul.f32 %v5729_v20, %v11824_v49  ;;  %v4794_v54 = vmul.f32 %v5729_v20, %v11827_v53  ;;  %v4795_v57 = vmul.f32 %v5729_v20, %v11830_v43  ;;  %v4796_v45 = vmul.f32 %v5729_v20, %v4736_v3  ;;  %v4784_v49 = vpop.xlane.xlu0 %4783 }
 0x6fb   :  { %v5731_v44 = vpop.eup %5730  ;;  %v4809_v29 = vadd.f32 1e-08, %v4793_v63  ;;  %v4810_v60 = vadd.f32 1e-08, %v4794_v54  ;;  %v11884_v59 = vadd.f32 1e-08, %v4795_v57 }
 0x6fc   :  { %v11886_v11 = vadd.f32 1e-08, %v4796_v45  ;;  %v4797_v39 = vmul.f32 %v5731_v44, %v11836_v4  ;;  %v4798_v17 = vmul.f32 %v5731_v44, %v11839_v7  ;;  %v4799_v58 = vmul.f32 %v5731_v44, %v4739_v35 }
 0x6fd   :  { %5734 = vrsqrt.f32 %v4809_v29  ;;  %v4800_v43 = vmul.f32 %v5731_v44, %v11844_v33  ;;  %vm4827_vm14 = vcmp.eq.f32.partialorder %v4809_v29, inf  ;;  %vm4829_vm6 = vcmp.eq.f32.partialorder %v4809_v29, 0.0 }
 0x6fe   :  { %5736 = vrsqrt.f32 %v4810_v60  ;;  %v11893_v3 = vadd.f32 1e-08, %v4797_v39  ;;  %v11895_v32 = vadd.f32 1e-08, %v4798_v17  ;;  %v11897_v24 = vadd.f32 1e-08, %v4799_v58 }
 0x6ff   :  { %5738 = vrsqrt.f32 %v11884_v59  ;;  %v4830_v4 = vand.u32 2147483648, %v4809_v29  ;;  %v4788_v7 = vadd.f32 1e-08, %v4784_v49  ;;  %v11899_v6 = vadd.f32 1e-08, %v4800_v43 }
 0x700   :  { %5740 = vrsqrt.f32 %v11886_v11  ;;  %vm4834_vm5 = vcmp.eq.f32.partialorder %v4810_v60, inf  ;;  %vm4836_vm13 = vcmp.eq.f32.partialorder %v4810_v60, 0.0  ;;  %v4837_v33 = vand.u32 2147483648, %v4810_v60 }
 0x701   :  { %v5733_v53 = vpop.eup %5732  ;;  %5742 = vrsqrt.f32 %v11893_v3  ;;  %vm4841_vm10 = vcmp.eq.f32.partialorder %v11884_v59, inf  ;;  %vm4843_vm15 = vcmp.eq.f32.partialorder %v11884_v59, 0.0  ;;  %v4844_v26 = vand.u32 2147483648, %v11884_v59 }
 0x702   :  { %v4801_v35 = vmul.f32 %v5733_v53, %v11850_v34  ;;  %v4802_v1 = vmul.f32 %v5733_v53, %v11853_v51  ;;  %5744 = vrsqrt.f32 %v11895_v32  ;;  %v4803_v16 = vmul.f32 %v5733_v53, %v11856_v61 }
 0x703   :  { %5746 = vrsqrt.f32 %v11897_v24  ;;  %vm4848_vm4 = vcmp.eq.f32.partialorder %v11886_v11, inf  ;;  %vm4850_vm8 = vcmp.eq.f32.partialorder %v11886_v11, 0.0  ;;  %v4804_v23 = vmul.f32 %v5733_v53, %v11859_v48 }
 0x704   :  { %5748 = vrsqrt.f32 %v11899_v6  ;;  %v11914_v62 = vadd.f32 1e-08, %v4801_v35  ;;  %v11916_v27 = vadd.f32 1e-08, %v4802_v1  ;;  %v4851_v36 = vand.u32 2147483648, %v11886_v11 }
 0x705   :  { %5750 = vrcp.f32 %v4788_v7  ;;  %vm4855_vm1 = vcmp.eq.f32.partialorder %v11893_v3, inf  ;;  %vm4857_vm0 = vcmp.eq.f32.partialorder %v11893_v3, 0.0  ;;  %v4858_v61 = vand.u32 2147483648, %v11893_v3 }
 0x706   :  { %v11922_v47 = vadd.f32 1e-08, %v4803_v16  ;;  %5752 = vrsqrt.f32 %v11914_v62  ;;  %vm4862_vm2 = vcmp.eq.f32.partialorder %v11895_v32, inf  ;;  %v11932_v38 = vadd.f32 1e-08, %v4804_v23 }
 0x707   :  { %v5735_v55 = vpop.eup %5734  ;;  %5754 = vrsqrt.f32 %v11916_v27  ;;  %vm4864_vm7 = vcmp.eq.f32.partialorder %v11895_v32, 0.0  ;;  %v4865_v25 = vand.u32 2147483648, %v11895_v32  ;;  %vm4869_vm3 = vcmp.eq.f32.partialorder %v11897_v24, inf }
 0x708   :  { %v5737_v37 = vpop.eup %5736  ;;  %v4826_v42 = vmul.f32 %v5735_v55, %v4809_v29  ;;  %5756 = vrsqrt.f32 %v11922_v47  ;;  %vm4871_vm11 = vcmp.eq.f32.partialorder %v11897_v24, 0.0  ;;  %v4872_v0 = vand.u32 2147483648, %v11897_v24 }
 0x709   :  { %v5739_v34 = vpop.eup %5738  ;;  %v4833_v51 = vmul.f32 %v5737_v37, %v4810_v60  ;;  %vm4876_vm9 = vcmp.eq.f32.partialorder %v11899_v6, inf  ;;  %vm4878_vm12 = vcmp.eq.f32.partialorder %v11899_v6, 0.0  ;;  %5758 = vrsqrt.f32 %v11932_v38 }
 0x70a   :  { %v5741_v48 = vpop.eup %5740  ;;  %v4828_v30 = vsel %vm4827_vm14, %v4809_v29, %v4826_v42  ;;  %v4840_v13 = vmul.f32 %v5739_v34, %v11884_v59  ;;  %v4879_v20 = vand.u32 2147483648, %v11899_v6  ;;  %vm4883_vm14 = vcmp.eq.f32.partialorder %v11914_v62, inf }
 0x70b   :  { %v4831_v5 = vsel %vm4829_vm6, %v4830_v4, %v4828_v30  ;;  %v4835_v31 = vsel %vm4834_vm5, %v4810_v60, %v4833_v51  ;;  %v4847_v52 = vmul.f32 %v5741_v48, %v11886_v11  ;;  %v5743_v41 = vpop.eup %5742  ;;  %vm4885_vm6 = vcmp.eq.f32.partialorder %v11914_v62, 0.0 }
 0x70c   :  { %v4838_v22 = vsel %vm4836_vm13, %v4837_v33, %v4835_v31  ;;  %v4842_v2 = vsel %vm4841_vm10, %v11884_v59, %v4840_v13  ;;  %4937 = vst [vmem:[#allocation2] sm:$0xff] %v4831_v5  ;;  %v5745_v10 = vpop.eup %5744  ;;  %v4854_v15 = vmul.f32 %v5743_v41, %v11893_v3  ;;  %vm4890_vm5 = vcmp.eq.f32.partialorder %v11916_v27, inf }
 0x70d   :  { %v4845_v18 = vsel %vm4843_vm15, %v4844_v26, %v4842_v2  ;;  %v4849_v14 = vsel %vm4848_vm4, %v11886_v11, %v4847_v52  ;;  %4938 = vst [vmem:[#allocation2 + $0x8] sm:$0xff] %v4838_v22  ;;  %v5747_v50 = vpop.eup %5746  ;;  %v4861_v21 = vmul.f32 %v5745_v10, %v11895_v32  ;;  %vm4892_vm13 = vcmp.eq.f32.partialorder %v11916_v27, 0.0 }
 0x70e   :  { %v4852_v46 = vsel %vm4850_vm8, %v4851_v36, %v4849_v14  ;;  %4939 = vst [vmem:[#allocation2 + $0x10] sm:$0xff] %v4845_v18  ;;  %v5749_v40 = vpop.eup %5748  ;;  %v4856_v56 = vsel %vm4855_vm1, %v11893_v3, %v4854_v15  ;;  %v4868_v28 = vmul.f32 %v5747_v50, %v11897_v24  ;;  %vm4897_vm10 = vcmp.eq.f32.partialorder %v11922_v47, inf }
 0x70f   :  { %4940 = vst [vmem:[#allocation2 + $0x18] sm:$0xff] %v4852_v46  ;;  %v5751_v63 = vpop.eup %5750  ;;  %v4859_v54 = vsel %vm4857_vm0, %v4858_v61, %v4856_v56  ;;  %v4863_v57 = vsel %vm4862_vm2, %v11895_v32, %v4861_v21  ;;  %v4875_v45 = vmul.f32 %v5749_v40, %v11899_v6  ;;  %v4886_v32 = vand.u32 2147483648, %v11914_v62 }
 0x710   :  { %v4866_v44 = vsel %vm4864_vm7, %v4865_v25, %v4863_v57  ;;  %v4870_v29 = vsel %vm4869_vm3, %v11897_v24, %v4868_v28  ;;  %4941 = vst [vmem:[#allocation2 + $0x20] sm:$0xff] %v4859_v54  ;;  %v4805_v60 = vmul.f32 %v5751_v63, %v11865_v12  ;;  %v4806_v59 = vmul.f32 %v5751_v63, %v11868_v8  ;;  %v5753_v11 = vpop.eup %5752 }
 0x711   :  { %v4873_v39 = vsel %vm4871_vm11, %v4872_v0, %v4870_v29  ;;  %v4877_v17 = vsel %vm4876_vm9, %v11899_v6, %v4875_v45  ;;  %4942 = vst [vmem:[#allocation2 + $0x28] sm:$0xff] %v4866_v44  ;;  %v4807_v58 = vmul.f32 %v5751_v63, %v11871_v9  ;;  %v4808_v49 = vmul.f32 %v5751_v63, %v11875_v19  ;;  %v5755_v53 = vpop.eup %5754 }
 0x712   :  { %v4880_v43 = vsel %vm4878_vm12, %v4879_v20, %v4877_v17  ;;  %4943 = vst [vmem:[#allocation2 + $0x30] sm:$0xff] %v4873_v39  ;;  %v4882_v12 = vmul.f32 %v5753_v11, %v11914_v62  ;;  %v4821_v8 = vadd.f32 1e-08, %v4805_v60  ;;  %v4822_v3 = vadd.f32 1e-08, %v4806_v59  ;;  %v5757_v6 = vpop.eup %5756 }
 0x713   :  { %4944 = vst [vmem:[#allocation2 + $0x38] sm:$0xff] %v4880_v43  ;;  %v4889_v24 = vmul.f32 %v5755_v53, %v11916_v27  ;;  %v4823_v4 = vadd.f32 1e-08, %v4807_v58  ;;  %v4893_v19 = vand.u32 2147483648, %v11916_v27  ;;  %v4824_v7 = vadd.f32 1e-08, %v4808_v49  ;;  %v5759_v26 = vpop.eup %5758 }
 0x714   :  { %v4884_v9 = vsel %vm4883_vm14, %v11914_v62, %v4882_v12  ;;  %5760 = vrsqrt.f32 %v4821_v8  ;;  %v4896_v16 = vmul.f32 %v5757_v6, %v11922_v47  ;;  %v4900_v55 = vand.u32 2147483648, %v11922_v47 }
 0x715   :  { %v4887_v35 = vsel %vm4885_vm6, %v4886_v32, %v4884_v9  ;;  %v4891_v1 = vsel %vm4890_vm5, %v11916_v27, %v4889_v24  ;;  %5762 = vrsqrt.f32 %v4822_v3  ;;  %vm4899_vm15 = vcmp.eq.f32.partialorder %v11922_v47, 0.0 }
 0x716   :  { %v4894_v33 = vsel %vm4892_vm13, %v4893_v19, %v4891_v1  ;;  %4945 = vst [vmem:[#allocation2 + $0x40] sm:$0xff] %v4887_v35  ;;  %5764 = vrsqrt.f32 %v4823_v4  ;;  %v4898_v23 = vsel %vm4897_vm10, %v11922_v47, %v4896_v16  ;;  %v4903_v62 = vmul.f32 %v5759_v26, %v11932_v38 }
 0x717   :  { %4946 = vst [vmem:[#allocation2 + $0x48] sm:$0xff] %v4894_v33  ;;  %5766 = vrsqrt.f32 %v4824_v7  ;;  %v4901_v27 = vsel %vm4899_vm15, %v4900_v55, %v4898_v23  ;;  %vm4904_vm4 = vcmp.eq.f32.partialorder %v11932_v38, inf  ;;  %v4907_v37 = vand.u32 2147483648, %v11932_v38 }
 0x718   :  { %v4905_v42 = vsel %vm4904_vm4, %v11932_v38, %v4903_v62  ;;  %vm4906_vm8 = vcmp.eq.f32.partialorder %v11932_v38, 0.0  ;;  %4947 = vst [vmem:[#allocation2 + $0x50] sm:$0xff] %v4901_v27  ;;  %vm4911_vm1 = vcmp.eq.f32.partialorder %v4821_v8, inf  ;;  %v4914_v47 = vand.u32 2147483648, %v4821_v8 }
 0x719   :  { %v4908_v36 = vsel %vm4906_vm8, %v4907_v37, %v4905_v42  ;;  %vm4913_vm0 = vcmp.eq.f32.partialorder %v4821_v8, 0.0  ;;  %vm4918_vm2 = vcmp.eq.f32.partialorder %v4822_v3, inf  ;;  %v4921_v5 = vand.u32 2147483648, %v4822_v3 }
 0x71a   :  { %4948 = vst [vmem:[#allocation2 + $0x58] sm:$0xff] %v4908_v36  ;;  %vm4920_vm7 = vcmp.eq.f32.partialorder %v4822_v3, 0.0  ;;  %vm4925_vm3 = vcmp.eq.f32.partialorder %v4823_v4, inf  ;;  %v4928_v25 = vand.u32 2147483648, %v4823_v4  ;;  %vm4927_vm11 = vcmp.eq.f32.partialorder %v4823_v4, 0.0 }
 0x71b   :  { %vm4932_vm9 = vcmp.eq.f32.partialorder %v4824_v7, inf  ;;  %v4935_v14 = vand.u32 2147483648, %v4824_v7  ;;  %vm4934_vm12 = vcmp.eq.f32.partialorder %v4824_v7, 0.0 }
 0x71e   :  { %v5761_v34 = vpop.eup %5760 }
 0x71f   :  { %v5763_v51 = vpop.eup %5762  ;;  %v4910_v61 = vmul.f32 %v5761_v34, %v4821_v8 }
 0x720   :  { %v4917_v48 = vmul.f32 %v5763_v51, %v4822_v3  ;;  %v5765_v30 = vpop.eup %5764 }
 0x721   :  { %v4912_v13 = vsel %vm4911_vm1, %v4821_v8, %v4910_v61  ;;  %v5767_v31 = vpop.eup %5766  ;;  %v4924_v2 = vmul.f32 %v5765_v30, %v4823_v4 }
 0x722   :  { %v4915_v52 = vsel %vm4913_vm0, %v4914_v47, %v4912_v13  ;;  %v4919_v22 = vsel %vm4918_vm2, %v4822_v3, %v4917_v48  ;;  %v4931_v41 = vmul.f32 %v5767_v31, %v4824_v7 }
 0x723   :  { %v4922_v38 = vsel %vm4920_vm7, %v4921_v5, %v4919_v22  ;;  %4949 = vst [vmem:[#allocation2 + $0x60] sm:$0xff] %v4915_v52  ;;  %v4926_v18 = vsel %vm4925_vm3, %v4823_v4, %v4924_v2 }
 0x724   :  { %4950 = vst [vmem:[#allocation2 + $0x68] sm:$0xff] %v4922_v38  ;;  %v4929_v10 = vsel %vm4927_vm11, %v4928_v25, %v4926_v18  ;;  %v4933_v46 = vsel %vm4932_vm9, %v4824_v7, %v4931_v41 }
 0x725   :  { %v4936_v15 = vsel %vm4934_vm12, %v4935_v14, %v4933_v46  ;;  %4951 = vst [vmem:[#allocation2 + $0x70] sm:$0xff] %v4929_v10 }
 0x726   :  { %4952 = vst [vmem:[#allocation2 + $0x78] sm:$0xff] %v4936_v15 }
 0x727   :  { %5782 = shalt.err (!%p5779_p4)
}
 0x728   :  { %s5783_s19 = scalar_lea.hbm %s12023_s3, 2048 }
 0x729   :  { %p5784_p5 = scmp.ne.s32.totalorder %s12023_s3, %s5783_s19  ;;  %p5787_p6 = scmp.lt.u32.totalorder %s5783_s19, %s12023_s3 }
 0x72b   :  { %p5789_p7 = pnand %p5787_p6, %p5784_p5 }
 0x72d   :  { %5792 = shalt.err (!%p5789_p7)
}
 0x72e   :  { %s5801_s24 = smov 512  }
 0x72f   :  { %4964 = dma.vmem_to_hbm [thread:$0]  %s4959_s14, 2048, %s12023_s3, [#allocation3], %s5801_s24, %s5801_s24, %s5798_s27  }
 0x730   :  { %5793 = dma.done.wait [#allocation3], 2048  }
 0x731   :  { %5794 = vsyncadd [#allocation3], 4294965248 }
 0x732   :  { %4968 = vsyncpa [#allocation3], 1 }

</bundles_post_ra>
